<compile_context>
chip_gen: v5e
topology: v5e:2x2
jax: 0.10.0
libtpu: 0.0.40
codegen_flags: <defaults>
</compile_context>

<pallas_src>
import math

import jax
import jax.numpy as jnp
from jax.experimental import pallas as pl
from jax.experimental.pallas import tpu as pltpu


INPUT_DIM = 9
HIDDEN_DIM = 64
OUTPUT_DIM = 3
HIDDEN_PAD = 128          # each gate padded to one full 128-lane vreg


def lstm_kernel(xaug_ref,    # [T*B, D_in+1]  (trailing column == 1.0; matmul dtype)
                wih1_ref,    # [D_in+1, Gp]   W_ih1^T gate-padded, 0.5-scaled i/f/o,
                             #                last row = (b_ih1 + b_hh1)
                wblk_ref,    # [2*Hp, 3*Gp]   block-diag [[W_hh1^T | W_ih2^T, 0],
                             #                            [0,              W_hh2^T]]
                consts_ref,  # [4, Gp] f32    rows: b2 | bout(pad) | gate_scale | gate_offset
                wout_ref,    # [Hp, D_out]    row-padded W_out^T (f32)
                out_ref,     # [B, D_out]
                xw_ref):     # [T*B, Gp] f32  VMEM scratch for the prologue projection
    TB = xaug_ref.shape[0]
    B, Dout = out_ref.shape
    T = TB // B
    Hp = wblk_ref.shape[0] // 2
    Gp = wblk_ref.shape[1] // 3
    mdt = wblk_ref.dtype                       # matmul operand dtype (bf16 or f32)

    # ---- prologue: ONE carry-independent matmul for all T input projections.
    #      Layer-1 bias rides in via the ones column of xaug / last row of wih1.
    xw_ref[...] = jnp.dot(xaug_ref[...], wih1_ref[...],
                          preferred_element_type=jnp.float32)      # [T*B, Gp]

    wblk = wblk_ref[...]
    # Hoisted broadcasts (no per-step broadcast_in_dim inside the loop).
    b2b  = jnp.broadcast_to(consts_ref[0:1, :], (B, Gp))
    gsc  = jnp.broadcast_to(consts_ref[2:3, :], (B, Gp))           # 0.5 (i,f,o) / 1.0 (g)
    goff = jnp.broadcast_to(consts_ref[3:4, :], (B, Gp))           # 0.5 (i,f,o) / 0.0 (g)

    def gates_to_hc(pre, c):
        # pre already carries the 0.5 pre-scale on i/f/o columns (baked into the
        # weights), so ONE tanh over the whole [B, Gp] tile + ONE lane-constant
        # FMA implements sigmoid for i/f/o and tanh for g.  Gate slices are
        # 128-lane aligned -> pure vreg slices, no cross-lane XLU work.
        act = gsc * jnp.tanh(pre) + goff
        i = act[:, 0 * Hp:1 * Hp]
        f = act[:, 1 * Hp:2 * Hp]
        g = act[:, 2 * Hp:3 * Hp]
        o = act[:, 3 * Hp:4 * Hp]
        c_new = i * g if c is None else f * c + i * g              # c is None <=> c == 0
        return o * jnp.tanh(c_new), c_new

    h2 = jnp.zeros((B, Hp), jnp.float32)
    c1 = c2 = rec1 = None                      # t = 0 peeled: no zeros_g add, no f*0

    # Fully unrolled time loop: ONE fused MXU matmul per step on the serial chain.
    # TODO(synk): for long sequences, switch to an in-kernel lax.fori_loop with the
    # xw slab resident in VMEM (carries in scratch); only move T to the pallas grid
    # once the slab exceeds the VMEM budget (64 MiB on v7x).
    for t in range(T):
        xw_t = xw_ref[t * B:(t + 1) * B, :]                         # [B, Gp] reload
        pre1 = xw_t if rec1 is None else xw_t + rec1
        h1, c1 = gates_to_hc(pre1, c1)

        # Fused recurrent matmul: [rec1 | inp2 | hr2] from z = [h1_t | h2_{t-1}].
        z = jnp.concatenate([h1, h2], axis=1).astype(mdt)           # [B, 2*Hp]
        big = jnp.dot(z, wblk, preferred_element_type=jnp.float32)  # [B, 3*Gp]
        rec1 = big[:, 0 * Gp:1 * Gp]       # layer-1 recurrent pre-act for step t+1
        inp2 = big[:, 1 * Gp:2 * Gp]       # layer-2 input pre-act for this step
        if t == 0:                          # hr2 == 0 at t = 0 (h2_init == 0)
            pre2 = inp2 + b2b
        else:
            pre2 = inp2 + big[:, 2 * Gp:3 * Gp] + b2b
        h2, c2 = gates_to_hc(pre2, c2)

    # Output linear head (padded h2 lanes are exactly zero -> no leakage).
    out_ref[...] = (jnp.dot(h2, wout_ref[...], preferred_element_type=jnp.float32)
                    + consts_ref[1:2, :Dout])


# ---------------------------------------------------------------------------
# Wrapper-side weight preparation (one-time, plain JAX)
# ---------------------------------------------------------------------------

def _pad_gate_cols(w_t, H, Hp):
    """w_t: [D, 4H] (already transposed) -> [D, 4*Hp]; each gate block zero-padded."""
    D = w_t.shape[0]
    out = jnp.zeros((D, 4 * Hp), w_t.dtype)
    for k in range(4):
        out = out.at[:, k * Hp:k * Hp + H].set(w_t[:, k * H:(k + 1) * H])
    return out


def _pad_gate_bias(b, H, Hp):
    """b: [4H] -> [1, 4*Hp]; padded lanes zero."""
    out = jnp.zeros((1, 4 * Hp), b.dtype)
    for k in range(4):
        out = out.at[0, k * Hp:k * Hp + H].set(b[k * H:(k + 1) * H])
    return out


def _pad_rows(w, Hp):
    """w: [H, G] -> [Hp, G]; padded rows zero."""
    H, G = w.shape
    return jnp.zeros((Hp, G), w.dtype).at[:H, :].set(w)


def _scale_ifo_cols(w, Hp):
    """Bake the 0.5 pre-scale of sigmoid(x)=0.5*tanh(0.5*x)+0.5 into i/f/o columns."""
    scale = jnp.ones((1, 4 * Hp), w.dtype)
    scale = scale.at[:, 0:2 * Hp].set(0.5)        # i, f
    scale = scale.at[:, 3 * Hp:4 * Hp].set(0.5)   # o
    return w * scale


def init_params(key, input_dim=INPUT_DIM, hidden_dim=HIDDEN_DIM,
                output_dim=OUTPUT_DIM):
    """Deterministic init mimicking PyTorch's U(-1/sqrt(H), 1/sqrt(H))."""
    bound = 1.0 / math.sqrt(hidden_dim)
    ks = jax.random.split(key, 10)
    u = lambda k, shape: jax.random.uniform(k, shape, jnp.float32, -bound, bound)

    p = {}
    # nn.LSTMCell layer 1
    p["w_ih1"] = u(ks[0], (4 * hidden_dim, input_dim))
    p["w_hh1"] = u(ks[1], (4 * hidden_dim, hidden_dim))
    p["b_ih1"] = u(ks[2], (4 * hidden_dim,))
    p["b_hh1"] = u(ks[3], (4 * hidden_dim,))
    # nn.LSTMCell layer 2
    p["w_ih2"] = u(ks[4], (4 * hidden_dim, hidden_dim))
    p["w_hh2"] = u(ks[5], (4 * hidden_dim, hidden_dim))
    p["b_ih2"] = u(ks[6], (4 * hidden_dim,))
    p["b_hh2"] = u(ks[7], (4 * hidden_dim,))
    # nn.Linear head
    p["w_out"] = u(ks[8], (output_dim, hidden_dim))
    p["b_out"] = u(ks[9], (output_dim,))
    return p


def lstm_model_forward(x, params, hidden_pad=HIDDEN_PAD, matmul_dtype=jnp.bfloat16):
    """x: [B, T, D_in] f32 -> out: [B, 1, D_out] f32 (matches the PyTorch module).

    matmul_dtype: dtype of MXU operands (weights / h / x).  bf16 gives single-pass
    MXU issue on v5e/v6e/v7x and halves weight DMA; all elementwise math stays f32.
    Set hidden_pad=64 on v5e to avoid doubling matmul column tiles.
    """
    B, T, Din = x.shape
    H = params["w_hh1"].shape[1]
    Dout = params["w_out"].shape[0]
    Hp = max(hidden_pad, H)
    Gp = 4 * Hp
    f32 = jnp.float32

    # Activations: time-major, flattened, trailing ones column folds the layer-1 bias
    # into the single prologue matmul (row t*B + b == x[b, t]).
    x_flat = jnp.transpose(x, (1, 0, 2)).reshape(T * B, Din)
    xaug = jnp.concatenate([x_flat, jnp.ones((T * B, 1), f32)], axis=1).astype(matmul_dtype)

    # Layer-1 input projection (+ folded bias), gate-padded, 0.5-scaled i/f/o columns.
    wih1_p = _scale_ifo_cols(_pad_gate_cols(params["w_ih1"].T, H, Hp), Hp)      # [Din, Gp]
    b1 = _scale_ifo_cols(_pad_gate_bias(params["b_ih1"] + params["b_hh1"], H, Hp), Hp)
    wih1_aug = jnp.concatenate([wih1_p, b1], axis=0).astype(matmul_dtype)       # [Din+1, Gp]

    # Block-diagonal recurrent weight: one matmul/step gives [rec1 | inp2 | hr2].
    whh1_p = _pad_rows(_scale_ifo_cols(_pad_gate_cols(params["w_hh1"].T, H, Hp), Hp), Hp)
    wih2_p = _pad_rows(_scale_ifo_cols(_pad_gate_cols(params["w_ih2"].T, H, Hp), Hp), Hp)
    whh2_p = _pad_rows(_scale_ifo_cols(_pad_gate_cols(params["w_hh2"].T, H, Hp), Hp), Hp)
    wblk = jnp.zeros((2 * Hp, 3 * Gp), f32)
    wblk = wblk.at[:Hp, 0 * Gp:1 * Gp].set(whh1_p)
    wblk = wblk.at[:Hp, 1 * Gp:2 * Gp].set(wih2_p)
    wblk = wblk.at[Hp:, 2 * Gp:3 * Gp].set(whh2_p)
    wblk = wblk.astype(matmul_dtype)                                            # [2Hp, 3Gp]

    # Small constants packed into ONE operand: b2 | bout | gate_scale | gate_offset.
    b2 = _scale_ifo_cols(_pad_gate_bias(params["b_ih2"] + params["b_hh2"], H, Hp), Hp)
    bout_row = jnp.zeros((1, Gp), f32).at[0, :Dout].set(params["b_out"])
    lane = jnp.arange(Gp)
    is_g = (lane >= 2 * Hp) & (lane < 3 * Hp)
    gsc_row = jnp.where(is_g, 1.0, 0.5)[None, :].astype(f32)
    goff_row = jnp.where(is_g, 0.0, 0.5)[None, :].astype(f32)
    consts = jnp.concatenate([b2, bout_row, gsc_row, goff_row], axis=0)         # [4, Gp]

    wout_p = _pad_rows(params["w_out"].T.astype(f32), Hp)                       # [Hp, Dout]

    # Single invocation, all operands resident in VMEM (total footprint ~1 MiB).
    # TODO(synk): for large batch, add a leading grid axis over B with
    # dimension_semantics=("parallel",) to use both v7x TensorCores; at B=2 a single
    # grid point is correct and avoids per-step pipeline overhead.
    out = pl.pallas_call(
        lstm_kernel,
        out_shape=jax.ShapeDtypeStruct((B, Dout), jnp.float32),
        in_specs=[pl.BlockSpec(memory_space=pltpu.MemorySpace.VMEM)] * 5,
        out_specs=pl.BlockSpec(memory_space=pltpu.MemorySpace.VMEM),
        scratch_shapes=[pltpu.VMEM((T * B, Gp), jnp.float32)],
    )(xaug, wih1_aug, wblk, consts, wout_p)

    return out[:, None, :]                                                      # [B, 1, D_out]


def lstm_model_reference(x, params):
    """Pure-JAX reference reproducing torch.nn.LSTMCell semantics."""
    B, T, _ = x.shape
    H = params["w_hh1"].shape[1]

    def cell(x_t, h, c, w_ih, w_hh, b_ih, b_hh):
        gates = x_t @ w_ih.T + b_ih + h @ w_hh.T + b_hh
        i, f, g, o = jnp.split(gates, 4, axis=1)
        i, f, o = jax.nn.sigmoid(i), jax.nn.sigmoid(f), jax.nn.sigmoid(o)
        g = jnp.tanh(g)
        c_new = f * c + i * g
        return o * jnp.tanh(c_new), c_new

    h1 = c1 = h2 = c2 = jnp.zeros((B, H), jnp.float32)
    for t in range(T):
        h1, c1 = cell(x[:, t, :], h1, c1, params["w_ih1"], params["w_hh1"],
                      params["b_ih1"], params["b_hh1"])
        h2, c2 = cell(h1, h2, c2, params["w_ih2"], params["w_hh2"],
                      params["b_ih2"], params["b_hh2"])
    out = h2 @ params["w_out"].T + params["b_out"]
    return out[:, None, :]


if __name__ == "__main__":
    key = jax.random.PRNGKey(0)
    k_param, k_x = jax.random.split(key)

    B, T = 2, 8
    params = init_params(k_param)
    x = jax.random.normal(k_x, (B, T, INPUT_DIM), dtype=jnp.float32)

    ref = lstm_model_reference(x, params)

    # Bit-faithful variant (f32 MXU operands) -> tight tolerance vs the reference.
    out_f32 = jax.block_until_ready(lstm_model_forward(x, params, matmul_dtype=jnp.float32))
    assert out_f32.shape == (B, 1, OUTPUT_DIM)
    assert jnp.allclose(out_f32, ref, atol=1e-4, rtol=1e-4), "f32 mismatch vs reference"

    # Default fast variant (bf16 MXU operands, f32 accumulation / elementwise) ->
    # slightly looser tolerance against the f32 reference.
    out = jax.block_until_ready(lstm_model_forward(x, params))
    assert out.shape == (B, 1, OUTPUT_DIM)
    assert jnp.allclose(out, ref, atol=3e-2, rtol=3e-2), "bf16 mismatch vs reference"

    print("KERNEL_OK")
</pallas_src>

<mosaic_0001>
module attributes {stable_mosaic.version = 11 : i64} {
  func.func @lstm_kernel(%arg0: memref<16x10xf32, #tpu.memory_space<vmem>>, %arg1: memref<10x512xf32, #tpu.memory_space<vmem>>, %arg2: memref<256x1536xf32, #tpu.memory_space<vmem>>, %arg3: memref<4x512xf32, #tpu.memory_space<vmem>>, %arg4: memref<128x3xf32, #tpu.memory_space<vmem>>, %arg5: memref<2x3xf32, #tpu.memory_space<vmem>>, %arg6: memref<16x512xf32, #tpu.memory_space<vmem>>) attributes {dimension_semantics = [], scalar_prefetch = 0 : i64, scratch_operands = 1 : i64, tpu.core_type = #tpu.core_type<tc>} {
    %c0 = arith.constant 0 : index
    %c0_0 = arith.constant 0 : index
    %0 = vector.load %arg0[%c0, %c0_0] : memref<16x10xf32, #tpu.memory_space<vmem>>, vector<16x10xf32>
    %c0_1 = arith.constant 0 : index
    %c0_2 = arith.constant 0 : index
    %1 = vector.load %arg1[%c0_1, %c0_2] : memref<10x512xf32, #tpu.memory_space<vmem>>, vector<10x512xf32>
    %cst = arith.constant dense<0.000000e+00> : vector<16x512xf32>
    %2 = tpu.matmul %0, %1, %cst {dimension_numbers = #tpu.dot_dimension_numbers<[1], [0], [0], [1], [0, 0, 1, 1], [], []>} : vector<16x10xf32>, vector<10x512xf32>, vector<16x512xf32> -> vector<16x512xf32>
    %c0_3 = arith.constant 0 : index
    %c0_4 = arith.constant 0 : index
    %3 = vector.load %arg6[%c0_3, %c0_4] : memref<16x512xf32, #tpu.memory_space<vmem>>, vector<16x512xf32>
    tpu.vector_store %arg6[%c0_3, %c0_4], %2 {strides = array<i32>} : memref<16x512xf32, #tpu.memory_space<vmem>>, vector<16x512xf32>,
    %c0_5 = arith.constant 0 : index
    %c0_6 = arith.constant 0 : index
    %4 = vector.load %arg2[%c0_5, %c0_6] : memref<256x1536xf32, #tpu.memory_space<vmem>>, vector<256x1536xf32>
    %c0_7 = arith.constant 0 : index
    %c0_8 = arith.constant 0 : index
    %5 = vector.load %arg3[%c0_7, %c0_8] : memref<4x512xf32, #tpu.memory_space<vmem>>, vector<1x512xf32>
    %6 = vector.shape_cast %5 : vector<1x512xf32> to vector<1x512xf32>
    %7 = vector.broadcast %6 : vector<1x512xf32> to vector<2x512xf32>
    %c2 = arith.constant 2 : index
    %c0_9 = arith.constant 0 : index
    %8 = vector.load %arg3[%c2, %c0_9] : memref<4x512xf32, #tpu.memory_space<vmem>>, vector<1x512xf32>
    %9 = vector.shape_cast %8 : vector<1x512xf32> to vector<1x512xf32>
    %10 = vector.broadcast %9 : vector<1x512xf32> to vector<2x512xf32>
    %c3 = arith.constant 3 : index
    %c0_10 = arith.constant 0 : index
    %11 = vector.load %arg3[%c3, %c0_10] : memref<4x512xf32, #tpu.memory_space<vmem>>, vector<1x512xf32>
    %12 = vector.shape_cast %11 : vector<1x512xf32> to vector<1x512xf32>
    %13 = vector.broadcast %12 : vector<1x512xf32> to vector<2x512xf32>
    %cst_11 = arith.constant 0.000000e+00 : f32
    %14 = vector.broadcast %cst_11 : f32 to vector<2x128xf32>
    %c0_12 = arith.constant 0 : index
    %c0_13 = arith.constant 0 : index
    %15 = vector.load %arg6[%c0_12, %c0_13] : memref<16x512xf32, #tpu.memory_space<vmem>>, vector<2x512xf32>
    %16 = math.tanh %15 : vector<2x512xf32>
    %17 = arith.mulf %10, %16 : vector<2x512xf32>
    %18 = arith.addf %17, %13 : vector<2x512xf32>
    %19 = vector.extract_strided_slice %18 {offsets = [0, 0], sizes = [2, 128], strides = [1, 1]} : vector<2x512xf32> to vector<2x128xf32>
    %20 = vector.extract_strided_slice %18 {offsets = [0, 256], sizes = [2, 128], strides = [1, 1]} : vector<2x512xf32> to vector<2x128xf32>
    %21 = vector.extract_strided_slice %18 {offsets = [0, 384], sizes = [2, 128], strides = [1, 1]} : vector<2x512xf32> to vector<2x128xf32>
    %22 = arith.mulf %19, %20 : vector<2x128xf32>
    %23 = math.tanh %22 : vector<2x128xf32>
    %24 = arith.mulf %21, %23 : vector<2x128xf32>
    %25 = tpu.concatenate %24, %14 in 1 : vector<2x128xf32>, vector<2x128xf32> -> vector<2x256xf32>
    %cst_14 = arith.constant dense<0.000000e+00> : vector<2x1536xf32>
    %26 = tpu.matmul %25, %4, %cst_14 {dimension_numbers = #tpu.dot_dimension_numbers<[1], [0], [0], [1], [0, 0, 1, 1], [], []>} : vector<2x256xf32>, vector<256x1536xf32>, vector<2x1536xf32> -> vector<2x1536xf32>
    %27 = vector.extract_strided_slice %26 {offsets = [0, 0], sizes = [2, 512], strides = [1, 1]} : vector<2x1536xf32> to vector<2x512xf32>
    %28 = vector.extract_strided_slice %26 {offsets = [0, 512], sizes = [2, 512], strides = [1, 1]} : vector<2x1536xf32> to vector<2x512xf32>
    %29 = arith.addf %28, %7 : vector<2x512xf32>
    %30 = math.tanh %29 : vector<2x512xf32>
    %31 = arith.mulf %10, %30 : vector<2x512xf32>
    %32 = arith.addf %31, %13 : vector<2x512xf32>
    %33 = vector.extract_strided_slice %32 {offsets = [0, 0], sizes = [2, 128], strides = [1, 1]} : vector<2x512xf32> to vector<2x128xf32>
    %34 = vector.extract_strided_slice %32 {offsets = [0, 256], sizes = [2, 128], strides = [1, 1]} : vector<2x512xf32> to vector<2x128xf32>
    %35 = vector.extract_strided_slice %32 {offsets = [0, 384], sizes = [2, 128], strides = [1, 1]} : vector<2x512xf32> to vector<2x128xf32>
    %36 = arith.mulf %33, %34 : vector<2x128xf32>
    %37 = math.tanh %36 : vector<2x128xf32>
    %38 = arith.mulf %35, %37 : vector<2x128xf32>
    %c2_15 = arith.constant 2 : index
    %c0_16 = arith.constant 0 : index
    %39 = vector.load %arg6[%c2_15, %c0_16] : memref<16x512xf32, #tpu.memory_space<vmem>>, vector<2x512xf32>
    %40 = arith.addf %39, %27 : vector<2x512xf32>
    %41 = math.tanh %40 : vector<2x512xf32>
    %42 = arith.mulf %10, %41 : vector<2x512xf32>
    %43 = arith.addf %42, %13 : vector<2x512xf32>
    %44 = vector.extract_strided_slice %43 {offsets = [0, 0], sizes = [2, 128], strides = [1, 1]} : vector<2x512xf32> to vector<2x128xf32>
    %45 = vector.extract_strided_slice %43 {offsets = [0, 128], sizes = [2, 128], strides = [1, 1]} : vector<2x512xf32> to vector<2x128xf32>
    %46 = vector.extract_strided_slice %43 {offsets = [0, 256], sizes = [2, 128], strides = [1, 1]} : vector<2x512xf32> to vector<2x128xf32>
    %47 = vector.extract_strided_slice %43 {offsets = [0, 384], sizes = [2, 128], strides = [1, 1]} : vector<2x512xf32> to vector<2x128xf32>
    %48 = arith.mulf %45, %22 : vector<2x128xf32>
    %49 = arith.mulf %44, %46 : vector<2x128xf32>
    %50 = arith.addf %48, %49 : vector<2x128xf32>
    %51 = math.tanh %50 : vector<2x128xf32>
    %52 = arith.mulf %47, %51 : vector<2x128xf32>
    %53 = tpu.concatenate %52, %38 in 1 : vector<2x128xf32>, vector<2x128xf32> -> vector<2x256xf32>
    %cst_17 = arith.constant dense<0.000000e+00> : vector<2x1536xf32>
    %54 = tpu.matmul %53, %4, %cst_17 {dimension_numbers = #tpu.dot_dimension_numbers<[1], [0], [0], [1], [0, 0, 1, 1], [], []>} : vector<2x256xf32>, vector<256x1536xf32>, vector<2x1536xf32> -> vector<2x1536xf32>
    %55 = vector.extract_strided_slice %54 {offsets = [0, 0], sizes = [2, 512], strides = [1, 1]} : vector<2x1536xf32> to vector<2x512xf32>
    %56 = vector.extract_strided_slice %54 {offsets = [0, 512], sizes = [2, 512], strides = [1, 1]} : vector<2x1536xf32> to vector<2x512xf32>
    %57 = vector.extract_strided_slice %54 {offsets = [0, 1024], sizes = [2, 512], strides = [1, 1]} : vector<2x1536xf32> to vector<2x512xf32>
    %58 = arith.addf %56, %57 : vector<2x512xf32>
    %59 = arith.addf %58, %7 : vector<2x512xf32>
    %60 = math.tanh %59 : vector<2x512xf32>
    %61 = arith.mulf %10, %60 : vector<2x512xf32>
    %62 = arith.addf %61, %13 : vector<2x512xf32>
    %63 = vector.extract_strided_slice %62 {offsets = [0, 0], sizes = [2, 128], strides = [1, 1]} : vector<2x512xf32> to vector<2x128xf32>
    %64 = vector.extract_strided_slice %62 {offsets = [0, 128], sizes = [2, 128], strides = [1, 1]} : vector<2x512xf32> to vector<2x128xf32>
    %65 = vector.extract_strided_slice %62 {offsets = [0, 256], sizes = [2, 128], strides = [1, 1]} : vector<2x512xf32> to vector<2x128xf32>
    %66 = vector.extract_strided_slice %62 {offsets = [0, 384], sizes = [2, 128], strides = [1, 1]} : vector<2x512xf32> to vector<2x128xf32>
    %67 = arith.mulf %64, %36 : vector<2x128xf32>
    %68 = arith.mulf %63, %65 : vector<2x128xf32>
    %69 = arith.addf %67, %68 : vector<2x128xf32>
    %70 = math.tanh %69 : vector<2x128xf32>
    %71 = arith.mulf %66, %70 : vector<2x128xf32>
    %c4 = arith.constant 4 : index
    %c0_18 = arith.constant 0 : index
    %72 = vector.load %arg6[%c4, %c0_18] : memref<16x512xf32, #tpu.memory_space<vmem>>, vector<2x512xf32>
    %73 = arith.addf %72, %55 : vector<2x512xf32>
    %74 = math.tanh %73 : vector<2x512xf32>
    %75 = arith.mulf %10, %74 : vector<2x512xf32>
    %76 = arith.addf %75, %13 : vector<2x512xf32>
    %77 = vector.extract_strided_slice %76 {offsets = [0, 0], sizes = [2, 128], strides = [1, 1]} : vector<2x512xf32> to vector<2x128xf32>
    %78 = vector.extract_strided_slice %76 {offsets = [0, 128], sizes = [2, 128], strides = [1, 1]} : vector<2x512xf32> to vector<2x128xf32>
    %79 = vector.extract_strided_slice %76 {offsets = [0, 256], sizes = [2, 128], strides = [1, 1]} : vector<2x512xf32> to vector<2x128xf32>
    %80 = vector.extract_strided_slice %76 {offsets = [0, 384], sizes = [2, 128], strides = [1, 1]} : vector<2x512xf32> to vector<2x128xf32>
    %81 = arith.mulf %78, %50 : vector<2x128xf32>
    %82 = arith.mulf %77, %79 : vector<2x128xf32>
    %83 = arith.addf %81, %82 : vector<2x128xf32>
    %84 = math.tanh %83 : vector<2x128xf32>
    %85 = arith.mulf %80, %84 : vector<2x128xf32>
    %86 = tpu.concatenate %85, %71 in 1 : vector<2x128xf32>, vector<2x128xf32> -> vector<2x256xf32>
    %cst_19 = arith.constant dense<0.000000e+00> : vector<2x1536xf32>
    %87 = tpu.matmul %86, %4, %cst_19 {dimension_numbers = #tpu.dot_dimension_numbers<[1], [0], [0], [1], [0, 0, 1, 1], [], []>} : vector<2x256xf32>, vector<256x1536xf32>, vector<2x1536xf32> -> vector<2x1536xf32>
    %88 = vector.extract_strided_slice %87 {offsets = [0, 0], sizes = [2, 512], strides = [1, 1]} : vector<2x1536xf32> to vector<2x512xf32>
    %89 = vector.extract_strided_slice %87 {offsets = [0, 512], sizes = [2, 512], strides = [1, 1]} : vector<2x1536xf32> to vector<2x512xf32>
    %90 = vector.extract_strided_slice %87 {offsets = [0, 1024], sizes = [2, 512], strides = [1, 1]} : vector<2x1536xf32> to vector<2x512xf32>
    %91 = arith.addf %89, %90 : vector<2x512xf32>
    %92 = arith.addf %91, %7 : vector<2x512xf32>
    %93 = math.tanh %92 : vector<2x512xf32>
    %94 = arith.mulf %10, %93 : vector<2x512xf32>
    %95 = arith.addf %94, %13 : vector<2x512xf32>
    %96 = vector.extract_strided_slice %95 {offsets = [0, 0], sizes = [2, 128], strides = [1, 1]} : vector<2x512xf32> to vector<2x128xf32>
    %97 = vector.extract_strided_slice %95 {offsets = [0, 128], sizes = [2, 128], strides = [1, 1]} : vector<2x512xf32> to vector<2x128xf32>
    %98 = vector.extract_strided_slice %95 {offsets = [0, 256], sizes = [2, 128], strides = [1, 1]} : vector<2x512xf32> to vector<2x128xf32>
    %99 = vector.extract_strided_slice %95 {offsets = [0, 384], sizes = [2, 128], strides = [1, 1]} : vector<2x512xf32> to vector<2x128xf32>
    %100 = arith.mulf %97, %69 : vector<2x128xf32>
    %101 = arith.mulf %96, %98 : vector<2x128xf32>
    %102 = arith.addf %100, %101 : vector<2x128xf32>
    %103 = math.tanh %102 : vector<2x128xf32>
    %104 = arith.mulf %99, %103 : vector<2x128xf32>
    %c6 = arith.constant 6 : index
    %c0_20 = arith.constant 0 : index
    %105 = vector.load %arg6[%c6, %c0_20] : memref<16x512xf32, #tpu.memory_space<vmem>>, vector<2x512xf32>
    %106 = arith.addf %105, %88 : vector<2x512xf32>
    %107 = math.tanh %106 : vector<2x512xf32>
    %108 = arith.mulf %10, %107 : vector<2x512xf32>
    %109 = arith.addf %108, %13 : vector<2x512xf32>
    %110 = vector.extract_strided_slice %109 {offsets = [0, 0], sizes = [2, 128], strides = [1, 1]} : vector<2x512xf32> to vector<2x128xf32>
    %111 = vector.extract_strided_slice %109 {offsets = [0, 128], sizes = [2, 128], strides = [1, 1]} : vector<2x512xf32> to vector<2x128xf32>
    %112 = vector.extract_strided_slice %109 {offsets = [0, 256], sizes = [2, 128], strides = [1, 1]} : vector<2x512xf32> to vector<2x128xf32>
    %113 = vector.extract_strided_slice %109 {offsets = [0, 384], sizes = [2, 128], strides = [1, 1]} : vector<2x512xf32> to vector<2x128xf32>
    %114 = arith.mulf %111, %83 : vector<2x128xf32>
    %115 = arith.mulf %110, %112 : vector<2x128xf32>
    %116 = arith.addf %114, %115 : vector<2x128xf32>
    %117 = math.tanh %116 : vector<2x128xf32>
    %118 = arith.mulf %113, %117 : vector<2x128xf32>
    %119 = tpu.concatenate %118, %104 in 1 : vector<2x128xf32>, vector<2x128xf32> -> vector<2x256xf32>
    %cst_21 = arith.constant dense<0.000000e+00> : vector<2x1536xf32>
    %120 = tpu.matmul %119, %4, %cst_21 {dimension_numbers = #tpu.dot_dimension_numbers<[1], [0], [0], [1], [0, 0, 1, 1], [], []>} : vector<2x256xf32>, vector<256x1536xf32>, vector<2x1536xf32> -> vector<2x1536xf32>
    %121 = vector.extract_strided_slice %120 {offsets = [0, 0], sizes = [2, 512], strides = [1, 1]} : vector<2x1536xf32> to vector<2x512xf32>
    %122 = vector.extract_strided_slice %120 {offsets = [0, 512], sizes = [2, 512], strides = [1, 1]} : vector<2x1536xf32> to vector<2x512xf32>
    %123 = vector.extract_strided_slice %120 {offsets = [0, 1024], sizes = [2, 512], strides = [1, 1]} : vector<2x1536xf32> to vector<2x512xf32>
    %124 = arith.addf %122, %123 : vector<2x512xf32>
    %125 = arith.addf %124, %7 : vector<2x512xf32>
    %126 = math.tanh %125 : vector<2x512xf32>
    %127 = arith.mulf %10, %126 : vector<2x512xf32>
    %128 = arith.addf %127, %13 : vector<2x512xf32>
    %129 = vector.extract_strided_slice %128 {offsets = [0, 0], sizes = [2, 128], strides = [1, 1]} : vector<2x512xf32> to vector<2x128xf32>
    %130 = vector.extract_strided_slice %128 {offsets = [0, 128], sizes = [2, 128], strides = [1, 1]} : vector<2x512xf32> to vector<2x128xf32>
    %131 = vector.extract_strided_slice %128 {offsets = [0, 256], sizes = [2, 128], strides = [1, 1]} : vector<2x512xf32> to vector<2x128xf32>
    %132 = vector.extract_strided_slice %128 {offsets = [0, 384], sizes = [2, 128], strides = [1, 1]} : vector<2x512xf32> to vector<2x128xf32>
    %133 = arith.mulf %130, %102 : vector<2x128xf32>
    %134 = arith.mulf %129, %131 : vector<2x128xf32>
    %135 = arith.addf %133, %134 : vector<2x128xf32>
    %136 = math.tanh %135 : vector<2x128xf32>
    %137 = arith.mulf %132, %136 : vector<2x128xf32>
    %c8 = arith.constant 8 : index
    %c0_22 = arith.constant 0 : index
    %138 = vector.load %arg6[%c8, %c0_22] : memref<16x512xf32, #tpu.memory_space<vmem>>, vector<2x512xf32>
    %139 = arith.addf %138, %121 : vector<2x512xf32>
    %140 = math.tanh %139 : vector<2x512xf32>
    %141 = arith.mulf %10, %140 : vector<2x512xf32>
    %142 = arith.addf %141, %13 : vector<2x512xf32>
    %143 = vector.extract_strided_slice %142 {offsets = [0, 0], sizes = [2, 128], strides = [1, 1]} : vector<2x512xf32> to vector<2x128xf32>
    %144 = vector.extract_strided_slice %142 {offsets = [0, 128], sizes = [2, 128], strides = [1, 1]} : vector<2x512xf32> to vector<2x128xf32>
    %145 = vector.extract_strided_slice %142 {offsets = [0, 256], sizes = [2, 128], strides = [1, 1]} : vector<2x512xf32> to vector<2x128xf32>
    %146 = vector.extract_strided_slice %142 {offsets = [0, 384], sizes = [2, 128], strides = [1, 1]} : vector<2x512xf32> to vector<2x128xf32>
    %147 = arith.mulf %144, %116 : vector<2x128xf32>
    %148 = arith.mulf %143, %145 : vector<2x128xf32>
    %149 = arith.addf %147, %148 : vector<2x128xf32>
    %150 = math.tanh %149 : vector<2x128xf32>
    %151 = arith.mulf %146, %150 : vector<2x128xf32>
    %152 = tpu.concatenate %151, %137 in 1 : vector<2x128xf32>, vector<2x128xf32> -> vector<2x256xf32>
    %cst_23 = arith.constant dense<0.000000e+00> : vector<2x1536xf32>
    %153 = tpu.matmul %152, %4, %cst_23 {dimension_numbers = #tpu.dot_dimension_numbers<[1], [0], [0], [1], [0, 0, 1, 1], [], []>} : vector<2x256xf32>, vector<256x1536xf32>, vector<2x1536xf32> -> vector<2x1536xf32>
    %154 = vector.extract_strided_slice %153 {offsets = [0, 0], sizes = [2, 512], strides = [1, 1]} : vector<2x1536xf32> to vector<2x512xf32>
    %155 = vector.extract_strided_slice %153 {offsets = [0, 512], sizes = [2, 512], strides = [1, 1]} : vector<2x1536xf32> to vector<2x512xf32>
    %156 = vector.extract_strided_slice %153 {offsets = [0, 1024], sizes = [2, 512], strides = [1, 1]} : vector<2x1536xf32> to vector<2x512xf32>
    %157 = arith.addf %155, %156 : vector<2x512xf32>
    %158 = arith.addf %157, %7 : vector<2x512xf32>
    %159 = math.tanh %158 : vector<2x512xf32>
    %160 = arith.mulf %10, %159 : vector<2x512xf32>
    %161 = arith.addf %160, %13 : vector<2x512xf32>
    %162 = vector.extract_strided_slice %161 {offsets = [0, 0], sizes = [2, 128], strides = [1, 1]} : vector<2x512xf32> to vector<2x128xf32>
    %163 = vector.extract_strided_slice %161 {offsets = [0, 128], sizes = [2, 128], strides = [1, 1]} : vector<2x512xf32> to vector<2x128xf32>
    %164 = vector.extract_strided_slice %161 {offsets = [0, 256], sizes = [2, 128], strides = [1, 1]} : vector<2x512xf32> to vector<2x128xf32>
    %165 = vector.extract_strided_slice %161 {offsets = [0, 384], sizes = [2, 128], strides = [1, 1]} : vector<2x512xf32> to vector<2x128xf32>
    %166 = arith.mulf %163, %135 : vector<2x128xf32>
    %167 = arith.mulf %162, %164 : vector<2x128xf32>
    %168 = arith.addf %166, %167 : vector<2x128xf32>
    %169 = math.tanh %168 : vector<2x128xf32>
    %170 = arith.mulf %165, %169 : vector<2x128xf32>
    %c10 = arith.constant 10 : index
    %c0_24 = arith.constant 0 : index
    %171 = vector.load %arg6[%c10, %c0_24] : memref<16x512xf32, #tpu.memory_space<vmem>>, vector<2x512xf32>
    %172 = arith.addf %171, %154 : vector<2x512xf32>
    %173 = math.tanh %172 : vector<2x512xf32>
    %174 = arith.mulf %10, %173 : vector<2x512xf32>
    %175 = arith.addf %174, %13 : vector<2x512xf32>
    %176 = vector.extract_strided_slice %175 {offsets = [0, 0], sizes = [2, 128], strides = [1, 1]} : vector<2x512xf32> to vector<2x128xf32>
    %177 = vector.extract_strided_slice %175 {offsets = [0, 128], sizes = [2, 128], strides = [1, 1]} : vector<2x512xf32> to vector<2x128xf32>
    %178 = vector.extract_strided_slice %175 {offsets = [0, 256], sizes = [2, 128], strides = [1, 1]} : vector<2x512xf32> to vector<2x128xf32>
    %179 = vector.extract_strided_slice %175 {offsets = [0, 384], sizes = [2, 128], strides = [1, 1]} : vector<2x512xf32> to vector<2x128xf32>
    %180 = arith.mulf %177, %149 : vector<2x128xf32>
    %181 = arith.mulf %176, %178 : vector<2x128xf32>
    %182 = arith.addf %180, %181 : vector<2x128xf32>
    %183 = math.tanh %182 : vector<2x128xf32>
    %184 = arith.mulf %179, %183 : vector<2x128xf32>
    %185 = tpu.concatenate %184, %170 in 1 : vector<2x128xf32>, vector<2x128xf32> -> vector<2x256xf32>
    %cst_25 = arith.constant dense<0.000000e+00> : vector<2x1536xf32>
    %186 = tpu.matmul %185, %4, %cst_25 {dimension_numbers = #tpu.dot_dimension_numbers<[1], [0], [0], [1], [0, 0, 1, 1], [], []>} : vector<2x256xf32>, vector<256x1536xf32>, vector<2x1536xf32> -> vector<2x1536xf32>
    %187 = vector.extract_strided_slice %186 {offsets = [0, 0], sizes = [2, 512], strides = [1, 1]} : vector<2x1536xf32> to vector<2x512xf32>
    %188 = vector.extract_strided_slice %186 {offsets = [0, 512], sizes = [2, 512], strides = [1, 1]} : vector<2x1536xf32> to vector<2x512xf32>
    %189 = vector.extract_strided_slice %186 {offsets = [0, 1024], sizes = [2, 512], strides = [1, 1]} : vector<2x1536xf32> to vector<2x512xf32>
    %190 = arith.addf %188, %189 : vector<2x512xf32>
    %191 = arith.addf %190, %7 : vector<2x512xf32>
    %192 = math.tanh %191 : vector<2x512xf32>
    %193 = arith.mulf %10, %192 : vector<2x512xf32>
    %194 = arith.addf %193, %13 : vector<2x512xf32>
    %195 = vector.extract_strided_slice %194 {offsets = [0, 0], sizes = [2, 128], strides = [1, 1]} : vector<2x512xf32> to vector<2x128xf32>
    %196 = vector.extract_strided_slice %194 {offsets = [0, 128], sizes = [2, 128], strides = [1, 1]} : vector<2x512xf32> to vector<2x128xf32>
    %197 = vector.extract_strided_slice %194 {offsets = [0, 256], sizes = [2, 128], strides = [1, 1]} : vector<2x512xf32> to vector<2x128xf32>
    %198 = vector.extract_strided_slice %194 {offsets = [0, 384], sizes = [2, 128], strides = [1, 1]} : vector<2x512xf32> to vector<2x128xf32>
    %199 = arith.mulf %196, %168 : vector<2x128xf32>
    %200 = arith.mulf %195, %197 : vector<2x128xf32>
    %201 = arith.addf %199, %200 : vector<2x128xf32>
    %202 = math.tanh %201 : vector<2x128xf32>
    %203 = arith.mulf %198, %202 : vector<2x128xf32>
    %c12 = arith.constant 12 : index
    %c0_26 = arith.constant 0 : index
    %204 = vector.load %arg6[%c12, %c0_26] : memref<16x512xf32, #tpu.memory_space<vmem>>, vector<2x512xf32>
    %205 = arith.addf %204, %187 : vector<2x512xf32>
    %206 = math.tanh %205 : vector<2x512xf32>
    %207 = arith.mulf %10, %206 : vector<2x512xf32>
    %208 = arith.addf %207, %13 : vector<2x512xf32>
    %209 = vector.extract_strided_slice %208 {offsets = [0, 0], sizes = [2, 128], strides = [1, 1]} : vector<2x512xf32> to vector<2x128xf32>
    %210 = vector.extract_strided_slice %208 {offsets = [0, 128], sizes = [2, 128], strides = [1, 1]} : vector<2x512xf32> to vector<2x128xf32>
    %211 = vector.extract_strided_slice %208 {offsets = [0, 256], sizes = [2, 128], strides = [1, 1]} : vector<2x512xf32> to vector<2x128xf32>
    %212 = vector.extract_strided_slice %208 {offsets = [0, 384], sizes = [2, 128], strides = [1, 1]} : vector<2x512xf32> to vector<2x128xf32>
    %213 = arith.mulf %210, %182 : vector<2x128xf32>
    %214 = arith.mulf %209, %211 : vector<2x128xf32>
    %215 = arith.addf %213, %214 : vector<2x128xf32>
    %216 = math.tanh %215 : vector<2x128xf32>
    %217 = arith.mulf %212, %216 : vector<2x128xf32>
    %218 = tpu.concatenate %217, %203 in 1 : vector<2x128xf32>, vector<2x128xf32> -> vector<2x256xf32>
    %cst_27 = arith.constant dense<0.000000e+00> : vector<2x1536xf32>
    %219 = tpu.matmul %218, %4, %cst_27 {dimension_numbers = #tpu.dot_dimension_numbers<[1], [0], [0], [1], [0, 0, 1, 1], [], []>} : vector<2x256xf32>, vector<256x1536xf32>, vector<2x1536xf32> -> vector<2x1536xf32>
    %220 = vector.extract_strided_slice %219 {offsets = [0, 0], sizes = [2, 512], strides = [1, 1]} : vector<2x1536xf32> to vector<2x512xf32>
    %221 = vector.extract_strided_slice %219 {offsets = [0, 512], sizes = [2, 512], strides = [1, 1]} : vector<2x1536xf32> to vector<2x512xf32>
    %222 = vector.extract_strided_slice %219 {offsets = [0, 1024], sizes = [2, 512], strides = [1, 1]} : vector<2x1536xf32> to vector<2x512xf32>
    %223 = arith.addf %221, %222 : vector<2x512xf32>
    %224 = arith.addf %223, %7 : vector<2x512xf32>
    %225 = math.tanh %224 : vector<2x512xf32>
    %226 = arith.mulf %10, %225 : vector<2x512xf32>
    %227 = arith.addf %226, %13 : vector<2x512xf32>
    %228 = vector.extract_strided_slice %227 {offsets = [0, 0], sizes = [2, 128], strides = [1, 1]} : vector<2x512xf32> to vector<2x128xf32>
    %229 = vector.extract_strided_slice %227 {offsets = [0, 128], sizes = [2, 128], strides = [1, 1]} : vector<2x512xf32> to vector<2x128xf32>
    %230 = vector.extract_strided_slice %227 {offsets = [0, 256], sizes = [2, 128], strides = [1, 1]} : vector<2x512xf32> to vector<2x128xf32>
    %231 = vector.extract_strided_slice %227 {offsets = [0, 384], sizes = [2, 128], strides = [1, 1]} : vector<2x512xf32> to vector<2x128xf32>
    %232 = arith.mulf %229, %201 : vector<2x128xf32>
    %233 = arith.mulf %228, %230 : vector<2x128xf32>
    %234 = arith.addf %232, %233 : vector<2x128xf32>
    %235 = math.tanh %234 : vector<2x128xf32>
    %236 = arith.mulf %231, %235 : vector<2x128xf32>
    %c14 = arith.constant 14 : index
    %c0_28 = arith.constant 0 : index
    %237 = vector.load %arg6[%c14, %c0_28] : memref<16x512xf32, #tpu.memory_space<vmem>>, vector<2x512xf32>
    %238 = arith.addf %237, %220 : vector<2x512xf32>
    %239 = math.tanh %238 : vector<2x512xf32>
    %240 = arith.mulf %10, %239 : vector<2x512xf32>
    %241 = arith.addf %240, %13 : vector<2x512xf32>
    %242 = vector.extract_strided_slice %241 {offsets = [0, 0], sizes = [2, 128], strides = [1, 1]} : vector<2x512xf32> to vector<2x128xf32>
    %243 = vector.extract_strided_slice %241 {offsets = [0, 128], sizes = [2, 128], strides = [1, 1]} : vector<2x512xf32> to vector<2x128xf32>
    %244 = vector.extract_strided_slice %241 {offsets = [0, 256], sizes = [2, 128], strides = [1, 1]} : vector<2x512xf32> to vector<2x128xf32>
    %245 = vector.extract_strided_slice %241 {offsets = [0, 384], sizes = [2, 128], strides = [1, 1]} : vector<2x512xf32> to vector<2x128xf32>
    %246 = arith.mulf %243, %215 : vector<2x128xf32>
    %247 = arith.mulf %242, %244 : vector<2x128xf32>
    %248 = arith.addf %246, %247 : vector<2x128xf32>
    %249 = math.tanh %248 : vector<2x128xf32>
    %250 = arith.mulf %245, %249 : vector<2x128xf32>
    %251 = tpu.concatenate %250, %236 in 1 : vector<2x128xf32>, vector<2x128xf32> -> vector<2x256xf32>
    %cst_29 = arith.constant dense<0.000000e+00> : vector<2x1536xf32>
    %252 = tpu.matmul %251, %4, %cst_29 {dimension_numbers = #tpu.dot_dimension_numbers<[1], [0], [0], [1], [0, 0, 1, 1], [], []>} : vector<2x256xf32>, vector<256x1536xf32>, vector<2x1536xf32> -> vector<2x1536xf32>
    %253 = vector.extract_strided_slice %252 {offsets = [0, 512], sizes = [2, 512], strides = [1, 1]} : vector<2x1536xf32> to vector<2x512xf32>
    %254 = vector.extract_strided_slice %252 {offsets = [0, 1024], sizes = [2, 512], strides = [1, 1]} : vector<2x1536xf32> to vector<2x512xf32>
    %255 = arith.addf %253, %254 : vector<2x512xf32>
    %256 = arith.addf %255, %7 : vector<2x512xf32>
    %257 = math.tanh %256 : vector<2x512xf32>
    %258 = arith.mulf %10, %257 : vector<2x512xf32>
    %259 = arith.addf %258, %13 : vector<2x512xf32>
    %260 = vector.extract_strided_slice %259 {offsets = [0, 0], sizes = [2, 128], strides = [1, 1]} : vector<2x512xf32> to vector<2x128xf32>
    %261 = vector.extract_strided_slice %259 {offsets = [0, 128], sizes = [2, 128], strides = [1, 1]} : vector<2x512xf32> to vector<2x128xf32>
    %262 = vector.extract_strided_slice %259 {offsets = [0, 256], sizes = [2, 128], strides = [1, 1]} : vector<2x512xf32> to vector<2x128xf32>
    %263 = vector.extract_strided_slice %259 {offsets = [0, 384], sizes = [2, 128], strides = [1, 1]} : vector<2x512xf32> to vector<2x128xf32>
    %264 = arith.mulf %261, %234 : vector<2x128xf32>
    %265 = arith.mulf %260, %262 : vector<2x128xf32>
    %266 = arith.addf %264, %265 : vector<2x128xf32>
    %267 = math.tanh %266 : vector<2x128xf32>
    %268 = arith.mulf %263, %267 : vector<2x128xf32>
    %c0_30 = arith.constant 0 : index
    %c0_31 = arith.constant 0 : index
    %269 = vector.load %arg4[%c0_30, %c0_31] : memref<128x3xf32, #tpu.memory_space<vmem>>, vector<128x3xf32>
    %cst_32 = arith.constant dense<0.000000e+00> : vector<2x3xf32>
    %270 = tpu.matmul %268, %269, %cst_32 {dimension_numbers = #tpu.dot_dimension_numbers<[1], [0], [0], [1], [0, 0, 1, 1], [], []>} : vector<2x128xf32>, vector<128x3xf32>, vector<2x3xf32> -> vector<2x3xf32>
    %c1 = arith.constant 1 : index
    %c0_33 = arith.constant 0 : index
    %271 = vector.load %arg3[%c1, %c0_33] : memref<4x512xf32, #tpu.memory_space<vmem>>, vector<1x3xf32>
    %272 = vector.broadcast %271 : vector<1x3xf32> to vector<2x3xf32>
    %273 = arith.addf %270, %272 : vector<2x3xf32>
    %c0_34 = arith.constant 0 : index
    %c0_35 = arith.constant 0 : index
    %274 = vector.load %arg5[%c0_34, %c0_35] : memref<2x3xf32, #tpu.memory_space<vmem>>, vector<2x3xf32>
    tpu.vector_store %arg5[%c0_34, %c0_35], %273 {strides = array<i32>} : memref<2x3xf32, #tpu.memory_space<vmem>>, vector<2x3xf32>,
    return
  }
}

</mosaic_0001>

<bundles_post_ra>
// kernel: tpu_custom_call.1
= control target key start
LH: loop header
LB: loop body
LE: loop exit
PB: predicated region body
PF: predicated region fallthrough
CT: control target
= control target key end

     0   :  { %10 = vsyncpa [#allocation4], 0  ;;  %s10840_s0 = inlined_call_operand.hbm [shape: f32[16,10], index: 0, kind: input, shape index: {}]   ;;  %s10841_s1 = inlined_call_operand.hbm [shape: f32[10,512], index: 1, kind: input, shape index: {}]   ;;  %s10842_s2 = inlined_call_operand.hbm [shape: f32[256,1536], index: 2, kind: input, shape index: {}]   ;;  %s10843_s3 = inlined_call_operand.hbm [shape: f32[4,512], index: 3, kind: input, shape index: {}]   ;;  %s10844_s4 = inlined_call_operand.vmem [shape: f32[128,3], index: 4, kind: input, shape index: {}]   ;;  %s10845_s5 = inlined_call_operand.hbm [shape: f32[2,3], index: 5, kind: output, shape index: {}]  }
   0x1   :  { %11 = vsyncpa [#allocation7], 0 }
   0x2   :  { %12 = vsyncpa [#allocation10], 0  ;;  %s31_s20 = sshll.u32 %s10841_s1, 4  ;;  %s32_s20 = int_to_ptr.hbm [resolvable:$true] %s31_s20 }
   0x3   :  { %13 = vsyncpa [#allocation5], 0  ;;  %s6444_s21 = smov [#allocation6]   ;;  %s18_s25 = sshll.u32 %s10840_s0, 4  ;;  %s19_s25 = int_to_ptr.hbm [resolvable:$true] %s18_s25 }
   0x4   :  { %s33_s22 = sshll.u32 %s6444_s21, 4  ;;  %s6445_s26 = smov 512   ;;  %s34_s22 = int_to_ptr.vmem [resolvable:$true] %s33_s22 }
   0x5   :  { %s6446_s27 = smov 32   ;;  %s6447_s28 = smov [#allocation3]  }
   0x6   :  { %39 = dma.hbm_to_vmem [thread:$0]  %s32_s20, 1024, %s34_s22, [#allocation7], %s6445_s26, %s6445_s26, %s6446_s27  }
   0x7   :  { %s20_s29 = sshll.u32 %s6447_s28, 4  ;;  %s6448_s30 = smov 128   ;;  %s21_s29 = int_to_ptr.vmem [resolvable:$true] %s20_s29 }
   0x8   :  { %s6449_s6 = smov 8   ;;  %s44_s8 = sshll.u32 %s10842_s2, 4  ;;  %s45_s8 = int_to_ptr.hbm [resolvable:$true] %s44_s8 }
   0x9   :  { %26 = dma.hbm_to_vmem [thread:$0]  %s19_s25, 256, %s21_s29, [#allocation4], %s6448_s30, %s6448_s30, %s6449_s6  }
   0xa   :  { %s6450_s9 = smov [#allocation8]   ;;  %s58_s12 = sshll.u32 %s10843_s3, 4  ;;  %s59_s12 = int_to_ptr.hbm [resolvable:$true] %s58_s12 }
   0xb   :  { %s46_s10 = sshll.u32 %s6450_s9, 4  ;;  %s6451_s13 = smov 1536   ;;  %s47_s10 = int_to_ptr.vmem [resolvable:$true] %s46_s10 }
   0xc   :  { %s6452_s14 = smov 96   ;;  %s6453_s15 = smov [#allocation9]  }
   0xd   :  { %52 = dma.hbm_to_vmem [thread:$0]  %s45_s8, 49152, %s47_s10, [#allocation7], %s6451_s13, %s6451_s13, %s6452_s14  }
   0xe   :  { %s60_s16 = sshll.u32 %s6453_s15, 4  ;;  %s61_s16 = int_to_ptr.vmem [resolvable:$true] %s60_s16 }
   0xf   :  { %63 = dma.hbm_to_vmem [thread:$0]  %s59_s12, 256, %s61_s16, [#allocation10]  }
  0x10   :  { %6436 = dma.done.wait [#allocation4], 256  }
  0x11   :  { %6437 = vsyncadd [#allocation4], 4294967040 }
  0x12   :  { %6438 = dma.done.wait [#allocation7], 50176  }
  0x13   :  { %6439 = vsyncadd [#allocation7], 4294917120 }
  0x14   :  { %6440 = dma.done.wait [#allocation10], 256  }
  0x15   :  { %6441 = vsyncadd [#allocation10], 4294967040  ;;  %vm99_vm0 = vcmask 1041408   ;;  %v88_v0 = vld [vmem:[#allocation6 + $0x20] sm:$0x3]  ;;  %v86_v3 = vld [vmem:[#allocation6 + $0x10] sm:$0xff] }
  0x16   :  { %v90_v1 = vld [vmem:[#allocation6 + $0x30] sm:$0x3]  ;;  %v84_v2 = vld [vmem:[#allocation6] sm:$0xff]  ;;  %4682 = vmatpush.msk.msra.mxu3 %vm99_vm0, %v88_v0  ;;  %vm92_vm1 = vcmask 80896   ;;  %v91_v5 = vld [vmem:[#allocation6 + $0x38] sm:$0x3] }
  0x17   :  { %4688 = vmatpush.msk.msra.mxu2 %vm99_vm0, %v90_v1  ;;  %v6500_v4 = vld [vmem:[#allocation3] sm:$0xff]  ;;  %v89_v6 = vld [vmem:[#allocation6 + $0x28] sm:$0x3]  ;;  %v6502_v7 = vld [vmem:[#allocation8 + $0x5a0] sm:$0xff]  ;;  %s4670_s21 = sshll.u32 %s10845_s5, 4  ;;  %vm4661_vm2 = vcmask 17408   ;;  %s4671_s21 = int_to_ptr.hbm [resolvable:$true] %s4670_s21 }
  0x18   :  { %127 = vmatpush.msra.mxu3 %v84_v2  ;;  %v87_v8 = vld [vmem:[#allocation6 + $0x18] sm:$0xff]  ;;  %v85_v9 = vld [vmem:[#allocation6 + $0x8] sm:$0xff]  ;;  %4685 = vmatpush.msk.msra.mxu1 %vm99_vm0, %v89_v6  ;;  %v6510_v11 = vld [vmem:[#allocation8 + $0xba0] sm:$0xff] }
  0x19   :  { %173 = vmatpush.msra.mxu2 %v86_v3  ;;  %4683 = vmatmul.msk.f32.vlgmr.msra.gmra.mxu3 %vm92_vm1, %v6500_v4  ;;  %v393_v10 = vld [vmem:[#allocation8 + $0x5a8] sm:$0xff]  ;;  %v6515_v13 = vld [vmem:[#allocation8 + $0x540] sm:$0xff]  ;;  %v6525_v19 = vld [vmem:[#allocation3 + $0x8] sm:$0xff] }
  0x1a   :  { %4689 = vmatmul.msk.f32.vlgmr.msra.gmra.mxu2 %vm92_vm1, %v6500_v4  ;;  %4691 = vmatpush.msk.msrb.mxu3 %vm99_vm0, %v91_v5  ;;  %v6512_v12 = vld [vmem:[#allocation8 + $0xba8] sm:$0xff]  ;;  %v6517_v15 = vld [vmem:[#allocation8 + $0xb40] sm:$0xff] }
  0x1b   :  { %643 = vmatpush.msra.mxu0 %v6502_v7  ;;  %683 = vmatpush.msrb.mxu2 %v393_v10  ;;  %v381_v14 = vld [vmem:[#allocation8 + $0x548] sm:$0xff]  ;;  %v6523_v17 = vld [vmem:[#allocation8 + $0x4e0] sm:$0xff] }
  0x1c   :  { %196 = vmatpush.msrb.mxu3 %v87_v8  ;;  %150 = vmatpush.msra.mxu1 %v85_v9  ;;  %v6519_v16 = vld [vmem:[#allocation8 + $0xb48] sm:$0xff]  ;;  %v6528_v20 = vld [vmem:[#allocation8 + $0xae0] sm:$0xff] }
  0x1d   :  { %v369_v18 = vld [vmem:[#allocation8 + $0x4e8] sm:$0xff]  ;;  %644 = vmatpush.msra.mxu0 %v6515_v13  ;;  %684 = vmatpush.msrb.mxu2 %v381_v14  ;;  %v6534_v22 = vld [vmem:[#allocation8 + $0x480] sm:$0xff]  ;;  %v6676_v14 = vld [vmem:[#allocation8 + $0x5b0] sm:$0xff] }
  0x1e   :  { %663 = vmatpush.msrb.mxu1 %v6510_v11  ;;  %703 = vmatpush.msra.mxu3 %v6512_v12  ;;  %v6532_v21 = vld [vmem:[#allocation8 + $0xae8] sm:$0xff]  ;;  %v6537_v23 = vld [vmem:[#allocation8 + $0xa80] sm:$0xff]  ;;  %11591 = vst [vmem:[#allocation31_spill] sm:$0xff] %v6676_v14 }
  0x1f   :  { %645 = vmatpush.msra.mxu0 %v6523_v17  ;;  %685 = vmatpush.msrb.mxu2 %v369_v18  ;;  %v357_v24 = vld [vmem:[#allocation8 + $0x488] sm:$0xff]  ;;  %v6544_v26 = vld [vmem:[#allocation8 + $0x420] sm:$0xff]  ;;  %v6678_v18 = vld [vmem:[#allocation8 + $0xbb0] sm:$0xff] }
  0x20   :  { %664 = vmatpush.msrb.mxu1 %v6517_v15  ;;  %704 = vmatpush.msra.mxu3 %v6519_v16  ;;  %v6542_v25 = vld [vmem:[#allocation8 + $0xa88] sm:$0xff]  ;;  %v6548_v27 = vld [vmem:[#allocation8 + $0xa20] sm:$0xff] }
  0x21   :  { %4684 = vmatmul.msk.f32.gmra.mxu3 %vm92_vm1, %v6525_v19  ;;  %646 = vmatpush.msra.mxu0 %v6534_v22  ;;  %v345_v28 = vld [vmem:[#allocation8 + $0x428] sm:$0xff]  ;;  %v6553_v30 = vld [vmem:[#allocation8 + $0x3c0] sm:$0xff] }
  0x22   :  { %665 = vmatpush.msrb.mxu1 %v6528_v20  ;;  %705 = vmatpush.msra.mxu3 %v6532_v21  ;;  %v6551_v29 = vld [vmem:[#allocation8 + $0xa28] sm:$0xff]  ;;  %v6557_v31 = vld [vmem:[#allocation8 + $0x9c0] sm:$0xff] }
  0x23   :  { %686 = vmatpush.msrb.mxu2 %v357_v24  ;;  %647 = vmatpush.msra.mxu0 %v6544_v26  ;;  %v333_v32 = vld [vmem:[#allocation8 + $0x3c8] sm:$0xff]  ;;  %v6562_v34 = vld [vmem:[#allocation8 + $0x360] sm:$0xff]  ;;  %v6684_v24 = vld [vmem:[#allocation8 + $0xbb8] sm:$0xff] }
  0x24   :  { %666 = vmatpush.msrb.mxu1 %v6537_v23  ;;  %706 = vmatpush.msra.mxu3 %v6542_v25  ;;  %v6560_v33 = vld [vmem:[#allocation8 + $0x9c8] sm:$0xff]  ;;  %v6566_v35 = vld [vmem:[#allocation8 + $0x960] sm:$0xff]  ;;  %11593 = vst [vmem:[#allocation33_spill] sm:$0xff] %v6684_v24 }
  0x25   :  { %687 = vmatpush.msrb.mxu2 %v345_v28  ;;  %648 = vmatpush.msra.mxu0 %v6553_v30  ;;  %v321_v36 = vld [vmem:[#allocation8 + $0x368] sm:$0xff]  ;;  %v6573_v38 = vld [vmem:[#allocation8 + $0x300] sm:$0xff]  ;;  %v6688_v28 = vld [vmem:[#allocation8 + $0x550] sm:$0xff] }
  0x26   :  { %667 = vmatpush.msrb.mxu1 %v6548_v27  ;;  %707 = vmatpush.msra.mxu3 %v6551_v29  ;;  %v6569_v37 = vld [vmem:[#allocation8 + $0x968] sm:$0xff]  ;;  %v6575_v39 = vld [vmem:[#allocation8 + $0x900] sm:$0xff]  ;;  %11594 = vst [vmem:[#allocation34_spill] sm:$0xff] %v6688_v28 }
  0x27   :  { %688 = vmatpush.msrb.mxu2 %v333_v32  ;;  %649 = vmatpush.msra.mxu0 %v6562_v34  ;;  %v309_v40 = vld [vmem:[#allocation8 + $0x308] sm:$0xff]  ;;  %v6583_v42 = vld [vmem:[#allocation8 + $0x2a0] sm:$0xff]  ;;  %v6690_v32 = vld [vmem:[#allocation8 + $0xb50] sm:$0xff] }
  0x28   :  { %668 = vmatpush.msrb.mxu1 %v6557_v31  ;;  %708 = vmatpush.msra.mxu3 %v6560_v33  ;;  %v6580_v41 = vld [vmem:[#allocation8 + $0x908] sm:$0xff]  ;;  %v6585_v43 = vld [vmem:[#allocation8 + $0x8a0] sm:$0xff] }
  0x29   :  { %4692 = vmatmul.msk.f32.vlgmr.msrb.gmra.mxu3 %vm92_vm1, %v6500_v4  ;;  %689 = vmatpush.msrb.mxu2 %v321_v36  ;;  %v297_v44 = vld [vmem:[#allocation8 + $0x2a8] sm:$0xff]  ;;  %v6592_v46 = vld [vmem:[#allocation8 + $0x240] sm:$0xff]  ;;  %v6692_v36 = vld [vmem:[#allocation8 + $0x558] sm:$0xff] }
  0x2a   :  { %669 = vmatpush.msrb.mxu1 %v6566_v35  ;;  %709 = vmatpush.msra.mxu3 %v6569_v37  ;;  %v6589_v45 = vld [vmem:[#allocation8 + $0x8a8] sm:$0xff]  ;;  %v6594_v47 = vld [vmem:[#allocation8 + $0x840] sm:$0xff]  ;;  %11595 = vst [vmem:[#allocation35_spill] sm:$0xff] %v6692_v36 }
  0x2b   :  { %650 = vmatpush.msra.mxu0 %v6573_v38  ;;  %11576 = vst [vmem:[#allocation16_spill] sm:$0xff] %v6589_v45  ;;  %690 = vmatpush.msrb.mxu2 %v309_v40  ;;  %v285_v48 = vld [vmem:[#allocation8 + $0x248] sm:$0xff]  ;;  %v6601_v50 = vld [vmem:[#allocation8 + $0x1e0] sm:$0xff]  ;;  %v6696_v40 = vld [vmem:[#allocation8 + $0xb58] sm:$0xff] }
  0x2c   :  { %670 = vmatpush.msrb.mxu1 %v6575_v39  ;;  %710 = vmatpush.msra.mxu3 %v6580_v41  ;;  %v6598_v49 = vld [vmem:[#allocation8 + $0x848] sm:$0xff]  ;;  %v6603_v51 = vld [vmem:[#allocation8 + $0x7e0] sm:$0xff]  ;;  %11596 = vst [vmem:[#allocation36_spill] sm:$0xff] %v6696_v40 }
  0x2d   :  { %651 = vmatpush.msra.mxu0 %v6583_v42  ;;  %11577 = vst [vmem:[#allocation17_spill] sm:$0xff] %v6598_v49  ;;  %691 = vmatpush.msrb.mxu2 %v297_v44  ;;  %v273_v52 = vld [vmem:[#allocation8 + $0x1e8] sm:$0xff]  ;;  %v6610_v54 = vld [vmem:[#allocation8 + $0x180] sm:$0xff]  ;;  %v6698_v44 = vld [vmem:[#allocation8 + $0x4f0] sm:$0xff] }
  0x2e   :  { %671 = vmatpush.msrb.mxu1 %v6585_v43  ;;  %711 = vmatpush.msra.mxu3 %v6589_v45  ;;  %v6607_v53 = vld [vmem:[#allocation8 + $0x7e8] sm:$0xff]  ;;  %v6612_v55 = vld [vmem:[#allocation8 + $0x780] sm:$0xff]  ;;  %11597 = vst [vmem:[#allocation37_spill] sm:$0xff] %v6698_v44 }
  0x2f   :  { %652 = vmatpush.msra.mxu0 %v6592_v46  ;;  %11578 = vst [vmem:[#allocation18_spill] sm:$0xff] %v6607_v53  ;;  %692 = vmatpush.msrb.mxu2 %v285_v48  ;;  %v261_v56 = vld [vmem:[#allocation8 + $0x188] sm:$0xff]  ;;  %v6630_v58 = vld [vmem:[#allocation8 + $0x120] sm:$0xff]  ;;  %v6700_v48 = vld [vmem:[#allocation8 + $0xaf0] sm:$0xff] }
  0x30   :  { %672 = vmatpush.msrb.mxu1 %v6594_v47  ;;  %712 = vmatpush.msra.mxu3 %v6598_v49  ;;  %v6616_v57 = vld [vmem:[#allocation8 + $0x788] sm:$0xff]  ;;  %v6632_v59 = vld [vmem:[#allocation8 + $0x720] sm:$0xff] }
  0x31   :  { %653 = vmatpush.msra.mxu0 %v6601_v50  ;;  %11579 = vst [vmem:[#allocation19_spill] sm:$0xff] %v6616_v57  ;;  %693 = vmatpush.msrb.mxu2 %v273_v52  ;;  %v6634_v60 = vld [vmem:[#allocation8 + $0x128] sm:$0xff]  ;;  %v6642_v62 = vld [vmem:[#allocation8 + $0xc0] sm:$0xff]  ;;  %v6704_v52 = vld [vmem:[#allocation8 + $0x4f8] sm:$0xff] }
  0x32   :  { %673 = vmatpush.msrb.mxu1 %v6603_v51  ;;  %713 = vmatpush.msra.mxu3 %v6607_v53  ;;  %11580 = vst [vmem:[#allocation20_spill] sm:$0xff] %v6634_v60  ;;  %v6638_v61 = vld [vmem:[#allocation8 + $0x728] sm:$0xff]  ;;  %v6644_v63 = vld [vmem:[#allocation8 + $0x6c0] sm:$0xff] }
  0x33   :  { %654 = vmatpush.msra.mxu0 %v6610_v54  ;;  %694 = vmatpush.msrb.mxu2 %v261_v56  ;;  %11581 = vst [vmem:[#allocation21_spill] sm:$0xff] %v6638_v61  ;;  %v6646_v0 = vld [vmem:[#allocation8 + $0xc8] sm:$0xff]  ;;  %v6654_v2 = vld [vmem:[#allocation8 + $0x60] sm:$0xff]  ;;  %v6706_v56 = vld [vmem:[#allocation8 + $0xaf8] sm:$0xff] }
  0x34   :  { %674 = vmatpush.msrb.mxu1 %v6612_v55  ;;  %714 = vmatpush.msra.mxu3 %v6616_v57  ;;  %11582 = vst [vmem:[#allocation22_spill] sm:$0xff] %v6642_v62  ;;  %v6650_v1 = vld [vmem:[#allocation8 + $0x6c8] sm:$0xff]  ;;  %v6656_v3 = vld [vmem:[#allocation8 + $0x660] sm:$0xff]  ;;  %v6812_v57 = vld [vmem:[#allocation8 + $0x198] sm:$0xff] }
  0x35   :  { %4686 = vmatmul.msk.f32.vlgmr.msra.gmra.mxu1 %vm92_vm1, %v6500_v4  ;;  %4690 = vmatmul.msk.f32.gmra.mxu2 %vm92_vm1, %v6525_v19  ;;  %11583 = vst [vmem:[#allocation23_spill] sm:$0xff] %v6646_v0  ;;  %v6658_v4 = vld [vmem:[#allocation8 + $0x68] sm:$0xff]  ;;  %v6666_v6 = vld [vmem:[#allocation8] sm:$0xff] }
  0x36   :  { %4693 = vmatmul.msk.f32.gmra.mxu3 %vm92_vm1, %v6525_v19  ;;  %655 = vmatpush.msra.mxu0 %v6630_v58  ;;  %11584 = vst [vmem:[#allocation24_spill] sm:$0xff] %v6650_v1  ;;  %v6662_v5 = vld [vmem:[#allocation8 + $0x668] sm:$0xff]  ;;  %v6668_v8 = vld [vmem:[#allocation8 + $0x600] sm:$0xff] }
  0x37   :  { %675 = vmatpush.msrb.mxu1 %v6632_v59  ;;  %695 = vmatpush.msrb.mxu2 %v6634_v60  ;;  %11585 = vst [vmem:[#allocation25_spill] sm:$0xff] %v6654_v2  ;;  %v6670_v9 = vld [vmem:[#allocation8 + $0x8] sm:$0xff]  ;;  %v6722_v60 = vld [vmem:[#allocation8 + $0x430] sm:$0xff]  ;;  %v540_v53 = vld [vmem:[#allocation8 + $0xa40] sm:$0xff] }
  0x38   :  { %715 = vmatpush.msra.mxu3 %v6638_v61  ;;  %656 = vmatpush.msra.mxu0 %v6642_v62  ;;  %11586 = vst [vmem:[#allocation26_spill] sm:$0xff] %v6658_v4  ;;  %v6674_v10 = vld [vmem:[#allocation8 + $0x608] sm:$0xff]  ;;  %v6792_v61 = vld [vmem:[#allocation8 + $0x858] sm:$0xff]  ;;  %v504_v45 = vld [vmem:[#allocation8 + $0x920] sm:$0xff] }
  0x39   :  { %676 = vmatpush.msrb.mxu1 %v6644_v63  ;;  %696 = vmatpush.msrb.mxu2 %v6646_v0  ;;  %11587 = vst [vmem:[#allocation27_spill] sm:$0xff] %v6662_v5  ;;  %v6718_v0 = vld [vmem:[#allocation8 + $0xa98] sm:$0xff] }
  0x3a   :  { %716 = vmatpush.msra.mxu3 %v6650_v1  ;;  %657 = vmatpush.msra.mxu0 %v6654_v2  ;;  %11588 = vst [vmem:[#allocation28_spill] sm:$0xff] %v6666_v6  ;;  %v6768_v1 = vld [vmem:[#allocation8 + $0x918] sm:$0xff] }
  0x3b   :  { %677 = vmatpush.msrb.mxu1 %v6656_v3  ;;  %697 = vmatpush.msrb.mxu2 %v6658_v4  ;;  %11589 = vst [vmem:[#allocation29_spill] sm:$0xff] %v6670_v9  ;;  %v6716_v4 = vld [vmem:[#allocation8 + $0x498] sm:$0xff] }
  0x3c   :  { %717 = vmatpush.msra.mxu3 %v6662_v5  ;;  %658 = vmatpush.msra.mxu0 %v6666_v6  ;;  %11590 = vst [vmem:[#allocation30_spill] sm:$0xff] %v6674_v10  ;;  %v6744_v5 = vld [vmem:[#allocation8 + $0x9d8] sm:$0xff]  ;;  %v566_v6 = vld [vmem:[#allocation8 + $0xb10] sm:$0xff] }
  0x3d   :  { %4687 = vmatmul.msk.f32.gmra.mxu1 %vm92_vm1, %v6525_v19  ;;  %698 = vmatpush.msrb.mxu2 %v6670_v9  ;;  %v6682_v19 = vld [vmem:[#allocation8 + $0x5b8] sm:$0xff]  ;;  %11598 = vst [vmem:[#allocation38_spill] sm:$0xff] %v6704_v52  ;;  %v6712_v9 = vld [vmem:[#allocation8 + $0xa90] sm:$0xff] }
  0x3e   :  { %678 = vmatpush.msrb.mxu1 %v6668_v8  ;;  %718 = vmatpush.msra.mxu3 %v6674_v10  ;;  %11592 = vst [vmem:[#allocation32_spill] sm:$0xff] %v6682_v19  ;;  %v6740_v10 = vld [vmem:[#allocation8 + $0x3d8] sm:$0xff] }
  0x3f   :  { %723 = vmatpush.msrb.mxu0 %v6676_v14  ;;  %763 = vmatpush.msra.mxu2 %v6682_v19  ;;  %11599 = vst [vmem:[#allocation39_spill] sm:$0xff] %v6706_v56  ;;  %v6710_v19 = vld [vmem:[#allocation8 + $0x490] sm:$0xff] }
  0x40   :  { %743 = vmatpush.msra.mxu1 %v6678_v18  ;;  %783 = vmatpush.msrb.mxu3 %v6684_v24  ;;  %11600 = vst [vmem:[#allocation40_spill] sm:$0xff] %v6710_v19  ;;  %v6730_v24 = vld [vmem:[#allocation8 + $0xa38] sm:$0xff] }
  0x41   :  { %724 = vmatpush.msrb.mxu0 %v6688_v28  ;;  %764 = vmatpush.msra.mxu2 %v6692_v36  ;;  %11601 = vst [vmem:[#allocation41_spill] sm:$0xff] %v6716_v4  ;;  %v6724_v36 = vld [vmem:[#allocation8 + $0xa30] sm:$0xff]  ;;  %v6802_v28 = vld [vmem:[#allocation8 + $0x7f8] sm:$0xff] }
  0x42   :  { %744 = vmatpush.msra.mxu1 %v6690_v32  ;;  %784 = vmatpush.msrb.mxu3 %v6696_v40  ;;  %11602 = vst [vmem:[#allocation42_spill] sm:$0xff] %v6718_v0  ;;  %v6728_v40 = vld [vmem:[#allocation8 + $0x438] sm:$0xff] }
  0x43   :  { %725 = vmatpush.msrb.mxu0 %v6698_v44  ;;  %765 = vmatpush.msra.mxu2 %v6704_v52  ;;  %11603 = vst [vmem:[#allocation43_spill] sm:$0xff] %v6722_v60  ;;  %v6736_v52 = vld [vmem:[#allocation8 + $0x3d0] sm:$0xff]  ;;  %v6780_v44 = vld [vmem:[#allocation8 + $0x8b8] sm:$0xff] }
  0x44   :  { %745 = vmatpush.msra.mxu1 %v6700_v48  ;;  %785 = vmatpush.msrb.mxu3 %v6706_v56  ;;  %11604 = vst [vmem:[#allocation44_spill] sm:$0xff] %v6728_v40  ;;  %v6738_v56 = vld [vmem:[#allocation8 + $0x9d0] sm:$0xff] }
  0x45   :  { %726 = vmatpush.msrb.mxu0 %v6710_v19  ;;  %11605 = vst [vmem:[#allocation45_spill] sm:$0xff] %v6730_v24  ;;  %766 = vmatpush.msra.mxu2 %v6716_v4  ;;  %v6748_v4 = vld [vmem:[#allocation8 + $0x370] sm:$0xff]  ;;  %v6756_v19 = vld [vmem:[#allocation8 + $0x978] sm:$0xff] }
  0x46   :  { %746 = vmatpush.msra.mxu1 %v6712_v9  ;;  %786 = vmatpush.msrb.mxu3 %v6718_v0  ;;  %11606 = vst [vmem:[#allocation46_spill] sm:$0xff] %v6736_v52  ;;  %v6750_v0 = vld [vmem:[#allocation8 + $0x970] sm:$0xff] }
  0x47   :  { %727 = vmatpush.msrb.mxu0 %v6722_v60  ;;  %11607 = vst [vmem:[#allocation47_spill] sm:$0xff] %v6740_v10  ;;  %767 = vmatpush.msra.mxu2 %v6728_v40  ;;  %v6752_v60 = vld [vmem:[#allocation8 + $0x378] sm:$0xff]  ;;  %v6760_v40 = vld [vmem:[#allocation8 + $0x310] sm:$0xff] }
  0x48   :  { %747 = vmatpush.msra.mxu1 %v6724_v36  ;;  %787 = vmatpush.msrb.mxu3 %v6730_v24  ;;  %11608 = vst [vmem:[#allocation48_spill] sm:$0xff] %v6744_v5  ;;  %v6762_v24 = vld [vmem:[#allocation8 + $0x910] sm:$0xff] }
  0x49   :  { %728 = vmatpush.msrb.mxu0 %v6736_v52  ;;  %11609 = vst [vmem:[#allocation49_spill] sm:$0xff] %v6748_v4  ;;  %768 = vmatpush.msra.mxu2 %v6740_v10  ;;  %v6764_v52 = vld [vmem:[#allocation8 + $0x318] sm:$0xff]  ;;  %v6772_v10 = vld [vmem:[#allocation8 + $0x2b0] sm:$0xff] }
  0x4a   :  { %748 = vmatpush.msra.mxu1 %v6738_v56  ;;  %11610 = vst [vmem:[#allocation50_spill] sm:$0xff] %v6750_v0  ;;  %788 = vmatpush.msrb.mxu3 %v6744_v5  ;;  %v6774_v5 = vld [vmem:[#allocation8 + $0x8b0] sm:$0xff] }
  0x4b   :  { %11611 = vst [vmem:[#allocation51_spill] sm:$0xff] %v6752_v60  ;;  %729 = vmatpush.msrb.mxu0 %v6748_v4  ;;  %769 = vmatpush.msra.mxu2 %v6752_v60  ;;  %v6776_v4 = vld [vmem:[#allocation8 + $0x2b8] sm:$0xff]  ;;  %v6784_v60 = vld [vmem:[#allocation8 + $0x250] sm:$0xff] }
  0x4c   :  { %11612 = vst [vmem:[#allocation52_spill] sm:$0xff] %v6756_v19  ;;  %749 = vmatpush.msra.mxu1 %v6750_v0  ;;  %789 = vmatpush.msrb.mxu3 %v6756_v19  ;;  %v6786_v19 = vld [vmem:[#allocation8 + $0x850] sm:$0xff] }
  0x4d   :  { %11613 = vst [vmem:[#allocation53_spill] sm:$0xff] %v6760_v40  ;;  %730 = vmatpush.msrb.mxu0 %v6760_v40  ;;  %770 = vmatpush.msra.mxu2 %v6764_v52  ;;  %v6788_v40 = vld [vmem:[#allocation8 + $0x258] sm:$0xff]  ;;  %v482_v0 = vld [vmem:[#allocation8 + $0x870] sm:$0xff] }
  0x4e   :  { %11614 = vst [vmem:[#allocation54_spill] sm:$0xff] %v6762_v24  ;;  %750 = vmatpush.msra.mxu1 %v6762_v24  ;;  %790 = vmatpush.msrb.mxu3 %v6768_v1  ;;  %v530_v24 = vld [vmem:[#allocation8 + $0x9f0] sm:$0xff] }
  0x4f   :  { %11615 = vst [vmem:[#allocation55_spill] sm:$0xff] %v6764_v52  ;;  %731 = vmatpush.msrb.mxu0 %v6772_v10  ;;  %771 = vmatpush.msra.mxu2 %v6776_v4  ;;  %v6794_v52 = vld [vmem:[#allocation8 + $0x1f0] sm:$0xff] }
  0x50   :  { %11616 = vst [vmem:[#allocation56_spill] sm:$0xff] %v6768_v1  ;;  %751 = vmatpush.msra.mxu1 %v6774_v5  ;;  %791 = vmatpush.msrb.mxu3 %v6780_v44  ;;  %v6796_v1 = vld [vmem:[#allocation8 + $0x7f0] sm:$0xff] }
  0x51   :  { %11617 = vst [vmem:[#allocation57_spill] sm:$0xff] %v6772_v10  ;;  %732 = vmatpush.msrb.mxu0 %v6784_v60  ;;  %v6800_v10 = vld [vmem:[#allocation8 + $0x1f8] sm:$0xff]  ;;  %772 = vmatpush.msra.mxu2 %v6788_v40 }
  0x52   :  { %11618 = vst [vmem:[#allocation58_spill] sm:$0xff] %v6774_v5  ;;  %752 = vmatpush.msra.mxu1 %v6786_v19  ;;  %792 = vmatpush.msrb.mxu3 %v6792_v61 }
  0x53   :  { %11619 = vst [vmem:[#allocation59_spill] sm:$0xff] %v6776_v4  ;;  %v6806_v4 = vld [vmem:[#allocation8 + $0x190] sm:$0xff]  ;;  %733 = vmatpush.msrb.mxu0 %v6794_v52  ;;  %773 = vmatpush.msra.mxu2 %v6800_v10 }
  0x54   :  { %11620 = vst [vmem:[#allocation60_spill] sm:$0xff] %v6780_v44  ;;  %v6808_v44 = vld [vmem:[#allocation8 + $0x790] sm:$0xff]  ;;  %753 = vmatpush.msra.mxu1 %v6796_v1  ;;  %793 = vmatpush.msrb.mxu3 %v6802_v28 }
  0x55   :  { %11621 = vst [vmem:[#allocation61_spill] sm:$0xff] %v6784_v60  ;;  %v6814_v60 = vld [vmem:[#allocation8 + $0x798] sm:$0xff]  ;;  %734 = vmatpush.msrb.mxu0 %v6806_v4  ;;  %774 = vmatpush.msra.mxu2 %v6812_v57 }
  0x56   :  { %11622 = vst [vmem:[#allocation62_spill] sm:$0xff] %v6786_v19  ;;  %v6818_v19 = vld [vmem:[#allocation8 + $0x130] sm:$0xff]  ;;  %754 = vmatpush.msra.mxu1 %v6808_v44  ;;  %794 = vmatpush.msrb.mxu3 %v6814_v60 }
  0x57   :  { %11623 = vst [vmem:[#allocation63_spill] sm:$0xff] %v6788_v40  ;;  %v6820_v40 = vld [vmem:[#allocation8 + $0x730] sm:$0xff]  ;;  %735 = vmatpush.msrb.mxu0 %v6818_v19 }
  0x58   :  { %11624 = vst [vmem:[#allocation64_spill] sm:$0xff] %v6792_v61  ;;  %v6824_v61 = vld [vmem:[#allocation8 + $0x138] sm:$0xff]  ;;  %755 = vmatpush.msra.mxu1 %v6820_v40 }
  0x59   :  { %11625 = vst [vmem:[#allocation65_spill] sm:$0xff] %v6794_v52  ;;  %v6826_v52 = vld [vmem:[#allocation8 + $0x738] sm:$0xff]  ;;  %775 = vmatpush.msra.mxu2 %v6824_v61 }
  0x5a   :  { %11626 = vst [vmem:[#allocation66_spill] sm:$0xff] %v6796_v1  ;;  %795 = vmatpush.msrb.mxu3 %v6826_v52 }
  0x5b   :  { %11627 = vst [vmem:[#allocation67_spill] sm:$0xff] %v6800_v10  ;;  %v6830_v10 = vld [vmem:[#allocation8 + $0xd0] sm:$0xff] }
  0x5c   :  { %11628 = vst [vmem:[#allocation68_spill] sm:$0xff] %v6802_v28  ;;  %v6832_v28 = vld [vmem:[#allocation8 + $0x6d0] sm:$0xff]  ;;  %736 = vmatpush.msrb.mxu0 %v6830_v10 }
  0x5d   :  { %11629 = vst [vmem:[#allocation69_spill] sm:$0xff] %v6806_v4  ;;  %v6836_v4 = vld [vmem:[#allocation8 + $0xd8] sm:$0xff]  ;;  %756 = vmatpush.msra.mxu1 %v6832_v28 }
  0x5e   :  { %11630 = vst [vmem:[#allocation70_spill] sm:$0xff] %v6808_v44  ;;  %v6838_v44 = vld [vmem:[#allocation8 + $0x6d8] sm:$0xff]  ;;  %776 = vmatpush.msra.mxu2 %v6836_v4 }
  0x5f   :  { %11631 = vst [vmem:[#allocation71_spill] sm:$0xff] %v6812_v57  ;;  %v6842_v57 = vld [vmem:[#allocation8 + $0x70] sm:$0xff]  ;;  %796 = vmatpush.msrb.mxu3 %v6838_v44 }
  0x60   :  { %11632 = vst [vmem:[#allocation72_spill] sm:$0xff] %v6814_v60  ;;  %v6844_v60 = vld [vmem:[#allocation8 + $0x670] sm:$0xff]  ;;  %737 = vmatpush.msrb.mxu0 %v6842_v57 }
  0x61   :  { %11633 = vst [vmem:[#allocation73_spill] sm:$0xff] %v6818_v19  ;;  %v6850_v19 = vld [vmem:[#allocation8 + $0x678] sm:$0xff]  ;;  %757 = vmatpush.msra.mxu1 %v6844_v60 }
  0x62   :  { %11634 = vst [vmem:[#allocation74_spill] sm:$0xff] %v6820_v40  ;;  %797 = vmatpush.msrb.mxu3 %v6850_v19 }
  0x63   :  { %11635 = vst [vmem:[#allocation75_spill] sm:$0xff] %v6824_v61  ;;  %v6856_v61 = vld [vmem:[#allocation8 + $0x610] sm:$0xff] }
  0x64   :  { %11636 = vst [vmem:[#allocation76_spill] sm:$0xff] %v6826_v52  ;;  %v6860_v52 = vld [vmem:[#allocation8 + $0x18] sm:$0xff]  ;;  %758 = vmatpush.msra.mxu1 %v6856_v61 }
  0x65   :  { %11637 = vst [vmem:[#allocation77_spill] sm:$0xff] %v6830_v10  ;;  %v6862_v10 = vld [vmem:[#allocation8 + $0x618] sm:$0xff] }
  0x66   :  { %11638 = vst [vmem:[#allocation78_spill] sm:$0xff] %v6832_v28  ;;  %798 = vmatpush.msrb.mxu3 %v6862_v10 }
  0x67   :  { %11639 = vst [vmem:[#allocation79_spill] sm:$0xff] %v6836_v4  ;;  %v588_v4 = vld [vmem:[#allocation8 + $0xbc0] sm:$0xff] }
  0x68   :  { %11640 = vst [vmem:[#allocation80_spill] sm:$0xff] %v6838_v44  ;;  %v590_v44 = vld [vmem:[#allocation8 + $0xbd0] sm:$0xff] }
  0x69   :  { %11641 = vst [vmem:[#allocation81_spill] sm:$0xff] %v6842_v57 }
  0x6a   :  { %11642 = vst [vmem:[#allocation82_spill] sm:$0xff] %v6844_v60  ;;  %v10911_v60 = vmov 0.0  }
  0x6b   :  { %11644 = vst [vmem:[#allocation84_spill] sm:$0xff] %v6850_v19  ;;  %679 = vmatmul.f32.vlgmr.msrb.gmra.mxu1 %v10911_v60  ;;  %719 = vmatmul.f32.vlgmr.msra.gmra.mxu3 %v10911_v60  ;;  %v578_v19 = vld [vmem:[#allocation8 + $0xb70] sm:$0xff]  ;;  %v6880_v60 = vld [vmem:[#allocation9 + $0x3] ss:$4 sm:$0xf] }
  0x6c   :  { %11646 = vst [vmem:[#allocation86_spill] sm:$0xff] %v6856_v61  ;;  %823 = vmatpush.msrb.mxu1 %v588_v4  ;;  %863 = vmatpush.msra.mxu3 %v590_v44  ;;  %v564_v61 = vld [vmem:[#allocation8 + $0xb00] sm:$0xff]  ;;  %v542_v4 = vld [vmem:[#allocation8 + $0xa50] sm:$0xff] }
  0x6d   :  { %11647 = vst [vmem:[#allocation87_spill] sm:$0xff] %v6860_v52 }
  0x6e   :  { %11648 = vst [vmem:[#allocation88_spill] sm:$0xff] %v6862_v10  ;;  %864 = vmatpush.msra.mxu3 %v578_v19  ;;  %v554_v10 = vld [vmem:[#allocation8 + $0xab0] sm:$0xff]  ;;  %v6883_v19 = vperm.slane %v6880_v60, 0 }
  0x70   :  { %865 = vmatpush.msra.mxu3 %v566_v6  ;;  %v528_v6 = vld [vmem:[#allocation8 + $0x9e0] sm:$0xff] }
  0x72   :  { %866 = vmatpush.msra.mxu3 %v554_v10  ;;  %v516_v10 = vld [vmem:[#allocation8 + $0x980] sm:$0xff] }
  0x74   :  { %867 = vmatpush.msra.mxu3 %v542_v4  ;;  %v480_v4 = vld [vmem:[#allocation8 + $0x860] sm:$0xff] }
  0x76   :  { %868 = vmatpush.msra.mxu3 %v530_v24  ;;  %v468_v24 = vld [vmem:[#allocation8 + $0x800] sm:$0xff] }
  0x9c   :  { %v129_v1 = vpop.f32.mrf.mxu3 }
  0x9d   :  { %v175_v14 = vpop.f32.mrf.mxu2  ;;  %204 = vst [vmem:[#allocation2 + $0x30] sm:$0xff] %v129_v1  ;;  %v6848_v1 = vld [vmem:[#allocation8 + $0x78] sm:$0xff] }
  0x9e   :  { %206 = vst [vmem:[#allocation2 + $0x18] sm:$0xff] %v175_v14  ;;  %v6854_v14 = vld [vmem:[#allocation8 + $0x10] sm:$0xff]  ;;  %777 = vmatpush.msra.mxu2 %v6848_v1 }
  0x9f   :  { %11643 = vst [vmem:[#allocation83_spill] sm:$0xff] %v6848_v1  ;;  %738 = vmatpush.msrb.mxu0 %v6854_v14  ;;  %v576_v1 = vld [vmem:[#allocation8 + $0xb60] sm:$0xff] }
  0xa0   :  { %11645 = vst [vmem:[#allocation85_spill] sm:$0xff] %v6854_v14  ;;  %778 = vmatpush.msra.mxu2 %v6860_v52  ;;  %v6872_v14 = vld [vmem:[#allocation9 + $0x2] ss:$4 sm:$0xf]  ;;  %824 = vmatpush.msrb.mxu1 %v576_v1  ;;  %v6886_v1 = vperm.slane %v6880_v60, 2 }
  0xa1   :  { %v552_v52 = vld [vmem:[#allocation8 + $0xaa0] sm:$0xff] }
  0xa2   :  { %825 = vmatpush.msrb.mxu1 %v564_v61  ;;  %11651 = vst [vmem:[#allocation91_spill] sm:$0xff] %v6886_v1  ;;  %v11652_v61 = vmov 0.0  }
  0xa3   :  { %759 = vmatmul.f32.vlgmr.msra.gmra.mxu1 %v11652_v61  ;;  %799 = vmatmul.f32.vlgmr.msrb.gmra.mxu3 %v11652_v61 }
  0xa4   :  { %v628_v28 = vld [vmem:[#allocation2 + $0x30] sm:$0x3]  ;;  %v132_v40 = vpop.f32.mrf.mxu3  ;;  %826 = vmatpush.msrb.mxu1 %v552_v52 }
  0xa5   :  { %4707 = vtanh.f32 %v628_v28  ;;  %v629_v57 = vld [vmem:[#allocation2 + $0x18] sm:$0x3]  ;;  %208 = vst [vmem:[#allocation2 + $0x8] sm:$0xff] %v132_v40  ;;  %v6875_v28 = vperm.slane %v6872_v14, 0  ;;  %v6878_v40 = vperm.slane %v6872_v14, 2 }
  0xa6   :  { %4709 = vtanh.f32 %v629_v57  ;;  %827 = vmatpush.msrb.mxu1 %v540_v53 }
  0xa7   :  { %11649 = vst [vmem:[#allocation89_spill] sm:$0xff] %v6875_v28 }
  0xa8   :  { %11650 = vst [vmem:[#allocation90_spill] sm:$0xff] %v6878_v40  ;;  %828 = vmatpush.msrb.mxu1 %v528_v6  ;;  %v456_v6 = vld [vmem:[#allocation8 + $0x7a0] sm:$0xff] }
  0xaa   :  { %829 = vmatpush.msrb.mxu1 %v516_v10  ;;  %v458_v10 = vld [vmem:[#allocation8 + $0x7b0] sm:$0xff] }
  0xab   :  { %v4708_v57 = vpop.eup %4707 }
  0xac   :  { %v4710_v44 = vpop.eup %4709  ;;  %v198_v5 = vpop.f32.mrf.mxu3  ;;  %v634_v2 = vmul.f32 %v4708_v57, %v6875_v28  ;;  %v506_v57 = vld [vmem:[#allocation8 + $0x930] sm:$0xff]  ;;  %830 = vmatpush.msrb.mxu1 %v504_v45  ;;  %v6901_v45 = vperm.slane %v6880_v60, 3 }
  0xad   :  { %207 = vst [vmem:[#allocation2 + $0x10] sm:$0xff] %v198_v5  ;;  %v635_v49 = vmul.f32 %v4710_v44, %v6878_v40  ;;  %v518_v5 = vld [vmem:[#allocation8 + $0x990] sm:$0xff]  ;;  %v492_v44 = vld [vmem:[#allocation8 + $0x8c0] sm:$0xff] }
  0xae   :  { %v637_v52 = vadd.f32 %v634_v2, %v6883_v19  ;;  %869 = vmatpush.msra.mxu3 %v518_v5  ;;  %v494_v40 = vld [vmem:[#allocation8 + $0x8d0] sm:$0xff]  ;;  %831 = vmatpush.msrb.mxu1 %v492_v44 }
  0xaf   :  { %v638_v62 = vadd.f32 %v635_v49, %v6886_v1  ;;  %v470_v2 = vld [vmem:[#allocation8 + $0x810] sm:$0xff]  ;;  %v6897_v49 = vperm.slane %v6872_v14, 3  ;;  %v6907_v1 = vld [vmem:[#allocation8 + $0x5c0] sm:$0xff] }
  0xb0   :  { %870 = vmatpush.msra.mxu3 %v506_v57  ;;  %832 = vmatpush.msrb.mxu1 %v480_v4  ;;  %v446_v5 = vld [vmem:[#allocation8 + $0x750] sm:$0xff] }
  0xb1   :  { %v6894_v53 = vmul.f32 %v638_v62, %v637_v52  ;;  %v432_v52 = vld [vmem:[#allocation8 + $0x6e0] sm:$0xff]  ;;  %v434_v57 = vld [vmem:[#allocation8 + $0x6f0] sm:$0xff] }
  0xb2   :  { %871 = vmatpush.msra.mxu3 %v494_v40  ;;  %833 = vmatpush.msrb.mxu1 %v468_v24  ;;  %v6909_v24 = vld [vmem:[#allocation8 + $0x5d0] sm:$0xff] }
  0xb3   :  { %11653 = vst [vmem:[#allocation92_spill] sm:$0xff] %v6894_v53 }
  0xb4   :  { %v630_v28 = vld [vmem:[#allocation2 + $0x10] sm:$0x3]  ;;  %872 = vmatpush.msra.mxu3 %v482_v0  ;;  %834 = vmatpush.msrb.mxu1 %v456_v6  ;;  %11654 = vst [vmem:[#allocation93_spill] sm:$0xff] %v6909_v24 }
  0xb5   :  { %4711 = vtanh.f32 %v630_v28  ;;  %v444_v28 = vld [vmem:[#allocation8 + $0x740] sm:$0xff] }
  0xb6   :  { %4713 = vtanh.f32 %v6894_v53  ;;  %873 = vmatpush.msra.mxu3 %v470_v2  ;;  %835 = vmatpush.msrb.mxu1 %v444_v28  ;;  %v420_v2 = vld [vmem:[#allocation8 + $0x680] sm:$0xff]  ;;  %v422_v53 = vld [vmem:[#allocation8 + $0x690] sm:$0xff] }
  0xb7   :  { %v6913_v6 = vld [vmem:[#allocation8 + $0x560] sm:$0xff]  ;;  %v410_v28 = vld [vmem:[#allocation8 + $0x630] sm:$0xff] }
  0xb8   :  { %874 = vmatpush.msra.mxu3 %v458_v10  ;;  %836 = vmatpush.msrb.mxu1 %v432_v52  ;;  %v6915_v10 = vld [vmem:[#allocation8 + $0x570] sm:$0xff]  ;;  %v6925_v52 = vld [vmem:[#allocation8 + $0x4a0] sm:$0xff] }
  0xb9   :  { %11655 = vst [vmem:[#allocation94_spill] sm:$0xff] %v6915_v10 }
  0xba   :  { %875 = vmatpush.msra.mxu3 %v446_v5  ;;  %v6919_v5 = vld [vmem:[#allocation8 + $0x500] sm:$0xff]  ;;  %837 = vmatpush.msrb.mxu1 %v420_v2 }
  0xbb   :  { %v4712_v62 = vpop.eup %4711  ;;  %v6943_v2 = vld [vmem:[#allocation8 + $0x3e0] sm:$0xff] }
  0xbc   :  { %v636_v40 = vmul.f32 %v4712_v62, %v6897_v49  ;;  %v4714_v44 = vpop.eup %4713  ;;  %876 = vmatpush.msra.mxu3 %v434_v57  ;;  %v408_v62 = vld [vmem:[#allocation8 + $0x620] sm:$0xff]  ;;  %v6927_v57 = vld [vmem:[#allocation8 + $0x4b0] sm:$0xff] }
  0xbd   :  { %11657 = vst [vmem:[#allocation96_spill] sm:$0xff] %v6927_v57  ;;  %838 = vmatpush.msrb.mxu1 %v408_v62  ;;  %v6945_v62 = vld [vmem:[#allocation8 + $0x3f0] sm:$0xff] }
  0xbe   :  { %v639_v0 = vadd.f32 %v636_v40, %v6901_v45  ;;  %v6921_v40 = vld [vmem:[#allocation8 + $0x510] sm:$0xff]  ;;  %877 = vmatpush.msra.mxu3 %v422_v53  ;;  %839 = vmatmul.f32.vlgmr.msrb.gmra.mxu1 %v11652_v61  ;;  %v6939_v53 = vld [vmem:[#allocation8 + $0xbd8] sm:$0xff]  ;;  %11661 = vst [vmem:[#allocation100_spill] sm:$0xff] %v6945_v62 }
  0xbf   :  { %11656 = vst [vmem:[#allocation95_spill] sm:$0xff] %v6921_v40  ;;  %903 = vmatpush.msra.mxu1 %v6939_v53 }
  0xc0   :  { %v6905_v4 = vmul.f32 %v4714_v44, %v639_v0  ;;  %878 = vmatpush.msra.mxu3 %v410_v28  ;;  %v6931_v0 = vld [vmem:[#allocation8 + $0x440] sm:$0xff]  ;;  %v6933_v44 = vld [vmem:[#allocation8 + $0x450] sm:$0xff]  ;;  %11660 = vst [vmem:[#allocation99_spill] sm:$0xff] %v6939_v53  ;;  %v6949_v28 = vld [vmem:[#allocation8 + $0xb78] sm:$0xff] }
  0xc1   :  { %11658 = vst [vmem:[#allocation97_spill] sm:$0xff] %v6931_v0  ;;  %879 = vmatmul.f32.vlgmr.msra.gmra.mxu3 %v11652_v61  ;;  %904 = vmatpush.msra.mxu1 %v6949_v28  ;;  %v6969_v53 = vld [vmem:[#allocation8 + $0xab8] sm:$0xff] }
  0xc2   :  { %659 = vmatmul.f32.vlgmr.msra.gmra.mxu0 %v6905_v4  ;;  %699 = vmatmul.f32.vlgmr.msrb.gmra.mxu2 %v6905_v4  ;;  %11659 = vst [vmem:[#allocation98_spill] sm:$0xff] %v6933_v44 }
  0xc3   :  { %803 = vmatpush.msra.mxu0 %v6907_v1  ;;  %843 = vmatpush.msrb.mxu2 %v6909_v24  ;;  %11662 = vst [vmem:[#allocation101_spill] sm:$0xff] %v6949_v28  ;;  %v6961_v24 = vld [vmem:[#allocation8 + $0x320] sm:$0xff]  ;;  %v6979_v28 = vld [vmem:[#allocation8 + $0xa58] sm:$0xff] }
  0xc4   :  { %1005 = vmatpush.msrb.mxu3 %v6510_v11  ;;  %11666 = vst [vmem:[#allocation105_spill] sm:$0xff] %v6969_v53  ;;  %v6971_v11 = vld [vmem:[#allocation8 + $0x2c0] sm:$0xff] }
  0xc5   :  { %804 = vmatpush.msra.mxu0 %v6913_v6  ;;  %844 = vmatpush.msrb.mxu2 %v6915_v10  ;;  %v6953_v10 = vld [vmem:[#allocation8 + $0x390] sm:$0xff]  ;;  %11668 = vst [vmem:[#allocation107_spill] sm:$0xff] %v6979_v28 }
  0xc6   :  { %11663 = vst [vmem:[#allocation102_spill] sm:$0xff] %v6953_v10  ;;  %1006 = vmatpush.msrb.mxu3 %v6517_v15  ;;  %v6981_v15 = vld [vmem:[#allocation8 + $0x260] sm:$0xff] }
  0xc7   :  { %805 = vmatpush.msra.mxu0 %v6919_v5  ;;  %845 = vmatpush.msrb.mxu2 %v6921_v40  ;;  %v6951_v40 = vld [vmem:[#allocation8 + $0x380] sm:$0xff] }
  0xc8   :  { %1007 = vmatpush.msrb.mxu3 %v6528_v20  ;;  %v6991_v20 = vld [vmem:[#allocation8 + $0x200] sm:$0xff] }
  0xc9   :  { %806 = vmatpush.msra.mxu0 %v6925_v52  ;;  %846 = vmatpush.msrb.mxu2 %v6927_v57  ;;  %v6959_v57 = vld [vmem:[#allocation8 + $0xb18] sm:$0xff] }
  0xca   :  { %739 = vmatmul.f32.vlgmr.msrb.gmra.mxu0 %v6905_v4  ;;  %779 = vmatmul.f32.vlgmr.msra.gmra.mxu2 %v6905_v4  ;;  %11664 = vst [vmem:[#allocation103_spill] sm:$0xff] %v6959_v57 }
  0xcb   :  { %807 = vmatpush.msra.mxu0 %v6931_v0  ;;  %847 = vmatpush.msrb.mxu2 %v6933_v44  ;;  %v6963_v0 = vld [vmem:[#allocation8 + $0x330] sm:$0xff] }
  0xcc   :  { %11665 = vst [vmem:[#allocation104_spill] sm:$0xff] %v6963_v0  ;;  %v6973_v44 = vld [vmem:[#allocation8 + $0x2d0] sm:$0xff]  ;;  %905 = vmatpush.msra.mxu1 %v6959_v57  ;;  %1008 = vmatpush.msrb.mxu3 %v6537_v23  ;;  %v6989_v57 = vld [vmem:[#allocation8 + $0x9f8] sm:$0xff]  ;;  %v7001_v23 = vld [vmem:[#allocation8 + $0x1a0] sm:$0xff] }
  0xcd   :  { %808 = vmatpush.msra.mxu0 %v6943_v2  ;;  %848 = vmatpush.msrb.mxu2 %v6945_v62  ;;  %11667 = vst [vmem:[#allocation106_spill] sm:$0xff] %v6973_v44  ;;  %v6983_v62 = vld [vmem:[#allocation8 + $0x270] sm:$0xff] }
  0xce   :  { %11669 = vst [vmem:[#allocation108_spill] sm:$0xff] %v6983_v62  ;;  %906 = vmatpush.msra.mxu1 %v6969_v53  ;;  %1009 = vmatpush.msrb.mxu3 %v6548_v27  ;;  %v6999_v53 = vld [vmem:[#allocation8 + $0x998] sm:$0xff]  ;;  %v7011_v27 = vld [vmem:[#allocation8 + $0x140] sm:$0xff] }
  0xcf   :  { %809 = vmatpush.msra.mxu0 %v6951_v40  ;;  %849 = vmatpush.msrb.mxu2 %v6953_v10  ;;  %11670 = vst [vmem:[#allocation109_spill] sm:$0xff] %v6989_v57  ;;  %v6993_v10 = vld [vmem:[#allocation8 + $0x210] sm:$0xff] }
  0xd0   :  { %11671 = vst [vmem:[#allocation110_spill] sm:$0xff] %v6993_v10  ;;  %907 = vmatpush.msra.mxu1 %v6979_v28  ;;  %1010 = vmatpush.msrb.mxu3 %v6557_v31  ;;  %v7009_v28 = vld [vmem:[#allocation8 + $0x938] sm:$0xff]  ;;  %v7021_v31 = vld [vmem:[#allocation8 + $0xe0] sm:$0xff] }
  0xd1   :  { %810 = vmatpush.msra.mxu0 %v6961_v24  ;;  %850 = vmatpush.msrb.mxu2 %v6963_v0  ;;  %11672 = vst [vmem:[#allocation111_spill] sm:$0xff] %v6999_v53  ;;  %v7003_v0 = vld [vmem:[#allocation8 + $0x1b0] sm:$0xff] }
  0xd2   :  { %11673 = vst [vmem:[#allocation112_spill] sm:$0xff] %v7003_v0  ;;  %908 = vmatpush.msra.mxu1 %v6989_v57  ;;  %1011 = vmatpush.msrb.mxu3 %v6566_v35  ;;  %v7019_v57 = vld [vmem:[#allocation8 + $0x8d8] sm:$0xff]  ;;  %v7031_v35 = vld [vmem:[#allocation8 + $0x80] sm:$0xff] }
  0xd3   :  { %811 = vmatpush.msra.mxu0 %v6971_v11  ;;  %851 = vmatpush.msrb.mxu2 %v6973_v44  ;;  %11674 = vst [vmem:[#allocation113_spill] sm:$0xff] %v7009_v28  ;;  %v7013_v44 = vld [vmem:[#allocation8 + $0x150] sm:$0xff] }
  0xd4   :  { %909 = vmatpush.msra.mxu1 %v6999_v53  ;;  %11675 = vst [vmem:[#allocation114_spill] sm:$0xff] %v7019_v57  ;;  %1012 = vmatpush.msrb.mxu3 %v6575_v39  ;;  %v7029_v53 = vld [vmem:[#allocation8 + $0x878] sm:$0xff]  ;;  %v7041_v39 = vld [vmem:[#allocation8 + $0x20] sm:$0xff] }
  0xd5   :  { %812 = vmatpush.msra.mxu0 %v6981_v15  ;;  %852 = vmatpush.msrb.mxu2 %v6983_v62  ;;  %v7023_v62 = vld [vmem:[#allocation8 + $0xf0] sm:$0xff]  ;;  %11677 = vst [vmem:[#allocation116_spill] sm:$0xff] %v7029_v53 }
  0xd6   :  { %11676 = vst [vmem:[#allocation115_spill] sm:$0xff] %v7023_v62  ;;  %910 = vmatpush.msra.mxu1 %v7009_v28  ;;  %1013 = vmatpush.msrb.mxu3 %v6585_v43  ;;  %v7039_v28 = vld [vmem:[#allocation8 + $0x818] sm:$0xff] }
  0xd7   :  { %813 = vmatpush.msra.mxu0 %v6991_v20  ;;  %853 = vmatpush.msrb.mxu2 %v6993_v10  ;;  %v7033_v10 = vld [vmem:[#allocation8 + $0x90] sm:$0xff]  ;;  %11679 = vst [vmem:[#allocation118_spill] sm:$0xff] %v7039_v28  ;;  %v7052_v43 = vld [vmem:[#allocation8 + $0x7b8] sm:$0xff] }
  0xd8   :  { %11678 = vst [vmem:[#allocation117_spill] sm:$0xff] %v7033_v10  ;;  %911 = vmatpush.msra.mxu1 %v7019_v57  ;;  %1014 = vmatpush.msrb.mxu3 %v6594_v47  ;;  %v7049_v57 = vld [vmem:[#allocation8 + $0x5d8] sm:$0xff] }
  0xd9   :  { %814 = vmatpush.msra.mxu0 %v7001_v23  ;;  %854 = vmatpush.msrb.mxu2 %v7003_v0  ;;  %v7043_v0 = vld [vmem:[#allocation8 + $0x30] sm:$0xff]  ;;  %v7059_v47 = vld [vmem:[#allocation8 + $0x578] sm:$0xff] }
  0xda   :  { %11680 = vst [vmem:[#allocation119_spill] sm:$0xff] %v7043_v0  ;;  %912 = vmatpush.msra.mxu1 %v7029_v53  ;;  %1015 = vmatpush.msrb.mxu3 %v6603_v51  ;;  %v7061_v53 = vld [vmem:[#allocation8 + $0x758] sm:$0xff] }
  0xdb   :  { %815 = vmatpush.msra.mxu0 %v7011_v27  ;;  %855 = vmatpush.msrb.mxu2 %v7013_v44  ;;  %v7067_v51 = vld [vmem:[#allocation8 + $0x6f8] sm:$0xff] }
  0xdc   :  { %913 = vmatpush.msra.mxu1 %v7039_v28  ;;  %v7065_v28 = vld [vmem:[#allocation8 + $0x518] sm:$0xff]  ;;  %1016 = vmatpush.msrb.mxu3 %v6612_v55 }
  0xdd   :  { %816 = vmatpush.msra.mxu0 %v7021_v31  ;;  %856 = vmatpush.msrb.mxu2 %v7023_v62  ;;  %v7075_v62 = vld [vmem:[#allocation8 + $0x698] sm:$0xff] }
  0xde   :  { %914 = vmatpush.msra.mxu1 %v7052_v43  ;;  %1017 = vmatpush.msrb.mxu3 %v6632_v59  ;;  %v7089_v55 = vld [vmem:[#allocation8 + $0x3f8] sm:$0xff] }
  0xdf   :  { %817 = vmatpush.msra.mxu0 %v7031_v35  ;;  %857 = vmatpush.msrb.mxu2 %v7033_v10  ;;  %v152_v10 = vpop.f32.mrf.mxu1  ;;  %v7107_v59 = vld [vmem:[#allocation8 + $0x2d8] sm:$0xff] }
  0xe0   :  { %205 = vst [vmem:[#allocation2] sm:$0xff] %v152_v10  ;;  %915 = vmatpush.msra.mxu1 %v7061_v53  ;;  %v7081_v10 = vld [vmem:[#allocation8 + $0x458] sm:$0xff]  ;;  %1018 = vmatpush.msrb.mxu3 %v6644_v63 }
  0xe1   :  { %818 = vmatpush.msra.mxu0 %v7041_v39  ;;  %858 = vmatpush.msrb.mxu2 %v7043_v0  ;;  %v7073_v0 = vld [vmem:[#allocation8 + $0x4b8] sm:$0xff] }
  0xe2   :  { %819 = vmatmul.f32.vlgmr.msra.gmra.mxu0 %v6905_v4  ;;  %859 = vmatmul.f32.vlgmr.msrb.gmra.mxu2 %v6905_v4  ;;  %v11689_v63 = vld [vmem:[#allocation28_spill] sm:$0xff] }
  0xe3   :  { %883 = vmatpush.msrb.mxu0 %v7049_v57  ;;  %985 = vmatpush.msra.mxu2 %v6502_v7  ;;  %v7083_v7 = vld [vmem:[#allocation8 + $0x638] sm:$0xff] }
  0xe4   :  { %916 = vmatpush.msra.mxu1 %v7067_v51  ;;  %1019 = vmatpush.msrb.mxu3 %v6656_v3  ;;  %v4863_v3 = vld [vmem:[#allocation8 + $0x5a8] sm:$0xff] }
  0xe5   :  { %884 = vmatpush.msrb.mxu0 %v7059_v47  ;;  %986 = vmatpush.msra.mxu2 %v6515_v13  ;;  %v7095_v13 = vld [vmem:[#allocation8 + $0x398] sm:$0xff] }
  0xe6   :  { %917 = vmatpush.msra.mxu1 %v7075_v62  ;;  %1020 = vmatpush.msrb.mxu3 %v6668_v8  ;;  %v11690_v8 = vld [vmem:[#allocation31_spill] sm:$0xff] }
  0xe7   :  { %885 = vmatpush.msrb.mxu0 %v7065_v28  ;;  %987 = vmatpush.msra.mxu2 %v6523_v17  ;;  %v7101_v17 = vld [vmem:[#allocation8 + $0x338] sm:$0xff] }
  0xe8   :  { %918 = vmatpush.msra.mxu1 %v7083_v7  ;;  %1085 = vmatpush.msra.mxu3 %v6678_v18  ;;  %v11692_v18 = vld [vmem:[#allocation62_spill] sm:$0xff] }
  0xe9   :  { %886 = vmatpush.msrb.mxu0 %v7073_v0  ;;  %988 = vmatpush.msra.mxu2 %v6534_v22  ;;  %v155_v22 = vpop.f32.mrf.mxu1 }
  0xea   :  { %919 = vmatmul.f32.vlgmr.msra.gmra.mxu1 %v11652_v61  ;;  %209 = vst [vmem:[#allocation2 + $0x20] sm:$0xff] %v155_v22  ;;  %1086 = vmatpush.msra.mxu3 %v6690_v32  ;;  %v4864_v32 = vld [vmem:[#allocation8 + $0x548] sm:$0xff]  ;;  %v11697_v22 = vld [vmem:[#allocation24_spill] sm:$0xff] }
  0xeb   :  { %887 = vmatpush.msrb.mxu0 %v7081_v10  ;;  %989 = vmatpush.msra.mxu2 %v6544_v26  ;;  %v178_v26 = vpop.f32.mrf.mxu2  ;;  %v4865_v61 = vld [vmem:[#allocation8 + $0x4e8] sm:$0xff] }
  0xec   :  { %1045 = vmatpush.msrb.mxu1 %v6512_v12  ;;  %v7113_v12 = vld [vmem:[#allocation8 + $0x278] sm:$0xff]  ;;  %1087 = vmatpush.msra.mxu3 %v6700_v48  ;;  %210 = vst [vmem:[#allocation2 + $0x28] sm:$0xff] %v178_v26  ;;  %v11698_v26 = vld [vmem:[#allocation70_spill] sm:$0xff] }
  0xed   :  { %888 = vmatpush.msrb.mxu0 %v7089_v55  ;;  %990 = vmatpush.msra.mxu2 %v6553_v30  ;;  %v201_v30 = vpop.f32.mrf.mxu3  ;;  %v11694_v48 = vld [vmem:[#allocation21_spill] sm:$0xff] }
  0xee   :  { %1046 = vmatpush.msrb.mxu1 %v6519_v16  ;;  %v7119_v16 = vld [vmem:[#allocation8 + $0x218] sm:$0xff]  ;;  %1088 = vmatpush.msra.mxu3 %v6712_v9  ;;  %211 = vst [vmem:[#allocation2 + $0x38] sm:$0xff] %v201_v30  ;;  %v11691_v9 = vld [vmem:[#allocation19_spill] sm:$0xff] }
  0xef   :  { %889 = vmatpush.msrb.mxu0 %v7095_v13  ;;  %991 = vmatpush.msra.mxu2 %v6562_v34  ;;  %v11681_v34 = vld [vmem:[#allocation50_spill] sm:$0xff] }
  0xf0   :  { %1047 = vmatpush.msrb.mxu1 %v6532_v21  ;;  %v7125_v21 = vld [vmem:[#allocation8 + $0x1b8] sm:$0xff]  ;;  %1089 = vmatpush.msra.mxu3 %v6724_v36  ;;  %v11693_v36 = vld [vmem:[#allocation34_spill] sm:$0xff] }
  0xf1   :  { %890 = vmatpush.msrb.mxu0 %v7101_v17  ;;  %992 = vmatpush.msra.mxu2 %v6573_v38  ;;  %v11682_v38 = vld [vmem:[#allocation16_spill] sm:$0xff]  ;;  %v4866_v30 = vld [vmem:[#allocation8 + $0x488] sm:$0xff] }
  0xf2   :  { %1048 = vmatpush.msrb.mxu1 %v6542_v25  ;;  %v7131_v25 = vld [vmem:[#allocation8 + $0x158] sm:$0xff]  ;;  %1090 = vmatpush.msra.mxu3 %v6738_v56  ;;  %v11695_v56 = vld [vmem:[#allocation66_spill] sm:$0xff] }
  0xf3   :  { %891 = vmatpush.msrb.mxu0 %v7107_v59  ;;  %993 = vmatpush.msra.mxu2 %v6583_v42  ;;  %v11683_v42 = vld [vmem:[#allocation22_spill] sm:$0xff] }
  0xf4   :  { %1049 = vmatpush.msrb.mxu1 %v6551_v29  ;;  %v7137_v29 = vld [vmem:[#allocation8 + $0xf8] sm:$0xff]  ;;  %1091 = vmatpush.msra.mxu3 %v11681_v34 }
  0xf5   :  { %892 = vmatpush.msrb.mxu0 %v7113_v12  ;;  %994 = vmatpush.msra.mxu2 %v6592_v46  ;;  %v11684_v46 = vld [vmem:[#allocation54_spill] sm:$0xff]  ;;  %v11699_v34 = vld [vmem:[#allocation40_spill] sm:$0xff] }
  0xf6   :  { %1050 = vmatpush.msrb.mxu1 %v6560_v33  ;;  %v7143_v33 = vld [vmem:[#allocation8 + $0x98] sm:$0xff]  ;;  %1092 = vmatpush.msra.mxu3 %v11684_v46  ;;  %v4867_v46 = vld [vmem:[#allocation8 + $0x428] sm:$0xff] }
  0xf7   :  { %893 = vmatpush.msrb.mxu0 %v7119_v16  ;;  %995 = vmatpush.msra.mxu2 %v6601_v50  ;;  %v11685_v50 = vld [vmem:[#allocation17_spill] sm:$0xff] }
  0xf8   :  { %1051 = vmatpush.msrb.mxu1 %v6569_v37  ;;  %v7149_v37 = vld [vmem:[#allocation8 + $0x38] sm:$0xff] }
  0xf9   :  { %894 = vmatpush.msrb.mxu0 %v7125_v21  ;;  %996 = vmatpush.msra.mxu2 %v6610_v54  ;;  %v11687_v54 = vld [vmem:[#allocation58_spill] sm:$0xff] }
  0xfa   :  { %1052 = vmatpush.msrb.mxu1 %v6580_v41  ;;  %v11686_v41 = vld [vmem:[#allocation25_spill] sm:$0xff]  ;;  %1093 = vmatpush.msra.mxu3 %v11687_v54  ;;  %v11704_v54 = vld [vmem:[#allocation78_spill] sm:$0xff] }
  0xfb   :  { %895 = vmatpush.msrb.mxu0 %v7131_v25  ;;  %997 = vmatpush.msra.mxu2 %v6630_v58  ;;  %v11688_v58 = vld [vmem:[#allocation18_spill] sm:$0xff] }
  0xfc   :  { %1053 = vmatpush.msrb.mxu1 %v11682_v38  ;;  %1094 = vmatpush.msra.mxu3 %v11692_v18  ;;  %v11700_v38 = vld [vmem:[#allocation27_spill] sm:$0xff]  ;;  %v11708_v18 = vld [vmem:[#allocation49_spill] sm:$0xff] }
  0xfd   :  { %896 = vmatpush.msrb.mxu0 %v7137_v29  ;;  %998 = vmatpush.msra.mxu2 %v11683_v42  ;;  %v11701_v42 = vld [vmem:[#allocation74_spill] sm:$0xff] }
  0xfe   :  { %1054 = vmatpush.msrb.mxu1 %v11685_v50  ;;  %1095 = vmatpush.msra.mxu3 %v11695_v56  ;;  %v11702_v50 = vld [vmem:[#allocation43_spill] sm:$0xff]  ;;  %v11711_v56 = vld [vmem:[#allocation53_spill] sm:$0xff] }
  0xff   :  { %897 = vmatpush.msrb.mxu0 %v7143_v33  ;;  %999 = vmatpush.msra.mxu2 %v11686_v41  ;;  %v11703_v41 = vld [vmem:[#allocation30_spill] sm:$0xff] }
 0x100   :  { %1055 = vmatpush.msrb.mxu1 %v11688_v58  ;;  %1096 = vmatpush.msra.mxu3 %v11698_v26  ;;  %v4868_v58 = vld [vmem:[#allocation8 + $0x3c8] sm:$0xff] }
 0x101   :  { %898 = vmatpush.msrb.mxu0 %v7149_v37  ;;  %1000 = vmatpush.msra.mxu2 %v11689_v63  ;;  %v11705_v63 = vld [vmem:[#allocation46_spill] sm:$0xff] }
 0x102   :  { %899 = vmatmul.f32.vlgmr.msrb.gmra.mxu0 %v6905_v4  ;;  %1056 = vmatpush.msrb.mxu1 %v11691_v9  ;;  %v11696_v4 = vld [vmem:[#allocation37_spill] sm:$0xff]  ;;  %v4869_v9 = vld [vmem:[#allocation8 + $0x368] sm:$0xff] }
 0x103   :  { %1025 = vmatpush.msra.mxu0 %v4863_v3  ;;  %1065 = vmatpush.msrb.mxu2 %v11690_v8  ;;  %v11706_v3 = vld [vmem:[#allocation33_spill] sm:$0xff]  ;;  %v11707_v8 = vld [vmem:[#allocation82_spill] sm:$0xff] }
 0x104   :  { %1057 = vmatpush.msrb.mxu1 %v11694_v48  ;;  %1097 = vmatpush.msra.mxu3 %v11701_v42  ;;  %v4870_v48 = vld [vmem:[#allocation8 + $0x308] sm:$0xff] }
 0x105   :  { %1026 = vmatpush.msra.mxu0 %v4864_v32  ;;  %1066 = vmatpush.msrb.mxu2 %v11693_v36  ;;  %v11709_v32 = vld [vmem:[#allocation36_spill] sm:$0xff]  ;;  %v11710_v36 = vld [vmem:[#allocation86_spill] sm:$0xff] }
 0x106   :  { %1058 = vmatpush.msrb.mxu1 %v11697_v22  ;;  %1098 = vmatpush.msra.mxu3 %v11704_v54  ;;  %v11713_v22 = vld [vmem:[#allocation57_spill] sm:$0xff]  ;;  %v11714_v26 = vld [vmem:[#allocation42_spill] sm:$0xff] }
 0x107   :  { %1027 = vmatpush.msra.mxu0 %v4865_v61  ;;  %1067 = vmatpush.msrb.mxu2 %v11696_v4  ;;  %v11712_v61 = vld [vmem:[#allocation39_spill] sm:$0xff]  ;;  %v11719_v54 = vld [vmem:[#allocation69_spill] sm:$0xff] }
 0x108   :  { %1059 = vmatpush.msrb.mxu1 %v11700_v38  ;;  %1099 = vmatpush.msra.mxu3 %v11707_v8  ;;  %v4871_v4 = vld [vmem:[#allocation8 + $0x2a8] sm:$0xff]  ;;  %v11716_v38 = vld [vmem:[#allocation45_spill] sm:$0xff]  ;;  %v11723_v8 = vld [vmem:[#allocation56_spill] sm:$0xff] }
 0x109   :  { %1028 = vmatpush.msra.mxu0 %v4866_v30  ;;  %1068 = vmatpush.msrb.mxu2 %v11699_v34  ;;  %v4872_v30 = vld [vmem:[#allocation8 + $0x248] sm:$0xff]  ;;  %v11715_v34 = vld [vmem:[#allocation61_spill] sm:$0xff] }
 0x10a   :  { %1060 = vmatpush.msrb.mxu1 %v11703_v41  ;;  %1100 = vmatpush.msra.mxu3 %v11710_v36  ;;  %v4873_v42 = vld [vmem:[#allocation8 + $0x1e8] sm:$0xff] }
 0x10b   :  { %1029 = vmatpush.msra.mxu0 %v4867_v46  ;;  %1069 = vmatpush.msrb.mxu2 %v11702_v50  ;;  %v11717_v46 = vld [vmem:[#allocation65_spill] sm:$0xff]  ;;  %v11718_v50 = vld [vmem:[#allocation48_spill] sm:$0xff]  ;;  %v4874_v41 = vld [vmem:[#allocation8 + $0x188] sm:$0xff] }
 0x10c   :  { %1125 = vmatpush.msra.mxu1 %v11706_v3  ;;  %v11722_v3 = vld [vmem:[#allocation73_spill] sm:$0xff]  ;;  %v11727_v36 = vld [vmem:[#allocation26_spill] sm:$0xff] }
 0x10d   :  { %1030 = vmatpush.msra.mxu0 %v4868_v58  ;;  %1070 = vmatpush.msrb.mxu2 %v11705_v63  ;;  %v11720_v58 = vld [vmem:[#allocation52_spill] sm:$0xff] }
 0x10e   :  { %1126 = vmatpush.msra.mxu1 %v11709_v32  ;;  %v11721_v63 = vld [vmem:[#allocation20_spill] sm:$0xff] }
 0x10f   :  { %1031 = vmatpush.msra.mxu0 %v4869_v9  ;;  %1071 = vmatpush.msrb.mxu2 %v11708_v18  ;;  %v11724_v9 = vld [vmem:[#allocation23_spill] sm:$0xff]  ;;  %v11725_v18 = vld [vmem:[#allocation77_spill] sm:$0xff]  ;;  %v11726_v32 = vld [vmem:[#allocation60_spill] sm:$0xff] }
 0x110   :  { %1127 = vmatpush.msra.mxu1 %v11712_v61  ;;  %v11730_v61 = vld [vmem:[#allocation29_spill] sm:$0xff] }
 0x111   :  { %1032 = vmatpush.msra.mxu0 %v4870_v48  ;;  %1072 = vmatpush.msrb.mxu2 %v11711_v56  ;;  %v11728_v48 = vld [vmem:[#allocation81_spill] sm:$0xff]  ;;  %v11729_v56 = vld [vmem:[#allocation64_spill] sm:$0xff] }
 0x112   :  { %1128 = vmatpush.msra.mxu1 %v11714_v26  ;;  %v11733_v26 = vld [vmem:[#allocation68_spill] sm:$0xff] }
 0x113   :  { %1033 = vmatpush.msra.mxu0 %v4871_v4  ;;  %1073 = vmatpush.msrb.mxu2 %v11713_v22  ;;  %v11731_v4 = vld [vmem:[#allocation85_spill] sm:$0xff]  ;;  %v11732_v22 = vld [vmem:[#allocation32_spill] sm:$0xff] }
 0x114   :  { %1129 = vmatpush.msra.mxu1 %v11716_v38  ;;  %v11736_v38 = vld [vmem:[#allocation38_spill] sm:$0xff] }
 0x115   :  { %1034 = vmatpush.msra.mxu0 %v4872_v30  ;;  %1074 = vmatpush.msrb.mxu2 %v11715_v34  ;;  %v11734_v30 = vld [vmem:[#allocation35_spill] sm:$0xff]  ;;  %v11735_v34 = vld [vmem:[#allocation72_spill] sm:$0xff] }
 0x116   :  { %1130 = vmatpush.msra.mxu1 %v11718_v50  ;;  %v11739_v50 = vld [vmem:[#allocation80_spill] sm:$0xff] }
 0x117   :  { %1035 = vmatpush.msra.mxu0 %v4873_v42  ;;  %1075 = vmatpush.msrb.mxu2 %v11717_v46  ;;  %v11737_v42 = vld [vmem:[#allocation76_spill] sm:$0xff]  ;;  %v11738_v46 = vld [vmem:[#allocation41_spill] sm:$0xff] }
 0x118   :  { %1131 = vmatpush.msra.mxu1 %v11720_v58  ;;  %v11742_v58 = vld [vmem:[#allocation47_spill] sm:$0xff] }
 0x119   :  { %1036 = vmatpush.msra.mxu0 %v4874_v41  ;;  %1076 = vmatpush.msrb.mxu2 %v11719_v54  ;;  %v11740_v41 = vld [vmem:[#allocation44_spill] sm:$0xff] }
 0x11a   :  { %1132 = vmatpush.msra.mxu1 %v11723_v8  ;;  %v11741_v54 = vld [vmem:[#allocation84_spill] sm:$0xff]  ;;  %v11745_v8 = vld [vmem:[#allocation55_spill] sm:$0xff] }
 0x11b   :  { %1037 = vmatpush.msra.mxu0 %v11721_v63  ;;  %1077 = vmatpush.msrb.mxu2 %v11722_v3  ;;  %v11743_v63 = vld [vmem:[#allocation88_spill] sm:$0xff]  ;;  %v11744_v3 = vld [vmem:[#allocation51_spill] sm:$0xff] }
 0x11c   :  { %1133 = vmatpush.msra.mxu1 %v11726_v32  ;;  %v11748_v32 = vld [vmem:[#allocation67_spill] sm:$0xff] }
 0x11d   :  { %1038 = vmatpush.msra.mxu0 %v11724_v9  ;;  %1078 = vmatpush.msrb.mxu2 %v11725_v18  ;;  %v11746_v9 = vld [vmem:[#allocation59_spill] sm:$0xff] }
 0x11e   :  { %1134 = vmatpush.msra.mxu1 %v11729_v56  ;;  %v11747_v18 = vld [vmem:[#allocation63_spill] sm:$0xff]  ;;  %v680_v56 = vpop.f32.mrf.mxu1 }
 0x11f   :  { %1039 = vmatpush.msra.mxu0 %v11727_v36  ;;  %1079 = vmatpush.msrb.mxu2 %v11728_v48  ;;  %v11749_v36 = vld [vmem:[#allocation71_spill] sm:$0xff] }
 0x120   :  { %1135 = vmatpush.msra.mxu1 %v11733_v26  ;;  %v11750_v48 = vld [vmem:[#allocation75_spill] sm:$0xff] }
 0x121   :  { %1040 = vmatpush.msra.mxu0 %v11730_v61  ;;  %1080 = vmatpush.msrb.mxu2 %v11731_v4  ;;  %v11751_v61 = vld [vmem:[#allocation79_spill] sm:$0xff] }
 0x122   :  { %1136 = vmatpush.msra.mxu1 %v11735_v34  ;;  %v11752_v4 = vld [vmem:[#allocation83_spill] sm:$0xff]  ;;  %v720_v34 = vpop.f32.mrf.mxu3 }
 0x123   :  { %1105 = vmatpush.msrb.mxu0 %v11732_v22 }
 0x124   :  { %1137 = vmatpush.msra.mxu1 %v11737_v42  ;;  %v938_v42 = vld [vmem:[#allocation2 + $0x30] sm:$0xc] }
 0x125   :  { %1106 = vmatpush.msrb.mxu0 %v11734_v30  ;;  %v11753_v30 = vld [vmem:[#allocation87_spill] sm:$0xff] }
 0x126   :  { %1138 = vmatpush.msra.mxu1 %v11739_v50  ;;  %v760_v50 = vpop.f32.mrf.mxu1 }
 0x127   :  { %1107 = vmatpush.msrb.mxu0 %v11736_v38 }
 0x128   :  { %1139 = vmatpush.msra.mxu1 %v11741_v54 }
 0x129   :  { %1108 = vmatpush.msrb.mxu0 %v11738_v46 }
 0x12a   :  { %1140 = vmatpush.msra.mxu1 %v11743_v63 }
 0x12b   :  { %1109 = vmatpush.msrb.mxu0 %v11740_v41 }
 0x12d   :  { %1110 = vmatpush.msrb.mxu0 %v11742_v58 }
 0x12f   :  { %1111 = vmatpush.msrb.mxu0 %v11744_v3 }
 0x131   :  { %1112 = vmatpush.msrb.mxu0 %v11745_v8  ;;  %v939_v8 = vld [vmem:[#allocation2] sm:$0xc] }
 0x133   :  { %1113 = vmatpush.msrb.mxu0 %v11746_v9 }
 0x135   :  { %1114 = vmatpush.msrb.mxu0 %v11747_v18 }
 0x137   :  { %1115 = vmatpush.msrb.mxu0 %v11748_v32  ;;  %v940_v32 = vld [vmem:[#allocation2 + $0x18] sm:$0xc] }
 0x139   :  { %1116 = vmatpush.msrb.mxu0 %v11749_v36  ;;  %v800_v36 = vpop.f32.mrf.mxu3 }
 0x13b   :  { %1117 = vmatpush.msrb.mxu0 %v11750_v48 }
 0x13d   :  { %1118 = vmatpush.msrb.mxu0 %v11751_v61 }
 0x13f   :  { %1119 = vmatpush.msrb.mxu0 %v11752_v4  ;;  %v660_v22 = vpop.f32.mrf.mxu0  ;;  %v7226_v4 = vperm.slane %v6872_v14, 1 }
 0x140   :  { %v681_v26 = vadd.f32 %v680_v56, %v660_v22 }
 0x141   :  { %1120 = vmatpush.msrb.mxu0 %v11753_v30  ;;  %v7229_v30 = vperm.slane %v6880_v60, 1 }
 0x142   :  { %v946_v38 = vrot.slane %v681_v26, 6 }
 0x144   :  { %v954_v41 = vadd.f32 %v946_v38, %v938_v42 }
 0x145   :  { %v700_v46 = vpop.f32.mrf.mxu2 }
 0x146   :  { %v721_v54 = vadd.f32 %v720_v34, %v700_v46  ;;  %4715 = vtanh.f32 %v954_v41  ;;  %v941_v34 = vld [vmem:[#allocation2 + $0x10] sm:$0xc]  ;;  %v11754_v46 = vld [vmem:[#allocation89_spill] sm:$0xff] }
 0x147   :  { %v740_v58 = vpop.f32.mrf.mxu0 }
 0x148   :  { %v947_v63 = vrot.slane %v721_v54, 6  ;;  %v761_v3 = vadd.f32 %v760_v50, %v740_v58 }
 0x14a   :  { %v955_v9 = vadd.f32 %v947_v63, %v939_v8  ;;  %v948_v18 = vrot.slane %v761_v3, 6  ;;  %v11755_v63 = vld [vmem:[#allocation90_spill] sm:$0xff]  ;;  %v11756_v8 = vld [vmem:[#allocation92_spill] sm:$0xff] }
 0x14c   :  { %4717 = vtanh.f32 %v955_v9  ;;  %v956_v48 = vadd.f32 %v948_v18, %v940_v32  ;;  %v4716_v22 = vpop.eup %4715  ;;  %v971_v9 = vrot.slane %v11756_v8, 6  ;;  %v11757_v18 = vld [vmem:[#allocation91_spill] sm:$0xff] }
 0x14d   :  { %v780_v56 = vpop.f32.mrf.mxu2  ;;  %v962_v50 = vmul.f32 %v4716_v22, %v11754_v46  ;;  %v373_v8 = vld [vmem:[#allocation8 + $0x508] sm:$0xff] }
 0x14e   :  { %4719 = vtanh.f32 %v956_v48  ;;  %v801_v61 = vadd.f32 %v800_v36, %v780_v56 }
 0x14f   :  { %v966_v14 = vadd.f32 %v962_v50, %v6883_v19 }
 0x150   :  { %v949_v26 = vrot.slane %v801_v61, 6 }
 0x152   :  { %v4718_v38 = vpop.eup %4717  ;;  %v957_v42 = vadd.f32 %v949_v26, %v941_v34 }
 0x153   :  { %v963_v41 = vmul.f32 %v4718_v38, %v7226_v4 }
 0x154   :  { %v4720_v54 = vpop.eup %4719  ;;  %4721 = vtanh.f32 %v957_v42  ;;  %v397_v42 = vld [vmem:[#allocation8 + $0x5c8] sm:$0xff] }
 0x155   :  { %v967_v58 = vadd.f32 %v963_v41, %v7229_v30  ;;  %v964_v3 = vmul.f32 %v4720_v54, %v11755_v63  ;;  %v880_v41 = vpop.f32.mrf.mxu3  ;;  %v385_v54 = vld [vmem:[#allocation8 + $0x568] sm:$0xff] }
 0x157   :  { %v968_v60 = vadd.f32 %v964_v3, %v11757_v18  ;;  %v973_v32 = vmul.f32 %v971_v9, %v967_v58  ;;  %v596_v3 = vld [vmem:[#allocation9] ss:$4 sm:$0xf] }
 0x158   :  { %v7248_v9 = vperm.slane %v596_v3, 2 }
 0x159   :  { %v974_v36 = vmul.f32 %v968_v60, %v966_v14  ;;  %v840_v14 = vpop.f32.mrf.mxu1 }
 0x15a   :  { %v4722_v48 = vpop.eup %4721  ;;  %11758 = vst [vmem:[#allocation50_spill] sm:$0xff] %v7248_v9 }
 0x15b   :  { %v7238_v56 = vadd.f32 %v974_v36, %v973_v32  ;;  %v965_v61 = vmul.f32 %v4722_v48, %v6897_v49  ;;  %v361_v32 = vld [vmem:[#allocation8 + $0x4a8] sm:$0xff]  ;;  %v7251_v36 = vperm.slane %v596_v3, 0 }
 0x15d   :  { %4723 = vtanh.f32 %v7238_v56  ;;  %v969_v22 = vadd.f32 %v965_v61, %v6901_v45  ;;  %11759 = vst [vmem:[#allocation16_spill] sm:$0xff] %v7251_v36  ;;  %v349_v61 = vld [vmem:[#allocation8 + $0x448] sm:$0xff] }
 0x15f   :  { %v820_v58 = vpop.f32.mrf.mxu0 }
 0x160   :  { %v841_v48 = vadd.f32 %v840_v14, %v820_v58  ;;  %v265_v58 = vld [vmem:[#allocation8 + $0x1a8] sm:$0xff]  ;;  %v7268_v14 = vperm.slane %v596_v3, 3 }
 0x162   :  { %11761 = vst [vmem:[#allocation22_spill] sm:$0xff] %v7268_v14 }
 0x163   :  { %v4724_v26 = vpop.eup %4723 }
 0x164   :  { %v977_v34 = vmul.f32 %v4724_v26, %v969_v22  ;;  %v337_v22 = vld [vmem:[#allocation8 + $0x3e8] sm:$0xff]  ;;  %v11760_v26 = vld [vmem:[#allocation97_spill] sm:$0xff] }
 0x165   :  { %v860_v50 = vpop.f32.mrf.mxu2 }
 0x166   :  { %v7243_v38 = vrot.slane %v977_v34, 2  ;;  %v881_v60 = vadd.f32 %v880_v41, %v860_v50  ;;  %v325_v34 = vld [vmem:[#allocation8 + $0x388] sm:$0xff] }
 0x167   :  { %v277_v41 = vld [vmem:[#allocation8 + $0x208] sm:$0xff] }
 0x168   :  { %1001 = vmatmul.f32.vlgmr.msra.gmra.mxu2 %v7243_v38  ;;  %1041 = vmatmul.f32.vlgmr.msra.gmra.mxu0 %v7243_v38 }
 0x169   :  { %1145 = vmatpush.msra.mxu2 %v6907_v1  ;;  %1185 = vmatpush.msra.mxu0 %v397_v42  ;;  %v924_v1 = vadd.f32 %v881_v60, %v7248_v9  ;;  %v289_v42 = vld [vmem:[#allocation8 + $0x268] sm:$0xff] }
 0x16b   :  { %1146 = vmatpush.msra.mxu2 %v6913_v6  ;;  %1186 = vmatpush.msra.mxu0 %v385_v54  ;;  %v923_v6 = vadd.f32 %v841_v48, %v7251_v36  ;;  %4725 = vtanh.f32 %v924_v1 }
 0x16d   :  { %1147 = vmatpush.msra.mxu2 %v6919_v5  ;;  %1187 = vmatpush.msra.mxu0 %v373_v8  ;;  %v313_v5 = vld [vmem:[#allocation8 + $0x328] sm:$0xff]  ;;  %4727 = vtanh.f32 %v923_v6 }
 0x16e   :  { %v253_v8 = vld [vmem:[#allocation8 + $0x148] sm:$0xff] }
 0x16f   :  { %1148 = vmatpush.msra.mxu2 %v6925_v52  ;;  %1188 = vmatpush.msra.mxu0 %v361_v32  ;;  %v301_v52 = vld [vmem:[#allocation8 + $0x2c8] sm:$0xff] }
 0x170   :  { %1081 = vmatmul.f32.vlgmr.msrb.gmra.mxu2 %v7243_v38  ;;  %1121 = vmatmul.f32.vlgmr.msrb.gmra.mxu0 %v7243_v38  ;;  %v241_v32 = vld [vmem:[#allocation8 + $0xe8] sm:$0xff] }
 0x171   :  { %1149 = vmatpush.msra.mxu2 %v11760_v26  ;;  %1189 = vmatpush.msra.mxu0 %v349_v61  ;;  %v4726_v50 = vpop.eup %4725  ;;  %v229_v61 = vld [vmem:[#allocation8 + $0x88] sm:$0xff] }
 0x173   :  { %1150 = vmatpush.msra.mxu2 %v6943_v2  ;;  %1190 = vmatpush.msra.mxu0 %v337_v22  ;;  %v4728_v54 = vpop.eup %4727  ;;  %v930_v2 = vmul.f32 %v4726_v50, %v11755_v63  ;;  %v11763_v22 = vld [vmem:[#allocation94_spill] sm:$0xff] }
 0x174   :  { %v4875_v50 = vld [vmem:[#allocation8 + $0xbc0] sm:$0xff] }
 0x175   :  { %1151 = vmatpush.msra.mxu2 %v6951_v40  ;;  %1191 = vmatpush.msra.mxu0 %v325_v34  ;;  %v920_v40 = vpop.f32.mrf.mxu1  ;;  %v11765_v34 = vld [vmem:[#allocation96_spill] sm:$0xff] }
 0x177   :  { %1152 = vmatpush.msra.mxu2 %v6961_v24  ;;  %1192 = vmatpush.msra.mxu0 %v313_v5  ;;  %v929_v24 = vmul.f32 %v4728_v54, %v11754_v46  ;;  %v11766_v5 = vld [vmem:[#allocation98_spill] sm:$0xff]  ;;  %v11769_v54 = vld [vmem:[#allocation104_spill] sm:$0xff] }
 0x179   :  { %1153 = vmatpush.msra.mxu2 %v6971_v11  ;;  %1193 = vmatpush.msra.mxu0 %v301_v52  ;;  %v933_v11 = vadd.f32 %v930_v2, %v11757_v18  ;;  %v4877_v2 = vld [vmem:[#allocation8 + $0xb00] sm:$0xff] }
 0x17b   :  { %1154 = vmatpush.msra.mxu2 %v6981_v15  ;;  %1194 = vmatpush.msra.mxu0 %v289_v42  ;;  %v589_v42 = vld [vmem:[#allocation8 + $0xbc8] sm:$0xff] }
 0x17d   :  { %1155 = vmatpush.msra.mxu2 %v6991_v20  ;;  %1195 = vmatpush.msra.mxu0 %v277_v41  ;;  %v932_v20 = vadd.f32 %v929_v24, %v6883_v19  ;;  %v4876_v41 = vld [vmem:[#allocation8 + $0xb60] sm:$0xff]  ;;  %v11771_v24 = vld [vmem:[#allocation108_spill] sm:$0xff] }
 0x17f   :  { %v900_v60 = vpop.f32.mrf.mxu0  ;;  %1156 = vmatpush.msra.mxu2 %v7001_v23  ;;  %1196 = vmatpush.msra.mxu0 %v265_v58  ;;  %v7276_v3 = vmul.f32 %v933_v11, %v932_v20  ;;  %v217_v23 = vld [vmem:[#allocation8 + $0x28] sm:$0xff]  ;;  %v4880_v11 = vld [vmem:[#allocation8 + $0x9e0] sm:$0xff] }
 0x180   :  { %v921_v15 = vadd.f32 %v920_v40, %v900_v60  ;;  %v11770_v58 = vld [vmem:[#allocation106_spill] sm:$0xff] }
 0x181   :  { %1157 = vmatpush.msra.mxu2 %v7011_v27  ;;  %1197 = vmatpush.msra.mxu0 %v253_v8  ;;  %v11762_v27 = vld [vmem:[#allocation93_spill] sm:$0xff]  ;;  %v11772_v60 = vld [vmem:[#allocation110_spill] sm:$0xff] }
 0x182   :  { %v925_v48 = vadd.f32 %v921_v15, %v7268_v14  ;;  %v4878_v40 = vld [vmem:[#allocation8 + $0xaa0] sm:$0xff]  ;;  %v11773_v15 = vld [vmem:[#allocation112_spill] sm:$0xff]  ;;  %v493_v20 = vld [vmem:[#allocation8 + $0x8c8] sm:$0xff] }
 0x183   :  { %1158 = vmatpush.msra.mxu2 %v7021_v31  ;;  %1198 = vmatpush.msra.mxu0 %v241_v32  ;;  %v4879_v8 = vld [vmem:[#allocation8 + $0xa40] sm:$0xff] }
 0x184   :  { %4729 = vtanh.f32 %v925_v48  ;;  %v4881_v32 = vld [vmem:[#allocation8 + $0x980] sm:$0xff] }
 0x185   :  { %1159 = vmatpush.msra.mxu2 %v7031_v35  ;;  %1199 = vmatpush.msra.mxu0 %v229_v61  ;;  %4731 = vtanh.f32 %v7276_v3  ;;  %v4882_v48 = vld [vmem:[#allocation8 + $0x920] sm:$0xff]  ;;  %v481_v61 = vld [vmem:[#allocation8 + $0x868] sm:$0xff] }
 0x187   :  { %1160 = vmatpush.msra.mxu2 %v7041_v39  ;;  %1200 = vmatpush.msra.mxu0 %v217_v23  ;;  %v11764_v39 = vld [vmem:[#allocation95_spill] sm:$0xff]  ;;  %v4883_v23 = vld [vmem:[#allocation8 + $0x8c0] sm:$0xff] }
 0x188   :  { %1161 = vmatmul.f32.vlgmr.msra.gmra.mxu2 %v7243_v38  ;;  %1201 = vmatmul.f32.vlgmr.msra.gmra.mxu0 %v7243_v38 }
 0x189   :  { %1225 = vmatpush.msrb.mxu2 %v11762_v27  ;;  %1265 = vmatpush.msrb.mxu0 %v7049_v57  ;;  %v4884_v27 = vld [vmem:[#allocation8 + $0x860] sm:$0xff] }
 0x18a   :  { %v4730_v31 = vpop.eup %4729 }
 0x18b   :  { %v931_v1 = vmul.f32 %v4730_v31, %v6897_v49  ;;  %1226 = vmatpush.msrb.mxu2 %v11763_v22  ;;  %1266 = vmatpush.msrb.mxu0 %v7059_v47  ;;  %v4732_v6 = vpop.eup %4731  ;;  %v11767_v47 = vld [vmem:[#allocation100_spill] sm:$0xff]  ;;  %v11776_v31 = vld [vmem:[#allocation119_spill] sm:$0xff] }
 0x18c   :  { %v389_v22 = vld [vmem:[#allocation8 + $0x588] sm:$0xff] }
 0x18d   :  { %v934_v35 = vadd.f32 %v931_v1, %v6901_v45  ;;  %1227 = vmatpush.msrb.mxu2 %v11764_v39  ;;  %1267 = vmatpush.msrb.mxu0 %v7065_v28  ;;  %v577_v28 = vld [vmem:[#allocation8 + $0xb68] sm:$0xff]  ;;  %v376_v39 = vld [vmem:[#allocation8 + $0x520] sm:$0xff] }
 0x18e   :  { %v469_v1 = vld [vmem:[#allocation8 + $0x808] sm:$0xff] }
 0x18f   :  { %v937_v26 = vmul.f32 %v4732_v6, %v934_v35  ;;  %1228 = vmatpush.msrb.mxu2 %v11765_v34  ;;  %1268 = vmatpush.msrb.mxu0 %v7073_v0  ;;  %v11768_v0 = vld [vmem:[#allocation102_spill] sm:$0xff] }
 0x190   :  { %v457_v35 = vld [vmem:[#allocation8 + $0x7a8] sm:$0xff]  ;;  %v4886_v34 = vld [vmem:[#allocation8 + $0x7a0] sm:$0xff] }
 0x191   :  { %v979_v57 = vrot.slane %v937_v26, 6  ;;  %1229 = vmatpush.msrb.mxu2 %v11766_v5  ;;  %1269 = vmatpush.msrb.mxu0 %v7081_v10  ;;  %v565_v10 = vld [vmem:[#allocation8 + $0xb08] sm:$0xff] }
 0x192   :  { %v377_v6 = vld [vmem:[#allocation8 + $0x528] sm:$0xff] }
 0x193   :  { %v7295_v52 = vrot.slane %v979_v57, 2  ;;  %1230 = vmatpush.msrb.mxu2 %v11767_v47  ;;  %1270 = vmatpush.msrb.mxu0 %v7089_v55  ;;  %v553_v55 = vld [vmem:[#allocation8 + $0xaa8] sm:$0xff]  ;;  %v4887_v47 = vld [vmem:[#allocation8 + $0x740] sm:$0xff] }
 0x194   :  { %v445_v26 = vld [vmem:[#allocation8 + $0x748] sm:$0xff] }
 0x195   :  { %1021 = vmatmul.f32.vlgmr.msrb.gmra.mxu3 %v7295_v52  ;;  %1061 = vmatmul.f32.vlgmr.msrb.gmra.mxu1 %v7295_v52  ;;  %v365_v57 = vld [vmem:[#allocation8 + $0x4c8] sm:$0xff] }
 0x196   :  { %1165 = vmatpush.msrb.mxu3 %v4875_v50  ;;  %1205 = vmatpush.msrb.mxu1 %v589_v42  ;;  %v433_v5 = vld [vmem:[#allocation8 + $0x6e8] sm:$0xff]  ;;  %v352_v42 = vld [vmem:[#allocation8 + $0x460] sm:$0xff] }
 0x197   :  { %1231 = vmatpush.msrb.mxu2 %v11768_v0  ;;  %1271 = vmatpush.msrb.mxu0 %v7095_v13  ;;  %v541_v13 = vld [vmem:[#allocation8 + $0xa48] sm:$0xff]  ;;  %v4888_v0 = vld [vmem:[#allocation8 + $0x6e0] sm:$0xff] }
 0x198   :  { %1166 = vmatpush.msrb.mxu3 %v4876_v41  ;;  %1206 = vmatpush.msrb.mxu1 %v577_v28  ;;  %v353_v28 = vld [vmem:[#allocation8 + $0x468] sm:$0xff] }
 0x199   :  { %1232 = vmatpush.msrb.mxu2 %v11769_v54  ;;  %1272 = vmatpush.msrb.mxu0 %v7101_v17  ;;  %v529_v17 = vld [vmem:[#allocation8 + $0x9e8] sm:$0xff] }
 0x19a   :  { %1167 = vmatpush.msrb.mxu3 %v4877_v2  ;;  %1207 = vmatpush.msrb.mxu1 %v565_v10  ;;  %v421_v50 = vld [vmem:[#allocation8 + $0x688] sm:$0xff]  ;;  %v340_v10 = vld [vmem:[#allocation8 + $0x400] sm:$0xff] }
 0x19b   :  { %1233 = vmatpush.msrb.mxu2 %v11770_v58  ;;  %1273 = vmatpush.msrb.mxu0 %v7107_v59  ;;  %v517_v59 = vld [vmem:[#allocation8 + $0x988] sm:$0xff]  ;;  %v4890_v2 = vld [vmem:[#allocation8 + $0x620] sm:$0xff] }
 0x19c   :  { %1168 = vmatpush.msrb.mxu3 %v4878_v40  ;;  %1208 = vmatpush.msrb.mxu1 %v553_v55  ;;  %v341_v41 = vld [vmem:[#allocation8 + $0x408] sm:$0xff]  ;;  %v4889_v55 = vld [vmem:[#allocation8 + $0x680] sm:$0xff] }
 0x19d   :  { %1234 = vmatpush.msrb.mxu2 %v11771_v24  ;;  %1274 = vmatpush.msrb.mxu0 %v7113_v12  ;;  %v505_v12 = vld [vmem:[#allocation8 + $0x928] sm:$0xff]  ;;  %v328_v58 = vld [vmem:[#allocation8 + $0x3a0] sm:$0xff] }
 0x19e   :  { %1101 = vmatmul.f32.vlgmr.msra.gmra.mxu3 %v7295_v52  ;;  %1141 = vmatmul.f32.vlgmr.msra.gmra.mxu1 %v7295_v52  ;;  %v409_v54 = vld [vmem:[#allocation8 + $0x628] sm:$0xff] }
 0x19f   :  { %1169 = vmatpush.msrb.mxu3 %v4879_v8  ;;  %1209 = vmatpush.msrb.mxu1 %v541_v13  ;;  %v329_v40 = vld [vmem:[#allocation8 + $0x3a8] sm:$0xff]  ;;  %v4891_v13 = vld [vmem:[#allocation8 + $0xbd0] sm:$0xff] }
 0x1a0   :  { %1235 = vmatpush.msrb.mxu2 %v11772_v60  ;;  %1275 = vmatpush.msrb.mxu0 %v7119_v16  ;;  %v11774_v16 = vld [vmem:[#allocation115_spill] sm:$0xff] }
 0x1a1   :  { %1170 = vmatpush.msrb.mxu3 %v4880_v11  ;;  %1210 = vmatpush.msrb.mxu1 %v529_v17  ;;  %v11777_v24 = vld [vmem:[#allocation99_spill] sm:$0xff]  ;;  %v316_v17 = vld [vmem:[#allocation8 + $0x340] sm:$0xff] }
 0x1a2   :  { %1236 = vmatpush.msrb.mxu2 %v11773_v15  ;;  %1276 = vmatpush.msrb.mxu0 %v7125_v21  ;;  %v11775_v21 = vld [vmem:[#allocation117_spill] sm:$0xff]  ;;  %v317_v8 = vld [vmem:[#allocation8 + $0x348] sm:$0xff]  ;;  %v4892_v60 = vld [vmem:[#allocation8 + $0xb70] sm:$0xff] }
 0x1a3   :  { %1171 = vmatpush.msrb.mxu3 %v4881_v32  ;;  %1211 = vmatpush.msrb.mxu1 %v517_v59  ;;  %v11778_v59 = vld [vmem:[#allocation101_spill] sm:$0xff]  ;;  %v305_v15 = vld [vmem:[#allocation8 + $0x2e8] sm:$0xff] }
 0x1a4   :  { %1237 = vmatpush.msrb.mxu2 %v7013_v44  ;;  %1277 = vmatpush.msrb.mxu0 %v7131_v25  ;;  %v400_v44 = vld [vmem:[#allocation8 + $0x5e0] sm:$0xff]  ;;  %v401_v25 = vld [vmem:[#allocation8 + $0x5e8] sm:$0xff] }
 0x1a5   :  { %1172 = vmatpush.msrb.mxu3 %v4882_v48  ;;  %1212 = vmatpush.msrb.mxu1 %v505_v12  ;;  %v304_v11 = vld [vmem:[#allocation8 + $0x2e0] sm:$0xff]  ;;  %v4893_v12 = vld [vmem:[#allocation8 + $0xb10] sm:$0xff]  ;;  %v293_v48 = vld [vmem:[#allocation8 + $0x288] sm:$0xff] }
 0x1a6   :  { %1238 = vmatpush.msrb.mxu2 %v11774_v16  ;;  %1278 = vmatpush.msrb.mxu0 %v7137_v29  ;;  %v388_v29 = vld [vmem:[#allocation8 + $0x580] sm:$0xff]  ;;  %v11779_v32 = vld [vmem:[#allocation103_spill] sm:$0xff] }
 0x1a7   :  { %1173 = vmatpush.msrb.mxu3 %v4883_v23  ;;  %1213 = vmatpush.msrb.mxu1 %v493_v20  ;;  %v292_v20 = vld [vmem:[#allocation8 + $0x280] sm:$0xff]  ;;  %v4894_v16 = vld [vmem:[#allocation8 + $0xab0] sm:$0xff] }
 0x1a8   :  { %1239 = vmatpush.msrb.mxu2 %v11775_v21  ;;  %1279 = vmatpush.msrb.mxu0 %v7143_v33  ;;  %v4885_v33 = vld [vmem:[#allocation8 + $0x800] sm:$0xff]  ;;  %v281_v21 = vld [vmem:[#allocation8 + $0x228] sm:$0xff] }
 0x1a9   :  { %1174 = vmatpush.msrb.mxu3 %v4884_v27  ;;  %1214 = vmatpush.msrb.mxu1 %v481_v61  ;;  %v11780_v61 = vld [vmem:[#allocation105_spill] sm:$0xff]  ;;  %v4895_v27 = vld [vmem:[#allocation8 + $0xa50] sm:$0xff] }
 0x1aa   :  { %1240 = vmatpush.msrb.mxu2 %v11776_v31  ;;  %1280 = vmatpush.msrb.mxu0 %v7149_v37  ;;  %v364_v37 = vld [vmem:[#allocation8 + $0x4c0] sm:$0xff]  ;;  %v269_v31 = vld [vmem:[#allocation8 + $0x1c8] sm:$0xff] }
 0x1ab   :  { %1241 = vmatmul.f32.vlgmr.msrb.gmra.mxu2 %v7243_v38  ;;  %1281 = vmatmul.f32.vlgmr.msrb.gmra.mxu0 %v7243_v38  ;;  %v280_v23 = vld [vmem:[#allocation8 + $0x220] sm:$0xff] }
 0x1ac   :  { %1305 = vmatpush.msra.mxu2 %v400_v44  ;;  %1345 = vmatpush.msra.mxu0 %v401_v25  ;;  %v11781_v44 = vld [vmem:[#allocation107_spill] sm:$0xff]  ;;  %v268_v25 = vld [vmem:[#allocation8 + $0x1c0] sm:$0xff] }
 0x1ad   :  { %1175 = vmatpush.msrb.mxu3 %v4885_v33  ;;  %1215 = vmatpush.msrb.mxu1 %v469_v1  ;;  %v4896_v1 = vld [vmem:[#allocation8 + $0x9f0] sm:$0xff] }
 0x1ae   :  { %1306 = vmatpush.msra.mxu2 %v388_v29  ;;  %1346 = vmatpush.msra.mxu0 %v389_v22  ;;  %v11782_v29 = vld [vmem:[#allocation109_spill] sm:$0xff]  ;;  %v4897_v33 = vld [vmem:[#allocation8 + $0x990] sm:$0xff] }
 0x1af   :  { %1176 = vmatpush.msrb.mxu3 %v4886_v34  ;;  %1216 = vmatpush.msrb.mxu1 %v457_v35  ;;  %v256_v22 = vld [vmem:[#allocation8 + $0x160] sm:$0xff]  ;;  %v257_v35 = vld [vmem:[#allocation8 + $0x168] sm:$0xff]  ;;  %v4898_v34 = vld [vmem:[#allocation8 + $0x930] sm:$0xff] }
 0x1b0   :  { %1307 = vmatpush.msra.mxu2 %v376_v39  ;;  %1347 = vmatpush.msra.mxu0 %v377_v6  ;;  %v11783_v39 = vld [vmem:[#allocation111_spill] sm:$0xff]  ;;  %v244_v6 = vld [vmem:[#allocation8 + $0x100] sm:$0xff] }
 0x1b1   :  { %1177 = vmatpush.msrb.mxu3 %v4887_v47  ;;  %1217 = vmatpush.msrb.mxu1 %v445_v26  ;;  %v245_v26 = vld [vmem:[#allocation8 + $0x108] sm:$0xff]  ;;  %v4899_v47 = vld [vmem:[#allocation8 + $0x8d0] sm:$0xff] }
 0x1b2   :  { %1308 = vmatpush.msra.mxu2 %v364_v37  ;;  %1348 = vmatpush.msra.mxu0 %v365_v57  ;;  %v11784_v37 = vld [vmem:[#allocation113_spill] sm:$0xff] }
 0x1b3   :  { %1178 = vmatpush.msrb.mxu3 %v4888_v0  ;;  %1218 = vmatpush.msrb.mxu1 %v433_v5  ;;  %v232_v57 = vld [vmem:[#allocation8 + $0xa0] sm:$0xff]  ;;  %v233_v5 = vld [vmem:[#allocation8 + $0xa8] sm:$0xff]  ;;  %v4900_v0 = vld [vmem:[#allocation8 + $0x870] sm:$0xff] }
 0x1b4   :  { %1309 = vmatpush.msra.mxu2 %v352_v42  ;;  %1349 = vmatpush.msra.mxu0 %v353_v28  ;;  %v11785_v42 = vld [vmem:[#allocation114_spill] sm:$0xff] }
 0x1b5   :  { %1179 = vmatpush.msrb.mxu3 %v4889_v55  ;;  %1219 = vmatpush.msrb.mxu1 %v421_v50  ;;  %v220_v28 = vld [vmem:[#allocation8 + $0x40] sm:$0xff]  ;;  %v221_v50 = vld [vmem:[#allocation8 + $0x48] sm:$0xff]  ;;  %v390_v55 = vld [vmem:[#allocation8 + $0x590] sm:$0xff] }
 0x1b6   :  { %1310 = vmatpush.msra.mxu2 %v340_v10  ;;  %1350 = vmatpush.msra.mxu0 %v341_v41  ;;  %v11786_v10 = vld [vmem:[#allocation116_spill] sm:$0xff] }
 0x1b7   :  { %1180 = vmatpush.msrb.mxu3 %v4890_v2  ;;  %1220 = vmatpush.msrb.mxu1 %v409_v54  ;;  %v402_v41 = vld [vmem:[#allocation8 + $0x5f0] sm:$0xff]  ;;  %v403_v54 = vld [vmem:[#allocation8 + $0x5f8] sm:$0xff] }
 0x1b8   :  { %1181 = vmatmul.f32.vlgmr.msrb.gmra.mxu3 %v7295_v52  ;;  %1221 = vmatmul.f32.vlgmr.msrb.gmra.mxu1 %v7295_v52  ;;  %v391_v2 = vld [vmem:[#allocation8 + $0x598] sm:$0xff] }
 0x1b9   :  { %1245 = vmatpush.msra.mxu3 %v4891_v13  ;;  %1285 = vmatpush.msra.mxu1 %v11777_v24  ;;  %v378_v13 = vld [vmem:[#allocation8 + $0x530] sm:$0xff]  ;;  %v379_v24 = vld [vmem:[#allocation8 + $0x538] sm:$0xff] }
 0x1ba   :  { %1311 = vmatpush.msra.mxu2 %v328_v58  ;;  %1351 = vmatpush.msra.mxu0 %v329_v40  ;;  %v4901_v58 = vld [vmem:[#allocation8 + $0x810] sm:$0xff]  ;;  %v11787_v40 = vld [vmem:[#allocation118_spill] sm:$0xff] }
 0x1bb   :  { %1246 = vmatpush.msra.mxu3 %v4892_v60  ;;  %1286 = vmatpush.msra.mxu1 %v11778_v59  ;;  %v367_v60 = vld [vmem:[#allocation8 + $0x4d8] sm:$0xff]  ;;  %v4903_v59 = vld [vmem:[#allocation8 + $0x750] sm:$0xff] }
 0x1bc   :  { %1312 = vmatpush.msra.mxu2 %v316_v17  ;;  %1352 = vmatpush.msra.mxu0 %v317_v8  ;;  %v4902_v17 = vld [vmem:[#allocation8 + $0x7b0] sm:$0xff] }
 0x1bd   :  { %1247 = vmatpush.msra.mxu3 %v4893_v12  ;;  %1287 = vmatpush.msra.mxu1 %v11779_v32  ;;  %v366_v8 = vld [vmem:[#allocation8 + $0x4d0] sm:$0xff] }
 0x1be   :  { %1313 = vmatpush.msra.mxu2 %v304_v11  ;;  %1353 = vmatpush.msra.mxu0 %v305_v15  ;;  %v354_v11 = vld [vmem:[#allocation8 + $0x470] sm:$0xff]  ;;  %v355_v15 = vld [vmem:[#allocation8 + $0x478] sm:$0xff] }
 0x1bf   :  { %1248 = vmatpush.msra.mxu3 %v4894_v16  ;;  %1288 = vmatpush.msra.mxu1 %v11780_v61  ;;  %v4904_v12 = vld [vmem:[#allocation8 + $0x6f0] sm:$0xff] }
 0x1c0   :  { %1314 = vmatpush.msra.mxu2 %v292_v20  ;;  %1354 = vmatpush.msra.mxu0 %v293_v48  ;;  %v342_v32 = vld [vmem:[#allocation8 + $0x410] sm:$0xff]  ;;  %v343_v20 = vld [vmem:[#allocation8 + $0x418] sm:$0xff]  ;;  %v592_v48 = vld [vmem:[#allocation8 + $0xbe0] sm:$0xff] }
 0x1c1   :  { %1249 = vmatpush.msra.mxu3 %v4895_v27  ;;  %1289 = vmatpush.msra.mxu1 %v11781_v44  ;;  %v4906_v16 = vld [vmem:[#allocation8 + $0x630] sm:$0xff]  ;;  %v568_v44 = vld [vmem:[#allocation8 + $0xb20] sm:$0xff] }
 0x1c2   :  { %1315 = vmatpush.msra.mxu2 %v280_v23  ;;  %1355 = vmatpush.msra.mxu0 %v281_v21  ;;  %v330_v61 = vld [vmem:[#allocation8 + $0x3b0] sm:$0xff]  ;;  %v331_v23 = vld [vmem:[#allocation8 + $0x3b8] sm:$0xff]  ;;  %v581_v21 = vld [vmem:[#allocation8 + $0xb88] sm:$0xff] }
 0x1c3   :  { %1250 = vmatpush.msra.mxu3 %v4896_v1  ;;  %1290 = vmatpush.msra.mxu1 %v11782_v29  ;;  %v7347_v27 = vld [vmem:[#allocation8 + $0x350] sm:$0xff]  ;;  %v556_v1 = vld [vmem:[#allocation8 + $0xac0] sm:$0xff]  ;;  %v557_v29 = vld [vmem:[#allocation8 + $0xac8] sm:$0xff] }
 0x1c4   :  { %1316 = vmatpush.msra.mxu2 %v268_v25  ;;  %1356 = vmatpush.msra.mxu0 %v269_v31  ;;  %v569_v25 = vld [vmem:[#allocation8 + $0xb28] sm:$0xff]  ;;  %v7353_v31 = vld [vmem:[#allocation8 + $0x2f8] sm:$0xff] }
 0x1c5   :  { %1251 = vmatpush.msra.mxu3 %v4897_v33  ;;  %1291 = vmatpush.msra.mxu1 %v11783_v39  ;;  %v544_v33 = vld [vmem:[#allocation8 + $0xa60] sm:$0xff]  ;;  %v545_v39 = vld [vmem:[#allocation8 + $0xa68] sm:$0xff] }
 0x1c6   :  { %1317 = vmatpush.msra.mxu2 %v256_v22  ;;  %1357 = vmatpush.msra.mxu0 %v257_v35  ;;  %v7357_v22 = vld [vmem:[#allocation8 + $0x290] sm:$0xff]  ;;  %v7359_v35 = vld [vmem:[#allocation8 + $0x298] sm:$0xff] }
 0x1c7   :  { %1252 = vmatpush.msra.mxu3 %v4898_v34  ;;  %1292 = vmatpush.msra.mxu1 %v11784_v37  ;;  %v532_v34 = vld [vmem:[#allocation8 + $0xa00] sm:$0xff]  ;;  %v533_v37 = vld [vmem:[#allocation8 + $0xa08] sm:$0xff] }
 0x1c8   :  { %1318 = vmatpush.msra.mxu2 %v244_v6  ;;  %1358 = vmatpush.msra.mxu0 %v245_v26  ;;  %v7363_v6 = vld [vmem:[#allocation8 + $0x230] sm:$0xff]  ;;  %v7365_v26 = vld [vmem:[#allocation8 + $0x238] sm:$0xff] }
 0x1c9   :  { %1253 = vmatpush.msra.mxu3 %v4899_v47  ;;  %1293 = vmatpush.msra.mxu1 %v11785_v42  ;;  %v520_v47 = vld [vmem:[#allocation8 + $0x9a0] sm:$0xff]  ;;  %v521_v42 = vld [vmem:[#allocation8 + $0x9a8] sm:$0xff] }
 0x1ca   :  { %1319 = vmatpush.msra.mxu2 %v232_v57  ;;  %1359 = vmatpush.msra.mxu0 %v233_v5  ;;  %v7369_v57 = vld [vmem:[#allocation8 + $0x1d0] sm:$0xff]  ;;  %v7371_v5 = vld [vmem:[#allocation8 + $0x1d8] sm:$0xff] }
 0x1cb   :  { %1254 = vmatpush.msra.mxu3 %v4900_v0  ;;  %1294 = vmatpush.msra.mxu1 %v11786_v10  ;;  %v508_v0 = vld [vmem:[#allocation8 + $0x940] sm:$0xff]  ;;  %v509_v10 = vld [vmem:[#allocation8 + $0x948] sm:$0xff] }
 0x1cc   :  { %1320 = vmatpush.msra.mxu2 %v220_v28  ;;  %1360 = vmatpush.msra.mxu0 %v221_v50  ;;  %v7375_v28 = vld [vmem:[#allocation8 + $0x170] sm:$0xff]  ;;  %v7377_v50 = vld [vmem:[#allocation8 + $0x178] sm:$0xff] }
 0x1cd   :  { %1321 = vmatmul.f32.vlgmr.msra.gmra.mxu2 %v7243_v38  ;;  %1361 = vmatmul.f32.vlgmr.msra.gmra.mxu0 %v7243_v38 }
 0x1ce   :  { %1385 = vmatpush.msrb.mxu2 %v402_v41  ;;  %1425 = vmatpush.msrb.mxu0 %v403_v54  ;;  %v7381_v41 = vld [vmem:[#allocation8 + $0x110] sm:$0xff]  ;;  %v7383_v54 = vld [vmem:[#allocation8 + $0x118] sm:$0xff] }
 0x1cf   :  { %1255 = vmatpush.msra.mxu3 %v4901_v58  ;;  %1295 = vmatpush.msra.mxu1 %v11787_v40  ;;  %v7387_v58 = vld [vmem:[#allocation8 + $0xb0] sm:$0xff]  ;;  %v7389_v40 = vld [vmem:[#allocation8 + $0xb8] sm:$0xff] }
 0x1d0   :  { %1386 = vmatpush.msrb.mxu2 %v390_v55  ;;  %1426 = vmatpush.msrb.mxu0 %v391_v2  ;;  %v496_v55 = vld [vmem:[#allocation8 + $0x8e0] sm:$0xff]  ;;  %v497_v2 = vld [vmem:[#allocation8 + $0x8e8] sm:$0xff] }
 0x1d1   :  { %1256 = vmatpush.msra.mxu3 %v4902_v17  ;;  %1296 = vmatpush.msra.mxu1 %v7052_v43  ;;  %v4905_v43 = vld [vmem:[#allocation8 + $0x690] sm:$0xff] }
 0x1d2   :  { %1387 = vmatpush.msrb.mxu2 %v378_v13  ;;  %1427 = vmatpush.msrb.mxu0 %v379_v24  ;;  %v484_v13 = vld [vmem:[#allocation8 + $0x880] sm:$0xff]  ;;  %v485_v24 = vld [vmem:[#allocation8 + $0x888] sm:$0xff]  ;;  %v7393_v17 = vld [vmem:[#allocation8 + $0x50] sm:$0xff] }
 0x1d3   :  { %1257 = vmatpush.msra.mxu3 %v4903_v59  ;;  %1297 = vmatpush.msra.mxu1 %v7061_v53  ;;  %v593_v53 = vld [vmem:[#allocation8 + $0xbe8] sm:$0xff] }
 0x1d4   :  { %1388 = vmatpush.msrb.mxu2 %v366_v8  ;;  %1428 = vmatpush.msrb.mxu0 %v367_v60  ;;  %v7395_v8 = vld [vmem:[#allocation8 + $0x58] sm:$0xff]  ;;  %v472_v60 = vld [vmem:[#allocation8 + $0x820] sm:$0xff]  ;;  %v473_v59 = vld [vmem:[#allocation8 + $0x828] sm:$0xff] }
 0x1d5   :  { %1258 = vmatpush.msra.mxu3 %v4904_v12  ;;  %1298 = vmatpush.msra.mxu1 %v7067_v51  ;;  %v580_v51 = vld [vmem:[#allocation8 + $0xb80] sm:$0xff] }
 0x1d6   :  { %1389 = vmatpush.msrb.mxu2 %v354_v11  ;;  %1429 = vmatpush.msrb.mxu0 %v355_v15  ;;  %v460_v11 = vld [vmem:[#allocation8 + $0x7c0] sm:$0xff]  ;;  %v461_v15 = vld [vmem:[#allocation8 + $0x7c8] sm:$0xff] }
 0x1d7   :  { %1259 = vmatpush.msra.mxu3 %v4905_v43  ;;  %1299 = vmatpush.msra.mxu1 %v7075_v62  ;;  %v7349_v62 = vld [vmem:[#allocation8 + $0x358] sm:$0xff]  ;;  %v448_v12 = vld [vmem:[#allocation8 + $0x760] sm:$0xff]  ;;  %v7406_v43 = vld [vmem:[#allocation8 + $0x5a8] sm:$0xff] }
 0x1d8   :  { %1390 = vmatpush.msrb.mxu2 %v342_v32  ;;  %1430 = vmatpush.msrb.mxu0 %v343_v20  ;;  %v449_v32 = vld [vmem:[#allocation8 + $0x768] sm:$0xff]  ;;  %v7403_v20 = vld [vmem:[#allocation8 + $0x5a0] sm:$0xff] }
 0x1d9   :  { %1260 = vmatpush.msra.mxu3 %v4906_v16  ;;  %1300 = vmatpush.msra.mxu1 %v7083_v7  ;;  %v7351_v7 = vld [vmem:[#allocation8 + $0x2f0] sm:$0xff]  ;;  %v7409_v16 = vld [vmem:[#allocation8 + $0x540] sm:$0xff] }
 0x1da   :  { %1261 = vmatmul.f32.vlgmr.msra.gmra.mxu3 %v7295_v52  ;;  %1301 = vmatmul.f32.vlgmr.msra.gmra.mxu1 %v7295_v52 }
 0x1db   :  { %1325 = vmatpush.msrb.mxu3 %v592_v48  ;;  %1365 = vmatpush.msrb.mxu1 %v593_v53  ;;  %v436_v48 = vld [vmem:[#allocation8 + $0x700] sm:$0xff]  ;;  %v437_v53 = vld [vmem:[#allocation8 + $0x708] sm:$0xff] }
 0x1dc   :  { %1391 = vmatpush.msrb.mxu2 %v330_v61  ;;  %1431 = vmatpush.msrb.mxu0 %v331_v23  ;;  %v424_v61 = vld [vmem:[#allocation8 + $0x6a0] sm:$0xff]  ;;  %v425_v23 = vld [vmem:[#allocation8 + $0x6a8] sm:$0xff] }
 0x1dd   :  { %1326 = vmatpush.msrb.mxu3 %v580_v51  ;;  %1366 = vmatpush.msrb.mxu1 %v581_v21  ;;  %v7415_v51 = vld [vmem:[#allocation8 + $0x4e0] sm:$0xff]  ;;  %v7418_v21 = vld [vmem:[#allocation8 + $0x4e8] sm:$0xff] }
 0x1de   :  { %1392 = vmatpush.msrb.mxu2 %v7347_v27  ;;  %1432 = vmatpush.msrb.mxu0 %v7349_v62 }
 0x1df   :  { %1327 = vmatpush.msrb.mxu3 %v568_v44  ;;  %1367 = vmatpush.msrb.mxu1 %v569_v25  ;;  %v412_v44 = vld [vmem:[#allocation8 + $0x640] sm:$0xff]  ;;  %v413_v25 = vld [vmem:[#allocation8 + $0x648] sm:$0xff] }
 0x1e0   :  { %1393 = vmatpush.msrb.mxu2 %v7351_v7  ;;  %1433 = vmatpush.msrb.mxu0 %v7353_v31 }
 0x1e1   :  { %1328 = vmatpush.msrb.mxu3 %v556_v1  ;;  %1368 = vmatpush.msrb.mxu1 %v557_v29  ;;  %v7421_v1 = vld [vmem:[#allocation8 + $0x480] sm:$0xff]  ;;  %v7424_v29 = vld [vmem:[#allocation8 + $0x488] sm:$0xff] }
 0x1e2   :  { %1394 = vmatpush.msrb.mxu2 %v7357_v22  ;;  %1434 = vmatpush.msrb.mxu0 %v7359_v35 }
 0x1e3   :  { %1329 = vmatpush.msrb.mxu3 %v544_v33  ;;  %1369 = vmatpush.msrb.mxu1 %v545_v39  ;;  %v594_v33 = vld [vmem:[#allocation8 + $0xbf0] sm:$0xff]  ;;  %v595_v39 = vld [vmem:[#allocation8 + $0xbf8] sm:$0xff] }
 0x1e4   :  { %1395 = vmatpush.msrb.mxu2 %v7363_v6  ;;  %1435 = vmatpush.msrb.mxu0 %v7365_v26 }
 0x1e5   :  { %1330 = vmatpush.msrb.mxu3 %v532_v34  ;;  %1370 = vmatpush.msrb.mxu1 %v533_v37  ;;  %v7427_v34 = vld [vmem:[#allocation8 + $0x420] sm:$0xff]  ;;  %v7430_v37 = vld [vmem:[#allocation8 + $0x428] sm:$0xff] }
 0x1e6   :  { %1396 = vmatpush.msrb.mxu2 %v7369_v57  ;;  %1436 = vmatpush.msrb.mxu0 %v7371_v5  ;;  %11788 = vst [vmem:[#allocation54_spill] sm:$0xff] %v7427_v34 }
 0x1e7   :  { %1331 = vmatpush.msrb.mxu3 %v520_v47  ;;  %1371 = vmatpush.msrb.mxu1 %v521_v42  ;;  %11789 = vst [vmem:[#allocation17_spill] sm:$0xff] %v7430_v37  ;;  %v582_v47 = vld [vmem:[#allocation8 + $0xb90] sm:$0xff]  ;;  %v583_v42 = vld [vmem:[#allocation8 + $0xb98] sm:$0xff] }
 0x1e8   :  { %1397 = vmatpush.msrb.mxu2 %v7375_v28  ;;  %1437 = vmatpush.msrb.mxu0 %v7377_v50 }
 0x1e9   :  { %1332 = vmatpush.msrb.mxu3 %v508_v0  ;;  %1372 = vmatpush.msrb.mxu1 %v509_v10  ;;  %v570_v0 = vld [vmem:[#allocation8 + $0xb30] sm:$0xff]  ;;  %v571_v10 = vld [vmem:[#allocation8 + $0xb38] sm:$0xff] }
 0x1ea   :  { %1398 = vmatpush.msrb.mxu2 %v7381_v41  ;;  %1438 = vmatpush.msrb.mxu0 %v7383_v54 }
 0x1eb   :  { %1333 = vmatpush.msrb.mxu3 %v496_v55  ;;  %1373 = vmatpush.msrb.mxu1 %v497_v2  ;;  %v7435_v55 = vld [vmem:[#allocation8 + $0x3c0] sm:$0xff]  ;;  %v7438_v2 = vld [vmem:[#allocation8 + $0x3c8] sm:$0xff] }
 0x1ec   :  { %1399 = vmatpush.msrb.mxu2 %v7387_v58  ;;  %1439 = vmatpush.msrb.mxu0 %v7389_v40  ;;  %11790 = vst [vmem:[#allocation25_spill] sm:$0xff] %v7435_v55 }
 0x1ed   :  { %1334 = vmatpush.msrb.mxu3 %v484_v13  ;;  %1374 = vmatpush.msrb.mxu1 %v485_v24  ;;  %11791 = vst [vmem:[#allocation58_spill] sm:$0xff] %v7438_v2  ;;  %v558_v13 = vld [vmem:[#allocation8 + $0xad0] sm:$0xff]  ;;  %v559_v24 = vld [vmem:[#allocation8 + $0xad8] sm:$0xff] }
 0x1ee   :  { %1400 = vmatpush.msrb.mxu2 %v7393_v17  ;;  %1440 = vmatpush.msrb.mxu0 %v7395_v8 }
 0x1ef   :  { %1401 = vmatmul.f32.vlgmr.msrb.gmra.mxu2 %v7243_v38  ;;  %1441 = vmatmul.f32.vlgmr.msrb.gmra.mxu0 %v7243_v38  ;;  %v7412_v38 = vld [vmem:[#allocation8 + $0x548] sm:$0xff] }
 0x1f0   :  { %1335 = vmatpush.msrb.mxu3 %v472_v60  ;;  %1375 = vmatpush.msrb.mxu1 %v473_v59  ;;  %v7441_v60 = vld [vmem:[#allocation8 + $0x360] sm:$0xff]  ;;  %v7444_v59 = vld [vmem:[#allocation8 + $0x368] sm:$0xff] }
 0x1f1   :  { %1537 = vmatpush.msra.mxu2 %v7403_v20  ;;  %1577 = vmatpush.msra.mxu0 %v7406_v43  ;;  %11792 = vst [vmem:[#allocation18_spill] sm:$0xff] %v7441_v60 }
 0x1f2   :  { %1336 = vmatpush.msrb.mxu3 %v460_v11  ;;  %1376 = vmatpush.msrb.mxu1 %v461_v15  ;;  %11793 = vst [vmem:[#allocation28_spill] sm:$0xff] %v7444_v59  ;;  %v546_v11 = vld [vmem:[#allocation8 + $0xa70] sm:$0xff]  ;;  %v547_v15 = vld [vmem:[#allocation8 + $0xa78] sm:$0xff] }
 0x1f3   :  { %1538 = vmatpush.msra.mxu2 %v7409_v16  ;;  %1578 = vmatpush.msra.mxu0 %v7412_v38 }
 0x1f4   :  { %1337 = vmatpush.msrb.mxu3 %v448_v12  ;;  %1377 = vmatpush.msrb.mxu1 %v449_v32  ;;  %v7447_v12 = vld [vmem:[#allocation8 + $0x300] sm:$0xff]  ;;  %v7450_v32 = vld [vmem:[#allocation8 + $0x308] sm:$0xff] }
 0x1f5   :  { %1539 = vmatpush.msra.mxu2 %v7415_v51  ;;  %1579 = vmatpush.msra.mxu0 %v7418_v21  ;;  %11794 = vst [vmem:[#allocation31_spill] sm:$0xff] %v7447_v12 }
 0x1f6   :  { %1338 = vmatpush.msrb.mxu3 %v436_v48  ;;  %1378 = vmatpush.msrb.mxu1 %v437_v53  ;;  %11795 = vst [vmem:[#allocation19_spill] sm:$0xff] %v7450_v32  ;;  %v534_v48 = vld [vmem:[#allocation8 + $0xa10] sm:$0xff]  ;;  %v535_v53 = vld [vmem:[#allocation8 + $0xa18] sm:$0xff] }
 0x1f7   :  { %1540 = vmatpush.msra.mxu2 %v7421_v1  ;;  %1580 = vmatpush.msra.mxu0 %v7424_v29 }
 0x1f8   :  { %1339 = vmatpush.msrb.mxu3 %v424_v61  ;;  %1379 = vmatpush.msrb.mxu1 %v425_v23  ;;  %v7453_v61 = vld [vmem:[#allocation8 + $0x2a0] sm:$0xff]  ;;  %v7456_v23 = vld [vmem:[#allocation8 + $0x2a8] sm:$0xff] }
 0x1f9   :  { %1541 = vmatpush.msra.mxu2 %v7427_v34  ;;  %1581 = vmatpush.msra.mxu0 %v7430_v37  ;;  %11796 = vst [vmem:[#allocation62_spill] sm:$0xff] %v7453_v61  ;;  %v5121_v34 = vld [vmem:[#allocation8 + $0x228] sm:$0xff] }
 0x1fa   :  { %1340 = vmatpush.msrb.mxu3 %v412_v44  ;;  %1380 = vmatpush.msrb.mxu1 %v413_v25  ;;  %11797 = vst [vmem:[#allocation34_spill] sm:$0xff] %v7456_v23  ;;  %v522_v44 = vld [vmem:[#allocation8 + $0x9b0] sm:$0xff]  ;;  %v523_v25 = vld [vmem:[#allocation8 + $0x9b8] sm:$0xff] }
 0x1fb   :  { %1341 = vmatmul.f32.vlgmr.msrb.gmra.mxu3 %v7295_v52  ;;  %1381 = vmatmul.f32.vlgmr.msrb.gmra.mxu1 %v7295_v52 }
 0x1fc   :  { %1405 = vmatpush.msra.mxu3 %v594_v33  ;;  %1445 = vmatpush.msra.mxu1 %v595_v39  ;;  %v7459_v33 = vld [vmem:[#allocation8 + $0x240] sm:$0xff]  ;;  %v7462_v39 = vld [vmem:[#allocation8 + $0x248] sm:$0xff] }
 0x1fd   :  { %1542 = vmatpush.msra.mxu2 %v7435_v55  ;;  %1582 = vmatpush.msra.mxu0 %v7438_v2  ;;  %11798 = vst [vmem:[#allocation21_spill] sm:$0xff] %v7459_v33  ;;  %v5119_v55 = vld [vmem:[#allocation9] ss:$4 sm:$0xf] }
 0x1fe   :  { %1406 = vmatpush.msra.mxu3 %v582_v47  ;;  %1446 = vmatpush.msra.mxu1 %v583_v42  ;;  %11799 = vst [vmem:[#allocation66_spill] sm:$0xff] %v7462_v39  ;;  %v510_v47 = vld [vmem:[#allocation8 + $0x950] sm:$0xff]  ;;  %v511_v42 = vld [vmem:[#allocation8 + $0x958] sm:$0xff]  ;;  %v7763_v37 = vperm.slane %v5119_v55, 1 }
 0x1ff   :  { %1543 = vmatpush.msra.mxu2 %v7441_v60  ;;  %1583 = vmatpush.msra.mxu0 %v7444_v59 }
 0x200   :  { %1407 = vmatpush.msra.mxu3 %v570_v0  ;;  %1447 = vmatpush.msra.mxu1 %v571_v10  ;;  %v7465_v0 = vld [vmem:[#allocation8 + $0x1e0] sm:$0xff]  ;;  %v7468_v10 = vld [vmem:[#allocation8 + $0x1e8] sm:$0xff]  ;;  %11891 = vst [vmem:[#allocation122_spill] sm:$0xff] %v7763_v37 }
 0x201   :  { %1544 = vmatpush.msra.mxu2 %v7447_v12  ;;  %1584 = vmatpush.msra.mxu0 %v7450_v32  ;;  %11800 = vst [vmem:[#allocation37_spill] sm:$0xff] %v7465_v0 }
 0x202   :  { %1408 = vmatpush.msra.mxu3 %v558_v13  ;;  %1448 = vmatpush.msra.mxu1 %v559_v24  ;;  %11801 = vst [vmem:[#allocation24_spill] sm:$0xff] %v7468_v10  ;;  %v498_v13 = vld [vmem:[#allocation8 + $0x8f0] sm:$0xff]  ;;  %v499_v24 = vld [vmem:[#allocation8 + $0x8f8] sm:$0xff] }
 0x203   :  { %1545 = vmatpush.msra.mxu2 %v7453_v61  ;;  %1585 = vmatpush.msra.mxu0 %v7456_v23  ;;  %v415_v23 = vld [vmem:[#allocation8 + $0x658] sm:$0xff]  ;;  %v7519_v61 = vld [vmem:[#allocation8 + $0x490] sm:$0xff] }
 0x204   :  { %1409 = vmatpush.msra.mxu3 %v546_v11  ;;  %1449 = vmatpush.msra.mxu1 %v547_v15  ;;  %v7471_v11 = vld [vmem:[#allocation8 + $0x180] sm:$0xff]  ;;  %v7474_v15 = vld [vmem:[#allocation8 + $0x188] sm:$0xff]  ;;  %11818 = vst [vmem:[#allocation42_spill] sm:$0xff] %v7519_v61 }
 0x205   :  { %1546 = vmatpush.msra.mxu2 %v7459_v33  ;;  %1586 = vmatpush.msra.mxu0 %v7462_v39  ;;  %11802 = vst [vmem:[#allocation70_spill] sm:$0xff] %v7471_v11  ;;  %v7501_v39 = vld [vmem:[#allocation8 + $0x5b0] sm:$0xff] }
 0x206   :  { %1410 = vmatpush.msra.mxu3 %v534_v48  ;;  %1450 = vmatpush.msra.mxu1 %v535_v53  ;;  %11803 = vst [vmem:[#allocation40_spill] sm:$0xff] %v7474_v15  ;;  %v486_v48 = vld [vmem:[#allocation8 + $0x890] sm:$0xff]  ;;  %v487_v53 = vld [vmem:[#allocation8 + $0x898] sm:$0xff] }
 0x207   :  { %1547 = vmatpush.msra.mxu2 %v7465_v0  ;;  %1587 = vmatpush.msra.mxu0 %v7468_v10  ;;  %v7477_v0 = vld [vmem:[#allocation8 + $0x120] sm:$0xff]  ;;  %11812 = vst [vmem:[#allocation49_spill] sm:$0xff] %v7501_v39  ;;  %v7507_v33 = vld [vmem:[#allocation8 + $0x550] sm:$0xff] }
 0x208   :  { %1411 = vmatpush.msra.mxu3 %v522_v44  ;;  %1451 = vmatpush.msra.mxu1 %v523_v25  ;;  %11804 = vst [vmem:[#allocation27_spill] sm:$0xff] %v7477_v0  ;;  %v7480_v44 = vld [vmem:[#allocation8 + $0x128] sm:$0xff]  ;;  %v474_v25 = vld [vmem:[#allocation8 + $0x830] sm:$0xff]  ;;  %v7483_v10 = vld [vmem:[#allocation8 + $0xc0] sm:$0xff] }
 0x209   :  { %1548 = vmatpush.msra.mxu2 %v7471_v11  ;;  %1588 = vmatpush.msra.mxu0 %v7474_v15  ;;  %11805 = vst [vmem:[#allocation74_spill] sm:$0xff] %v7480_v44  ;;  %v475_v11 = vld [vmem:[#allocation8 + $0x838] sm:$0xff]  ;;  %v7489_v15 = vld [vmem:[#allocation8 + $0x60] sm:$0xff] }
 0x20a   :  { %1412 = vmatpush.msra.mxu3 %v510_v47  ;;  %1452 = vmatpush.msra.mxu1 %v511_v42  ;;  %11806 = vst [vmem:[#allocation43_spill] sm:$0xff] %v7483_v10  ;;  %v7486_v47 = vld [vmem:[#allocation8 + $0xc8] sm:$0xff]  ;;  %v462_v42 = vld [vmem:[#allocation8 + $0x7d0] sm:$0xff] }
 0x20b   :  { %1549 = vmatpush.msra.mxu2 %v7477_v0  ;;  %1589 = vmatpush.msra.mxu0 %v7480_v44  ;;  %11807 = vst [vmem:[#allocation30_spill] sm:$0xff] %v7486_v47  ;;  %v463_v0 = vld [vmem:[#allocation8 + $0x7d8] sm:$0xff]  ;;  %v7495_v44 = vld [vmem:[#allocation8] sm:$0xff] }
 0x20c   :  { %1413 = vmatpush.msra.mxu3 %v498_v13  ;;  %1453 = vmatpush.msra.mxu1 %v499_v24  ;;  %11808 = vst [vmem:[#allocation78_spill] sm:$0xff] %v7489_v15  ;;  %v7492_v13 = vld [vmem:[#allocation8 + $0x68] sm:$0xff]  ;;  %v450_v24 = vld [vmem:[#allocation8 + $0x770] sm:$0xff] }
 0x20d   :  { %1550 = vmatpush.msra.mxu2 %v7483_v10  ;;  %1590 = vmatpush.msra.mxu0 %v7486_v47  ;;  %11809 = vst [vmem:[#allocation46_spill] sm:$0xff] %v7492_v13  ;;  %v451_v10 = vld [vmem:[#allocation8 + $0x778] sm:$0xff] }
 0x20e   :  { %1414 = vmatpush.msra.mxu3 %v486_v48  ;;  %1454 = vmatpush.msra.mxu1 %v487_v53  ;;  %11810 = vst [vmem:[#allocation33_spill] sm:$0xff] %v7495_v44  ;;  %v7498_v48 = vld [vmem:[#allocation8 + $0x8] sm:$0xff]  ;;  %v438_v53 = vld [vmem:[#allocation8 + $0x710] sm:$0xff] }
 0x20f   :  { %1551 = vmatpush.msra.mxu2 %v7489_v15  ;;  %1591 = vmatpush.msra.mxu0 %v7492_v13  ;;  %11811 = vst [vmem:[#allocation82_spill] sm:$0xff] %v7498_v48  ;;  %v439_v15 = vld [vmem:[#allocation8 + $0x718] sm:$0xff] }
 0x210   :  { %1415 = vmatpush.msra.mxu3 %v474_v25  ;;  %1455 = vmatpush.msra.mxu1 %v475_v11  ;;  %v7504_v11 = vld [vmem:[#allocation8 + $0x5b8] sm:$0xff]  ;;  %v1042_v25 = vpop.f32.mrf.mxu0  ;;  %11814 = vst [vmem:[#allocation86_spill] sm:$0xff] %v7507_v33 }
 0x211   :  { %1552 = vmatpush.msra.mxu2 %v7495_v44  ;;  %1592 = vmatpush.msra.mxu0 %v7498_v48  ;;  %11813 = vst [vmem:[#allocation36_spill] sm:$0xff] %v7504_v11  ;;  %v426_v44 = vld [vmem:[#allocation8 + $0x6b0] sm:$0xff]  ;;  %v427_v13 = vld [vmem:[#allocation8 + $0x6b8] sm:$0xff] }
 0x212   :  { %1416 = vmatpush.msra.mxu3 %v462_v42  ;;  %1456 = vmatpush.msra.mxu1 %v463_v0  ;;  %v1062_v47 = vpop.f32.mrf.mxu1  ;;  %v7510_v0 = vld [vmem:[#allocation8 + $0x558] sm:$0xff]  ;;  %v414_v48 = vld [vmem:[#allocation8 + $0x650] sm:$0xff] }
 0x213   :  { %1617 = vmatpush.msrb.mxu2 %v7501_v39  ;;  %1657 = vmatpush.msrb.mxu0 %v7504_v11  ;;  %11815 = vst [vmem:[#allocation53_spill] sm:$0xff] %v7510_v0  ;;  %v1063_v42 = vadd.f32 %v1062_v47, %v1042_v25  ;;  %v1002_v39 = vpop.f32.mrf.mxu2  ;;  %v7513_v11 = vld [vmem:[#allocation8 + $0x4f0] sm:$0xff]  ;;  %v4949_v25 = vld [vmem:[#allocation8 + $0xba0] sm:$0xff] }
 0x214   :  { %1417 = vmatpush.msra.mxu3 %v450_v24  ;;  %1457 = vmatpush.msra.mxu1 %v451_v10  ;;  %11816 = vst [vmem:[#allocation39_spill] sm:$0xff] %v7513_v11  ;;  %v7516_v10 = vld [vmem:[#allocation8 + $0x4f8] sm:$0xff] }
 0x215   :  { %1618 = vmatpush.msrb.mxu2 %v7507_v33  ;;  %1658 = vmatpush.msrb.mxu0 %v7510_v0  ;;  %11817 = vst [vmem:[#allocation57_spill] sm:$0xff] %v7516_v10  ;;  %v1499_v47 = vrot.slane %v1063_v42, 4  ;;  %v4953_v42 = vld [vmem:[#allocation8 + $0xb40] sm:$0xff] }
 0x216   :  { %1418 = vmatpush.msra.mxu3 %v438_v53  ;;  %1458 = vmatpush.msra.mxu1 %v439_v15  ;;  %v7522_v15 = vld [vmem:[#allocation8 + $0x498] sm:$0xff] }
 0x217   :  { %1619 = vmatpush.msrb.mxu2 %v7513_v11  ;;  %1659 = vmatpush.msrb.mxu0 %v7516_v10  ;;  %11819 = vst [vmem:[#allocation61_spill] sm:$0xff] %v7522_v15  ;;  %v7551_v10 = vld [vmem:[#allocation8 + $0x2b0] sm:$0xff]  ;;  %v5109_v11 = vld [vmem:[#allocation8 + $0x400] sm:$0xff] }
 0x218   :  { %1419 = vmatpush.msra.mxu3 %v426_v44  ;;  %1459 = vmatpush.msra.mxu1 %v427_v13  ;;  %v1022_v24 = vpop.f32.mrf.mxu3  ;;  %v7527_v44 = vld [vmem:[#allocation8 + $0x430] sm:$0xff]  ;;  %11828 = vst [vmem:[#allocation23_spill] sm:$0xff] %v7551_v10 }
 0x219   :  { %v1023_v33 = vadd.f32 %v1022_v24, %v1002_v39  ;;  %1620 = vmatpush.msrb.mxu2 %v7519_v61  ;;  %1660 = vmatpush.msrb.mxu0 %v7522_v15  ;;  %11820 = vst [vmem:[#allocation45_spill] sm:$0xff] %v7527_v44  ;;  %v7530_v39 = vld [vmem:[#allocation8 + $0x438] sm:$0xff]  ;;  %v1491_v13 = vld [vmem:[#allocation2] sm:$0x30]  ;;  %v4950_v24 = vld [vmem:[#allocation8 + $0xba8] sm:$0xff] }
 0x21a   :  { %1420 = vmatpush.msra.mxu3 %v414_v48  ;;  %1460 = vmatpush.msra.mxu1 %v415_v23  ;;  %11821 = vst [vmem:[#allocation65_spill] sm:$0xff] %v7530_v39  ;;  %v1507_v23 = vadd.f32 %v1499_v47, %v1491_v13  ;;  %v7533_v48 = vld [vmem:[#allocation8 + $0x3d0] sm:$0xff]  ;;  %v7542_v47 = vld [vmem:[#allocation8 + $0x378] sm:$0xff] }
 0x21b   :  { %1421 = vmatmul.f32.vlgmr.msra.gmra.mxu3 %v7295_v52  ;;  %1461 = vmatmul.f32.vlgmr.msra.gmra.mxu1 %v7295_v52  ;;  %v1498_v53 = vrot.slane %v1023_v33, 4  ;;  %11822 = vst [vmem:[#allocation48_spill] sm:$0xff] %v7533_v48  ;;  %v7536_v52 = vld [vmem:[#allocation8 + $0x3d8] sm:$0xff]  ;;  %v1490_v33 = vld [vmem:[#allocation2 + $0x30] sm:$0x30]  ;;  %v1142_v15 = vpop.f32.mrf.mxu1  ;;  %v7539_v61 = vld [vmem:[#allocation8 + $0x370] sm:$0xff]  ;;  %v1082_v13 = vpop.f32.mrf.mxu2 }
 0x21c   :  { %1621 = vmatpush.msrb.mxu2 %v7527_v44  ;;  %1661 = vmatpush.msrb.mxu0 %v7530_v39  ;;  %11823 = vst [vmem:[#allocation69_spill] sm:$0xff] %v7536_v52  ;;  %v4954_v44 = vld [vmem:[#allocation8 + $0xb48] sm:$0xff]  ;;  %4733 = vtanh.f32 %v1507_v23  ;;  %v7554_v23 = vld [vmem:[#allocation8 + $0x2b8] sm:$0xff] }
 0x21d   :  { %1557 = vmatpush.msrb.mxu3 %v4949_v25  ;;  %1597 = vmatpush.msrb.mxu1 %v4950_v24  ;;  %v1506_v39 = vadd.f32 %v1498_v53, %v1490_v33  ;;  %11824 = vst [vmem:[#allocation52_spill] sm:$0xff] %v7539_v61  ;;  %v4957_v24 = vld [vmem:[#allocation8 + $0xae0] sm:$0xff]  ;;  %v7548_v53 = vld [vmem:[#allocation8 + $0x318] sm:$0xff] }
 0x21e   :  { %1622 = vmatpush.msrb.mxu2 %v7533_v48  ;;  %1662 = vmatpush.msrb.mxu0 %v7536_v52  ;;  %11825 = vst [vmem:[#allocation20_spill] sm:$0xff] %v7542_v47  ;;  %v4958_v52 = vld [vmem:[#allocation8 + $0xae8] sm:$0xff]  ;;  %v1122_v48 = vpop.f32.mrf.mxu0 }
 0x21f   :  { %1558 = vmatpush.msrb.mxu3 %v4953_v42  ;;  %1598 = vmatpush.msrb.mxu1 %v4954_v44  ;;  %v7545_v44 = vld [vmem:[#allocation8 + $0x310] sm:$0xff]  ;;  %11827 = vst [vmem:[#allocation56_spill] sm:$0xff] %v7548_v53  ;;  %v1143_v33 = vadd.f32 %v1142_v15, %v1122_v48  ;;  %4735 = vtanh.f32 %v1506_v39 }
 0x220   :  { %1623 = vmatpush.msrb.mxu2 %v7539_v61  ;;  %1663 = vmatpush.msrb.mxu0 %v7542_v47  ;;  %11826 = vst [vmem:[#allocation73_spill] sm:$0xff] %v7545_v44  ;;  %v4961_v61 = vld [vmem:[#allocation8 + $0xa80] sm:$0xff]  ;;  %v4962_v47 = vld [vmem:[#allocation8 + $0xa88] sm:$0xff]  ;;  %v7557_v48 = vld [vmem:[#allocation8 + $0x250] sm:$0xff] }
 0x221   :  { %v1102_v25 = vpop.f32.mrf.mxu3  ;;  %1559 = vmatpush.msrb.mxu3 %v4957_v24  ;;  %1599 = vmatpush.msrb.mxu1 %v4958_v52  ;;  %11829 = vst [vmem:[#allocation77_spill] sm:$0xff] %v7554_v23  ;;  %v1492_v52 = vld [vmem:[#allocation2 + $0x18] sm:$0x30]  ;;  %v1501_v39 = vrot.slane %v1143_v33, 4  ;;  %v1493_v33 = vld [vmem:[#allocation2 + $0x10] sm:$0x30] }
 0x222   :  { %v1103_v42 = vadd.f32 %v1102_v25, %v1082_v13  ;;  %1624 = vmatpush.msrb.mxu2 %v7545_v44  ;;  %1664 = vmatpush.msrb.mxu0 %v7548_v53  ;;  %v4965_v13 = vld [vmem:[#allocation8 + $0xa20] sm:$0xff]  ;;  %v4966_v25 = vld [vmem:[#allocation8 + $0xa28] sm:$0xff]  ;;  %11830 = vst [vmem:[#allocation60_spill] sm:$0xff] %v7557_v48 }
 0x223   :  { %1560 = vmatpush.msrb.mxu3 %v4961_v61  ;;  %1600 = vmatpush.msrb.mxu1 %v4962_v47  ;;  %v7560_v61 = vld [vmem:[#allocation8 + $0x258] sm:$0xff]  ;;  %v4969_v47 = vld [vmem:[#allocation8 + $0x9c0] sm:$0xff] }
 0x224   :  { %v1500_v24 = vrot.slane %v1103_v42, 4  ;;  %1625 = vmatpush.msrb.mxu2 %v7551_v10  ;;  %1665 = vmatpush.msrb.mxu0 %v7554_v23  ;;  %11831 = vst [vmem:[#allocation26_spill] sm:$0xff] %v7560_v61  ;;  %v4970_v42 = vld [vmem:[#allocation8 + $0x9c8] sm:$0xff]  ;;  %v4734_v23 = vpop.eup %4733  ;;  %v7563_v10 = vld [vmem:[#allocation8 + $0x1f0] sm:$0xff]  ;;  %v5107_v44 = vld [vmem:[#allocation8 + $0x460] sm:$0xff] }
 0x225   :  { %1561 = vmatpush.msrb.mxu3 %v4965_v13  ;;  %1601 = vmatpush.msrb.mxu1 %v4966_v25  ;;  %11832 = vst [vmem:[#allocation81_spill] sm:$0xff] %v7563_v10  ;;  %v4974_v13 = vld [vmem:[#allocation8 + $0x968] sm:$0xff]  ;;  %v4736_v25 = vpop.eup %4735 }
 0x226   :  { %v1508_v15 = vadd.f32 %v1500_v24, %v1492_v52  ;;  %1626 = vmatpush.msrb.mxu2 %v7557_v48  ;;  %1666 = vmatpush.msrb.mxu0 %v7560_v61  ;;  %v7566_v24 = vld [vmem:[#allocation8 + $0x1f8] sm:$0xff]  ;;  %v4973_v52 = vld [vmem:[#allocation8 + $0x960] sm:$0xff]  ;;  %v7569_v61 = vld [vmem:[#allocation8 + $0x190] sm:$0xff] }
 0x227   :  { %1562 = vmatpush.msrb.mxu3 %v4969_v47  ;;  %1602 = vmatpush.msrb.mxu1 %v4970_v42  ;;  %11833 = vst [vmem:[#allocation64_spill] sm:$0xff] %v7566_v24  ;;  %v7572_v47 = vld [vmem:[#allocation8 + $0x198] sm:$0xff]  ;;  %v1509_v42 = vadd.f32 %v1501_v39, %v1493_v33  ;;  %v4981_v48 = vld [vmem:[#allocation8 + $0x8a0] sm:$0xff]  ;;  %v7583_v39 = vld [vmem:[#allocation8 + $0xd0] sm:$0xff] }
 0x228   :  { %4737 = vtanh.f32 %v1508_v15  ;;  %1627 = vmatpush.msrb.mxu2 %v7563_v10  ;;  %1667 = vmatpush.msrb.mxu0 %v7566_v24  ;;  %11834 = vst [vmem:[#allocation29_spill] sm:$0xff] %v7569_v61  ;;  %v1515_v15 = vmul.f32 %v4734_v23, %v7226_v4  ;;  %v4977_v10 = vld [vmem:[#allocation8 + $0x900] sm:$0xff]  ;;  %v4978_v24 = vld [vmem:[#allocation8 + $0x908] sm:$0xff] }
 0x229   :  { %1563 = vmatpush.msrb.mxu3 %v4973_v52  ;;  %1603 = vmatpush.msrb.mxu1 %v4974_v13  ;;  %11835 = vst [vmem:[#allocation85_spill] sm:$0xff] %v7572_v47  ;;  %v7576_v52 = vld [vmem:[#allocation8 + $0x130] sm:$0xff]  ;;  %v7579_v13 = vld [vmem:[#allocation8 + $0x138] sm:$0xff]  ;;  %4739 = vtanh.f32 %v1509_v42 }
 0x22a   :  { %1628 = vmatpush.msrb.mxu2 %v7569_v61  ;;  %1668 = vmatpush.msrb.mxu0 %v7572_v47  ;;  %11836 = vst [vmem:[#allocation32_spill] sm:$0xff] %v7576_v52  ;;  %v1514_v61 = vmul.f32 %v4736_v25, %v11754_v46  ;;  %v4982_v47 = vld [vmem:[#allocation8 + $0x8a8] sm:$0xff]  ;;  %v7597_v25 = vld [vmem:[#allocation8 + $0x70] sm:$0xff] }
 0x22b   :  { %1564 = vmatpush.msrb.mxu3 %v4977_v10  ;;  %1604 = vmatpush.msrb.mxu1 %v4978_v24  ;;  %11837 = vst [vmem:[#allocation68_spill] sm:$0xff] %v7579_v13  ;;  %v7586_v10 = vld [vmem:[#allocation8 + $0xd8] sm:$0xff]  ;;  %v1519_v24 = vadd.f32 %v1515_v15, %v7229_v30  ;;  %v1523_v15 = vrot.slane %v7238_v56, 6 }
 0x22c   :  { %1629 = vmatpush.msrb.mxu2 %v7576_v52  ;;  %1669 = vmatpush.msrb.mxu0 %v7579_v13  ;;  %11838 = vst [vmem:[#allocation35_spill] sm:$0xff] %v7583_v39  ;;  %v7591_v13 = vld [vmem:[#allocation8 + $0x840] sm:$0xff]  ;;  %v1518_v42 = vadd.f32 %v1514_v61, %v6883_v19  ;;  %v5106_v52 = vld [vmem:[#allocation8 + $0x4c8] sm:$0xff] }
 0x22d   :  { %1565 = vmatpush.msrb.mxu3 %v4981_v48  ;;  %1605 = vmatpush.msrb.mxu1 %v4982_v47  ;;  %11839 = vst [vmem:[#allocation72_spill] sm:$0xff] %v7586_v10  ;;  %v7594_v48 = vld [vmem:[#allocation8 + $0x848] sm:$0xff]  ;;  %v7600_v47 = vld [vmem:[#allocation8 + $0x78] sm:$0xff]  ;;  %v1525_v56 = vmul.f32 %v1523_v15, %v1519_v24  ;;  %v7633_v24 = vld [vmem:[#allocation8 + $0x6c0] sm:$0xff] }
 0x22e   :  { %v4738_v23 = vpop.eup %4737  ;;  %1630 = vmatpush.msrb.mxu2 %v7583_v39  ;;  %1670 = vmatpush.msrb.mxu0 %v7586_v10  ;;  %11840 = vst [vmem:[#allocation38_spill] sm:$0xff] %v7591_v13  ;;  %v7606_v10 = vld [vmem:[#allocation8 + $0x7e0] sm:$0xff]  ;;  %v7636_v15 = vld [vmem:[#allocation8 + $0x6c8] sm:$0xff] }
 0x22f   :  { %v1516_v33 = vmul.f32 %v4738_v23, %v11755_v63  ;;  %1566 = vmatpush.msrb.mxu3 %v7591_v13  ;;  %11841 = vst [vmem:[#allocation76_spill] sm:$0xff] %v7594_v48  ;;  %1606 = vmatpush.msrb.mxu1 %v7594_v48  ;;  %v7609_v13 = vld [vmem:[#allocation8 + $0x7e8] sm:$0xff]  ;;  %v7612_v48 = vld [vmem:[#allocation8 + $0x10] sm:$0xff]  ;;  %v7626_v39 = vld [vmem:[#allocation8 + $0x720] sm:$0xff] }
 0x230   :  { %11842 = vst [vmem:[#allocation41_spill] sm:$0xff] %v7597_v25  ;;  %1631 = vmatpush.msrb.mxu2 %v7597_v25  ;;  %1671 = vmatpush.msrb.mxu0 %v7600_v47  ;;  %v7615_v25 = vld [vmem:[#allocation8 + $0x18] sm:$0xff] }
 0x231   :  { %11843 = vst [vmem:[#allocation80_spill] sm:$0xff] %v7600_v47  ;;  %v1520_v23 = vadd.f32 %v1516_v33, %v11757_v18  ;;  %1567 = vmatpush.msrb.mxu3 %v7606_v10  ;;  %1607 = vmatpush.msrb.mxu1 %v7609_v13  ;;  %v7618_v47 = vld [vmem:[#allocation8 + $0x780] sm:$0xff]  ;;  %v7621_v33 = vld [vmem:[#allocation8 + $0x788] sm:$0xff] }
 0x232   :  { %11844 = vst [vmem:[#allocation44_spill] sm:$0xff] %v7606_v10  ;;  %1632 = vmatpush.msrb.mxu2 %v7612_v48  ;;  %1672 = vmatpush.msrb.mxu0 %v7615_v25  ;;  %v4740_v10 = vpop.eup %4739 }
 0x233   :  { %11845 = vst [vmem:[#allocation84_spill] sm:$0xff] %v7609_v13  ;;  %v1526_v61 = vmul.f32 %v1520_v23, %v1518_v42  ;;  %1568 = vmatpush.msrb.mxu3 %v7618_v47  ;;  %1608 = vmatpush.msrb.mxu1 %v7621_v33  ;;  %v1517_v42 = vmul.f32 %v4740_v10, %v6897_v49  ;;  %v7640_v23 = vld [vmem:[#allocation8 + $0x660] sm:$0xff]  ;;  %v7656_v10 = vld [vmem:[#allocation8 + $0xbb8] sm:$0xff] }
 0x234   :  { %11846 = vst [vmem:[#allocation47_spill] sm:$0xff] %v7612_v48  ;;  %v7629_v48 = vld [vmem:[#allocation8 + $0x728] sm:$0xff] }
 0x235   :  { %11847 = vst [vmem:[#allocation88_spill] sm:$0xff] %v7615_v25  ;;  %v7624_v13 = vadd.f32 %v1526_v61, %v1525_v56  ;;  %1569 = vmatpush.msrb.mxu3 %v7626_v39  ;;  %1609 = vmatpush.msrb.mxu1 %v7629_v48  ;;  %v7643_v56 = vld [vmem:[#allocation8 + $0x668] sm:$0xff]  ;;  %v7646_v61 = vld [vmem:[#allocation8 + $0x600] sm:$0xff] }
 0x236   :  { %11848 = vst [vmem:[#allocation51_spill] sm:$0xff] %v7618_v47  ;;  %v5077_v47 = vld [vmem:[#allocation8 + $0x3f0] sm:$0xff] }
 0x237   :  { %11849 = vst [vmem:[#allocation55_spill] sm:$0xff] %v7621_v33  ;;  %4741 = vtanh.f32 %v7624_v13  ;;  %1570 = vmatpush.msrb.mxu3 %v7633_v24  ;;  %1610 = vmatpush.msrb.mxu1 %v7636_v15  ;;  %v5076_v33 = vld [vmem:[#allocation8 + $0x458] sm:$0xff] }
 0x238   :  { %11850 = vst [vmem:[#allocation59_spill] sm:$0xff] %v7624_v13  ;;  %v7649_v13 = vld [vmem:[#allocation8 + $0x608] sm:$0xff] }
 0x239   :  { %11851 = vst [vmem:[#allocation63_spill] sm:$0xff] %v7626_v39  ;;  %1571 = vmatpush.msrb.mxu3 %v7640_v23  ;;  %1611 = vmatpush.msrb.mxu1 %v7643_v56  ;;  %v5066_v39 = vld [vmem:[#allocation8 + $0x28] sm:$0xff] }
 0x23a   :  { %11852 = vst [vmem:[#allocation67_spill] sm:$0xff] %v7629_v48  ;;  %v7659_v48 = vld [vmem:[#allocation8 + $0xb50] sm:$0xff] }
 0x23b   :  { %11853 = vst [vmem:[#allocation71_spill] sm:$0xff] %v7633_v24  ;;  %1572 = vmatpush.msrb.mxu3 %v7646_v61  ;;  %1612 = vmatpush.msrb.mxu1 %v7649_v13  ;;  %v7653_v24 = vld [vmem:[#allocation8 + $0xbb0] sm:$0xff]  ;;  %v1182_v25 = vpop.f32.mrf.mxu3 }
 0x23c   :  { %11854 = vst [vmem:[#allocation75_spill] sm:$0xff] %v7636_v15  ;;  %v1521_v15 = vadd.f32 %v1517_v42, %v6901_v45  ;;  %v7667_v42 = vld [vmem:[#allocation8 + $0xaf0] sm:$0xff] }
 0x23d   :  { %11855 = vst [vmem:[#allocation79_spill] sm:$0xff] %v7640_v23  ;;  %1637 = vmatpush.msra.mxu3 %v7653_v24  ;;  %1677 = vmatpush.msra.mxu1 %v7656_v10  ;;  %v4742_v23 = vpop.eup %4741 }
 0x23e   :  { %11856 = vst [vmem:[#allocation83_spill] sm:$0xff] %v7643_v56  ;;  %v1529_v56 = vmul.f32 %v4742_v23, %v1521_v15  ;;  %v5009_v15 = vld [vmem:[#allocation8 + $0x5c0] sm:$0xff]  ;;  %v5010_v23 = vld [vmem:[#allocation8 + $0x5c8] sm:$0xff] }
 0x23f   :  { %11857 = vst [vmem:[#allocation87_spill] sm:$0xff] %v7646_v61  ;;  %1638 = vmatpush.msra.mxu3 %v7659_v48  ;;  %v7662_v61 = vld [vmem:[#allocation8 + $0xb58] sm:$0xff] }
 0x240   :  { %11858 = vst [vmem:[#allocation89_spill] sm:$0xff] %v7649_v13  ;;  %1678 = vmatpush.msra.mxu1 %v7662_v61  ;;  %v7665_v13 = vrot.slane %v1529_v56, 4  ;;  %v7678_v56 = vld [vmem:[#allocation8 + $0xa98] sm:$0xff] }
 0x241   :  { %11859 = vst [vmem:[#allocation90_spill] sm:$0xff] %v7653_v24  ;;  %1639 = vmatpush.msra.mxu3 %v7667_v42  ;;  %v7670_v24 = vld [vmem:[#allocation8 + $0xaf8] sm:$0xff] }
 0x242   :  { %11860 = vst [vmem:[#allocation92_spill] sm:$0xff] %v7656_v10  ;;  %1679 = vmatpush.msra.mxu1 %v7670_v24  ;;  %1553 = vmatmul.f32.vlgmr.msra.gmra.mxu2 %v7665_v13  ;;  %v7684_v10 = vld [vmem:[#allocation8 + $0xa38] sm:$0xff] }
 0x243   :  { %11861 = vst [vmem:[#allocation91_spill] sm:$0xff] %v7659_v48  ;;  %1593 = vmatmul.f32.vlgmr.msra.gmra.mxu0 %v7665_v13  ;;  %1697 = vmatpush.msra.mxu2 %v5009_v15  ;;  %v7675_v48 = vld [vmem:[#allocation8 + $0xa90] sm:$0xff]  ;;  %v5017_v15 = vld [vmem:[#allocation8 + $0x500] sm:$0xff] }
 0x244   :  { %11862 = vst [vmem:[#allocation97_spill] sm:$0xff] %v7662_v61  ;;  %1737 = vmatpush.msra.mxu0 %v5010_v23  ;;  %1640 = vmatpush.msra.mxu3 %v7675_v48  ;;  %v5014_v61 = vld [vmem:[#allocation8 + $0x568] sm:$0xff] }
 0x245   :  { %11863 = vst [vmem:[#allocation93_spill] sm:$0xff] %v7667_v42  ;;  %1680 = vmatpush.msra.mxu1 %v7678_v56  ;;  %v5013_v42 = vld [vmem:[#allocation8 + $0x560] sm:$0xff]  ;;  %v5018_v23 = vld [vmem:[#allocation8 + $0x508] sm:$0xff] }
 0x246   :  { %11864 = vst [vmem:[#allocation94_spill] sm:$0xff] %v7670_v24  ;;  %1698 = vmatpush.msra.mxu2 %v5013_v42  ;;  %1738 = vmatpush.msra.mxu0 %v5014_v61  ;;  %v7681_v24 = vld [vmem:[#allocation8 + $0xa30] sm:$0xff]  ;;  %v5021_v61 = vld [vmem:[#allocation8 + $0x4a0] sm:$0xff]  ;;  %v5022_v42 = vld [vmem:[#allocation8 + $0x4a8] sm:$0xff] }
 0x247   :  { %11865 = vst [vmem:[#allocation95_spill] sm:$0xff] %v7675_v48  ;;  %1641 = vmatpush.msra.mxu3 %v7681_v24  ;;  %1681 = vmatpush.msra.mxu1 %v7684_v10  ;;  %v7687_v48 = vld [vmem:[#allocation8 + $0x9d0] sm:$0xff] }
 0x248   :  { %11866 = vst [vmem:[#allocation96_spill] sm:$0xff] %v7678_v56  ;;  %1699 = vmatpush.msra.mxu2 %v5017_v15  ;;  %1739 = vmatpush.msra.mxu0 %v5018_v23  ;;  %v7690_v56 = vld [vmem:[#allocation8 + $0x9d8] sm:$0xff]  ;;  %v5024_v15 = vld [vmem:[#allocation8 + $0x448] sm:$0xff]  ;;  %v7695_v23 = vld [vmem:[#allocation8 + $0x970] sm:$0xff] }
 0x249   :  { %11867 = vst [vmem:[#allocation98_spill] sm:$0xff] %v7681_v24  ;;  %1642 = vmatpush.msra.mxu3 %v7687_v48  ;;  %1682 = vmatpush.msra.mxu1 %v7690_v56  ;;  %v7704_v24 = vld [vmem:[#allocation8 + $0x918] sm:$0xff] }
 0x24a   :  { %11868 = vst [vmem:[#allocation100_spill] sm:$0xff] %v7684_v10  ;;  %1700 = vmatpush.msra.mxu2 %v5021_v61  ;;  %1740 = vmatpush.msra.mxu0 %v5022_v42  ;;  %v5023_v10 = vld [vmem:[#allocation8 + $0x440] sm:$0xff]  ;;  %v5028_v61 = vld [vmem:[#allocation8 + $0x3e8] sm:$0xff]  ;;  %v7701_v42 = vld [vmem:[#allocation8 + $0x910] sm:$0xff] }
 0x24b   :  { %11869 = vst [vmem:[#allocation102_spill] sm:$0xff] %v7687_v48  ;;  %1633 = vmatmul.f32.vlgmr.msrb.gmra.mxu2 %v7665_v13  ;;  %1673 = vmatmul.f32.vlgmr.msrb.gmra.mxu0 %v7665_v13  ;;  %v7698_v48 = vld [vmem:[#allocation8 + $0x978] sm:$0xff] }
 0x24c   :  { %11870 = vst [vmem:[#allocation104_spill] sm:$0xff] %v7690_v56  ;;  %1701 = vmatpush.msra.mxu2 %v5023_v10  ;;  %1741 = vmatpush.msra.mxu0 %v5024_v15  ;;  %v5027_v56 = vld [vmem:[#allocation8 + $0x3e0] sm:$0xff]  ;;  %v5032_v15 = vld [vmem:[#allocation8 + $0x388] sm:$0xff] }
 0x24d   :  { %11871 = vst [vmem:[#allocation106_spill] sm:$0xff] %v7695_v23  ;;  %1643 = vmatpush.msra.mxu3 %v7695_v23  ;;  %1683 = vmatpush.msra.mxu1 %v7698_v48  ;;  %v5031_v10 = vld [vmem:[#allocation8 + $0x380] sm:$0xff]  ;;  %v7707_v23 = vld [vmem:[#allocation8 + $0x8b0] sm:$0xff] }
 0x24e   :  { %11872 = vst [vmem:[#allocation108_spill] sm:$0xff] %v7698_v48  ;;  %1702 = vmatpush.msra.mxu2 %v5027_v56  ;;  %1742 = vmatpush.msra.mxu0 %v5028_v61  ;;  %v7710_v48 = vld [vmem:[#allocation8 + $0x8b8] sm:$0xff]  ;;  %v5035_v56 = vld [vmem:[#allocation8 + $0x320] sm:$0xff]  ;;  %v5036_v61 = vld [vmem:[#allocation8 + $0x328] sm:$0xff] }
 0x24f   :  { %11873 = vst [vmem:[#allocation110_spill] sm:$0xff] %v7701_v42  ;;  %1644 = vmatpush.msra.mxu3 %v7701_v42  ;;  %1684 = vmatpush.msra.mxu1 %v7704_v24  ;;  %v7713_v42 = vld [vmem:[#allocation8 + $0x850] sm:$0xff] }
 0x250   :  { %11874 = vst [vmem:[#allocation112_spill] sm:$0xff] %v7704_v24  ;;  %1703 = vmatpush.msra.mxu2 %v5031_v10  ;;  %1743 = vmatpush.msra.mxu0 %v5032_v15  ;;  %v7716_v24 = vld [vmem:[#allocation8 + $0x858] sm:$0xff]  ;;  %v5039_v10 = vld [vmem:[#allocation8 + $0x2c0] sm:$0xff]  ;;  %v5040_v15 = vld [vmem:[#allocation8 + $0x2c8] sm:$0xff] }
 0x251   :  { %11875 = vst [vmem:[#allocation115_spill] sm:$0xff] %v7707_v23  ;;  %1645 = vmatpush.msra.mxu3 %v7707_v23  ;;  %1685 = vmatpush.msra.mxu1 %v7710_v48  ;;  %v7719_v23 = vld [vmem:[#allocation8 + $0x7f0] sm:$0xff] }
 0x252   :  { %11876 = vst [vmem:[#allocation117_spill] sm:$0xff] %v7710_v48  ;;  %1704 = vmatpush.msra.mxu2 %v5035_v56  ;;  %1744 = vmatpush.msra.mxu0 %v5036_v61  ;;  %v7722_v48 = vld [vmem:[#allocation8 + $0x7f8] sm:$0xff]  ;;  %v5043_v56 = vld [vmem:[#allocation8 + $0x260] sm:$0xff]  ;;  %v5044_v61 = vld [vmem:[#allocation8 + $0x268] sm:$0xff] }
 0x253   :  { %11877 = vst [vmem:[#allocation119_spill] sm:$0xff] %v7713_v42  ;;  %1646 = vmatpush.msra.mxu3 %v7713_v42  ;;  %1686 = vmatpush.msra.mxu1 %v7716_v24  ;;  %v7725_v42 = vld [vmem:[#allocation8 + $0x790] sm:$0xff] }
 0x254   :  { %11878 = vst [vmem:[#allocation99_spill] sm:$0xff] %v7716_v24  ;;  %1705 = vmatpush.msra.mxu2 %v5039_v10  ;;  %1745 = vmatpush.msra.mxu0 %v5040_v15  ;;  %v7728_v24 = vld [vmem:[#allocation8 + $0x798] sm:$0xff]  ;;  %v5047_v10 = vld [vmem:[#allocation8 + $0x200] sm:$0xff]  ;;  %v5048_v15 = vld [vmem:[#allocation8 + $0x208] sm:$0xff] }
 0x255   :  { %11879 = vst [vmem:[#allocation101_spill] sm:$0xff] %v7719_v23  ;;  %1647 = vmatpush.msra.mxu3 %v7719_v23  ;;  %1687 = vmatpush.msra.mxu1 %v7722_v48  ;;  %v7731_v23 = vld [vmem:[#allocation8 + $0x730] sm:$0xff] }
 0x256   :  { %11880 = vst [vmem:[#allocation103_spill] sm:$0xff] %v7722_v48  ;;  %1706 = vmatpush.msra.mxu2 %v5043_v56  ;;  %1746 = vmatpush.msra.mxu0 %v5044_v61  ;;  %v7734_v48 = vld [vmem:[#allocation8 + $0x738] sm:$0xff]  ;;  %v5051_v56 = vld [vmem:[#allocation8 + $0x1a0] sm:$0xff]  ;;  %v5052_v61 = vld [vmem:[#allocation8 + $0x1a8] sm:$0xff] }
 0x257   :  { %11881 = vst [vmem:[#allocation105_spill] sm:$0xff] %v7725_v42  ;;  %1648 = vmatpush.msra.mxu3 %v7725_v42  ;;  %1688 = vmatpush.msra.mxu1 %v7728_v24  ;;  %v7737_v42 = vld [vmem:[#allocation8 + $0x6d0] sm:$0xff] }
 0x258   :  { %11882 = vst [vmem:[#allocation107_spill] sm:$0xff] %v7728_v24  ;;  %1707 = vmatpush.msra.mxu2 %v5047_v10  ;;  %1747 = vmatpush.msra.mxu0 %v5048_v15  ;;  %v7740_v24 = vld [vmem:[#allocation8 + $0x6d8] sm:$0xff]  ;;  %v5055_v10 = vld [vmem:[#allocation8 + $0x140] sm:$0xff]  ;;  %v5056_v15 = vld [vmem:[#allocation8 + $0x148] sm:$0xff] }
 0x259   :  { %11883 = vst [vmem:[#allocation109_spill] sm:$0xff] %v7731_v23  ;;  %1649 = vmatpush.msra.mxu3 %v7731_v23  ;;  %1689 = vmatpush.msra.mxu1 %v7734_v48  ;;  %v7743_v23 = vld [vmem:[#allocation8 + $0x670] sm:$0xff] }
 0x25a   :  { %11884 = vst [vmem:[#allocation111_spill] sm:$0xff] %v7734_v48  ;;  %1708 = vmatpush.msra.mxu2 %v5051_v56  ;;  %1748 = vmatpush.msra.mxu0 %v5052_v61  ;;  %v7746_v48 = vld [vmem:[#allocation8 + $0x678] sm:$0xff]  ;;  %v5059_v56 = vld [vmem:[#allocation8 + $0xe0] sm:$0xff]  ;;  %v5060_v61 = vld [vmem:[#allocation8 + $0xe8] sm:$0xff] }
 0x25b   :  { %11885 = vst [vmem:[#allocation113_spill] sm:$0xff] %v7737_v42  ;;  %1650 = vmatpush.msra.mxu3 %v7737_v42  ;;  %1690 = vmatpush.msra.mxu1 %v7740_v24  ;;  %v7749_v42 = vld [vmem:[#allocation8 + $0x610] sm:$0xff] }
 0x25c   :  { %11886 = vst [vmem:[#allocation114_spill] sm:$0xff] %v7740_v24  ;;  %1709 = vmatpush.msra.mxu2 %v5055_v10  ;;  %1749 = vmatpush.msra.mxu0 %v5056_v15  ;;  %v7752_v24 = vld [vmem:[#allocation8 + $0x618] sm:$0xff]  ;;  %v5063_v10 = vld [vmem:[#allocation8 + $0x80] sm:$0xff]  ;;  %v5064_v15 = vld [vmem:[#allocation8 + $0x88] sm:$0xff] }
 0x25d   :  { %11887 = vst [vmem:[#allocation116_spill] sm:$0xff] %v7743_v23  ;;  %1651 = vmatpush.msra.mxu3 %v7743_v23  ;;  %1691 = vmatpush.msra.mxu1 %v7746_v48  ;;  %v5065_v23 = vld [vmem:[#allocation8 + $0x20] sm:$0xff] }
 0x25e   :  { %11888 = vst [vmem:[#allocation118_spill] sm:$0xff] %v7746_v48  ;;  %1710 = vmatpush.msra.mxu2 %v5059_v56  ;;  %1750 = vmatpush.msra.mxu0 %v5060_v61  ;;  %v5067_v56 = vld [vmem:[#allocation8 + $0x5d0] sm:$0xff]  ;;  %v5068_v61 = vld [vmem:[#allocation8 + $0x5d8] sm:$0xff] }
 0x25f   :  { %11889 = vst [vmem:[#allocation120_spill] sm:$0xff] %v7749_v42  ;;  %1652 = vmatpush.msra.mxu3 %v7749_v42  ;;  %1692 = vmatpush.msra.mxu1 %v7752_v24  ;;  %v5069_v42 = vld [vmem:[#allocation8 + $0x570] sm:$0xff]  ;;  %v5070_v48 = vld [vmem:[#allocation8 + $0x578] sm:$0xff] }
 0x260   :  { %11890 = vst [vmem:[#allocation121_spill] sm:$0xff] %v7752_v24  ;;  %1711 = vmatpush.msra.mxu2 %v5063_v10  ;;  %1751 = vmatpush.msra.mxu0 %v5064_v15  ;;  %v5071_v24 = vld [vmem:[#allocation8 + $0x510] sm:$0xff]  ;;  %v5072_v10 = vld [vmem:[#allocation8 + $0x518] sm:$0xff] }
 0x261   :  { %v5073_v15 = vld [vmem:[#allocation8 + $0x4b0] sm:$0xff] }
 0x262   :  { %1712 = vmatpush.msra.mxu2 %v5065_v23  ;;  %1752 = vmatpush.msra.mxu0 %v5066_v39  ;;  %v5074_v23 = vld [vmem:[#allocation8 + $0x4b8] sm:$0xff]  ;;  %v5075_v39 = vld [vmem:[#allocation8 + $0x450] sm:$0xff] }
 0x263   :  { %1713 = vmatmul.f32.vlgmr.msra.gmra.mxu2 %v7665_v13  ;;  %1753 = vmatmul.f32.vlgmr.msra.gmra.mxu0 %v7665_v13 }
 0x264   :  { %1777 = vmatpush.msrb.mxu2 %v5067_v56  ;;  %1817 = vmatpush.msrb.mxu0 %v5068_v61  ;;  %v5078_v56 = vld [vmem:[#allocation8 + $0x3f8] sm:$0xff]  ;;  %v5079_v61 = vld [vmem:[#allocation8 + $0x390] sm:$0xff] }
 0x266   :  { %1778 = vmatpush.msrb.mxu2 %v5069_v42  ;;  %1818 = vmatpush.msrb.mxu0 %v5070_v48  ;;  %v5080_v42 = vld [vmem:[#allocation8 + $0x398] sm:$0xff]  ;;  %v5081_v48 = vld [vmem:[#allocation8 + $0x330] sm:$0xff] }
 0x268   :  { %1779 = vmatpush.msrb.mxu2 %v5071_v24  ;;  %1819 = vmatpush.msrb.mxu0 %v5072_v10  ;;  %v5082_v24 = vld [vmem:[#allocation8 + $0x338] sm:$0xff]  ;;  %v5083_v10 = vld [vmem:[#allocation8 + $0x2d0] sm:$0xff] }
 0x26a   :  { %1780 = vmatpush.msrb.mxu2 %v5073_v15  ;;  %1820 = vmatpush.msrb.mxu0 %v5074_v23  ;;  %v5084_v15 = vld [vmem:[#allocation8 + $0x2d8] sm:$0xff]  ;;  %v5085_v23 = vld [vmem:[#allocation8 + $0x270] sm:$0xff] }
 0x26c   :  { %1781 = vmatpush.msrb.mxu2 %v5075_v39  ;;  %1821 = vmatpush.msrb.mxu0 %v5076_v33  ;;  %v5086_v39 = vld [vmem:[#allocation8 + $0x278] sm:$0xff]  ;;  %v5087_v33 = vld [vmem:[#allocation8 + $0x210] sm:$0xff] }
 0x26e   :  { %1782 = vmatpush.msrb.mxu2 %v5077_v47  ;;  %1822 = vmatpush.msrb.mxu0 %v5078_v56  ;;  %v5088_v47 = vld [vmem:[#allocation8 + $0x218] sm:$0xff]  ;;  %v5089_v56 = vld [vmem:[#allocation8 + $0x1b0] sm:$0xff] }
 0x270   :  { %1783 = vmatpush.msrb.mxu2 %v5079_v61  ;;  %1823 = vmatpush.msrb.mxu0 %v5080_v42  ;;  %v5090_v61 = vld [vmem:[#allocation8 + $0x1b8] sm:$0xff]  ;;  %v5091_v42 = vld [vmem:[#allocation8 + $0x150] sm:$0xff] }
 0x272   :  { %1784 = vmatpush.msrb.mxu2 %v5081_v48  ;;  %1824 = vmatpush.msrb.mxu0 %v5082_v24  ;;  %v5092_v48 = vld [vmem:[#allocation8 + $0x158] sm:$0xff]  ;;  %v5093_v24 = vld [vmem:[#allocation8 + $0xf0] sm:$0xff] }
 0x274   :  { %1785 = vmatpush.msrb.mxu2 %v5083_v10  ;;  %1825 = vmatpush.msrb.mxu0 %v5084_v15  ;;  %v5094_v10 = vld [vmem:[#allocation8 + $0xf8] sm:$0xff]  ;;  %v5095_v15 = vld [vmem:[#allocation8 + $0x90] sm:$0xff] }
 0x276   :  { %1786 = vmatpush.msrb.mxu2 %v5085_v23  ;;  %1826 = vmatpush.msrb.mxu0 %v5086_v39  ;;  %v5096_v23 = vld [vmem:[#allocation8 + $0x98] sm:$0xff]  ;;  %v1222_v39 = vpop.f32.mrf.mxu1 }
 0x278   :  { %1787 = vmatpush.msrb.mxu2 %v5087_v33  ;;  %1827 = vmatpush.msrb.mxu0 %v5088_v47  ;;  %v5097_v33 = vld [vmem:[#allocation8 + $0x30] sm:$0xff]  ;;  %v5098_v47 = vld [vmem:[#allocation8 + $0x38] sm:$0xff] }
 0x27a   :  { %1788 = vmatpush.msrb.mxu2 %v5089_v56  ;;  %1828 = vmatpush.msrb.mxu0 %v5090_v61  ;;  %v1202_v56 = vpop.f32.mrf.mxu0  ;;  %v5099_v61 = vld [vmem:[#allocation8 + $0x5e0] sm:$0xff] }
 0x27c   :  { %1789 = vmatpush.msrb.mxu2 %v5091_v42  ;;  %1829 = vmatpush.msrb.mxu0 %v5092_v48  ;;  %v5100_v42 = vld [vmem:[#allocation8 + $0x5e8] sm:$0xff]  ;;  %v1162_v48 = vpop.f32.mrf.mxu2 }
 0x27e   :  { %1790 = vmatpush.msrb.mxu2 %v5093_v24  ;;  %1830 = vmatpush.msrb.mxu0 %v5094_v10  ;;  %v5101_v24 = vld [vmem:[#allocation8 + $0x580] sm:$0xff]  ;;  %v5102_v10 = vld [vmem:[#allocation8 + $0x588] sm:$0xff] }
 0x280   :  { %1791 = vmatpush.msrb.mxu2 %v5095_v15  ;;  %1831 = vmatpush.msrb.mxu0 %v5096_v23  ;;  %v5103_v15 = vld [vmem:[#allocation8 + $0x520] sm:$0xff]  ;;  %v5104_v23 = vld [vmem:[#allocation8 + $0x528] sm:$0xff] }
 0x282   :  { %1792 = vmatpush.msrb.mxu2 %v5097_v33  ;;  %1832 = vmatpush.msrb.mxu0 %v5098_v47  ;;  %v7759_v33 = vpop.f32.mrf.mxu1  ;;  %v5105_v47 = vld [vmem:[#allocation8 + $0x4c0] sm:$0xff]  ;;  %v7761_v53 = vpop.f32.mrf.mxu0 }
 0x283   :  { %1793 = vmatmul.f32.vlgmr.msrb.gmra.mxu2 %v7665_v13  ;;  %1833 = vmatmul.f32.vlgmr.msrb.gmra.mxu0 %v7665_v13 }
 0x284   :  { %1857 = vmatpush.msra.mxu2 %v5099_v61  ;;  %1897 = vmatpush.msra.mxu0 %v5100_v42  ;;  %v1262_v61 = vpop.f32.mrf.mxu3  ;;  %v5108_v42 = vld [vmem:[#allocation8 + $0x468] sm:$0xff] }
 0x286   :  { %1858 = vmatpush.msra.mxu2 %v5101_v24  ;;  %1898 = vmatpush.msra.mxu0 %v5102_v10  ;;  %v1242_v24 = vpop.f32.mrf.mxu2  ;;  %v5110_v10 = vld [vmem:[#allocation8 + $0x408] sm:$0xff] }
 0x288   :  { %1859 = vmatpush.msra.mxu2 %v5103_v15  ;;  %1899 = vmatpush.msra.mxu0 %v5104_v23  ;;  %v5111_v15 = vld [vmem:[#allocation8 + $0x3a0] sm:$0xff]  ;;  %v5112_v23 = vld [vmem:[#allocation8 + $0x3a8] sm:$0xff] }
 0x28a   :  { %1860 = vmatpush.msra.mxu2 %v5105_v47  ;;  %1900 = vmatpush.msra.mxu0 %v5106_v52  ;;  %v1382_v0 = vpop.f32.mrf.mxu1  ;;  %v5113_v47 = vld [vmem:[#allocation8 + $0x340] sm:$0xff]  ;;  %v5114_v52 = vld [vmem:[#allocation8 + $0x348] sm:$0xff]  ;;  %v1362_v32 = vpop.f32.mrf.mxu0 }
 0x28b   :  { %v1383_v59 = vadd.f32 %v1382_v0, %v1362_v32  ;;  %v5122_v0 = vld [vmem:[#allocation8 + $0x1c0] sm:$0xff] }
 0x28c   :  { %1861 = vmatpush.msra.mxu2 %v5107_v44  ;;  %1901 = vmatpush.msra.mxu0 %v5108_v42  ;;  %v1342_v12 = vpop.f32.mrf.mxu3  ;;  %v5115_v44 = vld [vmem:[#allocation8 + $0x2e0] sm:$0xff]  ;;  %v5116_v42 = vld [vmem:[#allocation8 + $0x2e8] sm:$0xff] }
 0x28e   :  { %1862 = vmatpush.msra.mxu2 %v5109_v11  ;;  %1902 = vmatpush.msra.mxu0 %v5110_v10  ;;  %v1322_v60 = vpop.f32.mrf.mxu2  ;;  %v1223_v11 = vadd.f32 %v1222_v39, %v1202_v56  ;;  %v5117_v10 = vld [vmem:[#allocation8 + $0x280] sm:$0xff]  ;;  %v5125_v39 = vld [vmem:[#allocation8 + $0x168] sm:$0xff] }
 0x28f   :  { %v1343_v2 = vadd.f32 %v1342_v12, %v1322_v60  ;;  %v5124_v12 = vld [vmem:[#allocation8 + $0x160] sm:$0xff] }
 0x290   :  { %1863 = vmatpush.msra.mxu2 %v5111_v15  ;;  %1903 = vmatpush.msra.mxu0 %v5112_v23  ;;  %v5118_v15 = vld [vmem:[#allocation8 + $0x288] sm:$0xff]  ;;  %v1183_v23 = vadd.f32 %v1182_v25, %v1162_v48  ;;  %v5126_v56 = vld [vmem:[#allocation8 + $0x100] sm:$0xff] }
 0x292   :  { %1864 = vmatpush.msra.mxu2 %v5113_v47  ;;  %1904 = vmatpush.msra.mxu0 %v5114_v52  ;;  %v1466_v47 = vadd.f32 %v1383_v59, %v1223_v11  ;;  %v5120_v52 = vld [vmem:[#allocation8 + $0x220] sm:$0xff]  ;;  %v1465_v32 = vadd.f32 %v1343_v2, %v1183_v23  ;;  %v5127_v59 = vld [vmem:[#allocation8 + $0x108] sm:$0xff]  ;;  %v1263_v2 = vadd.f32 %v1262_v61, %v1242_v24  ;;  %v5132_v24 = vld [vmem:[#allocation8 + $0x5f0] sm:$0xff] }
 0x294   :  { %1865 = vmatpush.msra.mxu2 %v5115_v44  ;;  %1905 = vmatpush.msra.mxu0 %v5116_v42  ;;  %v5123_v44 = vld [vmem:[#allocation8 + $0x1c8] sm:$0xff]  ;;  %v1470_v60 = vadd.f32 %v1466_v47, %v7763_v37  ;;  %v1469_v25 = vadd.f32 %v1465_v32, %v7251_v36  ;;  %v1442_v42 = vpop.f32.mrf.mxu0 }
 0x295   :  { %v5131_v32 = vld [vmem:[#allocation8 + $0x48] sm:$0xff] }
 0x296   :  { %1866 = vmatpush.msra.mxu2 %v5117_v10  ;;  %1906 = vmatpush.msra.mxu0 %v5118_v15  ;;  %v1402_v48 = vpop.f32.mrf.mxu2  ;;  %4743 = vtanh.f32 %v1470_v60  ;;  %v5128_v10 = vld [vmem:[#allocation8 + $0xa0] sm:$0xff]  ;;  %v5129_v15 = vld [vmem:[#allocation8 + $0xa8] sm:$0xff] }
 0x297   :  { %4745 = vtanh.f32 %v1469_v25  ;;  %v5135_v25 = vld [vmem:[#allocation8 + $0x598] sm:$0xff] }
 0x298   :  { %1867 = vmatpush.msra.mxu2 %v5120_v52  ;;  %1907 = vmatpush.msra.mxu0 %v5121_v34  ;;  %v1462_v55 = vpop.f32.mrf.mxu1  ;;  %v5130_v52 = vld [vmem:[#allocation8 + $0x40] sm:$0xff] }
 0x299   :  { %v1463_v23 = vadd.f32 %v1462_v55, %v1442_v42 }
 0x29a   :  { %1868 = vmatpush.msra.mxu2 %v5122_v0  ;;  %1908 = vmatpush.msra.mxu0 %v5123_v44  ;;  %v1303_v0 = vadd.f32 %v7759_v33, %v7761_v53  ;;  %v5133_v44 = vld [vmem:[#allocation8 + $0x5f8] sm:$0xff] }
 0x29b   :  { %v5137_v53 = vld [vmem:[#allocation8 + $0x538] sm:$0xff] }
 0x29c   :  { %1869 = vmatpush.msra.mxu2 %v5124_v12  ;;  %1909 = vmatpush.msra.mxu0 %v5125_v39  ;;  %v1468_v60 = vadd.f32 %v1463_v23, %v1303_v0  ;;  %v4744_v12 = vpop.eup %4743  ;;  %v5134_v39 = vld [vmem:[#allocation8 + $0x590] sm:$0xff] }
 0x29d   :  { %v4746_v55 = vpop.eup %4745  ;;  %v1478_v33 = vmul.f32 %v4744_v12, %v7226_v4 }
 0x29e   :  { %1870 = vmatpush.msra.mxu2 %v5126_v56  ;;  %1910 = vmatpush.msra.mxu0 %v5127_v59  ;;  %v1422_v34 = vpop.f32.mrf.mxu3  ;;  %v5136_v56 = vld [vmem:[#allocation8 + $0x530] sm:$0xff]  ;;  %v1472_v59 = vadd.f32 %v1468_v60, %v7268_v14 }
 0x29f   :  { %v1423_v11 = vadd.f32 %v1422_v34, %v1402_v48  ;;  %v5138_v48 = vld [vmem:[#allocation8 + $0x4d0] sm:$0xff]  ;;  %v5139_v34 = vld [vmem:[#allocation8 + $0x4d8] sm:$0xff] }
 0x2a0   :  { %1871 = vmatpush.msra.mxu2 %v5128_v10  ;;  %1911 = vmatpush.msra.mxu0 %v5129_v15  ;;  %v5141_v10 = vld [vmem:[#allocation8 + $0x478] sm:$0xff]  ;;  %v1482_v15 = vadd.f32 %v1478_v33, %v7229_v30  ;;  %v7885_v33 = vld [vmem:[#allocation8 + $0x800] sm:$0xff] }
 0x2a1   :  { %v1467_v47 = vadd.f32 %v1423_v11, %v1263_v2  ;;  %v1477_v2 = vmul.f32 %v4746_v55, %v11754_v46  ;;  %v5140_v11 = vld [vmem:[#allocation8 + $0x470] sm:$0xff]  ;;  %v7880_v55 = vld [vmem:[#allocation8 + $0x868] sm:$0xff] }
 0x2a2   :  { %1872 = vmatpush.msra.mxu2 %v5130_v52  ;;  %1912 = vmatpush.msra.mxu0 %v5131_v32  ;;  %v5143_v52 = vld [vmem:[#allocation8 + $0x418] sm:$0xff] }
 0x2a3   :  { %1873 = vmatmul.f32.vlgmr.msra.gmra.mxu2 %v7665_v13  ;;  %1913 = vmatmul.f32.vlgmr.msra.gmra.mxu0 %v7665_v13  ;;  %v1471_v61 = vadd.f32 %v1467_v47, %v7248_v9  ;;  %v5142_v47 = vld [vmem:[#allocation8 + $0x410] sm:$0xff]  ;;  %v1481_v32 = vadd.f32 %v1477_v2, %v6883_v19  ;;  %v7893_v2 = vld [vmem:[#allocation8 + $0x7a0] sm:$0xff] }
 0x2a4   :  { %1937 = vmatpush.msrb.mxu2 %v5132_v24  ;;  %1977 = vmatpush.msrb.mxu0 %v5133_v44  ;;  %v5145_v24 = vld [vmem:[#allocation8 + $0x3b8] sm:$0xff]  ;;  %v1485_v44 = vmul.f32 %v1482_v15, %v7276_v3  ;;  %v7901_v15 = vld [vmem:[#allocation8 + $0x740] sm:$0xff] }
 0x2a5   :  { %4747 = vtanh.f32 %v1471_v61  ;;  %v5144_v61 = vld [vmem:[#allocation8 + $0x3b0] sm:$0xff] }
 0x2a6   :  { %1938 = vmatpush.msrb.mxu2 %v5134_v39  ;;  %1978 = vmatpush.msrb.mxu0 %v5135_v25  ;;  %4749 = vtanh.f32 %v1472_v59  ;;  %v7888_v59 = vld [vmem:[#allocation8 + $0x808] sm:$0xff] }
 0x2a8   :  { %1939 = vmatpush.msrb.mxu2 %v5136_v56  ;;  %1979 = vmatpush.msrb.mxu0 %v5137_v53  ;;  %v11896_v56 = vld [vmem:[#allocation18_spill] sm:$0xff]  ;;  %v11897_v53 = vld [vmem:[#allocation28_spill] sm:$0xff] }
 0x2aa   :  { %1940 = vmatpush.msrb.mxu2 %v5138_v48  ;;  %1980 = vmatpush.msrb.mxu0 %v5139_v34  ;;  %v11898_v48 = vld [vmem:[#allocation31_spill] sm:$0xff] }
 0x2ab   :  { %v4748_v42 = vpop.eup %4747  ;;  %v11899_v34 = vld [vmem:[#allocation19_spill] sm:$0xff] }
 0x2ac   :  { %1941 = vmatpush.msrb.mxu2 %v5140_v11  ;;  %1981 = vmatpush.msrb.mxu0 %v5141_v10  ;;  %v1479_v23 = vmul.f32 %v4748_v42, %v11755_v63  ;;  %v4750_v12 = vpop.eup %4749  ;;  %v7896_v42 = vld [vmem:[#allocation8 + $0x7a8] sm:$0xff] }
 0x2ad   :  { %v1480_v25 = vmul.f32 %v4750_v12, %v6897_v49  ;;  %v11900_v11 = vld [vmem:[#allocation62_spill] sm:$0xff] }
 0x2ae   :  { %1942 = vmatpush.msrb.mxu2 %v5142_v47  ;;  %1982 = vmatpush.msrb.mxu0 %v5143_v52  ;;  %v1483_v0 = vadd.f32 %v1479_v23, %v11757_v18  ;;  %v11901_v10 = vld [vmem:[#allocation34_spill] sm:$0xff]  ;;  %v11902_v47 = vld [vmem:[#allocation21_spill] sm:$0xff] }
 0x2af   :  { %v1484_v3 = vadd.f32 %v1480_v25, %v6901_v45  ;;  %v7904_v23 = vld [vmem:[#allocation8 + $0x748] sm:$0xff]  ;;  %v11907_v25 = vld [vmem:[#allocation40_spill] sm:$0xff] }
 0x2b0   :  { %1943 = vmatpush.msrb.mxu2 %v5144_v61  ;;  %1983 = vmatpush.msrb.mxu0 %v5145_v24  ;;  %v1486_v60 = vmul.f32 %v1483_v0, %v1481_v32  ;;  %v11903_v52 = vld [vmem:[#allocation66_spill] sm:$0xff]  ;;  %v11904_v61 = vld [vmem:[#allocation37_spill] sm:$0xff]  ;;  %v11905_v24 = vld [vmem:[#allocation24_spill] sm:$0xff] }
 0x2b1   :  { %v7909_v32 = vld [vmem:[#allocation8 + $0x6e0] sm:$0xff]  ;;  %v7912_v0 = vld [vmem:[#allocation8 + $0x6e8] sm:$0xff] }
 0x2b2   :  { %1944 = vmatpush.msrb.mxu2 %v7347_v27  ;;  %1984 = vmatpush.msrb.mxu0 %v7349_v62  ;;  %v7782_v39 = vadd.f32 %v1486_v60, %v1485_v44  ;;  %v7917_v44 = vld [vmem:[#allocation8 + $0x680] sm:$0xff]  ;;  %v7920_v60 = vld [vmem:[#allocation8 + $0x688] sm:$0xff] }
 0x2b3   :  { %v11906_v12 = vld [vmem:[#allocation70_spill] sm:$0xff] }
 0x2b4   :  { %1945 = vmatpush.msrb.mxu2 %v7351_v7  ;;  %1985 = vmatpush.msrb.mxu0 %v7353_v31  ;;  %4751 = vtanh.f32 %v7782_v39 }
 0x2b6   :  { %1946 = vmatpush.msrb.mxu2 %v7357_v22  ;;  %1986 = vmatpush.msrb.mxu0 %v7359_v35  ;;  %v7805_v22 = vld [vmem:[#allocation8 + $0xbc0] sm:$0xff]  ;;  %v7808_v35 = vld [vmem:[#allocation8 + $0xbc8] sm:$0xff] }
 0x2b8   :  { %1947 = vmatpush.msrb.mxu2 %v7363_v6  ;;  %1987 = vmatpush.msrb.mxu0 %v7365_v26  ;;  %v7813_v6 = vld [vmem:[#allocation8 + $0xb60] sm:$0xff]  ;;  %v7816_v26 = vld [vmem:[#allocation8 + $0xb68] sm:$0xff] }
 0x2ba   :  { %1948 = vmatpush.msrb.mxu2 %v7369_v57  ;;  %1988 = vmatpush.msrb.mxu0 %v7371_v5  ;;  %v4752_v27 = vpop.eup %4751  ;;  %v7821_v57 = vld [vmem:[#allocation8 + $0xb00] sm:$0xff]  ;;  %v7824_v5 = vld [vmem:[#allocation8 + $0xb08] sm:$0xff] }
 0x2bb   :  { %v1489_v62 = vmul.f32 %v4752_v27, %v1484_v3  ;;  %v7925_v3 = vld [vmem:[#allocation8 + $0x620] sm:$0xff]  ;;  %v7928_v27 = vld [vmem:[#allocation8 + $0x628] sm:$0xff] }
 0x2bc   :  { %1949 = vmatpush.msrb.mxu2 %v7375_v28  ;;  %1989 = vmatpush.msrb.mxu0 %v7377_v50  ;;  %v7829_v28 = vld [vmem:[#allocation8 + $0xaa0] sm:$0xff]  ;;  %v7832_v50 = vld [vmem:[#allocation8 + $0xaa8] sm:$0xff] }
 0x2bd   :  { %v1531_v7 = vrot.slane %v1489_v62, 4  ;;  %v7933_v62 = vld [vmem:[#allocation8 + $0xbd0] sm:$0xff] }
 0x2be   :  { %1950 = vmatpush.msrb.mxu2 %v7381_v41  ;;  %1990 = vmatpush.msrb.mxu0 %v7383_v54  ;;  %v7837_v41 = vld [vmem:[#allocation8 + $0xa40] sm:$0xff]  ;;  %v7840_v54 = vld [vmem:[#allocation8 + $0xa48] sm:$0xff] }
 0x2bf   :  { %v7799_v31 = vrot.slane %v1531_v7, 4  ;;  %v7936_v7 = vld [vmem:[#allocation8 + $0xbd8] sm:$0xff] }
 0x2c0   :  { %1951 = vmatpush.msrb.mxu2 %v7387_v58  ;;  %1991 = vmatpush.msrb.mxu0 %v7389_v40  ;;  %v7845_v58 = vld [vmem:[#allocation8 + $0x9e0] sm:$0xff]  ;;  %v7848_v40 = vld [vmem:[#allocation8 + $0x9e8] sm:$0xff] }
 0x2c1   :  { %1573 = vmatmul.f32.vlgmr.msrb.gmra.mxu3 %v7799_v31  ;;  %1613 = vmatmul.f32.vlgmr.msrb.gmra.mxu1 %v7799_v31 }
 0x2c2   :  { %1717 = vmatpush.msrb.mxu3 %v7805_v22  ;;  %1757 = vmatpush.msrb.mxu1 %v7808_v35 }
 0x2c3   :  { %1952 = vmatpush.msrb.mxu2 %v7393_v17  ;;  %1992 = vmatpush.msrb.mxu0 %v7395_v8  ;;  %v7853_v17 = vld [vmem:[#allocation8 + $0x980] sm:$0xff]  ;;  %v7856_v8 = vld [vmem:[#allocation8 + $0x988] sm:$0xff] }
 0x2c4   :  { %1718 = vmatpush.msrb.mxu3 %v7813_v6  ;;  %1758 = vmatpush.msrb.mxu1 %v7816_v26 }
 0x2c5   :  { %1953 = vmatmul.f32.vlgmr.msrb.gmra.mxu2 %v7665_v13  ;;  %1993 = vmatmul.f32.vlgmr.msrb.gmra.mxu0 %v7665_v13  ;;  %v7877_v13 = vld [vmem:[#allocation8 + $0x860] sm:$0xff] }
 0x2c6   :  { %1719 = vmatpush.msrb.mxu3 %v7821_v57  ;;  %1759 = vmatpush.msrb.mxu1 %v7824_v5 }
 0x2c7   :  { %2089 = vmatpush.msra.mxu2 %v7403_v20  ;;  %2129 = vmatpush.msra.mxu0 %v7406_v43  ;;  %v7861_v20 = vld [vmem:[#allocation8 + $0x920] sm:$0xff]  ;;  %v7864_v43 = vld [vmem:[#allocation8 + $0x928] sm:$0xff] }
 0x2c8   :  { %1720 = vmatpush.msrb.mxu3 %v7829_v28  ;;  %1760 = vmatpush.msrb.mxu1 %v7832_v50 }
 0x2c9   :  { %1653 = vmatmul.f32.vlgmr.msra.gmra.mxu3 %v7799_v31  ;;  %1693 = vmatmul.f32.vlgmr.msra.gmra.mxu1 %v7799_v31 }
 0x2ca   :  { %1721 = vmatpush.msrb.mxu3 %v7837_v41  ;;  %1761 = vmatpush.msrb.mxu1 %v7840_v54 }
 0x2cb   :  { %2090 = vmatpush.msra.mxu2 %v7409_v16  ;;  %2130 = vmatpush.msra.mxu0 %v7412_v38  ;;  %v11892_v16 = vld [vmem:[#allocation54_spill] sm:$0xff]  ;;  %v11893_v38 = vld [vmem:[#allocation17_spill] sm:$0xff] }
 0x2cc   :  { %1722 = vmatpush.msrb.mxu3 %v7845_v58  ;;  %1762 = vmatpush.msrb.mxu1 %v7848_v40  ;;  %11908 = vst [vmem:[#allocation54_spill] sm:$0xff] %v7925_v3 }
 0x2cd   :  { %2091 = vmatpush.msra.mxu2 %v7415_v51  ;;  %2131 = vmatpush.msra.mxu0 %v7418_v21  ;;  %v7869_v51 = vld [vmem:[#allocation8 + $0x8c0] sm:$0xff]  ;;  %v7872_v21 = vld [vmem:[#allocation8 + $0x8c8] sm:$0xff]  ;;  %11909 = vst [vmem:[#allocation17_spill] sm:$0xff] %v7928_v27 }
 0x2ce   :  { %1723 = vmatpush.msrb.mxu3 %v7853_v17  ;;  %1763 = vmatpush.msrb.mxu1 %v7856_v8 }
 0x2cf   :  { %2092 = vmatpush.msra.mxu2 %v7421_v1  ;;  %2132 = vmatpush.msra.mxu0 %v7424_v29  ;;  %v11894_v1 = vld [vmem:[#allocation25_spill] sm:$0xff]  ;;  %v11895_v29 = vld [vmem:[#allocation58_spill] sm:$0xff] }
 0x2d0   :  { %1724 = vmatpush.msrb.mxu3 %v7861_v20  ;;  %1764 = vmatpush.msrb.mxu1 %v7864_v43  ;;  %11910 = vst [vmem:[#allocation25_spill] sm:$0xff] %v7933_v62 }
 0x2d1   :  { %2093 = vmatpush.msra.mxu2 %v11892_v16  ;;  %2133 = vmatpush.msra.mxu0 %v11893_v38  ;;  %11911 = vst [vmem:[#allocation58_spill] sm:$0xff] %v7936_v7  ;;  %v11912_v16 = vld [vmem:[#allocation27_spill] sm:$0xff]  ;;  %v11913_v38 = vld [vmem:[#allocation74_spill] sm:$0xff] }
 0x2d2   :  { %1725 = vmatpush.msrb.mxu3 %v7869_v51  ;;  %1765 = vmatpush.msrb.mxu1 %v7872_v21 }
 0x2d3   :  { %2094 = vmatpush.msra.mxu2 %v11894_v1  ;;  %2134 = vmatpush.msra.mxu0 %v11895_v29  ;;  %v7941_v1 = vld [vmem:[#allocation8 + $0xb70] sm:$0xff]  ;;  %v7944_v29 = vld [vmem:[#allocation8 + $0xb78] sm:$0xff] }
 0x2d4   :  { %1726 = vmatpush.msrb.mxu3 %v7877_v13  ;;  %1766 = vmatpush.msrb.mxu1 %v7880_v55  ;;  %11914 = vst [vmem:[#allocation18_spill] sm:$0xff] %v7941_v1 }
 0x2d5   :  { %2095 = vmatpush.msra.mxu2 %v11896_v56  ;;  %2135 = vmatpush.msra.mxu0 %v11897_v53  ;;  %11915 = vst [vmem:[#allocation28_spill] sm:$0xff] %v7944_v29  ;;  %v11916_v56 = vld [vmem:[#allocation43_spill] sm:$0xff]  ;;  %v11917_v53 = vld [vmem:[#allocation30_spill] sm:$0xff] }
 0x2d6   :  { %1727 = vmatpush.msrb.mxu3 %v7885_v33  ;;  %1767 = vmatpush.msrb.mxu1 %v7888_v59 }
 0x2d7   :  { %2096 = vmatpush.msra.mxu2 %v11898_v48  ;;  %2136 = vmatpush.msra.mxu0 %v11899_v34  ;;  %v7949_v48 = vld [vmem:[#allocation8 + $0xb10] sm:$0xff]  ;;  %v7952_v34 = vld [vmem:[#allocation8 + $0xb18] sm:$0xff] }
 0x2d8   :  { %1728 = vmatpush.msrb.mxu3 %v7893_v2  ;;  %1768 = vmatpush.msrb.mxu1 %v7896_v42  ;;  %11918 = vst [vmem:[#allocation31_spill] sm:$0xff] %v7949_v48 }
 0x2d9   :  { %2097 = vmatpush.msra.mxu2 %v11900_v11  ;;  %2137 = vmatpush.msra.mxu0 %v11901_v10  ;;  %11919 = vst [vmem:[#allocation19_spill] sm:$0xff] %v7952_v34  ;;  %v11920_v11 = vld [vmem:[#allocation78_spill] sm:$0xff] }
 0x2da   :  { %1729 = vmatpush.msrb.mxu3 %v7901_v15  ;;  %1769 = vmatpush.msrb.mxu1 %v7904_v23  ;;  %v11921_v10 = vld [vmem:[#allocation46_spill] sm:$0xff] }
 0x2db   :  { %2098 = vmatpush.msra.mxu2 %v11902_v47  ;;  %2138 = vmatpush.msra.mxu0 %v11903_v52  ;;  %v7957_v47 = vld [vmem:[#allocation8 + $0xab0] sm:$0xff]  ;;  %v7960_v52 = vld [vmem:[#allocation8 + $0xab8] sm:$0xff] }
 0x2dc   :  { %1730 = vmatpush.msrb.mxu3 %v7909_v32  ;;  %1770 = vmatpush.msrb.mxu1 %v7912_v0  ;;  %11922 = vst [vmem:[#allocation62_spill] sm:$0xff] %v7957_v47 }
 0x2dd   :  { %2099 = vmatpush.msra.mxu2 %v11904_v61  ;;  %2139 = vmatpush.msra.mxu0 %v11905_v24  ;;  %11923 = vst [vmem:[#allocation34_spill] sm:$0xff] %v7960_v52  ;;  %v11924_v61 = vld [vmem:[#allocation33_spill] sm:$0xff]  ;;  %v11925_v24 = vld [vmem:[#allocation82_spill] sm:$0xff] }
 0x2de   :  { %1731 = vmatpush.msrb.mxu3 %v7917_v44  ;;  %1771 = vmatpush.msrb.mxu1 %v7920_v60 }
 0x2df   :  { %2100 = vmatpush.msra.mxu2 %v11906_v12  ;;  %2140 = vmatpush.msra.mxu0 %v11907_v25  ;;  %v7965_v12 = vld [vmem:[#allocation8 + $0xa50] sm:$0xff]  ;;  %v7968_v25 = vld [vmem:[#allocation8 + $0xa58] sm:$0xff] }
 0x2e0   :  { %1732 = vmatpush.msrb.mxu3 %v7925_v3  ;;  %1772 = vmatpush.msrb.mxu1 %v7928_v27  ;;  %11926 = vst [vmem:[#allocation21_spill] sm:$0xff] %v7965_v12  ;;  %v8459_v3 = vld [vmem:[#allocation8 + $0x340] sm:$0xff] }
 0x2e1   :  { %1733 = vmatmul.f32.vlgmr.msrb.gmra.mxu3 %v7799_v31  ;;  %1773 = vmatmul.f32.vlgmr.msrb.gmra.mxu1 %v7799_v31  ;;  %11927 = vst [vmem:[#allocation66_spill] sm:$0xff] %v7968_v25 }
 0x2e2   :  { %1797 = vmatpush.msra.mxu3 %v7933_v62  ;;  %1837 = vmatpush.msra.mxu1 %v7936_v7  ;;  %v8453_v62 = vld [vmem:[#allocation8 + $0x3a0] sm:$0xff] }
 0x2e3   :  { %2101 = vmatpush.msra.mxu2 %v11912_v16  ;;  %2141 = vmatpush.msra.mxu0 %v11913_v38  ;;  %v11928_v16 = vld [vmem:[#allocation49_spill] sm:$0xff]  ;;  %v11929_v38 = vld [vmem:[#allocation36_spill] sm:$0xff]  ;;  %12132 = vst [vmem:[#allocation157_spill] sm:$0xff] %v8453_v62 }
 0x2e4   :  { %1798 = vmatpush.msra.mxu3 %v7941_v1  ;;  %1838 = vmatpush.msra.mxu1 %v7944_v29  ;;  %v2042_v29 = vld [vmem:[#allocation2 + $0x30] sm:$0xc0] }
 0x2e5   :  { %2102 = vmatpush.msra.mxu2 %v11916_v56  ;;  %2142 = vmatpush.msra.mxu0 %v11917_v53  ;;  %v7973_v56 = vld [vmem:[#allocation8 + $0x9f0] sm:$0xff]  ;;  %v7976_v53 = vld [vmem:[#allocation8 + $0x9f8] sm:$0xff] }
 0x2e6   :  { %1799 = vmatpush.msra.mxu3 %v7949_v48  ;;  %1839 = vmatpush.msra.mxu1 %v7952_v34  ;;  %11930 = vst [vmem:[#allocation37_spill] sm:$0xff] %v7973_v56  ;;  %v5280_v34 = vld [vmem:[#allocation8 + $0xa80] sm:$0xff] }
 0x2e7   :  { %2103 = vmatpush.msra.mxu2 %v11920_v11  ;;  %2143 = vmatpush.msra.mxu0 %v11921_v10  ;;  %11931 = vst [vmem:[#allocation24_spill] sm:$0xff] %v7976_v53  ;;  %v11932_v11 = vld [vmem:[#allocation86_spill] sm:$0xff]  ;;  %v11933_v10 = vld [vmem:[#allocation53_spill] sm:$0xff] }
 0x2e8   :  { %1800 = vmatpush.msra.mxu3 %v7957_v47  ;;  %1840 = vmatpush.msra.mxu1 %v7960_v52  ;;  %v5231_v52 = vld [vmem:[#allocation8 + $0x828] sm:$0xff]  ;;  %v8109_v47 = vld [vmem:[#allocation8 + $0x650] sm:$0xff] }
 0x2e9   :  { %2104 = vmatpush.msra.mxu2 %v11924_v61  ;;  %2144 = vmatpush.msra.mxu0 %v11925_v24  ;;  %v7981_v61 = vld [vmem:[#allocation8 + $0x990] sm:$0xff]  ;;  %v7984_v24 = vld [vmem:[#allocation8 + $0x998] sm:$0xff] }
 0x2ea   :  { %1801 = vmatpush.msra.mxu3 %v7965_v12  ;;  %1841 = vmatpush.msra.mxu1 %v7968_v25  ;;  %11934 = vst [vmem:[#allocation70_spill] sm:$0xff] %v7981_v61  ;;  %v5225_v25 = vld [vmem:[#allocation8 + $0x948] sm:$0xff] }
 0x2eb   :  { %2169 = vmatpush.msrb.mxu2 %v11928_v16  ;;  %2209 = vmatpush.msrb.mxu0 %v11929_v38  ;;  %11935 = vst [vmem:[#allocation40_spill] sm:$0xff] %v7984_v24  ;;  %v11936_v16 = vld [vmem:[#allocation39_spill] sm:$0xff]  ;;  %v11937_v38 = vld [vmem:[#allocation57_spill] sm:$0xff] }
 0x2ec   :  { %1802 = vmatpush.msra.mxu3 %v7973_v56  ;;  %1842 = vmatpush.msra.mxu1 %v7976_v53  ;;  %v7989_v56 = vld [vmem:[#allocation8 + $0x930] sm:$0xff]  ;;  %v7992_v53 = vld [vmem:[#allocation8 + $0x938] sm:$0xff]  ;;  %v5229_v12 = vld [vmem:[#allocation8 + $0x888] sm:$0xff] }
 0x2ed   :  { %2170 = vmatpush.msrb.mxu2 %v11932_v11  ;;  %2210 = vmatpush.msrb.mxu0 %v11933_v10  ;;  %11938 = vst [vmem:[#allocation27_spill] sm:$0xff] %v7989_v56  ;;  %v11940_v11 = vld [vmem:[#allocation42_spill] sm:$0xff]  ;;  %v11941_v10 = vld [vmem:[#allocation61_spill] sm:$0xff] }
 0x2ee   :  { %1803 = vmatpush.msra.mxu3 %v7981_v61  ;;  %1843 = vmatpush.msra.mxu1 %v7984_v24  ;;  %11939 = vst [vmem:[#allocation74_spill] sm:$0xff] %v7992_v53  ;;  %v7997_v61 = vld [vmem:[#allocation8 + $0x8d0] sm:$0xff]  ;;  %v8000_v24 = vld [vmem:[#allocation8 + $0x8d8] sm:$0xff] }
 0x2ef   :  { %2171 = vmatpush.msrb.mxu2 %v11936_v16  ;;  %2211 = vmatpush.msrb.mxu0 %v11937_v38  ;;  %11942 = vst [vmem:[#allocation43_spill] sm:$0xff] %v7997_v61  ;;  %v11944_v16 = vld [vmem:[#allocation45_spill] sm:$0xff] }
 0x2f0   :  { %1804 = vmatpush.msra.mxu3 %v7989_v56  ;;  %1844 = vmatpush.msra.mxu1 %v7992_v53  ;;  %11943 = vst [vmem:[#allocation30_spill] sm:$0xff] %v8000_v24  ;;  %v11945_v38 = vld [vmem:[#allocation65_spill] sm:$0xff]  ;;  %v8005_v56 = vld [vmem:[#allocation8 + $0x870] sm:$0xff] }
 0x2f1   :  { %2172 = vmatpush.msrb.mxu2 %v11940_v11  ;;  %2212 = vmatpush.msrb.mxu0 %v11941_v10  ;;  %11946 = vst [vmem:[#allocation78_spill] sm:$0xff] %v8005_v56  ;;  %v8008_v53 = vld [vmem:[#allocation8 + $0x878] sm:$0xff] }
 0x2f2   :  { %1805 = vmatpush.msra.mxu3 %v7997_v61  ;;  %1845 = vmatpush.msra.mxu1 %v8000_v24  ;;  %11947 = vst [vmem:[#allocation46_spill] sm:$0xff] %v8008_v53  ;;  %v11948_v11 = vld [vmem:[#allocation48_spill] sm:$0xff]  ;;  %v11949_v10 = vld [vmem:[#allocation69_spill] sm:$0xff] }
 0x2f3   :  { %2173 = vmatpush.msrb.mxu2 %v11944_v16  ;;  %2213 = vmatpush.msrb.mxu0 %v11945_v38  ;;  %v8013_v61 = vld [vmem:[#allocation8 + $0x810] sm:$0xff]  ;;  %v8016_v24 = vld [vmem:[#allocation8 + $0x818] sm:$0xff] }
 0x2f4   :  { %1806 = vmatpush.msra.mxu3 %v8005_v56  ;;  %1846 = vmatpush.msra.mxu1 %v8008_v53  ;;  %11950 = vst [vmem:[#allocation33_spill] sm:$0xff] %v8013_v61  ;;  %v11952_v16 = vld [vmem:[#allocation52_spill] sm:$0xff] }
 0x2f5   :  { %2174 = vmatpush.msrb.mxu2 %v11948_v11  ;;  %2214 = vmatpush.msrb.mxu0 %v11949_v10  ;;  %11951 = vst [vmem:[#allocation82_spill] sm:$0xff] %v8016_v24  ;;  %v11953_v38 = vld [vmem:[#allocation20_spill] sm:$0xff]  ;;  %v11956_v11 = vld [vmem:[#allocation73_spill] sm:$0xff] }
 0x2f6   :  { %1807 = vmatpush.msra.mxu3 %v8013_v61  ;;  %1847 = vmatpush.msra.mxu1 %v8016_v24  ;;  %v8021_v56 = vld [vmem:[#allocation8 + $0x7b0] sm:$0xff]  ;;  %v8024_v53 = vld [vmem:[#allocation8 + $0x7b8] sm:$0xff] }
 0x2f7   :  { %2175 = vmatpush.msrb.mxu2 %v11952_v16  ;;  %2215 = vmatpush.msrb.mxu0 %v11953_v38  ;;  %11954 = vst [vmem:[#allocation49_spill] sm:$0xff] %v8021_v56  ;;  %v11957_v10 = vld [vmem:[#allocation56_spill] sm:$0xff]  ;;  %v11960_v16 = vld [vmem:[#allocation23_spill] sm:$0xff]  ;;  %v11961_v38 = vld [vmem:[#allocation77_spill] sm:$0xff] }
 0x2f8   :  { %1808 = vmatpush.msra.mxu3 %v8021_v56  ;;  %11955 = vst [vmem:[#allocation36_spill] sm:$0xff] %v8024_v53  ;;  %1848 = vmatpush.msra.mxu1 %v8024_v53  ;;  %v8029_v61 = vld [vmem:[#allocation8 + $0x750] sm:$0xff]  ;;  %v8032_v24 = vld [vmem:[#allocation8 + $0x758] sm:$0xff] }
 0x2f9   :  { %2176 = vmatpush.msrb.mxu2 %v11956_v11  ;;  %2216 = vmatpush.msrb.mxu0 %v11957_v10  ;;  %11958 = vst [vmem:[#allocation86_spill] sm:$0xff] %v8029_v61  ;;  %v8037_v56 = vld [vmem:[#allocation8 + $0x6f0] sm:$0xff]  ;;  %v8040_v53 = vld [vmem:[#allocation8 + $0x6f8] sm:$0xff]  ;;  %v11965_v10 = vld [vmem:[#allocation26_spill] sm:$0xff] }
 0x2fa   :  { %1809 = vmatpush.msra.mxu3 %v8029_v61  ;;  %11959 = vst [vmem:[#allocation53_spill] sm:$0xff] %v8032_v24  ;;  %1849 = vmatpush.msra.mxu1 %v8032_v24  ;;  %v11964_v11 = vld [vmem:[#allocation60_spill] sm:$0xff] }
 0x2fb   :  { %2177 = vmatpush.msrb.mxu2 %v11960_v16  ;;  %2217 = vmatpush.msrb.mxu0 %v11961_v38  ;;  %11962 = vst [vmem:[#allocation39_spill] sm:$0xff] %v8037_v56  ;;  %v8045_v61 = vld [vmem:[#allocation8 + $0x690] sm:$0xff]  ;;  %v8048_v24 = vld [vmem:[#allocation8 + $0x698] sm:$0xff] }
 0x2fc   :  { %1810 = vmatpush.msra.mxu3 %v8037_v56  ;;  %11963 = vst [vmem:[#allocation57_spill] sm:$0xff] %v8040_v53  ;;  %1850 = vmatpush.msra.mxu1 %v8040_v53  ;;  %v11968_v16 = vld [vmem:[#allocation81_spill] sm:$0xff]  ;;  %v11969_v38 = vld [vmem:[#allocation64_spill] sm:$0xff] }
 0x2fd   :  { %2178 = vmatpush.msrb.mxu2 %v11964_v11  ;;  %2218 = vmatpush.msrb.mxu0 %v11965_v10  ;;  %11966 = vst [vmem:[#allocation42_spill] sm:$0xff] %v8045_v61  ;;  %v8053_v56 = vld [vmem:[#allocation8 + $0x630] sm:$0xff]  ;;  %v8056_v53 = vld [vmem:[#allocation8 + $0x638] sm:$0xff]  ;;  %v8061_v11 = vld [vmem:[#allocation8 + $0xbe0] sm:$0xff] }
 0x2fe   :  { %1811 = vmatpush.msra.mxu3 %v8045_v61  ;;  %11967 = vst [vmem:[#allocation61_spill] sm:$0xff] %v8048_v24  ;;  %1851 = vmatpush.msra.mxu1 %v8048_v24  ;;  %v8064_v10 = vld [vmem:[#allocation8 + $0xbe8] sm:$0xff]  ;;  %v11978_v24 = vld [vmem:[#allocation32_spill] sm:$0xff] }
 0x2ff   :  { %2179 = vmatpush.msrb.mxu2 %v11968_v16  ;;  %2219 = vmatpush.msrb.mxu0 %v11969_v38  ;;  %11970 = vst [vmem:[#allocation45_spill] sm:$0xff] %v8053_v56  ;;  %v11974_v16 = vld [vmem:[#allocation29_spill] sm:$0xff]  ;;  %v11979_v61 = vld [vmem:[#allocation68_spill] sm:$0xff] }
 0x300   :  { %1812 = vmatpush.msra.mxu3 %v8053_v56  ;;  %11971 = vst [vmem:[#allocation65_spill] sm:$0xff] %v8056_v53  ;;  %1852 = vmatpush.msra.mxu1 %v8056_v53  ;;  %v11975_v38 = vld [vmem:[#allocation85_spill] sm:$0xff]  ;;  %v8072_v53 = vld [vmem:[#allocation8 + $0xb88] sm:$0xff] }
 0x301   :  { %1813 = vmatmul.f32.vlgmr.msra.gmra.mxu3 %v7799_v31  ;;  %1853 = vmatmul.f32.vlgmr.msra.gmra.mxu1 %v7799_v31  ;;  %11972 = vst [vmem:[#allocation48_spill] sm:$0xff] %v8061_v11  ;;  %v8069_v56 = vld [vmem:[#allocation8 + $0xb80] sm:$0xff] }
 0x302   :  { %1877 = vmatpush.msrb.mxu3 %v8061_v11  ;;  %11973 = vst [vmem:[#allocation69_spill] sm:$0xff] %v8064_v10  ;;  %1917 = vmatpush.msrb.mxu1 %v8064_v10  ;;  %v8077_v11 = vld [vmem:[#allocation8 + $0xb20] sm:$0xff]  ;;  %v8080_v10 = vld [vmem:[#allocation8 + $0xb28] sm:$0xff] }
 0x303   :  { %2180 = vmatpush.msrb.mxu2 %v11974_v16  ;;  %2220 = vmatpush.msrb.mxu0 %v11975_v38  ;;  %11976 = vst [vmem:[#allocation52_spill] sm:$0xff] %v8069_v56  ;;  %v11982_v16 = vld [vmem:[#allocation35_spill] sm:$0xff]  ;;  %v11983_v38 = vld [vmem:[#allocation72_spill] sm:$0xff] }
 0x304   :  { %1878 = vmatpush.msrb.mxu3 %v8069_v56  ;;  %11977 = vst [vmem:[#allocation20_spill] sm:$0xff] %v8072_v53  ;;  %1918 = vmatpush.msrb.mxu1 %v8072_v53  ;;  %v8085_v56 = vld [vmem:[#allocation8 + $0xac0] sm:$0xff]  ;;  %v8088_v53 = vld [vmem:[#allocation8 + $0xac8] sm:$0xff] }
 0x305   :  { %2181 = vmatpush.msrb.mxu2 %v11978_v24  ;;  %2221 = vmatpush.msrb.mxu0 %v11979_v61  ;;  %11980 = vst [vmem:[#allocation73_spill] sm:$0xff] %v8077_v11  ;;  %v11986_v61 = vld [vmem:[#allocation41_spill] sm:$0xff]  ;;  %v11987_v24 = vld [vmem:[#allocation80_spill] sm:$0xff] }
 0x306   :  { %1879 = vmatpush.msrb.mxu3 %v8077_v11  ;;  %11981 = vst [vmem:[#allocation56_spill] sm:$0xff] %v8080_v10  ;;  %1919 = vmatpush.msrb.mxu1 %v8080_v10  ;;  %v8093_v11 = vld [vmem:[#allocation8 + $0xa60] sm:$0xff]  ;;  %v8096_v10 = vld [vmem:[#allocation8 + $0xa68] sm:$0xff] }
 0x307   :  { %2182 = vmatpush.msrb.mxu2 %v11982_v16  ;;  %2222 = vmatpush.msrb.mxu0 %v11983_v38  ;;  %11984 = vst [vmem:[#allocation23_spill] sm:$0xff] %v8085_v56  ;;  %v11990_v16 = vld [vmem:[#allocation47_spill] sm:$0xff]  ;;  %v11991_v38 = vld [vmem:[#allocation88_spill] sm:$0xff] }
 0x308   :  { %1880 = vmatpush.msrb.mxu3 %v8085_v56  ;;  %11985 = vst [vmem:[#allocation77_spill] sm:$0xff] %v8088_v53  ;;  %1920 = vmatpush.msrb.mxu1 %v8088_v53  ;;  %v8101_v56 = vld [vmem:[#allocation8 + $0xa00] sm:$0xff]  ;;  %v8104_v53 = vld [vmem:[#allocation8 + $0xa08] sm:$0xff] }
 0x309   :  { %2183 = vmatpush.msrb.mxu2 %v11986_v61  ;;  %2223 = vmatpush.msrb.mxu0 %v11987_v24  ;;  %11988 = vst [vmem:[#allocation60_spill] sm:$0xff] %v8093_v11  ;;  %v5222_v61 = vld [vmem:[#allocation8 + $0x9a0] sm:$0xff]  ;;  %v5223_v24 = vld [vmem:[#allocation8 + $0x9a8] sm:$0xff] }
 0x30a   :  { %1881 = vmatpush.msrb.mxu3 %v8093_v11  ;;  %11989 = vst [vmem:[#allocation26_spill] sm:$0xff] %v8096_v10  ;;  %1921 = vmatpush.msrb.mxu1 %v8096_v10  ;;  %v5224_v11 = vld [vmem:[#allocation8 + $0x940] sm:$0xff] }
 0x30b   :  { %2184 = vmatpush.msrb.mxu2 %v11990_v16  ;;  %2224 = vmatpush.msrb.mxu0 %v11991_v38  ;;  %11992 = vst [vmem:[#allocation81_spill] sm:$0xff] %v8101_v56  ;;  %v5226_v10 = vld [vmem:[#allocation8 + $0x8e0] sm:$0xff]  ;;  %v5227_v16 = vld [vmem:[#allocation8 + $0x8e8] sm:$0xff] }
 0x30c   :  { %1882 = vmatpush.msrb.mxu3 %v8101_v56  ;;  %11993 = vst [vmem:[#allocation64_spill] sm:$0xff] %v8104_v53  ;;  %1922 = vmatpush.msrb.mxu1 %v8104_v53  ;;  %v5228_v38 = vld [vmem:[#allocation8 + $0x880] sm:$0xff] }
 0x30d   :  { %v5230_v56 = vld [vmem:[#allocation8 + $0x820] sm:$0xff]  ;;  %11994 = vst [vmem:[#allocation29_spill] sm:$0xff] %v8109_v47 }
 0x30e   :  { %1883 = vmatpush.msrb.mxu3 %v5222_v61  ;;  %1923 = vmatpush.msrb.mxu1 %v5223_v24  ;;  %v5232_v53 = vld [vmem:[#allocation8 + $0x7c0] sm:$0xff]  ;;  %v5233_v61 = vld [vmem:[#allocation8 + $0x7c8] sm:$0xff] }
 0x30f   :  { %v5234_v24 = vld [vmem:[#allocation8 + $0x760] sm:$0xff] }
 0x310   :  { %1884 = vmatpush.msrb.mxu3 %v5224_v11  ;;  %1924 = vmatpush.msrb.mxu1 %v5225_v25  ;;  %v5235_v11 = vld [vmem:[#allocation8 + $0x768] sm:$0xff]  ;;  %v5236_v25 = vld [vmem:[#allocation8 + $0x700] sm:$0xff] }
 0x312   :  { %1885 = vmatpush.msrb.mxu3 %v5226_v10  ;;  %1925 = vmatpush.msrb.mxu1 %v5227_v16  ;;  %v5237_v10 = vld [vmem:[#allocation8 + $0x708] sm:$0xff]  ;;  %v5238_v16 = vld [vmem:[#allocation8 + $0x6a0] sm:$0xff] }
 0x314   :  { %1886 = vmatpush.msrb.mxu3 %v5228_v38  ;;  %1926 = vmatpush.msrb.mxu1 %v5229_v12  ;;  %v5239_v38 = vld [vmem:[#allocation8 + $0x6a8] sm:$0xff]  ;;  %v5240_v12 = vld [vmem:[#allocation8 + $0x640] sm:$0xff] }
 0x316   :  { %1887 = vmatpush.msrb.mxu3 %v5230_v56  ;;  %1927 = vmatpush.msrb.mxu1 %v5231_v52  ;;  %v5241_v56 = vld [vmem:[#allocation8 + $0x648] sm:$0xff]  ;;  %v5242_v52 = vld [vmem:[#allocation8 + $0xbf0] sm:$0xff] }
 0x318   :  { %1888 = vmatpush.msrb.mxu3 %v5232_v53  ;;  %1928 = vmatpush.msrb.mxu1 %v5233_v61  ;;  %v5243_v53 = vld [vmem:[#allocation8 + $0xbf8] sm:$0xff]  ;;  %v5244_v61 = vld [vmem:[#allocation8 + $0xb90] sm:$0xff] }
 0x31a   :  { %1889 = vmatpush.msrb.mxu3 %v5234_v24  ;;  %1929 = vmatpush.msrb.mxu1 %v5235_v11  ;;  %v5245_v24 = vld [vmem:[#allocation8 + $0xb98] sm:$0xff]  ;;  %v5246_v11 = vld [vmem:[#allocation8 + $0xb30] sm:$0xff] }
 0x31c   :  { %1890 = vmatpush.msrb.mxu3 %v5236_v25  ;;  %1930 = vmatpush.msrb.mxu1 %v5237_v10  ;;  %v5247_v25 = vld [vmem:[#allocation8 + $0xb38] sm:$0xff]  ;;  %v5248_v10 = vld [vmem:[#allocation8 + $0xad0] sm:$0xff] }
 0x31e   :  { %1891 = vmatpush.msrb.mxu3 %v5238_v16  ;;  %1931 = vmatpush.msrb.mxu1 %v5239_v38  ;;  %v5249_v16 = vld [vmem:[#allocation8 + $0xad8] sm:$0xff]  ;;  %v5250_v38 = vld [vmem:[#allocation8 + $0xa70] sm:$0xff] }
 0x320   :  { %1892 = vmatpush.msrb.mxu3 %v5240_v12  ;;  %1932 = vmatpush.msrb.mxu1 %v5241_v56  ;;  %v5251_v12 = vld [vmem:[#allocation8 + $0xa78] sm:$0xff]  ;;  %v5252_v56 = vld [vmem:[#allocation8 + $0xa10] sm:$0xff] }
 0x321   :  { %1893 = vmatmul.f32.vlgmr.msrb.gmra.mxu3 %v7799_v31  ;;  %1933 = vmatmul.f32.vlgmr.msrb.gmra.mxu1 %v7799_v31 }
 0x322   :  { %1957 = vmatpush.msra.mxu3 %v5242_v52  ;;  %1997 = vmatpush.msra.mxu1 %v5243_v53  ;;  %v5253_v52 = vld [vmem:[#allocation8 + $0xa18] sm:$0xff]  ;;  %v5254_v53 = vld [vmem:[#allocation8 + $0x9b0] sm:$0xff] }
 0x324   :  { %1958 = vmatpush.msra.mxu3 %v5244_v61  ;;  %1998 = vmatpush.msra.mxu1 %v5245_v24  ;;  %v5255_v61 = vld [vmem:[#allocation8 + $0x9b8] sm:$0xff]  ;;  %v5256_v24 = vld [vmem:[#allocation8 + $0x950] sm:$0xff] }
 0x326   :  { %1959 = vmatpush.msra.mxu3 %v5246_v11  ;;  %1999 = vmatpush.msra.mxu1 %v5247_v25  ;;  %v5257_v11 = vld [vmem:[#allocation8 + $0x958] sm:$0xff]  ;;  %v5258_v25 = vld [vmem:[#allocation8 + $0x8f0] sm:$0xff] }
 0x328   :  { %1960 = vmatpush.msra.mxu3 %v5248_v10  ;;  %2000 = vmatpush.msra.mxu1 %v5249_v16  ;;  %v5259_v10 = vld [vmem:[#allocation8 + $0x8f8] sm:$0xff]  ;;  %v5260_v16 = vld [vmem:[#allocation8 + $0x890] sm:$0xff] }
 0x32a   :  { %1961 = vmatpush.msra.mxu3 %v5250_v38  ;;  %2001 = vmatpush.msra.mxu1 %v5251_v12  ;;  %v5261_v38 = vld [vmem:[#allocation8 + $0x898] sm:$0xff]  ;;  %v5262_v12 = vld [vmem:[#allocation8 + $0x830] sm:$0xff] }
 0x32c   :  { %1962 = vmatpush.msra.mxu3 %v5252_v56  ;;  %2002 = vmatpush.msra.mxu1 %v5253_v52  ;;  %v5263_v56 = vld [vmem:[#allocation8 + $0x838] sm:$0xff]  ;;  %v5264_v52 = vld [vmem:[#allocation8 + $0x7d0] sm:$0xff] }
 0x32e   :  { %1963 = vmatpush.msra.mxu3 %v5254_v53  ;;  %2003 = vmatpush.msra.mxu1 %v5255_v61  ;;  %v5265_v53 = vld [vmem:[#allocation8 + $0x7d8] sm:$0xff]  ;;  %v5266_v61 = vld [vmem:[#allocation8 + $0x770] sm:$0xff] }
 0x330   :  { %1964 = vmatpush.msra.mxu3 %v5256_v24  ;;  %2004 = vmatpush.msra.mxu1 %v5257_v11  ;;  %v5267_v24 = vld [vmem:[#allocation8 + $0x778] sm:$0xff]  ;;  %v5268_v11 = vld [vmem:[#allocation8 + $0x710] sm:$0xff] }
 0x332   :  { %1965 = vmatpush.msra.mxu3 %v5258_v25  ;;  %2005 = vmatpush.msra.mxu1 %v5259_v10  ;;  %v5269_v25 = vld [vmem:[#allocation8 + $0x718] sm:$0xff]  ;;  %v5270_v10 = vld [vmem:[#allocation8 + $0x6b0] sm:$0xff] }
 0x334   :  { %1966 = vmatpush.msra.mxu3 %v5260_v16  ;;  %2006 = vmatpush.msra.mxu1 %v5261_v38  ;;  %v5271_v16 = vld [vmem:[#allocation8 + $0x6b8] sm:$0xff] }
 0x336   :  { %1967 = vmatpush.msra.mxu3 %v5262_v12  ;;  %2007 = vmatpush.msra.mxu1 %v5263_v56  ;;  %v1594_v12 = vpop.f32.mrf.mxu0  ;;  %v8112_v56 = vld [vmem:[#allocation8 + $0x658] sm:$0xff] }
 0x337   :  { %11995 = vst [vmem:[#allocation85_spill] sm:$0xff] %v8112_v56 }
 0x338   :  { %1968 = vmatpush.msra.mxu3 %v5264_v52  ;;  %2008 = vmatpush.msra.mxu1 %v5265_v53  ;;  %v1554_v53 = vpop.f32.mrf.mxu2 }
 0x33a   :  { %1969 = vmatpush.msra.mxu3 %v5266_v61  ;;  %2009 = vmatpush.msra.mxu1 %v5267_v24  ;;  %v8117_v61 = vld [vmem:[#allocation8 + $0xba0] sm:$0xff]  ;;  %v8120_v24 = vld [vmem:[#allocation8 + $0xba8] sm:$0xff] }
 0x33b   :  { %11996 = vst [vmem:[#allocation32_spill] sm:$0xff] %v8117_v61 }
 0x33c   :  { %1970 = vmatpush.msra.mxu3 %v5268_v11  ;;  %2010 = vmatpush.msra.mxu1 %v5269_v25  ;;  %11997 = vst [vmem:[#allocation68_spill] sm:$0xff] %v8120_v24  ;;  %v5276_v25 = vld [vmem:[#allocation8 + $0xb40] sm:$0xff] }
 0x33e   :  { %1971 = vmatpush.msra.mxu3 %v5270_v10  ;;  %2011 = vmatpush.msra.mxu1 %v5271_v16  ;;  %v1614_v38 = vpop.f32.mrf.mxu1  ;;  %v5277_v10 = vld [vmem:[#allocation8 + $0xb48] sm:$0xff] }
 0x33f   :  { %v1615_v52 = vadd.f32 %v1614_v38, %v1594_v12  ;;  %v2043_v12 = vld [vmem:[#allocation2] sm:$0xc0] }
 0x340   :  { %1972 = vmatpush.msra.mxu3 %v8109_v47  ;;  %2012 = vmatpush.msra.mxu1 %v8112_v56  ;;  %v5278_v47 = vld [vmem:[#allocation8 + $0xae0] sm:$0xff] }
 0x341   :  { %1973 = vmatmul.f32.vlgmr.msra.gmra.mxu3 %v7799_v31  ;;  %2013 = vmatmul.f32.vlgmr.msra.gmra.mxu1 %v7799_v31  ;;  %v2051_v16 = vrot.slane %v1615_v52, 2  ;;  %v5279_v31 = vld [vmem:[#allocation8 + $0xae8] sm:$0xff] }
 0x342   :  { %2109 = vmatpush.msrb.mxu3 %v8117_v61  ;;  %2149 = vmatpush.msrb.mxu1 %v8120_v24  ;;  %v5281_v61 = vld [vmem:[#allocation8 + $0xa88] sm:$0xff]  ;;  %v8123_v24 = vld [vmem:[#allocation8 + $0xa20] sm:$0xff] }
 0x343   :  { %v2059_v48 = vadd.f32 %v2051_v16, %v2043_v12  ;;  %11998 = vst [vmem:[#allocation35_spill] sm:$0xff] %v8123_v24  ;;  %v2044_v12 = vld [vmem:[#allocation2 + $0x18] sm:$0xc0] }
 0x344   :  { %v1574_v11 = vpop.f32.mrf.mxu3  ;;  %2110 = vmatpush.msrb.mxu3 %v5276_v25  ;;  %2150 = vmatpush.msrb.mxu1 %v5277_v10  ;;  %v8126_v25 = vld [vmem:[#allocation8 + $0xa28] sm:$0xff] }
 0x345   :  { %v1575_v56 = vadd.f32 %v1574_v11, %v1554_v53  ;;  %11999 = vst [vmem:[#allocation72_spill] sm:$0xff] %v8126_v25  ;;  %v1634_v53 = vpop.f32.mrf.mxu2  ;;  %4753 = vtanh.f32 %v2059_v48 }
 0x346   :  { %2111 = vmatpush.msrb.mxu3 %v5278_v47  ;;  %2151 = vmatpush.msrb.mxu1 %v5279_v31  ;;  %v1694_v47 = vpop.f32.mrf.mxu1  ;;  %v8135_v31 = vld [vmem:[#allocation8 + $0x960] sm:$0xff] }
 0x347   :  { %v2050_v38 = vrot.slane %v1575_v56, 2  ;;  %v8129_v56 = vld [vmem:[#allocation8 + $0x9c0] sm:$0xff]  ;;  %12002 = vst [vmem:[#allocation47_spill] sm:$0xff] %v8135_v31 }
 0x348   :  { %2112 = vmatpush.msrb.mxu3 %v5280_v34  ;;  %2152 = vmatpush.msrb.mxu1 %v5281_v61  ;;  %12000 = vst [vmem:[#allocation41_spill] sm:$0xff] %v8129_v56  ;;  %v8132_v34 = vld [vmem:[#allocation8 + $0x9c8] sm:$0xff]  ;;  %v1674_v61 = vpop.f32.mrf.mxu0 }
 0x349   :  { %v2058_v52 = vadd.f32 %v2050_v38, %v2042_v29  ;;  %12001 = vst [vmem:[#allocation80_spill] sm:$0xff] %v8132_v34  ;;  %v1695_v16 = vadd.f32 %v1694_v47, %v1674_v61  ;;  %v8138_v29 = vld [vmem:[#allocation8 + $0x968] sm:$0xff] }
 0x34a   :  { %2113 = vmatpush.msrb.mxu3 %v8123_v24  ;;  %2153 = vmatpush.msrb.mxu1 %v8126_v25  ;;  %12003 = vst [vmem:[#allocation88_spill] sm:$0xff] %v8138_v29  ;;  %v12008_v61 = vld [vmem:[#allocation38_spill] sm:$0xff]  ;;  %v12014_v25 = vld [vmem:[#allocation63_spill] sm:$0xff] }
 0x34b   :  { %4755 = vtanh.f32 %v2058_v52  ;;  %v2053_v47 = vrot.slane %v1695_v16, 2  ;;  %v4754_v52 = vpop.eup %4753  ;;  %v12010_v16 = vld [vmem:[#allocation44_spill] sm:$0xff] }
 0x34c   :  { %v1654_v11 = vpop.f32.mrf.mxu3  ;;  %2114 = vmatpush.msrb.mxu3 %v8129_v56  ;;  %2154 = vmatpush.msrb.mxu1 %v8132_v34  ;;  %v8141_v56 = vld [vmem:[#allocation8 + $0x900] sm:$0xff]  ;;  %v8144_v34 = vld [vmem:[#allocation8 + $0x908] sm:$0xff] }
 0x34d   :  { %v1655_v10 = vadd.f32 %v1654_v11, %v1634_v53  ;;  %12004 = vst [vmem:[#allocation123_spill] sm:$0xff] %v8141_v56  ;;  %v8147_v53 = vld [vmem:[#allocation8 + $0x8a0] sm:$0xff]  ;;  %v8150_v11 = vld [vmem:[#allocation8 + $0x8a8] sm:$0xff] }
 0x34e   :  { %2115 = vmatpush.msrb.mxu3 %v8135_v31  ;;  %2155 = vmatpush.msrb.mxu1 %v8138_v29  ;;  %12005 = vst [vmem:[#allocation124_spill] sm:$0xff] %v8144_v34  ;;  %v2045_v29 = vld [vmem:[#allocation2 + $0x10] sm:$0xc0]  ;;  %v12012_v31 = vld [vmem:[#allocation51_spill] sm:$0xff] }
 0x34f   :  { %v2052_v38 = vrot.slane %v1655_v10, 2  ;;  %12006 = vst [vmem:[#allocation125_spill] sm:$0xff] %v8147_v53  ;;  %v12009_v10 = vld [vmem:[#allocation76_spill] sm:$0xff] }
 0x350   :  { %2116 = vmatpush.msrb.mxu3 %v8141_v56  ;;  %2156 = vmatpush.msrb.mxu1 %v8144_v34  ;;  %12007 = vst [vmem:[#allocation126_spill] sm:$0xff] %v8150_v11  ;;  %v2067_v34 = vmul.f32 %v4754_v52, %v7226_v4  ;;  %v12015_v52 = vld [vmem:[#allocation67_spill] sm:$0xff] }
 0x351   :  { %v2060_v48 = vadd.f32 %v2052_v38, %v2044_v12  ;;  %v4756_v56 = vpop.eup %4755  ;;  %v2061_v38 = vadd.f32 %v2053_v47, %v2045_v29  ;;  %v12011_v12 = vld [vmem:[#allocation84_spill] sm:$0xff]  ;;  %v12016_v29 = vld [vmem:[#allocation59_spill] sm:$0xff] }
 0x352   :  { %2117 = vmatpush.msrb.mxu3 %v8147_v53  ;;  %2157 = vmatpush.msrb.mxu1 %v8150_v11  ;;  %v2066_v53 = vmul.f32 %v4756_v56, %v11754_v46  ;;  %v12013_v11 = vld [vmem:[#allocation55_spill] sm:$0xff]  ;;  %v2075_v47 = vrot.slane %v12016_v29, 6  ;;  %v12023_v29 = vld [vmem:[#allocation89_spill] sm:$0xff] }
 0x353   :  { %4757 = vtanh.f32 %v2060_v48 }
 0x354   :  { %2118 = vmatpush.msrb.mxu3 %v12008_v61  ;;  %2158 = vmatpush.msrb.mxu1 %v12009_v10  ;;  %v2071_v61 = vadd.f32 %v2067_v34, %v7229_v30  ;;  %4759 = vtanh.f32 %v2061_v38  ;;  %v12019_v34 = vld [vmem:[#allocation79_spill] sm:$0xff] }
 0x355   :  { %v12020_v38 = vld [vmem:[#allocation83_spill] sm:$0xff] }
 0x356   :  { %2119 = vmatpush.msrb.mxu3 %v12010_v16  ;;  %2159 = vmatpush.msrb.mxu1 %v12011_v12  ;;  %v2070_v16 = vadd.f32 %v2066_v53, %v6883_v19  ;;  %v12017_v12 = vld [vmem:[#allocation71_spill] sm:$0xff]  ;;  %v12024_v53 = vld [vmem:[#allocation90_spill] sm:$0xff] }
 0x358   :  { %2120 = vmatpush.msrb.mxu3 %v12012_v31  ;;  %2160 = vmatpush.msrb.mxu1 %v12013_v11  ;;  %v12018_v31 = vld [vmem:[#allocation75_spill] sm:$0xff]  ;;  %v2077_v11 = vmul.f32 %v2075_v47, %v2071_v61 }
 0x359   :  { %v4758_v48 = vpop.eup %4757  ;;  %v12026_v47 = vld [vmem:[#allocation91_spill] sm:$0xff] }
 0x35a   :  { %v2068_v10 = vmul.f32 %v4758_v48, %v11755_v63  ;;  %2121 = vmatpush.msrb.mxu3 %v12014_v25  ;;  %2161 = vmatpush.msrb.mxu1 %v12015_v52  ;;  %v4760_v48 = vpop.eup %4759  ;;  %v12022_v52 = vld [vmem:[#allocation87_spill] sm:$0xff] }
 0x35b   :  { %v2069_v61 = vmul.f32 %v4760_v48, %v6897_v49 }
 0x35c   :  { %v2072_v56 = vadd.f32 %v2068_v10, %v11757_v18  ;;  %2122 = vmatpush.msrb.mxu3 %v12017_v12  ;;  %2162 = vmatpush.msrb.mxu1 %v12018_v31  ;;  %v12025_v10 = vld [vmem:[#allocation92_spill] sm:$0xff]  ;;  %v12030_v31 = vld [vmem:[#allocation95_spill] sm:$0xff] }
 0x35d   :  { %v2073_v12 = vadd.f32 %v2069_v61, %v6901_v45  ;;  %v8195_v61 = vld [vmem:[#allocation8 + $0x5c0] sm:$0xff] }
 0x35e   :  { %v2078_v24 = vmul.f32 %v2072_v56, %v2070_v16  ;;  %2123 = vmatpush.msrb.mxu3 %v12019_v34  ;;  %2163 = vmatpush.msrb.mxu1 %v12020_v38  ;;  %v12027_v16 = vld [vmem:[#allocation97_spill] sm:$0xff]  ;;  %12036 = vst [vmem:[#allocation76_spill] sm:$0xff] %v8195_v61 }
 0x35f   :  { %v12028_v56 = vld [vmem:[#allocation93_spill] sm:$0xff] }
 0x360   :  { %v8172_v25 = vadd.f32 %v2078_v24, %v2077_v11  ;;  %2124 = vmatpush.msrb.mxu3 %v12022_v52  ;;  %2164 = vmatpush.msrb.mxu1 %v12023_v29  ;;  %v12029_v24 = vld [vmem:[#allocation94_spill] sm:$0xff]  ;;  %v12031_v11 = vld [vmem:[#allocation96_spill] sm:$0xff] }
 0x361   :  { %v12032_v52 = vld [vmem:[#allocation98_spill] sm:$0xff]  ;;  %v12033_v29 = vld [vmem:[#allocation100_spill] sm:$0xff] }
 0x362   :  { %12021 = vst [vmem:[#allocation38_spill] sm:$0xff] %v8172_v25  ;;  %2189 = vmatpush.msra.mxu3 %v12024_v53  ;;  %2229 = vmatpush.msra.mxu1 %v12025_v10  ;;  %4761 = vtanh.f32 %v8172_v25  ;;  %v12034_v53 = vld [vmem:[#allocation102_spill] sm:$0xff]  ;;  %v12035_v10 = vld [vmem:[#allocation104_spill] sm:$0xff] }
 0x363   :  { %v8441_v25 = vld [vmem:[#allocation8 + $0x460] sm:$0xff] }
 0x364   :  { %2190 = vmatpush.msra.mxu3 %v12026_v47  ;;  %2230 = vmatpush.msra.mxu1 %v12027_v16  ;;  %v8198_v47 = vld [vmem:[#allocation8 + $0x5c8] sm:$0xff]  ;;  %12128 = vst [vmem:[#allocation153_spill] sm:$0xff] %v8441_v25 }
 0x365   :  { %12037 = vst [vmem:[#allocation44_spill] sm:$0xff] %v8198_v47  ;;  %v12038_v16 = vld [vmem:[#allocation106_spill] sm:$0xff] }
 0x366   :  { %2191 = vmatpush.msra.mxu3 %v12028_v56  ;;  %2231 = vmatpush.msra.mxu1 %v12029_v24  ;;  %v12039_v56 = vld [vmem:[#allocation108_spill] sm:$0xff]  ;;  %v8203_v24 = vld [vmem:[#allocation8 + $0x560] sm:$0xff] }
 0x367   :  { %12040 = vst [vmem:[#allocation84_spill] sm:$0xff] %v8203_v24 }
 0x368   :  { %2192 = vmatpush.msra.mxu3 %v12030_v31  ;;  %2232 = vmatpush.msra.mxu1 %v12031_v11  ;;  %v4762_v34 = vpop.eup %4761  ;;  %v12042_v31 = vld [vmem:[#allocation110_spill] sm:$0xff]  ;;  %v12043_v11 = vld [vmem:[#allocation112_spill] sm:$0xff] }
 0x369   :  { %v2081_v38 = vmul.f32 %v4762_v34, %v2073_v12  ;;  %v8206_v12 = vld [vmem:[#allocation8 + $0x568] sm:$0xff]  ;;  %v8211_v34 = vld [vmem:[#allocation8 + $0x500] sm:$0xff] }
 0x36a   :  { %2193 = vmatpush.msra.mxu3 %v12032_v52  ;;  %2233 = vmatpush.msra.mxu1 %v12033_v29  ;;  %12041 = vst [vmem:[#allocation51_spill] sm:$0xff] %v8206_v12  ;;  %v12046_v52 = vld [vmem:[#allocation115_spill] sm:$0xff]  ;;  %v12047_v29 = vld [vmem:[#allocation117_spill] sm:$0xff] }
 0x36b   :  { %v8189_v48 = vrot.slane %v2081_v38, 6  ;;  %12044 = vst [vmem:[#allocation55_spill] sm:$0xff] %v8211_v34  ;;  %v8214_v38 = vld [vmem:[#allocation8 + $0x508] sm:$0xff] }
 0x36c   :  { %2194 = vmatpush.msra.mxu3 %v12034_v53  ;;  %2234 = vmatpush.msra.mxu1 %v12035_v10  ;;  %12045 = vst [vmem:[#allocation63_spill] sm:$0xff] %v8214_v38  ;;  %v8219_v53 = vld [vmem:[#allocation8 + $0x4a0] sm:$0xff]  ;;  %v8222_v10 = vld [vmem:[#allocation8 + $0x4a8] sm:$0xff] }
 0x36d   :  { %2105 = vmatmul.f32.vlgmr.msra.gmra.mxu2 %v8189_v48  ;;  %2145 = vmatmul.f32.vlgmr.msra.gmra.mxu0 %v8189_v48  ;;  %12048 = vst [vmem:[#allocation67_spill] sm:$0xff] %v8219_v53 }
 0x36e   :  { %2249 = vmatpush.msra.mxu2 %v8195_v61  ;;  %2289 = vmatpush.msra.mxu0 %v8198_v47  ;;  %12049 = vst [vmem:[#allocation59_spill] sm:$0xff] %v8222_v10  ;;  %v8429_v47 = vld [vmem:[#allocation8 + $0x520] sm:$0xff]  ;;  %v8438_v61 = vld [vmem:[#allocation8 + $0x4c8] sm:$0xff] }
 0x36f   :  { %2195 = vmatpush.msra.mxu3 %v12038_v16  ;;  %2235 = vmatpush.msra.mxu1 %v12039_v56  ;;  %v8227_v16 = vld [vmem:[#allocation8 + $0x440] sm:$0xff]  ;;  %v8230_v56 = vld [vmem:[#allocation8 + $0x448] sm:$0xff]  ;;  %12124 = vst [vmem:[#allocation149_spill] sm:$0xff] %v8429_v47 }
 0x370   :  { %2250 = vmatpush.msra.mxu2 %v8203_v24  ;;  %2290 = vmatpush.msra.mxu0 %v8206_v12  ;;  %12050 = vst [vmem:[#allocation71_spill] sm:$0xff] %v8227_v16  ;;  %v8423_v12 = vld [vmem:[#allocation8 + $0x580] sm:$0xff] }
 0x371   :  { %2196 = vmatpush.msra.mxu3 %v12042_v31  ;;  %2236 = vmatpush.msra.mxu1 %v12043_v11  ;;  %12051 = vst [vmem:[#allocation75_spill] sm:$0xff] %v8230_v56  ;;  %v12052_v31 = vld [vmem:[#allocation119_spill] sm:$0xff] }
 0x372   :  { %2251 = vmatpush.msra.mxu2 %v8211_v34  ;;  %2291 = vmatpush.msra.mxu0 %v8214_v38  ;;  %v12053_v11 = vld [vmem:[#allocation99_spill] sm:$0xff]  ;;  %v8408_v34 = vld [vmem:[#allocation8 + $0x38] sm:$0xff]  ;;  %12122 = vst [vmem:[#allocation147_spill] sm:$0xff] %v8423_v12 }
 0x373   :  { %2197 = vmatpush.msra.mxu3 %v12046_v52  ;;  %2237 = vmatpush.msra.mxu1 %v12047_v29  ;;  %v8235_v52 = vld [vmem:[#allocation8 + $0x3e0] sm:$0xff]  ;;  %v8238_v29 = vld [vmem:[#allocation8 + $0x3e8] sm:$0xff]  ;;  %v8399_v38 = vld [vmem:[#allocation8 + $0x90] sm:$0xff]  ;;  %12119 = vst [vmem:[#allocation144_spill] sm:$0xff] %v8408_v34 }
 0x374   :  { %2252 = vmatpush.msra.mxu2 %v8219_v53  ;;  %2292 = vmatpush.msra.mxu0 %v8222_v10  ;;  %12054 = vst [vmem:[#allocation79_spill] sm:$0xff] %v8235_v52  ;;  %v12056_v10 = vld [vmem:[#allocation101_spill] sm:$0xff]  ;;  %v12057_v53 = vld [vmem:[#allocation103_spill] sm:$0xff] }
 0x375   :  { %2185 = vmatmul.f32.vlgmr.msrb.gmra.mxu2 %v8189_v48  ;;  %2225 = vmatmul.f32.vlgmr.msrb.gmra.mxu0 %v8189_v48  ;;  %12055 = vst [vmem:[#allocation83_spill] sm:$0xff] %v8238_v29 }
 0x376   :  { %2253 = vmatpush.msra.mxu2 %v8227_v16  ;;  %2293 = vmatpush.msra.mxu0 %v8230_v56  ;;  %v8243_v16 = vld [vmem:[#allocation8 + $0x380] sm:$0xff]  ;;  %v8246_v56 = vld [vmem:[#allocation8 + $0x388] sm:$0xff]  ;;  %12116 = vst [vmem:[#allocation141_spill] sm:$0xff] %v8399_v38 }
 0x377   :  { %2198 = vmatpush.msra.mxu3 %v12052_v31  ;;  %2238 = vmatpush.msra.mxu1 %v12053_v11  ;;  %12058 = vst [vmem:[#allocation87_spill] sm:$0xff] %v8243_v16  ;;  %v12060_v31 = vld [vmem:[#allocation105_spill] sm:$0xff]  ;;  %v12061_v11 = vld [vmem:[#allocation107_spill] sm:$0xff] }
 0x378   :  { %2254 = vmatpush.msra.mxu2 %v8235_v52  ;;  %2294 = vmatpush.msra.mxu0 %v8238_v29  ;;  %12059 = vst [vmem:[#allocation89_spill] sm:$0xff] %v8246_v56  ;;  %v8251_v52 = vld [vmem:[#allocation8 + $0x320] sm:$0xff]  ;;  %v8254_v29 = vld [vmem:[#allocation8 + $0x328] sm:$0xff] }
 0x379   :  { %2199 = vmatpush.msra.mxu3 %v12056_v10  ;;  %2239 = vmatpush.msra.mxu1 %v12057_v53  ;;  %12062 = vst [vmem:[#allocation90_spill] sm:$0xff] %v8251_v52  ;;  %v12064_v53 = vld [vmem:[#allocation109_spill] sm:$0xff]  ;;  %v12065_v10 = vld [vmem:[#allocation111_spill] sm:$0xff] }
 0x37a   :  { %2255 = vmatpush.msra.mxu2 %v8243_v16  ;;  %2295 = vmatpush.msra.mxu0 %v8246_v56  ;;  %12063 = vst [vmem:[#allocation92_spill] sm:$0xff] %v8254_v29  ;;  %v8259_v16 = vld [vmem:[#allocation8 + $0x2c0] sm:$0xff]  ;;  %v8262_v56 = vld [vmem:[#allocation8 + $0x2c8] sm:$0xff] }
 0x37b   :  { %2200 = vmatpush.msra.mxu3 %v12060_v31  ;;  %2240 = vmatpush.msra.mxu1 %v12061_v11  ;;  %12066 = vst [vmem:[#allocation91_spill] sm:$0xff] %v8259_v16  ;;  %v12068_v31 = vld [vmem:[#allocation113_spill] sm:$0xff]  ;;  %v12069_v11 = vld [vmem:[#allocation114_spill] sm:$0xff] }
 0x37c   :  { %2256 = vmatpush.msra.mxu2 %v8251_v52  ;;  %2296 = vmatpush.msra.mxu0 %v8254_v29  ;;  %12067 = vst [vmem:[#allocation97_spill] sm:$0xff] %v8262_v56  ;;  %v8267_v52 = vld [vmem:[#allocation8 + $0x260] sm:$0xff]  ;;  %v8270_v29 = vld [vmem:[#allocation8 + $0x268] sm:$0xff] }
 0x37d   :  { %2201 = vmatpush.msra.mxu3 %v12064_v53  ;;  %2241 = vmatpush.msra.mxu1 %v12065_v10  ;;  %12070 = vst [vmem:[#allocation93_spill] sm:$0xff] %v8267_v52  ;;  %v12072_v53 = vld [vmem:[#allocation116_spill] sm:$0xff]  ;;  %v12073_v10 = vld [vmem:[#allocation118_spill] sm:$0xff] }
 0x37e   :  { %2257 = vmatpush.msra.mxu2 %v8259_v16  ;;  %2297 = vmatpush.msra.mxu0 %v8262_v56  ;;  %12071 = vst [vmem:[#allocation94_spill] sm:$0xff] %v8270_v29  ;;  %v8275_v16 = vld [vmem:[#allocation8 + $0x200] sm:$0xff]  ;;  %v8278_v56 = vld [vmem:[#allocation8 + $0x208] sm:$0xff] }
 0x37f   :  { %2202 = vmatpush.msra.mxu3 %v12068_v31  ;;  %2242 = vmatpush.msra.mxu1 %v12069_v11  ;;  %12074 = vst [vmem:[#allocation95_spill] sm:$0xff] %v8275_v16  ;;  %v12076_v31 = vld [vmem:[#allocation120_spill] sm:$0xff]  ;;  %v12077_v11 = vld [vmem:[#allocation121_spill] sm:$0xff] }
 0x380   :  { %2258 = vmatpush.msra.mxu2 %v8267_v52  ;;  %2298 = vmatpush.msra.mxu0 %v8270_v29  ;;  %12075 = vst [vmem:[#allocation96_spill] sm:$0xff] %v8278_v56  ;;  %v8283_v52 = vld [vmem:[#allocation8 + $0x1a0] sm:$0xff]  ;;  %v8286_v29 = vld [vmem:[#allocation8 + $0x1a8] sm:$0xff] }
 0x381   :  { %2203 = vmatpush.msra.mxu3 %v12072_v53  ;;  %2243 = vmatpush.msra.mxu1 %v12073_v10  ;;  %12078 = vst [vmem:[#allocation98_spill] sm:$0xff] %v8283_v52  ;;  %v8289_v53 = vld [vmem:[#allocation8 + $0x140] sm:$0xff]  ;;  %v8292_v10 = vld [vmem:[#allocation8 + $0x148] sm:$0xff] }
 0x382   :  { %2259 = vmatpush.msra.mxu2 %v8275_v16  ;;  %2299 = vmatpush.msra.mxu0 %v8278_v56  ;;  %12079 = vst [vmem:[#allocation100_spill] sm:$0xff] %v8286_v29  ;;  %v8295_v56 = vld [vmem:[#allocation8 + $0xe0] sm:$0xff]  ;;  %v1734_v16 = vpop.f32.mrf.mxu3 }
 0x383   :  { %2204 = vmatpush.msra.mxu3 %v12076_v31  ;;  %2244 = vmatpush.msra.mxu1 %v12077_v11  ;;  %12080 = vst [vmem:[#allocation102_spill] sm:$0xff] %v8289_v53  ;;  %v8298_v31 = vld [vmem:[#allocation8 + $0xe8] sm:$0xff]  ;;  %v8301_v11 = vld [vmem:[#allocation8 + $0x80] sm:$0xff] }
 0x384   :  { %2260 = vmatpush.msra.mxu2 %v8283_v52  ;;  %2300 = vmatpush.msra.mxu0 %v8286_v29  ;;  %12081 = vst [vmem:[#allocation104_spill] sm:$0xff] %v8292_v10  ;;  %v8304_v29 = vld [vmem:[#allocation8 + $0x88] sm:$0xff]  ;;  %v8387_v52 = vld [vmem:[#allocation8 + $0x150] sm:$0xff] }
 0x385   :  { %12082 = vst [vmem:[#allocation106_spill] sm:$0xff] %v8295_v56 }
 0x386   :  { %2261 = vmatpush.msra.mxu2 %v8289_v53  ;;  %2301 = vmatpush.msra.mxu0 %v8292_v10  ;;  %12083 = vst [vmem:[#allocation108_spill] sm:$0xff] %v8298_v31  ;;  %v8307_v53 = vld [vmem:[#allocation8 + $0x20] sm:$0xff]  ;;  %v8310_v10 = vld [vmem:[#allocation8 + $0x28] sm:$0xff] }
 0x387   :  { %12084 = vst [vmem:[#allocation110_spill] sm:$0xff] %v8301_v11 }
 0x388   :  { %2262 = vmatpush.msra.mxu2 %v8295_v56  ;;  %2302 = vmatpush.msra.mxu0 %v8298_v31  ;;  %12085 = vst [vmem:[#allocation112_spill] sm:$0xff] %v8304_v29  ;;  %v8315_v31 = vld [vmem:[#allocation8 + $0x5d0] sm:$0xff]  ;;  %v8330_v56 = vld [vmem:[#allocation8 + $0x518] sm:$0xff] }
 0x389   :  { %12086 = vst [vmem:[#allocation115_spill] sm:$0xff] %v8307_v53 }
 0x38a   :  { %2263 = vmatpush.msra.mxu2 %v8301_v11  ;;  %2303 = vmatpush.msra.mxu0 %v8304_v29  ;;  %12087 = vst [vmem:[#allocation117_spill] sm:$0xff] %v8310_v10  ;;  %v8318_v11 = vld [vmem:[#allocation8 + $0x5d8] sm:$0xff]  ;;  %v8321_v29 = vld [vmem:[#allocation8 + $0x570] sm:$0xff] }
 0x38b   :  { %12088 = vst [vmem:[#allocation119_spill] sm:$0xff] %v8315_v31 }
 0x38c   :  { %2264 = vmatpush.msra.mxu2 %v8307_v53  ;;  %2304 = vmatpush.msra.mxu0 %v8310_v10  ;;  %12089 = vst [vmem:[#allocation99_spill] sm:$0xff] %v8318_v11  ;;  %v8324_v53 = vld [vmem:[#allocation8 + $0x578] sm:$0xff]  ;;  %v8327_v10 = vld [vmem:[#allocation8 + $0x510] sm:$0xff] }
 0x38d   :  { %2265 = vmatmul.f32.vlgmr.msra.gmra.mxu2 %v8189_v48  ;;  %2305 = vmatmul.f32.vlgmr.msra.gmra.mxu0 %v8189_v48  ;;  %12090 = vst [vmem:[#allocation101_spill] sm:$0xff] %v8321_v29 }
 0x38e   :  { %2329 = vmatpush.msrb.mxu2 %v8315_v31  ;;  %2369 = vmatpush.msrb.mxu0 %v8318_v11  ;;  %12091 = vst [vmem:[#allocation103_spill] sm:$0xff] %v8324_v53  ;;  %v8333_v31 = vld [vmem:[#allocation8 + $0x4b0] sm:$0xff]  ;;  %v8336_v11 = vld [vmem:[#allocation8 + $0x4b8] sm:$0xff] }
 0x38f   :  { %12092 = vst [vmem:[#allocation105_spill] sm:$0xff] %v8327_v10 }
 0x390   :  { %2330 = vmatpush.msrb.mxu2 %v8321_v29  ;;  %2370 = vmatpush.msrb.mxu0 %v8324_v53  ;;  %12093 = vst [vmem:[#allocation107_spill] sm:$0xff] %v8330_v56  ;;  %v8339_v29 = vld [vmem:[#allocation8 + $0x450] sm:$0xff]  ;;  %v8342_v53 = vld [vmem:[#allocation8 + $0x458] sm:$0xff] }
 0x391   :  { %12094 = vst [vmem:[#allocation109_spill] sm:$0xff] %v8333_v31 }
 0x392   :  { %2331 = vmatpush.msrb.mxu2 %v8327_v10  ;;  %2371 = vmatpush.msrb.mxu0 %v8330_v56  ;;  %12095 = vst [vmem:[#allocation111_spill] sm:$0xff] %v8336_v11  ;;  %v8345_v10 = vld [vmem:[#allocation8 + $0x3f0] sm:$0xff]  ;;  %v8348_v56 = vld [vmem:[#allocation8 + $0x3f8] sm:$0xff] }
 0x393   :  { %12096 = vst [vmem:[#allocation113_spill] sm:$0xff] %v8339_v29 }
 0x394   :  { %2332 = vmatpush.msrb.mxu2 %v8333_v31  ;;  %2372 = vmatpush.msrb.mxu0 %v8336_v11  ;;  %12097 = vst [vmem:[#allocation114_spill] sm:$0xff] %v8342_v53  ;;  %v8351_v31 = vld [vmem:[#allocation8 + $0x390] sm:$0xff]  ;;  %v8354_v11 = vld [vmem:[#allocation8 + $0x398] sm:$0xff] }
 0x395   :  { %12098 = vst [vmem:[#allocation116_spill] sm:$0xff] %v8345_v10 }
 0x396   :  { %2333 = vmatpush.msrb.mxu2 %v8339_v29  ;;  %2373 = vmatpush.msrb.mxu0 %v8342_v53  ;;  %12099 = vst [vmem:[#allocation118_spill] sm:$0xff] %v8348_v56  ;;  %v8357_v29 = vld [vmem:[#allocation8 + $0x330] sm:$0xff]  ;;  %v8360_v53 = vld [vmem:[#allocation8 + $0x338] sm:$0xff] }
 0x397   :  { %12100 = vst [vmem:[#allocation120_spill] sm:$0xff] %v8351_v31 }
 0x398   :  { %2334 = vmatpush.msrb.mxu2 %v8345_v10  ;;  %2374 = vmatpush.msrb.mxu0 %v8348_v56  ;;  %12101 = vst [vmem:[#allocation121_spill] sm:$0xff] %v8354_v11  ;;  %v8363_v10 = vld [vmem:[#allocation8 + $0x2d0] sm:$0xff]  ;;  %v8366_v56 = vld [vmem:[#allocation8 + $0x2d8] sm:$0xff] }
 0x399   :  { %12102 = vst [vmem:[#allocation127_spill] sm:$0xff] %v8357_v29 }
 0x39a   :  { %2335 = vmatpush.msrb.mxu2 %v8351_v31  ;;  %2375 = vmatpush.msrb.mxu0 %v8354_v11  ;;  %12103 = vst [vmem:[#allocation128_spill] sm:$0xff] %v8360_v53  ;;  %v8369_v31 = vld [vmem:[#allocation8 + $0x270] sm:$0xff]  ;;  %v8372_v11 = vld [vmem:[#allocation8 + $0x278] sm:$0xff] }
 0x39b   :  { %12104 = vst [vmem:[#allocation129_spill] sm:$0xff] %v8363_v10 }
 0x39c   :  { %2336 = vmatpush.msrb.mxu2 %v8357_v29  ;;  %2376 = vmatpush.msrb.mxu0 %v8360_v53  ;;  %12105 = vst [vmem:[#allocation130_spill] sm:$0xff] %v8366_v56  ;;  %v8375_v29 = vld [vmem:[#allocation8 + $0x210] sm:$0xff]  ;;  %v8378_v53 = vld [vmem:[#allocation8 + $0x218] sm:$0xff] }
 0x39d   :  { %12106 = vst [vmem:[#allocation131_spill] sm:$0xff] %v8369_v31 }
 0x39e   :  { %2337 = vmatpush.msrb.mxu2 %v8363_v10  ;;  %2377 = vmatpush.msrb.mxu0 %v8366_v56  ;;  %12107 = vst [vmem:[#allocation132_spill] sm:$0xff] %v8372_v11  ;;  %v8381_v10 = vld [vmem:[#allocation8 + $0x1b0] sm:$0xff]  ;;  %v8384_v56 = vld [vmem:[#allocation8 + $0x1b8] sm:$0xff] }
 0x39f   :  { %12108 = vst [vmem:[#allocation133_spill] sm:$0xff] %v8375_v29 }
 0x3a0   :  { %2338 = vmatpush.msrb.mxu2 %v8369_v31  ;;  %2378 = vmatpush.msrb.mxu0 %v8372_v11  ;;  %12109 = vst [vmem:[#allocation134_spill] sm:$0xff] %v8378_v53  ;;  %v1774_v31 = vpop.f32.mrf.mxu1  ;;  %v8390_v11 = vld [vmem:[#allocation8 + $0x158] sm:$0xff] }
 0x3a1   :  { %12110 = vst [vmem:[#allocation135_spill] sm:$0xff] %v8381_v10 }
 0x3a2   :  { %2339 = vmatpush.msrb.mxu2 %v8375_v29  ;;  %2379 = vmatpush.msrb.mxu0 %v8378_v53  ;;  %12111 = vst [vmem:[#allocation136_spill] sm:$0xff] %v8384_v56  ;;  %v1754_v29 = vpop.f32.mrf.mxu0  ;;  %v8393_v53 = vld [vmem:[#allocation8 + $0xf0] sm:$0xff] }
 0x3a3   :  { %12112 = vst [vmem:[#allocation137_spill] sm:$0xff] %v8387_v52 }
 0x3a4   :  { %2340 = vmatpush.msrb.mxu2 %v8381_v10  ;;  %2380 = vmatpush.msrb.mxu0 %v8384_v56  ;;  %12113 = vst [vmem:[#allocation138_spill] sm:$0xff] %v8390_v11  ;;  %v8396_v10 = vld [vmem:[#allocation8 + $0xf8] sm:$0xff]  ;;  %v1714_v56 = vpop.f32.mrf.mxu2 }
 0x3a5   :  { %12114 = vst [vmem:[#allocation139_spill] sm:$0xff] %v8393_v53 }
 0x3a6   :  { %2341 = vmatpush.msrb.mxu2 %v8387_v52  ;;  %2381 = vmatpush.msrb.mxu0 %v8390_v11  ;;  %12115 = vst [vmem:[#allocation140_spill] sm:$0xff] %v8396_v10  ;;  %v8402_v52 = vld [vmem:[#allocation8 + $0x98] sm:$0xff]  ;;  %v8405_v11 = vld [vmem:[#allocation8 + $0x30] sm:$0xff] }
 0x3a7   :  { %12117 = vst [vmem:[#allocation142_spill] sm:$0xff] %v8402_v52 }
 0x3a8   :  { %2342 = vmatpush.msrb.mxu2 %v8393_v53  ;;  %2382 = vmatpush.msrb.mxu0 %v8396_v10  ;;  %12118 = vst [vmem:[#allocation143_spill] sm:$0xff] %v8405_v11  ;;  %v8413_v10 = vpop.f32.mrf.mxu1  ;;  %v8415_v53 = vld [vmem:[#allocation8 + $0x5e0] sm:$0xff] }
 0x3a9   :  { %12120 = vst [vmem:[#allocation145_spill] sm:$0xff] %v8415_v53 }
 0x3aa   :  { %2343 = vmatpush.msrb.mxu2 %v8399_v38  ;;  %2383 = vmatpush.msrb.mxu0 %v8402_v52  ;;  %v8418_v38 = vld [vmem:[#allocation8 + $0x5e8] sm:$0xff]  ;;  %v8421_v52 = vpop.f32.mrf.mxu0  ;;  %12127 = vst [vmem:[#allocation152_spill] sm:$0xff] %v8438_v61 }
 0x3ab   :  { %12121 = vst [vmem:[#allocation146_spill] sm:$0xff] %v8418_v38 }
 0x3ac   :  { %2344 = vmatpush.msrb.mxu2 %v8405_v11  ;;  %2384 = vmatpush.msrb.mxu0 %v8408_v34  ;;  %v1814_v11 = vpop.f32.mrf.mxu3  ;;  %v8426_v34 = vld [vmem:[#allocation8 + $0x588] sm:$0xff]  ;;  %v1794_v24 = vpop.f32.mrf.mxu2 }
 0x3ad   :  { %2345 = vmatmul.f32.vlgmr.msrb.gmra.mxu2 %v8189_v48  ;;  %2385 = vmatmul.f32.vlgmr.msrb.gmra.mxu0 %v8189_v48  ;;  %12123 = vst [vmem:[#allocation148_spill] sm:$0xff] %v8426_v34 }
 0x3ae   :  { %2409 = vmatpush.msra.mxu2 %v8415_v53  ;;  %2449 = vmatpush.msra.mxu0 %v8418_v38  ;;  %v8432_v53 = vld [vmem:[#allocation8 + $0x528] sm:$0xff]  ;;  %v8435_v38 = vld [vmem:[#allocation8 + $0x4c0] sm:$0xff] }
 0x3af   :  { %12125 = vst [vmem:[#allocation150_spill] sm:$0xff] %v8432_v53 }
 0x3b0   :  { %2410 = vmatpush.msra.mxu2 %v8423_v12  ;;  %2450 = vmatpush.msra.mxu0 %v8426_v34  ;;  %12126 = vst [vmem:[#allocation151_spill] sm:$0xff] %v8435_v38  ;;  %v1934_v12 = vpop.f32.mrf.mxu1  ;;  %v8444_v34 = vld [vmem:[#allocation8 + $0x468] sm:$0xff] }
 0x3b1   :  { %12129 = vst [vmem:[#allocation154_spill] sm:$0xff] %v8444_v34 }
 0x3b2   :  { %2411 = vmatpush.msra.mxu2 %v8429_v47  ;;  %2451 = vmatpush.msra.mxu0 %v8432_v53  ;;  %v1914_v47 = vpop.f32.mrf.mxu0  ;;  %v8447_v53 = vld [vmem:[#allocation8 + $0x400] sm:$0xff] }
 0x3b3   :  { %12130 = vst [vmem:[#allocation155_spill] sm:$0xff] %v8447_v53 }
 0x3b4   :  { %2412 = vmatpush.msra.mxu2 %v8435_v38  ;;  %2452 = vmatpush.msra.mxu0 %v8438_v61  ;;  %v1894_v1 = vpop.f32.mrf.mxu3  ;;  %v8450_v38 = vld [vmem:[#allocation8 + $0x408] sm:$0xff]  ;;  %v1935_v61 = vadd.f32 %v1934_v12, %v1914_v47  ;;  %v1874_v7 = vpop.f32.mrf.mxu2  ;;  %v1735_v47 = vadd.f32 %v1734_v16, %v1714_v56 }
 0x3b5   :  { %12131 = vst [vmem:[#allocation156_spill] sm:$0xff] %v8450_v38  ;;  %v1895_v27 = vadd.f32 %v1894_v1, %v1874_v7  ;;  %v8471_v7 = vld [vmem:[#allocation8 + $0x280] sm:$0xff]  ;;  %v8474_v1 = vld [vmem:[#allocation8 + $0x288] sm:$0xff] }
 0x3b6   :  { %2413 = vmatpush.msra.mxu2 %v8441_v25  ;;  %2453 = vmatpush.msra.mxu0 %v8444_v34  ;;  %v8456_v25 = vld [vmem:[#allocation8 + $0x3a8] sm:$0xff]  ;;  %v1775_v34 = vadd.f32 %v1774_v31, %v1754_v29  ;;  %12135 = vst [vmem:[#allocation160_spill] sm:$0xff] %v8471_v7 }
 0x3b7   :  { %v2017_v29 = vadd.f32 %v1895_v27, %v1735_v47  ;;  %12136 = vst [vmem:[#allocation161_spill] sm:$0xff] %v8474_v1 }
 0x3b8   :  { %2414 = vmatpush.msra.mxu2 %v8447_v53  ;;  %2454 = vmatpush.msra.mxu0 %v8450_v38  ;;  %v8462_v53 = vld [vmem:[#allocation8 + $0x348] sm:$0xff]  ;;  %v2018_v12 = vadd.f32 %v1935_v61, %v1775_v34  ;;  %v8465_v38 = vld [vmem:[#allocation8 + $0x2e0] sm:$0xff] }
 0x3b9   :  { %12133 = vst [vmem:[#allocation158_spill] sm:$0xff] %v8465_v38  ;;  %v8478_v61 = vld [vmem:[#allocation8 + $0x220] sm:$0xff]  ;;  %v8481_v34 = vld [vmem:[#allocation8 + $0x228] sm:$0xff]  ;;  %v2021_v27 = vadd.f32 %v2017_v29, %v7251_v36 }
 0x3ba   :  { %2415 = vmatpush.msra.mxu2 %v8453_v62  ;;  %2455 = vmatpush.msra.mxu0 %v8456_v25  ;;  %v8468_v62 = vld [vmem:[#allocation8 + $0x2e8] sm:$0xff]  ;;  %v2022_v16 = vadd.f32 %v2018_v12, %v7763_v37  ;;  %12137 = vst [vmem:[#allocation162_spill] sm:$0xff] %v8478_v61  ;;  %v1994_v12 = vpop.f32.mrf.mxu0  ;;  %v1815_v37 = vadd.f32 %v1814_v11, %v1794_v24 }
 0x3bb   :  { %12134 = vst [vmem:[#allocation159_spill] sm:$0xff] %v8468_v62  ;;  %v8494_v29 = vld [vmem:[#allocation8 + $0x168] sm:$0xff] }
 0x3bc   :  { %2416 = vmatpush.msra.mxu2 %v8459_v3  ;;  %2456 = vmatpush.msra.mxu0 %v8462_v53  ;;  %12138 = vst [vmem:[#allocation163_spill] sm:$0xff] %v8481_v34  ;;  %v1954_v31 = vpop.f32.mrf.mxu2  ;;  %4763 = vtanh.f32 %v2022_v16  ;;  %v8502_v24 = vld [vmem:[#allocation8 + $0x108] sm:$0xff] }
 0x3bd   :  { %4765 = vtanh.f32 %v2021_v27  ;;  %v8509_v27 = vld [vmem:[#allocation8 + $0xa8] sm:$0xff] }
 0x3be   :  { %2417 = vmatpush.msra.mxu2 %v8465_v38  ;;  %2457 = vmatpush.msra.mxu0 %v8468_v62  ;;  %v2014_v56 = vpop.f32.mrf.mxu1  ;;  %v8491_v38 = vld [vmem:[#allocation8 + $0x160] sm:$0xff] }
 0x3bf   :  { %v2015_v62 = vadd.f32 %v2014_v56, %v1994_v12  ;;  %v8506_v56 = vld [vmem:[#allocation8 + $0xa0] sm:$0xff]  ;;  %v8529_v12 = vld [vmem:[#allocation8 + $0x590] sm:$0xff] }
 0x3c0   :  { %2418 = vmatpush.msra.mxu2 %v8471_v7  ;;  %2458 = vmatpush.msra.mxu0 %v8474_v1  ;;  %v8485_v7 = vld [vmem:[#allocation8 + $0x1c0] sm:$0xff]  ;;  %v8488_v1 = vld [vmem:[#allocation8 + $0x1c8] sm:$0xff]  ;;  %12142 = vst [vmem:[#allocation167_spill] sm:$0xff] %v8529_v12 }
 0x3c1   :  { %12139 = vst [vmem:[#allocation164_spill] sm:$0xff] %v8485_v7 }
 0x3c2   :  { %2419 = vmatpush.msra.mxu2 %v8478_v61  ;;  %2459 = vmatpush.msra.mxu0 %v8481_v34  ;;  %v8499_v34 = vld [vmem:[#allocation8 + $0x100] sm:$0xff] }
 0x3c4   :  { %v1974_v47 = vpop.f32.mrf.mxu3  ;;  %2420 = vmatpush.msra.mxu2 %v8485_v7  ;;  %2460 = vmatpush.msra.mxu0 %v8488_v1  ;;  %v1855_v7 = vadd.f32 %v8413_v10, %v8421_v52  ;;  %v8512_v52 = vld [vmem:[#allocation8 + $0x40] sm:$0xff]  ;;  %v8515_v10 = vld [vmem:[#allocation8 + $0x48] sm:$0xff] }
 0x3c5   :  { %v1975_v61 = vadd.f32 %v1974_v47, %v1954_v31  ;;  %v8525_v31 = vld [vmem:[#allocation8 + $0x5f8] sm:$0xff] }
 0x3c6   :  { %2421 = vmatpush.msra.mxu2 %v8491_v38  ;;  %2461 = vmatpush.msra.mxu0 %v8494_v29  ;;  %v2020_v16 = vadd.f32 %v2015_v62, %v1855_v7  ;;  %12141 = vst [vmem:[#allocation166_spill] sm:$0xff] %v8525_v31 }
 0x3c7   :  { %v2019_v36 = vadd.f32 %v1975_v61, %v1815_v37  ;;  %v4764_v37 = vpop.eup %4763  ;;  %v8522_v61 = vld [vmem:[#allocation8 + $0x5f0] sm:$0xff] }
 0x3c8   :  { %2422 = vmatpush.msra.mxu2 %v8499_v34  ;;  %2462 = vmatpush.msra.mxu0 %v8502_v24  ;;  %v2030_v62 = vmul.f32 %v4764_v37, %v7226_v4  ;;  %v2024_v7 = vadd.f32 %v2020_v16, %v7268_v14  ;;  %12140 = vst [vmem:[#allocation165_spill] sm:$0xff] %v8522_v61 }
 0x3c9   :  { %v2023_v11 = vadd.f32 %v2019_v36, %v7248_v9  ;;  %v4766_v36 = vpop.eup %4765  ;;  %v8545_v9 = vld [vmem:[#allocation8 + $0x4d0] sm:$0xff] }
 0x3ca   :  { %2423 = vmatpush.msra.mxu2 %v8506_v56  ;;  %2463 = vmatpush.msra.mxu0 %v8509_v27  ;;  %v2029_v47 = vmul.f32 %v4766_v36, %v11754_v46  ;;  %v2034_v16 = vadd.f32 %v2030_v62, %v7229_v30  ;;  %12146 = vst [vmem:[#allocation171_spill] sm:$0xff] %v8545_v9  ;;  %v8548_v62 = vld [vmem:[#allocation8 + $0x4d8] sm:$0xff] }
 0x3cb   :  { %4767 = vtanh.f32 %v2023_v11  ;;  %v8532_v11 = vld [vmem:[#allocation8 + $0x598] sm:$0xff] }
 0x3cc   :  { %2424 = vmatpush.msra.mxu2 %v8512_v52  ;;  %2464 = vmatpush.msra.mxu0 %v8515_v10  ;;  %12143 = vst [vmem:[#allocation168_spill] sm:$0xff] %v8532_v11  ;;  %4769 = vtanh.f32 %v2024_v7  ;;  %v2033_v36 = vadd.f32 %v2029_v47, %v6883_v19  ;;  %v2037_v7 = vmul.f32 %v2034_v16, %v7782_v39  ;;  %v8567_v39 = vld [vmem:[#allocation8 + $0x3b0] sm:$0xff] }
 0x3cd   :  { %2425 = vmatmul.f32.vlgmr.msra.gmra.mxu2 %v8189_v48  ;;  %2465 = vmatmul.f32.vlgmr.msra.gmra.mxu0 %v8189_v48  ;;  %12150 = vst [vmem:[#allocation175_spill] sm:$0xff] %v8567_v39 }
 0x3ce   :  { %2489 = vmatpush.msrb.mxu2 %v8522_v61  ;;  %2529 = vmatpush.msrb.mxu0 %v8525_v31  ;;  %v8537_v61 = vld [vmem:[#allocation8 + $0x530] sm:$0xff]  ;;  %v8540_v31 = vld [vmem:[#allocation8 + $0x538] sm:$0xff] }
 0x3cf   :  { %12144 = vst [vmem:[#allocation169_spill] sm:$0xff] %v8537_v61 }
 0x3d0   :  { %2490 = vmatpush.msrb.mxu2 %v8529_v12  ;;  %2530 = vmatpush.msrb.mxu0 %v8532_v11  ;;  %12145 = vst [vmem:[#allocation170_spill] sm:$0xff] %v8540_v31  ;;  %v8560_v11 = vld [vmem:[#allocation8 + $0x410] sm:$0xff] }
 0x3d1   :  { %v4768_v37 = vpop.eup %4767  ;;  %12148 = vst [vmem:[#allocation173_spill] sm:$0xff] %v8560_v11 }
 0x3d2   :  { %v2031_v14 = vmul.f32 %v4768_v37, %v11755_v63  ;;  %2491 = vmatpush.msrb.mxu2 %v8537_v61  ;;  %2531 = vmatpush.msrb.mxu0 %v8540_v31  ;;  %v8552_v61 = vld [vmem:[#allocation8 + $0x470] sm:$0xff]  ;;  %v8555_v31 = vld [vmem:[#allocation8 + $0x478] sm:$0xff] }
 0x3d4   :  { %v2035_v12 = vadd.f32 %v2031_v14, %v11757_v18  ;;  %2492 = vmatpush.msrb.mxu2 %v8545_v9  ;;  %2532 = vmatpush.msrb.mxu0 %v8548_v62  ;;  %v4770_v14 = vpop.eup %4769  ;;  %v8563_v9 = vld [vmem:[#allocation8 + $0x418] sm:$0xff] }
 0x3d5   :  { %12149 = vst [vmem:[#allocation174_spill] sm:$0xff] %v8563_v9  ;;  %v2032_v16 = vmul.f32 %v4770_v14, %v6897_v49  ;;  %v8587_v14 = vld [vmem:[#allocation8 + $0x290] sm:$0xff] }
 0x3d6   :  { %v2038_v37 = vmul.f32 %v2035_v12, %v2033_v36  ;;  %2493 = vmatpush.msrb.mxu2 %v8552_v61  ;;  %2533 = vmatpush.msrb.mxu0 %v8555_v31  ;;  %v8570_v12 = vld [vmem:[#allocation8 + $0x3b8] sm:$0xff]  ;;  %v8574_v36 = vld [vmem:[#allocation8 + $0x350] sm:$0xff]  ;;  %12156 = vst [vmem:[#allocation181_spill] sm:$0xff] %v8587_v14 }
 0x3d7   :  { %12151 = vst [vmem:[#allocation176_spill] sm:$0xff] %v8570_v12 }
 0x3d8   :  { %v8558_v47 = vadd.f32 %v2038_v37, %v2037_v7  ;;  %2494 = vmatpush.msrb.mxu2 %v8560_v11  ;;  %2534 = vmatpush.msrb.mxu0 %v8563_v9  ;;  %12152 = vst [vmem:[#allocation177_spill] sm:$0xff] %v8574_v36  ;;  %v8577_v7 = vld [vmem:[#allocation8 + $0x358] sm:$0xff]  ;;  %v8580_v37 = vld [vmem:[#allocation8 + $0x2f0] sm:$0xff] }
 0x3d9   :  { %12153 = vst [vmem:[#allocation178_spill] sm:$0xff] %v8577_v7  ;;  %v8593_v9 = vld [vmem:[#allocation8 + $0x230] sm:$0xff]  ;;  %v8602_v11 = vld [vmem:[#allocation8 + $0x1d8] sm:$0xff] }
 0x3da   :  { %12147 = vst [vmem:[#allocation172_spill] sm:$0xff] %v8558_v47  ;;  %4771 = vtanh.f32 %v8558_v47  ;;  %2495 = vmatpush.msrb.mxu2 %v8567_v39  ;;  %2535 = vmatpush.msrb.mxu0 %v8570_v12  ;;  %v8583_v47 = vld [vmem:[#allocation8 + $0x2f8] sm:$0xff]  ;;  %v2036_v12 = vadd.f32 %v2032_v16, %v6901_v45  ;;  %v8599_v16 = vld [vmem:[#allocation8 + $0x1d0] sm:$0xff] }
 0x3db   :  { %12154 = vst [vmem:[#allocation179_spill] sm:$0xff] %v8580_v37 }
 0x3dc   :  { %2496 = vmatpush.msrb.mxu2 %v8574_v36  ;;  %2536 = vmatpush.msrb.mxu0 %v8577_v7  ;;  %12155 = vst [vmem:[#allocation180_spill] sm:$0xff] %v8583_v47  ;;  %v8590_v36 = vld [vmem:[#allocation8 + $0x298] sm:$0xff] }
 0x3de   :  { %2497 = vmatpush.msrb.mxu2 %v8580_v37  ;;  %2537 = vmatpush.msrb.mxu0 %v8583_v47  ;;  %v8596_v37 = vld [vmem:[#allocation8 + $0x238] sm:$0xff] }
 0x3e0   :  { %v4772_v39 = vpop.eup %4771  ;;  %2498 = vmatpush.msrb.mxu2 %v8587_v14  ;;  %2538 = vmatpush.msrb.mxu0 %v8590_v36 }
 0x3e1   :  { %v2041_v7 = vmul.f32 %v4772_v39, %v2036_v12  ;;  %v8607_v39 = vld [vmem:[#allocation8 + $0x170] sm:$0xff]  ;;  %v8610_v12 = vld [vmem:[#allocation8 + $0x178] sm:$0xff] }
 0x3e2   :  { %2499 = vmatpush.msrb.mxu2 %v8593_v9  ;;  %2539 = vmatpush.msrb.mxu0 %v8596_v37  ;;  %12157 = vst [vmem:[#allocation182_spill] sm:$0xff] %v8607_v39 }
 0x3e3   :  { %v2083_v47 = vrot.slane %v2041_v7, 2  ;;  %12158 = vst [vmem:[#allocation183_spill] sm:$0xff] %v8610_v12  ;;  %v8617_v7 = vld [vmem:[#allocation8 + $0x110] sm:$0xff] }
 0x3e4   :  { %2500 = vmatpush.msrb.mxu2 %v8599_v16  ;;  %2540 = vmatpush.msrb.mxu0 %v8602_v11 }
 0x3e5   :  { %v8605_v14 = vrot.slane %v2083_v47, 6  ;;  %v8620_v47 = vld [vmem:[#allocation8 + $0x118] sm:$0xff] }
 0x3e6   :  { %2501 = vmatpush.msrb.mxu2 %v8607_v39  ;;  %2541 = vmatpush.msrb.mxu0 %v8610_v12  ;;  %v8625_v12 = vld [vmem:[#allocation8 + $0xb0] sm:$0xff]  ;;  %v8628_v39 = vld [vmem:[#allocation8 + $0xb8] sm:$0xff] }
 0x3e7   :  { %2125 = vmatmul.f32.vlgmr.msrb.gmra.mxu3 %v8605_v14  ;;  %2165 = vmatmul.f32.vlgmr.msrb.gmra.mxu1 %v8605_v14 }
 0x3e8   :  { %2269 = vmatpush.msrb.mxu3 %v7805_v22  ;;  %2309 = vmatpush.msrb.mxu1 %v7808_v35  ;;  %v8633_v22 = vld [vmem:[#allocation8 + $0x50] sm:$0xff]  ;;  %v8636_v35 = vld [vmem:[#allocation8 + $0x58] sm:$0xff] }
 0x3e9   :  { %2502 = vmatpush.msrb.mxu2 %v8617_v7  ;;  %2542 = vmatpush.msrb.mxu0 %v8620_v47 }
 0x3ea   :  { %2270 = vmatpush.msrb.mxu3 %v7813_v6  ;;  %2310 = vmatpush.msrb.mxu1 %v7816_v26  ;;  %v8647_v6 = vld [vmem:[#allocation8 + $0x5a0] sm:$0xff]  ;;  %v8650_v26 = vld [vmem:[#allocation8 + $0x5a8] sm:$0xff] }
 0x3eb   :  { %2503 = vmatpush.msrb.mxu2 %v8625_v12  ;;  %2543 = vmatpush.msrb.mxu0 %v8628_v39 }
 0x3ec   :  { %2271 = vmatpush.msrb.mxu3 %v7821_v57  ;;  %2311 = vmatpush.msrb.mxu1 %v7824_v5  ;;  %v8655_v57 = vld [vmem:[#allocation8 + $0x540] sm:$0xff]  ;;  %v8658_v5 = vld [vmem:[#allocation8 + $0x548] sm:$0xff] }
 0x3ed   :  { %2504 = vmatpush.msrb.mxu2 %v8633_v22  ;;  %2544 = vmatpush.msrb.mxu0 %v8636_v35 }
 0x3ee   :  { %2272 = vmatpush.msrb.mxu3 %v7829_v28  ;;  %2312 = vmatpush.msrb.mxu1 %v7832_v50  ;;  %v8663_v28 = vld [vmem:[#allocation8 + $0x4e0] sm:$0xff]  ;;  %v8666_v50 = vld [vmem:[#allocation8 + $0x4e8] sm:$0xff] }
 0x3ef   :  { %2505 = vmatmul.f32.vlgmr.msrb.gmra.mxu2 %v8189_v48  ;;  %2545 = vmatmul.f32.vlgmr.msrb.gmra.mxu0 %v8189_v48  ;;  %v12180_v48 = vld [vmem:[#allocation18_spill] sm:$0xff] }
 0x3f0   :  { %2205 = vmatmul.f32.vlgmr.msra.gmra.mxu3 %v8605_v14  ;;  %2245 = vmatmul.f32.vlgmr.msra.gmra.mxu1 %v8605_v14 }
 0x3f1   :  { %2273 = vmatpush.msrb.mxu3 %v7837_v41  ;;  %2313 = vmatpush.msrb.mxu1 %v7840_v54  ;;  %v8671_v41 = vld [vmem:[#allocation8 + $0x480] sm:$0xff]  ;;  %v8674_v54 = vld [vmem:[#allocation8 + $0x488] sm:$0xff] }
 0x3f2   :  { %2622 = vmatpush.msra.mxu2 %v8647_v6  ;;  %2662 = vmatpush.msra.mxu0 %v8650_v26  ;;  %12159 = vst [vmem:[#allocation184_spill] sm:$0xff] %v8674_v54 }
 0x3f3   :  { %2274 = vmatpush.msrb.mxu3 %v7845_v58  ;;  %2314 = vmatpush.msrb.mxu1 %v7848_v40  ;;  %v8679_v58 = vld [vmem:[#allocation8 + $0x420] sm:$0xff]  ;;  %v8682_v40 = vld [vmem:[#allocation8 + $0x428] sm:$0xff] }
 0x3f4   :  { %2623 = vmatpush.msra.mxu2 %v8655_v57  ;;  %2663 = vmatpush.msra.mxu0 %v8658_v5  ;;  %12160 = vst [vmem:[#allocation185_spill] sm:$0xff] %v8679_v58 }
 0x3f5   :  { %2275 = vmatpush.msrb.mxu3 %v7853_v17  ;;  %2315 = vmatpush.msrb.mxu1 %v7856_v8  ;;  %12161 = vst [vmem:[#allocation186_spill] sm:$0xff] %v8682_v40  ;;  %v8687_v17 = vld [vmem:[#allocation8 + $0x3c0] sm:$0xff]  ;;  %v8690_v8 = vld [vmem:[#allocation8 + $0x3c8] sm:$0xff] }
 0x3f6   :  { %2624 = vmatpush.msra.mxu2 %v8663_v28  ;;  %2664 = vmatpush.msra.mxu0 %v8666_v50  ;;  %12162 = vst [vmem:[#allocation187_spill] sm:$0xff] %v8687_v17 }
 0x3f7   :  { %2276 = vmatpush.msrb.mxu3 %v7861_v20  ;;  %2316 = vmatpush.msrb.mxu1 %v7864_v43  ;;  %12163 = vst [vmem:[#allocation188_spill] sm:$0xff] %v8690_v8  ;;  %v8695_v20 = vld [vmem:[#allocation8 + $0x360] sm:$0xff]  ;;  %v8698_v43 = vld [vmem:[#allocation8 + $0x368] sm:$0xff] }
 0x3f8   :  { %2625 = vmatpush.msra.mxu2 %v8671_v41  ;;  %2665 = vmatpush.msra.mxu0 %v8674_v54  ;;  %12164 = vst [vmem:[#allocation189_spill] sm:$0xff] %v8695_v20  ;;  %v12462_v54 = vld [vmem:[#allocation163_spill] sm:$0xff] }
 0x3f9   :  { %2277 = vmatpush.msrb.mxu3 %v7869_v51  ;;  %2317 = vmatpush.msrb.mxu1 %v7872_v21  ;;  %12165 = vst [vmem:[#allocation190_spill] sm:$0xff] %v8698_v43  ;;  %v8703_v51 = vld [vmem:[#allocation8 + $0x300] sm:$0xff]  ;;  %v8706_v21 = vld [vmem:[#allocation8 + $0x308] sm:$0xff] }
 0x3fa   :  { %2626 = vmatpush.msra.mxu2 %v8679_v58  ;;  %2666 = vmatpush.msra.mxu0 %v8682_v40  ;;  %12166 = vst [vmem:[#allocation191_spill] sm:$0xff] %v8703_v51  ;;  %v12460_v40 = vld [vmem:[#allocation161_spill] sm:$0xff]  ;;  %v12461_v58 = vld [vmem:[#allocation162_spill] sm:$0xff] }
 0x3fb   :  { %2278 = vmatpush.msrb.mxu3 %v7877_v13  ;;  %2318 = vmatpush.msrb.mxu1 %v7880_v55  ;;  %12167 = vst [vmem:[#allocation192_spill] sm:$0xff] %v8706_v21  ;;  %v8711_v13 = vld [vmem:[#allocation8 + $0x2a0] sm:$0xff]  ;;  %v8714_v55 = vld [vmem:[#allocation8 + $0x2a8] sm:$0xff] }
 0x3fc   :  { %2627 = vmatpush.msra.mxu2 %v8687_v17  ;;  %2667 = vmatpush.msra.mxu0 %v8690_v8  ;;  %12168 = vst [vmem:[#allocation193_spill] sm:$0xff] %v8711_v13  ;;  %v12456_v8 = vld [vmem:[#allocation157_spill] sm:$0xff] }
 0x3fd   :  { %2279 = vmatpush.msrb.mxu3 %v7885_v33  ;;  %2319 = vmatpush.msrb.mxu1 %v7888_v59  ;;  %12169 = vst [vmem:[#allocation194_spill] sm:$0xff] %v8714_v55  ;;  %v8719_v33 = vld [vmem:[#allocation8 + $0x240] sm:$0xff]  ;;  %v8722_v59 = vld [vmem:[#allocation8 + $0x248] sm:$0xff] }
 0x3fe   :  { %2628 = vmatpush.msra.mxu2 %v8695_v20  ;;  %2668 = vmatpush.msra.mxu0 %v8698_v43  ;;  %12170 = vst [vmem:[#allocation195_spill] sm:$0xff] %v8719_v33  ;;  %v9096_v43 = vld [vmem:[#allocation8 + $0x840] sm:$0xff] }
 0x3ff   :  { %2280 = vmatpush.msrb.mxu3 %v7893_v2  ;;  %2320 = vmatpush.msrb.mxu1 %v7896_v42  ;;  %12171 = vst [vmem:[#allocation196_spill] sm:$0xff] %v8722_v59  ;;  %v8727_v2 = vld [vmem:[#allocation8 + $0x1e0] sm:$0xff]  ;;  %v8730_v42 = vld [vmem:[#allocation8 + $0x1e8] sm:$0xff] }
 0x400   :  { %2629 = vmatpush.msra.mxu2 %v8703_v51  ;;  %2669 = vmatpush.msra.mxu0 %v8706_v21  ;;  %12172 = vst [vmem:[#allocation197_spill] sm:$0xff] %v8727_v2  ;;  %v12326_v21 = vld [vmem:[#allocation47_spill] sm:$0xff]  ;;  %v12327_v51 = vld [vmem:[#allocation88_spill] sm:$0xff]  ;;  %v12452_v20 = vld [vmem:[#allocation153_spill] sm:$0xff] }
 0x401   :  { %2281 = vmatpush.msrb.mxu3 %v7901_v15  ;;  %2321 = vmatpush.msrb.mxu1 %v7904_v23  ;;  %12173 = vst [vmem:[#allocation198_spill] sm:$0xff] %v8730_v42  ;;  %v12174_v15 = vld [vmem:[#allocation54_spill] sm:$0xff]  ;;  %v12175_v23 = vld [vmem:[#allocation17_spill] sm:$0xff] }
 0x402   :  { %2630 = vmatpush.msra.mxu2 %v8711_v13  ;;  %2670 = vmatpush.msra.mxu0 %v8714_v55  ;;  %v9073_v55 = vld [vmem:[#allocation8 + $0xae0] sm:$0xff] }
 0x403   :  { %2282 = vmatpush.msrb.mxu3 %v7909_v32  ;;  %2322 = vmatpush.msrb.mxu1 %v7912_v0  ;;  %v12176_v32 = vld [vmem:[#allocation25_spill] sm:$0xff]  ;;  %v12177_v0 = vld [vmem:[#allocation58_spill] sm:$0xff] }
 0x404   :  { %2631 = vmatpush.msra.mxu2 %v8719_v33  ;;  %2671 = vmatpush.msra.mxu0 %v8722_v59  ;;  %v9067_v33 = vld [vmem:[#allocation8 + $0xb40] sm:$0xff] }
 0x405   :  { %2283 = vmatpush.msrb.mxu3 %v7917_v44  ;;  %2323 = vmatpush.msrb.mxu1 %v7920_v60  ;;  %v8739_v44 = vld [vmem:[#allocation8 + $0x180] sm:$0xff]  ;;  %v8742_v60 = vld [vmem:[#allocation8 + $0x188] sm:$0xff] }
 0x406   :  { %2632 = vmatpush.msra.mxu2 %v8727_v2  ;;  %2672 = vmatpush.msra.mxu0 %v8730_v42  ;;  %12178 = vst [vmem:[#allocation54_spill] sm:$0xff] %v8739_v44  ;;  %v8750_v42 = vld [vmem:[#allocation8 + $0x128] sm:$0xff]  ;;  %v12315_v2 = vld [vmem:[#allocation68_spill] sm:$0xff]  ;;  %v12324_v13 = vld [vmem:[#allocation41_spill] sm:$0xff] }
 0x407   :  { %2284 = vmatpush.msrb.mxu3 %v12174_v15  ;;  %2324 = vmatpush.msrb.mxu1 %v12175_v23  ;;  %12179 = vst [vmem:[#allocation17_spill] sm:$0xff] %v8742_v60  ;;  %v12181_v15 = vld [vmem:[#allocation28_spill] sm:$0xff]  ;;  %v8747_v23 = vld [vmem:[#allocation8 + $0x120] sm:$0xff] }
 0x408   :  { %2285 = vmatmul.f32.vlgmr.msrb.gmra.mxu3 %v8605_v14  ;;  %2325 = vmatmul.f32.vlgmr.msrb.gmra.mxu1 %v8605_v14  ;;  %12182 = vst [vmem:[#allocation25_spill] sm:$0xff] %v8747_v23 }
 0x409   :  { %2349 = vmatpush.msra.mxu3 %v12176_v32  ;;  %2389 = vmatpush.msra.mxu1 %v12177_v0  ;;  %12183 = vst [vmem:[#allocation58_spill] sm:$0xff] %v8750_v42  ;;  %v12184_v32 = vld [vmem:[#allocation31_spill] sm:$0xff] }
 0x40a   :  { %2633 = vmatpush.msra.mxu2 %v8739_v44  ;;  %2673 = vmatpush.msra.mxu0 %v8742_v60  ;;  %v12185_v0 = vld [vmem:[#allocation19_spill] sm:$0xff]  ;;  %v8755_v44 = vld [vmem:[#allocation8 + $0xc0] sm:$0xff] }
 0x40b   :  { %2350 = vmatpush.msra.mxu3 %v12180_v48  ;;  %2390 = vmatpush.msra.mxu1 %v12181_v15  ;;  %12186 = vst [vmem:[#allocation18_spill] sm:$0xff] %v8755_v44  ;;  %v8758_v60 = vld [vmem:[#allocation8 + $0xc8] sm:$0xff] }
 0x40c   :  { %2634 = vmatpush.msra.mxu2 %v8747_v23  ;;  %2674 = vmatpush.msra.mxu0 %v8750_v42  ;;  %12187 = vst [vmem:[#allocation28_spill] sm:$0xff] %v8758_v60  ;;  %v12188_v48 = vld [vmem:[#allocation62_spill] sm:$0xff] }
 0x40d   :  { %2351 = vmatpush.msra.mxu3 %v12184_v32  ;;  %2391 = vmatpush.msra.mxu1 %v12185_v0  ;;  %v12189_v15 = vld [vmem:[#allocation34_spill] sm:$0xff]  ;;  %v12192_v32 = vld [vmem:[#allocation21_spill] sm:$0xff] }
 0x40e   :  { %2635 = vmatpush.msra.mxu2 %v8755_v44  ;;  %2675 = vmatpush.msra.mxu0 %v8758_v60  ;;  %v8763_v23 = vld [vmem:[#allocation8 + $0x60] sm:$0xff]  ;;  %v8766_v42 = vld [vmem:[#allocation8 + $0x68] sm:$0xff] }
 0x40f   :  { %2352 = vmatpush.msra.mxu3 %v12188_v48  ;;  %2392 = vmatpush.msra.mxu1 %v12189_v15  ;;  %12190 = vst [vmem:[#allocation31_spill] sm:$0xff] %v8763_v23  ;;  %v12193_v0 = vld [vmem:[#allocation66_spill] sm:$0xff]  ;;  %v12196_v48 = vld [vmem:[#allocation37_spill] sm:$0xff]  ;;  %v12197_v15 = vld [vmem:[#allocation24_spill] sm:$0xff] }
 0x410   :  { %2636 = vmatpush.msra.mxu2 %v8763_v23  ;;  %12191 = vst [vmem:[#allocation19_spill] sm:$0xff] %v8766_v42  ;;  %2676 = vmatpush.msra.mxu0 %v8766_v42  ;;  %v8771_v44 = vld [vmem:[#allocation8] sm:$0xff]  ;;  %v8774_v60 = vld [vmem:[#allocation8 + $0x8] sm:$0xff]  ;;  %v8779_v23 = vld [vmem:[#allocation8 + $0x5b0] sm:$0xff] }
 0x411   :  { %2353 = vmatpush.msra.mxu3 %v12192_v32  ;;  %2393 = vmatpush.msra.mxu1 %v12193_v0  ;;  %12194 = vst [vmem:[#allocation62_spill] sm:$0xff] %v8771_v44  ;;  %v8782_v42 = vld [vmem:[#allocation8 + $0x5b8] sm:$0xff]  ;;  %v12200_v32 = vld [vmem:[#allocation70_spill] sm:$0xff] }
 0x412   :  { %2637 = vmatpush.msra.mxu2 %v8771_v44  ;;  %12195 = vst [vmem:[#allocation34_spill] sm:$0xff] %v8774_v60  ;;  %2677 = vmatpush.msra.mxu0 %v8774_v60  ;;  %v12201_v0 = vld [vmem:[#allocation40_spill] sm:$0xff] }
 0x413   :  { %2354 = vmatpush.msra.mxu3 %v12196_v48  ;;  %2394 = vmatpush.msra.mxu1 %v12197_v15  ;;  %12198 = vst [vmem:[#allocation21_spill] sm:$0xff] %v8779_v23  ;;  %v8787_v44 = vld [vmem:[#allocation8 + $0x550] sm:$0xff]  ;;  %v8790_v60 = vld [vmem:[#allocation8 + $0x558] sm:$0xff]  ;;  %v12205_v15 = vld [vmem:[#allocation74_spill] sm:$0xff] }
 0x414   :  { %2702 = vmatpush.msrb.mxu2 %v8779_v23  ;;  %12199 = vst [vmem:[#allocation66_spill] sm:$0xff] %v8782_v42  ;;  %2742 = vmatpush.msrb.mxu0 %v8782_v42  ;;  %v12204_v48 = vld [vmem:[#allocation27_spill] sm:$0xff]  ;;  %v8798_v42 = vld [vmem:[#allocation8 + $0x4f8] sm:$0xff] }
 0x415   :  { %2355 = vmatpush.msra.mxu3 %v12200_v32  ;;  %2395 = vmatpush.msra.mxu1 %v12201_v0  ;;  %12202 = vst [vmem:[#allocation37_spill] sm:$0xff] %v8787_v44  ;;  %v8795_v23 = vld [vmem:[#allocation8 + $0x4f0] sm:$0xff]  ;;  %v12209_v0 = vld [vmem:[#allocation30_spill] sm:$0xff] }
 0x416   :  { %2703 = vmatpush.msrb.mxu2 %v8787_v44  ;;  %12203 = vst [vmem:[#allocation24_spill] sm:$0xff] %v8790_v60  ;;  %2743 = vmatpush.msrb.mxu0 %v8790_v60  ;;  %v12208_v32 = vld [vmem:[#allocation43_spill] sm:$0xff]  ;;  %v8806_v60 = vld [vmem:[#allocation8 + $0x498] sm:$0xff] }
 0x417   :  { %2356 = vmatpush.msra.mxu3 %v12204_v48  ;;  %2396 = vmatpush.msra.mxu1 %v12205_v15  ;;  %12206 = vst [vmem:[#allocation70_spill] sm:$0xff] %v8795_v23  ;;  %v8803_v44 = vld [vmem:[#allocation8 + $0x490] sm:$0xff]  ;;  %v12212_v48 = vld [vmem:[#allocation78_spill] sm:$0xff] }
 0x418   :  { %2704 = vmatpush.msrb.mxu2 %v8795_v23  ;;  %12207 = vst [vmem:[#allocation40_spill] sm:$0xff] %v8798_v42  ;;  %2744 = vmatpush.msrb.mxu0 %v8798_v42  ;;  %v12213_v15 = vld [vmem:[#allocation46_spill] sm:$0xff]  ;;  %v8811_v23 = vld [vmem:[#allocation8 + $0x430] sm:$0xff]  ;;  %v8814_v42 = vld [vmem:[#allocation8 + $0x438] sm:$0xff] }
 0x419   :  { %2357 = vmatpush.msra.mxu3 %v12208_v32  ;;  %2397 = vmatpush.msra.mxu1 %v12209_v0  ;;  %12210 = vst [vmem:[#allocation27_spill] sm:$0xff] %v8803_v44  ;;  %v12216_v32 = vld [vmem:[#allocation33_spill] sm:$0xff]  ;;  %v12217_v0 = vld [vmem:[#allocation82_spill] sm:$0xff] }
 0x41a   :  { %2705 = vmatpush.msrb.mxu2 %v8803_v44  ;;  %12211 = vst [vmem:[#allocation74_spill] sm:$0xff] %v8806_v60  ;;  %2745 = vmatpush.msrb.mxu0 %v8806_v60  ;;  %v8819_v44 = vld [vmem:[#allocation8 + $0x3d0] sm:$0xff]  ;;  %v8822_v60 = vld [vmem:[#allocation8 + $0x3d8] sm:$0xff] }
 0x41b   :  { %2358 = vmatpush.msra.mxu3 %v12212_v48  ;;  %2398 = vmatpush.msra.mxu1 %v12213_v15  ;;  %12214 = vst [vmem:[#allocation43_spill] sm:$0xff] %v8811_v23  ;;  %v12220_v48 = vld [vmem:[#allocation49_spill] sm:$0xff]  ;;  %v12221_v15 = vld [vmem:[#allocation36_spill] sm:$0xff] }
 0x41c   :  { %2706 = vmatpush.msrb.mxu2 %v8811_v23  ;;  %12215 = vst [vmem:[#allocation30_spill] sm:$0xff] %v8814_v42  ;;  %2746 = vmatpush.msrb.mxu0 %v8814_v42  ;;  %v8827_v23 = vld [vmem:[#allocation8 + $0x370] sm:$0xff]  ;;  %v8830_v42 = vld [vmem:[#allocation8 + $0x378] sm:$0xff] }
 0x41d   :  { %2359 = vmatpush.msra.mxu3 %v12216_v32  ;;  %2399 = vmatpush.msra.mxu1 %v12217_v0  ;;  %12218 = vst [vmem:[#allocation78_spill] sm:$0xff] %v8819_v44  ;;  %v12224_v32 = vld [vmem:[#allocation86_spill] sm:$0xff]  ;;  %v12225_v0 = vld [vmem:[#allocation53_spill] sm:$0xff] }
 0x41e   :  { %2707 = vmatpush.msrb.mxu2 %v8819_v44  ;;  %12219 = vst [vmem:[#allocation46_spill] sm:$0xff] %v8822_v60  ;;  %2747 = vmatpush.msrb.mxu0 %v8822_v60  ;;  %v8835_v44 = vld [vmem:[#allocation8 + $0x310] sm:$0xff]  ;;  %v8838_v60 = vld [vmem:[#allocation8 + $0x318] sm:$0xff] }
 0x41f   :  { %2360 = vmatpush.msra.mxu3 %v12220_v48  ;;  %2400 = vmatpush.msra.mxu1 %v12221_v15  ;;  %12222 = vst [vmem:[#allocation33_spill] sm:$0xff] %v8827_v23  ;;  %v12228_v48 = vld [vmem:[#allocation39_spill] sm:$0xff]  ;;  %v12229_v15 = vld [vmem:[#allocation57_spill] sm:$0xff] }
 0x420   :  { %2708 = vmatpush.msrb.mxu2 %v8827_v23  ;;  %12223 = vst [vmem:[#allocation82_spill] sm:$0xff] %v8830_v42  ;;  %2748 = vmatpush.msrb.mxu0 %v8830_v42  ;;  %v8843_v23 = vld [vmem:[#allocation8 + $0x2b0] sm:$0xff]  ;;  %v8846_v42 = vld [vmem:[#allocation8 + $0x2b8] sm:$0xff] }
 0x421   :  { %2361 = vmatpush.msra.mxu3 %v12224_v32  ;;  %2401 = vmatpush.msra.mxu1 %v12225_v0  ;;  %12226 = vst [vmem:[#allocation49_spill] sm:$0xff] %v8835_v44  ;;  %v12232_v32 = vld [vmem:[#allocation42_spill] sm:$0xff]  ;;  %v12233_v0 = vld [vmem:[#allocation61_spill] sm:$0xff] }
 0x422   :  { %2709 = vmatpush.msrb.mxu2 %v8835_v44  ;;  %12227 = vst [vmem:[#allocation36_spill] sm:$0xff] %v8838_v60  ;;  %2749 = vmatpush.msrb.mxu0 %v8838_v60  ;;  %v8851_v44 = vld [vmem:[#allocation8 + $0x250] sm:$0xff]  ;;  %v8854_v60 = vld [vmem:[#allocation8 + $0x258] sm:$0xff] }
 0x423   :  { %2362 = vmatpush.msra.mxu3 %v12228_v48  ;;  %2402 = vmatpush.msra.mxu1 %v12229_v15  ;;  %12230 = vst [vmem:[#allocation86_spill] sm:$0xff] %v8843_v23  ;;  %v12236_v48 = vld [vmem:[#allocation45_spill] sm:$0xff] }
 0x424   :  { %2710 = vmatpush.msrb.mxu2 %v8843_v23  ;;  %12231 = vst [vmem:[#allocation53_spill] sm:$0xff] %v8846_v42  ;;  %2750 = vmatpush.msrb.mxu0 %v8846_v42  ;;  %v12237_v15 = vld [vmem:[#allocation65_spill] sm:$0xff]  ;;  %v12238_v42 = vld [vmem:[#allocation48_spill] sm:$0xff] }
 0x425   :  { %2363 = vmatpush.msra.mxu3 %v12232_v32  ;;  %2403 = vmatpush.msra.mxu1 %v12233_v0  ;;  %12234 = vst [vmem:[#allocation39_spill] sm:$0xff] %v8851_v44  ;;  %v12239_v32 = vld [vmem:[#allocation69_spill] sm:$0xff]  ;;  %v8863_v0 = vld [vmem:[#allocation8 + $0x1f0] sm:$0xff] }
 0x426   :  { %2711 = vmatpush.msrb.mxu2 %v8851_v44  ;;  %12235 = vst [vmem:[#allocation57_spill] sm:$0xff] %v8854_v60  ;;  %2751 = vmatpush.msrb.mxu0 %v8854_v60  ;;  %v8866_v44 = vld [vmem:[#allocation8 + $0x1f8] sm:$0xff] }
 0x427   :  { %2364 = vmatpush.msra.mxu3 %v12236_v48  ;;  %2404 = vmatpush.msra.mxu1 %v12237_v15  ;;  %12240 = vst [vmem:[#allocation42_spill] sm:$0xff] %v8863_v0  ;;  %v12242_v60 = vld [vmem:[#allocation52_spill] sm:$0xff] }
 0x428   :  { %2365 = vmatmul.f32.vlgmr.msra.gmra.mxu3 %v8605_v14  ;;  %2405 = vmatmul.f32.vlgmr.msra.gmra.mxu1 %v8605_v14  ;;  %12241 = vst [vmem:[#allocation61_spill] sm:$0xff] %v8866_v44  ;;  %v12243_v48 = vld [vmem:[#allocation20_spill] sm:$0xff] }
 0x429   :  { %2429 = vmatpush.msrb.mxu3 %v12238_v42  ;;  %2469 = vmatpush.msrb.mxu1 %v12239_v32  ;;  %v8871_v15 = vld [vmem:[#allocation8 + $0x190] sm:$0xff]  ;;  %v8874_v23 = vld [vmem:[#allocation8 + $0x198] sm:$0xff] }
 0x42a   :  { %2712 = vmatpush.msrb.mxu2 %v8863_v0  ;;  %2752 = vmatpush.msrb.mxu0 %v8866_v44  ;;  %12244 = vst [vmem:[#allocation45_spill] sm:$0xff] %v8871_v15  ;;  %v12246_v42 = vld [vmem:[#allocation73_spill] sm:$0xff]  ;;  %v12247_v32 = vld [vmem:[#allocation56_spill] sm:$0xff] }
 0x42b   :  { %2430 = vmatpush.msrb.mxu3 %v12242_v60  ;;  %2470 = vmatpush.msrb.mxu1 %v12243_v48  ;;  %12245 = vst [vmem:[#allocation65_spill] sm:$0xff] %v8874_v23  ;;  %v8879_v0 = vld [vmem:[#allocation8 + $0x130] sm:$0xff]  ;;  %v8882_v44 = vld [vmem:[#allocation8 + $0x138] sm:$0xff] }
 0x42c   :  { %2713 = vmatpush.msrb.mxu2 %v8871_v15  ;;  %2753 = vmatpush.msrb.mxu0 %v8874_v23  ;;  %12248 = vst [vmem:[#allocation48_spill] sm:$0xff] %v8879_v0  ;;  %v12250_v60 = vld [vmem:[#allocation23_spill] sm:$0xff]  ;;  %v12251_v48 = vld [vmem:[#allocation77_spill] sm:$0xff] }
 0x42d   :  { %2431 = vmatpush.msrb.mxu3 %v12246_v42  ;;  %2471 = vmatpush.msrb.mxu1 %v12247_v32  ;;  %12249 = vst [vmem:[#allocation69_spill] sm:$0xff] %v8882_v44  ;;  %v8887_v15 = vld [vmem:[#allocation8 + $0xd0] sm:$0xff]  ;;  %v8890_v23 = vld [vmem:[#allocation8 + $0xd8] sm:$0xff]  ;;  %v12255_v32 = vld [vmem:[#allocation26_spill] sm:$0xff] }
 0x42e   :  { %2714 = vmatpush.msrb.mxu2 %v8879_v0  ;;  %2754 = vmatpush.msrb.mxu0 %v8882_v44  ;;  %12252 = vst [vmem:[#allocation52_spill] sm:$0xff] %v8887_v15  ;;  %v12254_v42 = vld [vmem:[#allocation60_spill] sm:$0xff] }
 0x42f   :  { %2432 = vmatpush.msrb.mxu3 %v12250_v60  ;;  %2472 = vmatpush.msrb.mxu1 %v12251_v48  ;;  %12253 = vst [vmem:[#allocation20_spill] sm:$0xff] %v8890_v23  ;;  %v8895_v0 = vld [vmem:[#allocation8 + $0x70] sm:$0xff]  ;;  %v8898_v44 = vld [vmem:[#allocation8 + $0x78] sm:$0xff] }
 0x430   :  { %2715 = vmatpush.msrb.mxu2 %v8887_v15  ;;  %2755 = vmatpush.msrb.mxu0 %v8890_v23  ;;  %12256 = vst [vmem:[#allocation73_spill] sm:$0xff] %v8895_v0  ;;  %v12258_v60 = vld [vmem:[#allocation81_spill] sm:$0xff]  ;;  %v12259_v48 = vld [vmem:[#allocation64_spill] sm:$0xff] }
 0x431   :  { %2433 = vmatpush.msrb.mxu3 %v12254_v42  ;;  %2473 = vmatpush.msrb.mxu1 %v12255_v32  ;;  %12257 = vst [vmem:[#allocation56_spill] sm:$0xff] %v8898_v44  ;;  %v8903_v15 = vld [vmem:[#allocation8 + $0x10] sm:$0xff]  ;;  %v8906_v23 = vld [vmem:[#allocation8 + $0x18] sm:$0xff]  ;;  %v8909_v42 = vld [vmem:[#allocation8 + $0x9a0] sm:$0xff] }
 0x432   :  { %2716 = vmatpush.msrb.mxu2 %v8895_v0  ;;  %2756 = vmatpush.msrb.mxu0 %v8898_v44  ;;  %12260 = vst [vmem:[#allocation23_spill] sm:$0xff] %v8903_v15  ;;  %v8912_v32 = vld [vmem:[#allocation8 + $0x9a8] sm:$0xff]  ;;  %v8915_v44 = vld [vmem:[#allocation8 + $0x940] sm:$0xff]  ;;  %v2106_v0 = vpop.f32.mrf.mxu2 }
 0x433   :  { %2434 = vmatpush.msrb.mxu3 %v12258_v60  ;;  %2474 = vmatpush.msrb.mxu1 %v12259_v48  ;;  %12261 = vst [vmem:[#allocation77_spill] sm:$0xff] %v8906_v23  ;;  %v8918_v60 = vld [vmem:[#allocation8 + $0x948] sm:$0xff]  ;;  %v8921_v48 = vld [vmem:[#allocation8 + $0x8e0] sm:$0xff] }
 0x434   :  { %2717 = vmatpush.msrb.mxu2 %v8903_v15  ;;  %2757 = vmatpush.msrb.mxu0 %v8906_v23  ;;  %12262 = vst [vmem:[#allocation60_spill] sm:$0xff] %v8909_v42  ;;  %v8924_v23 = vld [vmem:[#allocation8 + $0x8e8] sm:$0xff]  ;;  %v12313_v15 = vld [vmem:[#allocation85_spill] sm:$0xff] }
 0x435   :  { %2435 = vmatpush.msrb.mxu3 %v8909_v42  ;;  %12263 = vst [vmem:[#allocation26_spill] sm:$0xff] %v8912_v32  ;;  %2475 = vmatpush.msrb.mxu1 %v8912_v32  ;;  %v8927_v42 = vld [vmem:[#allocation8 + $0x880] sm:$0xff]  ;;  %v8930_v32 = vld [vmem:[#allocation8 + $0x888] sm:$0xff] }
 0x436   :  { %12264 = vst [vmem:[#allocation81_spill] sm:$0xff] %v8915_v44 }
 0x437   :  { %2436 = vmatpush.msrb.mxu3 %v8915_v44  ;;  %12265 = vst [vmem:[#allocation64_spill] sm:$0xff] %v8918_v60  ;;  %2476 = vmatpush.msrb.mxu1 %v8918_v60  ;;  %v8933_v44 = vld [vmem:[#allocation8 + $0x820] sm:$0xff]  ;;  %v8936_v60 = vld [vmem:[#allocation8 + $0x828] sm:$0xff] }
 0x438   :  { %12266 = vst [vmem:[#allocation199_spill] sm:$0xff] %v8921_v48 }
 0x439   :  { %2437 = vmatpush.msrb.mxu3 %v8921_v48  ;;  %12267 = vst [vmem:[#allocation200_spill] sm:$0xff] %v8924_v23  ;;  %2477 = vmatpush.msrb.mxu1 %v8924_v23  ;;  %v8939_v48 = vld [vmem:[#allocation8 + $0x7c0] sm:$0xff]  ;;  %v8942_v23 = vld [vmem:[#allocation8 + $0x7c8] sm:$0xff] }
 0x43a   :  { %12268 = vst [vmem:[#allocation201_spill] sm:$0xff] %v8927_v42 }
 0x43b   :  { %2438 = vmatpush.msrb.mxu3 %v8927_v42  ;;  %12269 = vst [vmem:[#allocation202_spill] sm:$0xff] %v8930_v32  ;;  %2478 = vmatpush.msrb.mxu1 %v8930_v32  ;;  %v8945_v42 = vld [vmem:[#allocation8 + $0x760] sm:$0xff]  ;;  %v8948_v32 = vld [vmem:[#allocation8 + $0x768] sm:$0xff] }
 0x43c   :  { %12270 = vst [vmem:[#allocation203_spill] sm:$0xff] %v8933_v44 }
 0x43d   :  { %2439 = vmatpush.msrb.mxu3 %v8933_v44  ;;  %12271 = vst [vmem:[#allocation204_spill] sm:$0xff] %v8936_v60  ;;  %2479 = vmatpush.msrb.mxu1 %v8936_v60  ;;  %v8951_v44 = vld [vmem:[#allocation8 + $0x700] sm:$0xff]  ;;  %v8954_v60 = vld [vmem:[#allocation8 + $0x708] sm:$0xff] }
 0x43e   :  { %12272 = vst [vmem:[#allocation205_spill] sm:$0xff] %v8939_v48 }
 0x43f   :  { %2440 = vmatpush.msrb.mxu3 %v8939_v48  ;;  %12273 = vst [vmem:[#allocation206_spill] sm:$0xff] %v8942_v23  ;;  %2480 = vmatpush.msrb.mxu1 %v8942_v23  ;;  %v8957_v48 = vld [vmem:[#allocation8 + $0x6a0] sm:$0xff]  ;;  %v8960_v23 = vld [vmem:[#allocation8 + $0x6a8] sm:$0xff] }
 0x440   :  { %12274 = vst [vmem:[#allocation207_spill] sm:$0xff] %v8945_v42 }
 0x441   :  { %2441 = vmatpush.msrb.mxu3 %v8945_v42  ;;  %12275 = vst [vmem:[#allocation208_spill] sm:$0xff] %v8948_v32  ;;  %2481 = vmatpush.msrb.mxu1 %v8948_v32  ;;  %v8963_v42 = vld [vmem:[#allocation8 + $0x640] sm:$0xff]  ;;  %v8966_v32 = vld [vmem:[#allocation8 + $0x648] sm:$0xff] }
 0x442   :  { %12276 = vst [vmem:[#allocation209_spill] sm:$0xff] %v8951_v44 }
 0x443   :  { %2442 = vmatpush.msrb.mxu3 %v8951_v44  ;;  %12277 = vst [vmem:[#allocation210_spill] sm:$0xff] %v8954_v60  ;;  %2482 = vmatpush.msrb.mxu1 %v8954_v60  ;;  %v8971_v60 = vld [vmem:[#allocation8 + $0xbf0] sm:$0xff]  ;;  %v8986_v44 = vld [vmem:[#allocation8 + $0xb38] sm:$0xff] }
 0x444   :  { %12278 = vst [vmem:[#allocation211_spill] sm:$0xff] %v8957_v48 }
 0x445   :  { %2443 = vmatpush.msrb.mxu3 %v8957_v48  ;;  %12279 = vst [vmem:[#allocation212_spill] sm:$0xff] %v8960_v23  ;;  %2483 = vmatpush.msrb.mxu1 %v8960_v23  ;;  %v8974_v48 = vld [vmem:[#allocation8 + $0xbf8] sm:$0xff]  ;;  %v8977_v23 = vld [vmem:[#allocation8 + $0xb90] sm:$0xff] }
 0x446   :  { %12280 = vst [vmem:[#allocation213_spill] sm:$0xff] %v8963_v42 }
 0x447   :  { %2444 = vmatpush.msrb.mxu3 %v8963_v42  ;;  %12281 = vst [vmem:[#allocation214_spill] sm:$0xff] %v8966_v32  ;;  %2484 = vmatpush.msrb.mxu1 %v8966_v32  ;;  %v8980_v42 = vld [vmem:[#allocation8 + $0xb98] sm:$0xff]  ;;  %v8983_v32 = vld [vmem:[#allocation8 + $0xb30] sm:$0xff] }
 0x448   :  { %2445 = vmatmul.f32.vlgmr.msrb.gmra.mxu3 %v8605_v14  ;;  %2485 = vmatmul.f32.vlgmr.msrb.gmra.mxu1 %v8605_v14  ;;  %12282 = vst [vmem:[#allocation215_spill] sm:$0xff] %v8971_v60 }
 0x449   :  { %2509 = vmatpush.msra.mxu3 %v8971_v60  ;;  %12283 = vst [vmem:[#allocation216_spill] sm:$0xff] %v8974_v48  ;;  %2549 = vmatpush.msra.mxu1 %v8974_v48  ;;  %v8989_v60 = vld [vmem:[#allocation8 + $0xad0] sm:$0xff]  ;;  %v8992_v48 = vld [vmem:[#allocation8 + $0xad8] sm:$0xff] }
 0x44a   :  { %12284 = vst [vmem:[#allocation217_spill] sm:$0xff] %v8977_v23 }
 0x44b   :  { %2510 = vmatpush.msra.mxu3 %v8977_v23  ;;  %12285 = vst [vmem:[#allocation218_spill] sm:$0xff] %v8980_v42  ;;  %2550 = vmatpush.msra.mxu1 %v8980_v42  ;;  %v8995_v23 = vld [vmem:[#allocation8 + $0xa70] sm:$0xff]  ;;  %v8998_v42 = vld [vmem:[#allocation8 + $0xa78] sm:$0xff] }
 0x44c   :  { %12286 = vst [vmem:[#allocation219_spill] sm:$0xff] %v8983_v32 }
 0x44d   :  { %2511 = vmatpush.msra.mxu3 %v8983_v32  ;;  %12287 = vst [vmem:[#allocation220_spill] sm:$0xff] %v8986_v44  ;;  %2551 = vmatpush.msra.mxu1 %v8986_v44  ;;  %v9001_v32 = vld [vmem:[#allocation8 + $0xa10] sm:$0xff]  ;;  %v9004_v44 = vld [vmem:[#allocation8 + $0xa18] sm:$0xff] }
 0x44e   :  { %12288 = vst [vmem:[#allocation221_spill] sm:$0xff] %v8989_v60 }
 0x44f   :  { %2512 = vmatpush.msra.mxu3 %v8989_v60  ;;  %12289 = vst [vmem:[#allocation222_spill] sm:$0xff] %v8992_v48  ;;  %2552 = vmatpush.msra.mxu1 %v8992_v48  ;;  %v9007_v60 = vld [vmem:[#allocation8 + $0x9b0] sm:$0xff]  ;;  %v9010_v48 = vld [vmem:[#allocation8 + $0x9b8] sm:$0xff] }
 0x450   :  { %12290 = vst [vmem:[#allocation223_spill] sm:$0xff] %v8995_v23 }
 0x451   :  { %2513 = vmatpush.msra.mxu3 %v8995_v23  ;;  %12291 = vst [vmem:[#allocation224_spill] sm:$0xff] %v8998_v42  ;;  %2553 = vmatpush.msra.mxu1 %v8998_v42  ;;  %v9013_v23 = vld [vmem:[#allocation8 + $0x950] sm:$0xff]  ;;  %v9016_v42 = vld [vmem:[#allocation8 + $0x958] sm:$0xff] }
 0x452   :  { %12292 = vst [vmem:[#allocation225_spill] sm:$0xff] %v9001_v32 }
 0x453   :  { %2514 = vmatpush.msra.mxu3 %v9001_v32  ;;  %12293 = vst [vmem:[#allocation226_spill] sm:$0xff] %v9004_v44  ;;  %2554 = vmatpush.msra.mxu1 %v9004_v44  ;;  %v9019_v32 = vld [vmem:[#allocation8 + $0x8f0] sm:$0xff]  ;;  %v9022_v44 = vld [vmem:[#allocation8 + $0x8f8] sm:$0xff] }
 0x454   :  { %12294 = vst [vmem:[#allocation227_spill] sm:$0xff] %v9007_v60 }
 0x455   :  { %2515 = vmatpush.msra.mxu3 %v9007_v60  ;;  %12295 = vst [vmem:[#allocation228_spill] sm:$0xff] %v9010_v48  ;;  %2555 = vmatpush.msra.mxu1 %v9010_v48  ;;  %v9025_v60 = vld [vmem:[#allocation8 + $0x890] sm:$0xff]  ;;  %v9028_v48 = vld [vmem:[#allocation8 + $0x898] sm:$0xff] }
 0x456   :  { %12296 = vst [vmem:[#allocation229_spill] sm:$0xff] %v9013_v23 }
 0x457   :  { %2516 = vmatpush.msra.mxu3 %v9013_v23  ;;  %12297 = vst [vmem:[#allocation230_spill] sm:$0xff] %v9016_v42  ;;  %2556 = vmatpush.msra.mxu1 %v9016_v42  ;;  %v9031_v23 = vld [vmem:[#allocation8 + $0x830] sm:$0xff]  ;;  %v9034_v42 = vld [vmem:[#allocation8 + $0x838] sm:$0xff] }
 0x458   :  { %12298 = vst [vmem:[#allocation231_spill] sm:$0xff] %v9019_v32 }
 0x459   :  { %2517 = vmatpush.msra.mxu3 %v9019_v32  ;;  %12299 = vst [vmem:[#allocation232_spill] sm:$0xff] %v9022_v44  ;;  %2557 = vmatpush.msra.mxu1 %v9022_v44  ;;  %v9037_v32 = vld [vmem:[#allocation8 + $0x7d0] sm:$0xff]  ;;  %v9040_v44 = vld [vmem:[#allocation8 + $0x7d8] sm:$0xff] }
 0x45a   :  { %12300 = vst [vmem:[#allocation233_spill] sm:$0xff] %v9025_v60 }
 0x45b   :  { %2518 = vmatpush.msra.mxu3 %v9025_v60  ;;  %12301 = vst [vmem:[#allocation234_spill] sm:$0xff] %v9028_v48  ;;  %2558 = vmatpush.msra.mxu1 %v9028_v48  ;;  %v9043_v60 = vld [vmem:[#allocation8 + $0x770] sm:$0xff]  ;;  %v9046_v48 = vld [vmem:[#allocation8 + $0x778] sm:$0xff] }
 0x45c   :  { %12302 = vst [vmem:[#allocation235_spill] sm:$0xff] %v9031_v23 }
 0x45d   :  { %2519 = vmatpush.msra.mxu3 %v9031_v23  ;;  %12303 = vst [vmem:[#allocation236_spill] sm:$0xff] %v9034_v42  ;;  %2559 = vmatpush.msra.mxu1 %v9034_v42  ;;  %v9049_v23 = vld [vmem:[#allocation8 + $0x710] sm:$0xff]  ;;  %v9052_v42 = vld [vmem:[#allocation8 + $0x718] sm:$0xff] }
 0x45e   :  { %12304 = vst [vmem:[#allocation237_spill] sm:$0xff] %v9037_v32 }
 0x45f   :  { %2520 = vmatpush.msra.mxu3 %v9037_v32  ;;  %12305 = vst [vmem:[#allocation238_spill] sm:$0xff] %v9040_v44  ;;  %2560 = vmatpush.msra.mxu1 %v9040_v44  ;;  %v9055_v32 = vld [vmem:[#allocation8 + $0x6b0] sm:$0xff]  ;;  %v9058_v44 = vld [vmem:[#allocation8 + $0x6b8] sm:$0xff] }
 0x460   :  { %12306 = vst [vmem:[#allocation239_spill] sm:$0xff] %v9043_v60 }
 0x461   :  { %2521 = vmatpush.msra.mxu3 %v9043_v60  ;;  %12307 = vst [vmem:[#allocation240_spill] sm:$0xff] %v9046_v48  ;;  %2561 = vmatpush.msra.mxu1 %v9046_v48  ;;  %v12312_v60 = vld [vmem:[#allocation29_spill] sm:$0xff] }
 0x462   :  { %12308 = vst [vmem:[#allocation241_spill] sm:$0xff] %v9049_v23 }
 0x463   :  { %2522 = vmatpush.msra.mxu3 %v9049_v23  ;;  %12309 = vst [vmem:[#allocation242_spill] sm:$0xff] %v9052_v42  ;;  %2562 = vmatpush.msra.mxu1 %v9052_v42  ;;  %v2146_v23 = vpop.f32.mrf.mxu0  ;;  %v12314_v42 = vld [vmem:[#allocation32_spill] sm:$0xff] }
 0x464   :  { %12310 = vst [vmem:[#allocation243_spill] sm:$0xff] %v9055_v32  ;;  %v2166_v48 = vpop.f32.mrf.mxu1 }
 0x465   :  { %2523 = vmatpush.msra.mxu3 %v9055_v32  ;;  %12311 = vst [vmem:[#allocation244_spill] sm:$0xff] %v9058_v44  ;;  %2563 = vmatpush.msra.mxu1 %v9058_v44  ;;  %v2167_v32 = vadd.f32 %v2166_v48, %v2146_v23  ;;  %v2595_v44 = vld [vmem:[#allocation2 + $0x20] sm:$0x3]  ;;  %v2594_v23 = vld [vmem:[#allocation2 + $0x8] sm:$0x3]  ;;  %v9082_v48 = vld [vmem:[#allocation8 + $0xa88] sm:$0xff] }
 0x466   :  { %12316 = vst [vmem:[#allocation29_spill] sm:$0xff] %v9067_v33 }
 0x467   :  { %2524 = vmatpush.msra.mxu3 %v12312_v60  ;;  %2564 = vmatpush.msra.mxu1 %v12313_v15  ;;  %v9070_v60 = vld [vmem:[#allocation8 + $0xb48] sm:$0xff]  ;;  %12318 = vst [vmem:[#allocation32_spill] sm:$0xff] %v9073_v55 }
 0x468   :  { %2525 = vmatmul.f32.vlgmr.msra.gmra.mxu3 %v8605_v14  ;;  %2565 = vmatmul.f32.vlgmr.msra.gmra.mxu1 %v8605_v14  ;;  %12317 = vst [vmem:[#allocation85_spill] sm:$0xff] %v9070_v60  ;;  %v9076_v14 = vld [vmem:[#allocation8 + $0xae8] sm:$0xff] }
 0x469   :  { %2642 = vmatpush.msrb.mxu3 %v12314_v42  ;;  %2682 = vmatpush.msrb.mxu1 %v12315_v2  ;;  %12319 = vst [vmem:[#allocation68_spill] sm:$0xff] %v9076_v14  ;;  %v2599_v2 = vadd.f32 %v2595_v44, %v2167_v32  ;;  %v9079_v42 = vld [vmem:[#allocation8 + $0xa80] sm:$0xff]  ;;  %v12325_v44 = vld [vmem:[#allocation80_spill] sm:$0xff] }
 0x46a   :  { %v2126_v59 = vpop.f32.mrf.mxu3  ;;  %12320 = vst [vmem:[#allocation245_spill] sm:$0xff] %v9079_v42 }
 0x46b   :  { %2643 = vmatpush.msrb.mxu3 %v9067_v33  ;;  %2683 = vmatpush.msrb.mxu1 %v9070_v60  ;;  %v2127_v15 = vadd.f32 %v2126_v59, %v2106_v0  ;;  %12321 = vst [vmem:[#allocation246_spill] sm:$0xff] %v9082_v48  ;;  %v12322_v0 = vld [vmem:[#allocation35_spill] sm:$0xff]  ;;  %v12323_v60 = vld [vmem:[#allocation72_spill] sm:$0xff]  ;;  %4773 = vtanh.f32 %v2599_v2 }
 0x46c   :  { %12332 = vst [vmem:[#allocation35_spill] sm:$0xff] %v9096_v43 }
 0x46d   :  { %2644 = vmatpush.msrb.mxu3 %v9073_v55  ;;  %2684 = vmatpush.msrb.mxu1 %v9076_v14  ;;  %v2598_v59 = vadd.f32 %v2594_v23, %v2127_v15  ;;  %v2186_v55 = vpop.f32.mrf.mxu2  ;;  %v2246_v32 = vpop.f32.mrf.mxu1 }
 0x46e   :  { %v2226_v15 = vpop.f32.mrf.mxu0 }
 0x46f   :  { %2645 = vmatpush.msrb.mxu3 %v9079_v42  ;;  %2685 = vmatpush.msrb.mxu1 %v9082_v48  ;;  %4775 = vtanh.f32 %v2598_v59  ;;  %v2596_v42 = vld [vmem:[#allocation2 + $0x28] sm:$0x3]  ;;  %v12328_v48 = vld [vmem:[#allocation123_spill] sm:$0xff] }
 0x471   :  { %2646 = vmatpush.msrb.mxu3 %v12322_v0  ;;  %2686 = vmatpush.msrb.mxu1 %v12323_v60  ;;  %v2247_v0 = vadd.f32 %v2246_v32, %v2226_v15  ;;  %v12329_v60 = vld [vmem:[#allocation124_spill] sm:$0xff]  ;;  %v4774_v2 = vpop.eup %4773 }
 0x473   :  { %v2206_v33 = vpop.f32.mrf.mxu3  ;;  %2647 = vmatpush.msrb.mxu3 %v12324_v13  ;;  %2687 = vmatpush.msrb.mxu1 %v12325_v44  ;;  %v12330_v13 = vld [vmem:[#allocation125_spill] sm:$0xff]  ;;  %v12331_v44 = vld [vmem:[#allocation126_spill] sm:$0xff] }
 0x474   :  { %v2207_v14 = vadd.f32 %v2206_v33, %v2186_v55  ;;  %v2597_v55 = vld [vmem:[#allocation2 + $0x38] sm:$0x3]  ;;  %v2607_v33 = vmul.f32 %v4774_v2, %v7226_v4 }
 0x475   :  { %2648 = vmatpush.msrb.mxu3 %v12326_v21  ;;  %2688 = vmatpush.msrb.mxu1 %v12327_v51  ;;  %v4776_v59 = vpop.eup %4775  ;;  %v2601_v21 = vadd.f32 %v2597_v55, %v2247_v0  ;;  %v9099_v51 = vld [vmem:[#allocation8 + $0x848] sm:$0xff]  ;;  %v9111_v0 = vld [vmem:[#allocation8 + $0x780] sm:$0xff] }
 0x476   :  { %v2600_v23 = vadd.f32 %v2596_v42, %v2207_v14  ;;  %12333 = vst [vmem:[#allocation72_spill] sm:$0xff] %v9099_v51  ;;  %v2606_v14 = vmul.f32 %v4776_v59, %v11754_v46  ;;  %v9103_v42 = vld [vmem:[#allocation8 + $0x7e0] sm:$0xff]  ;;  %v2611_v15 = vadd.f32 %v2607_v33, %v7229_v30  ;;  %v9123_v33 = vld [vmem:[#allocation8 + $0x728] sm:$0xff] }
 0x477   :  { %2649 = vmatpush.msrb.mxu3 %v12328_v48  ;;  %2689 = vmatpush.msrb.mxu1 %v12329_v60  ;;  %12334 = vst [vmem:[#allocation41_spill] sm:$0xff] %v9103_v42  ;;  %v9106_v48 = vld [vmem:[#allocation8 + $0x7e8] sm:$0xff]  ;;  %v9120_v55 = vld [vmem:[#allocation8 + $0x720] sm:$0xff] }
 0x478   :  { %4777 = vtanh.f32 %v2600_v23  ;;  %12335 = vst [vmem:[#allocation80_spill] sm:$0xff] %v9106_v48  ;;  %v9114_v60 = vld [vmem:[#allocation8 + $0x788] sm:$0xff] }
 0x479   :  { %2650 = vmatpush.msrb.mxu3 %v12330_v13  ;;  %2690 = vmatpush.msrb.mxu1 %v12331_v44  ;;  %4779 = vtanh.f32 %v2601_v21  ;;  %12336 = vst [vmem:[#allocation47_spill] sm:$0xff] %v9111_v0  ;;  %v12338_v2 = vld [vmem:[#allocation38_spill] sm:$0xff]  ;;  %v2610_v44 = vadd.f32 %v2606_v14, %v6883_v19 }
 0x47a   :  { %12337 = vst [vmem:[#allocation88_spill] sm:$0xff] %v9114_v60  ;;  %v2615_v13 = vrot.slane %v12338_v2, 6  ;;  %v9134_v2 = vld [vmem:[#allocation8 + $0x660] sm:$0xff] }
 0x47b   :  { %2651 = vmatpush.msrb.mxu3 %v9096_v43  ;;  %2691 = vmatpush.msrb.mxu1 %v9099_v51  ;;  %12339 = vst [vmem:[#allocation123_spill] sm:$0xff] %v9120_v55  ;;  %v12451_v51 = vld [vmem:[#allocation152_spill] sm:$0xff] }
 0x47c   :  { %12340 = vst [vmem:[#allocation124_spill] sm:$0xff] %v9123_v33  ;;  %v2617_v21 = vmul.f32 %v2615_v13, %v2611_v15  ;;  %v9141_v15 = vld [vmem:[#allocation8 + $0x600] sm:$0xff]  ;;  %v9144_v13 = vld [vmem:[#allocation8 + $0x608] sm:$0xff] }
 0x47d   :  { %2652 = vmatpush.msrb.mxu3 %v9103_v42  ;;  %2692 = vmatpush.msrb.mxu1 %v9106_v48  ;;  %12344 = vst [vmem:[#allocation247_spill] sm:$0xff] %v9134_v2  ;;  %v12449_v48 = vld [vmem:[#allocation150_spill] sm:$0xff]  ;;  %v12450_v42 = vld [vmem:[#allocation151_spill] sm:$0xff] }
 0x47e   :  { %v4778_v32 = vpop.eup %4777  ;;  %12346 = vst [vmem:[#allocation249_spill] sm:$0xff] %v9141_v15 }
 0x47f   :  { %v2608_v23 = vmul.f32 %v4778_v32, %v11755_v63  ;;  %2653 = vmatpush.msrb.mxu3 %v9111_v0  ;;  %2693 = vmatpush.msrb.mxu1 %v9114_v60  ;;  %v9126_v0 = vld [vmem:[#allocation8 + $0x6c0] sm:$0xff]  ;;  %v9129_v60 = vld [vmem:[#allocation8 + $0x6c8] sm:$0xff]  ;;  %v4780_v14 = vpop.eup %4779  ;;  %12347 = vst [vmem:[#allocation250_spill] sm:$0xff] %v9144_v13 }
 0x480   :  { %12341 = vst [vmem:[#allocation125_spill] sm:$0xff] %v9126_v0 }
 0x481   :  { %v2612_v59 = vadd.f32 %v2608_v23, %v11757_v18  ;;  %2654 = vmatpush.msrb.mxu3 %v9120_v55  ;;  %2694 = vmatpush.msrb.mxu1 %v9123_v33  ;;  %12342 = vst [vmem:[#allocation126_spill] sm:$0xff] %v9129_v60  ;;  %v9137_v55 = vld [vmem:[#allocation8 + $0x668] sm:$0xff] }
 0x482   :  { %12345 = vst [vmem:[#allocation248_spill] sm:$0xff] %v9137_v55 }
 0x483   :  { %v2618_v32 = vmul.f32 %v2612_v59, %v2610_v44  ;;  %2655 = vmatpush.msrb.mxu3 %v9126_v0  ;;  %2695 = vmatpush.msrb.mxu1 %v9129_v60  ;;  %v2609_v44 = vmul.f32 %v4780_v14, %v6897_v49  ;;  %v9148_v59 = vld [vmem:[#allocation8 + $0xbb0] sm:$0xff]  ;;  %v9164_v14 = vld [vmem:[#allocation8 + $0xaf8] sm:$0xff]  ;;  %v12421_v0 = vld [vmem:[#allocation114_spill] sm:$0xff] }
 0x484   :  { %12348 = vst [vmem:[#allocation251_spill] sm:$0xff] %v9148_v59  ;;  %v12409_v60 = vld [vmem:[#allocation112_spill] sm:$0xff] }
 0x485   :  { %v9132_v23 = vadd.f32 %v2618_v32, %v2617_v21  ;;  %2656 = vmatpush.msrb.mxu3 %v9134_v2  ;;  %2696 = vmatpush.msrb.mxu1 %v9137_v55  ;;  %v9151_v21 = vld [vmem:[#allocation8 + $0xbb8] sm:$0xff]  ;;  %v9154_v32 = vld [vmem:[#allocation8 + $0xb50] sm:$0xff]  ;;  %12353 = vst [vmem:[#allocation256_spill] sm:$0xff] %v9164_v14 }
 0x486   :  { %12349 = vst [vmem:[#allocation252_spill] sm:$0xff] %v9151_v21  ;;  %v9157_v55 = vld [vmem:[#allocation8 + $0xb58] sm:$0xff]  ;;  %v9169_v2 = vld [vmem:[#allocation8 + $0xa90] sm:$0xff] }
 0x487   :  { %12343 = vst [vmem:[#allocation38_spill] sm:$0xff] %v9132_v23  ;;  %4781 = vtanh.f32 %v9132_v23  ;;  %2657 = vmatpush.msrb.mxu3 %v9141_v15  ;;  %2697 = vmatpush.msrb.mxu1 %v9144_v13  ;;  %v2613_v13 = vadd.f32 %v2609_v44, %v6901_v45  ;;  %v9161_v15 = vld [vmem:[#allocation8 + $0xaf0] sm:$0xff] }
 0x488   :  { %12350 = vst [vmem:[#allocation253_spill] sm:$0xff] %v9154_v32  ;;  %v12356_v44 = vld [vmem:[#allocation76_spill] sm:$0xff] }
 0x489   :  { %2722 = vmatpush.msra.mxu3 %v9148_v59  ;;  %2762 = vmatpush.msra.mxu1 %v9151_v21  ;;  %12351 = vst [vmem:[#allocation254_spill] sm:$0xff] %v9157_v55  ;;  %v12422_v23 = vld [vmem:[#allocation116_spill] sm:$0xff] }
 0x48a   :  { %12352 = vst [vmem:[#allocation255_spill] sm:$0xff] %v9161_v15 }
 0x48b   :  { %2723 = vmatpush.msra.mxu3 %v9154_v32  ;;  %2763 = vmatpush.msra.mxu1 %v9157_v55  ;;  %12354 = vst [vmem:[#allocation257_spill] sm:$0xff] %v9169_v2  ;;  %v9172_v32 = vld [vmem:[#allocation8 + $0xa98] sm:$0xff]  ;;  %v2286_v33 = vpop.f32.mrf.mxu3 }
 0x48c   :  { %12355 = vst [vmem:[#allocation258_spill] sm:$0xff] %v9172_v32  ;;  %v9190_v55 = vld [vmem:[#allocation8 + $0x9d8] sm:$0xff] }
 0x48d   :  { %2724 = vmatpush.msra.mxu3 %v9161_v15  ;;  %2764 = vmatpush.msra.mxu1 %v9164_v14  ;;  %v4782_v59 = vpop.eup %4781  ;;  %v12357_v15 = vld [vmem:[#allocation44_spill] sm:$0xff] }
 0x48e   :  { %v9167_v21 = vmul.f32 %v4782_v59, %v2613_v13  ;;  %v9179_v14 = vld [vmem:[#allocation8 + $0xa30] sm:$0xff]  ;;  %v9182_v13 = vld [vmem:[#allocation8 + $0xa38] sm:$0xff] }
 0x48f   :  { %2725 = vmatpush.msra.mxu3 %v9169_v2  ;;  %2765 = vmatpush.msra.mxu1 %v9172_v32  ;;  %12358 = vst [vmem:[#allocation76_spill] sm:$0xff] %v9179_v14  ;;  %v12360_v59 = vld [vmem:[#allocation84_spill] sm:$0xff]  ;;  %v12361_v2 = vld [vmem:[#allocation51_spill] sm:$0xff] }
 0x490   :  { %2638 = vmatmul.f32.vlgmr.msra.gmra.mxu2 %v9167_v21  ;;  %2678 = vmatmul.f32.vlgmr.msra.gmra.mxu0 %v9167_v21  ;;  %12359 = vst [vmem:[#allocation44_spill] sm:$0xff] %v9182_v13  ;;  %v9187_v32 = vld [vmem:[#allocation8 + $0x9d0] sm:$0xff] }
 0x491   :  { %2782 = vmatpush.msra.mxu2 %v12356_v44  ;;  %2822 = vmatpush.msra.mxu0 %v12357_v15  ;;  %12362 = vst [vmem:[#allocation84_spill] sm:$0xff] %v9187_v32  ;;  %v12364_v15 = vld [vmem:[#allocation55_spill] sm:$0xff] }
 0x492   :  { %2726 = vmatpush.msra.mxu3 %v9179_v14  ;;  %2766 = vmatpush.msra.mxu1 %v9182_v13  ;;  %12363 = vst [vmem:[#allocation51_spill] sm:$0xff] %v9190_v55  ;;  %v12365_v44 = vld [vmem:[#allocation63_spill] sm:$0xff]  ;;  %v9198_v13 = vld [vmem:[#allocation8 + $0x978] sm:$0xff] }
 0x493   :  { %2783 = vmatpush.msra.mxu2 %v12360_v59  ;;  %2823 = vmatpush.msra.mxu0 %v12361_v2  ;;  %v9195_v14 = vld [vmem:[#allocation8 + $0x970] sm:$0xff]  ;;  %12367 = vst [vmem:[#allocation63_spill] sm:$0xff] %v9198_v13 }
 0x494   :  { %2727 = vmatpush.msra.mxu3 %v9187_v32  ;;  %2767 = vmatpush.msra.mxu1 %v9190_v55  ;;  %12366 = vst [vmem:[#allocation55_spill] sm:$0xff] %v9195_v14  ;;  %v12368_v2 = vld [vmem:[#allocation67_spill] sm:$0xff]  ;;  %v9218_v32 = vld [vmem:[#allocation8 + $0x8b8] sm:$0xff] }
 0x495   :  { %2784 = vmatpush.msra.mxu2 %v12364_v15  ;;  %2824 = vmatpush.msra.mxu0 %v12365_v44  ;;  %v12369_v59 = vld [vmem:[#allocation59_spill] sm:$0xff] }
 0x496   :  { %2728 = vmatpush.msra.mxu3 %v9195_v14  ;;  %2768 = vmatpush.msra.mxu1 %v9198_v13  ;;  %v12370_v55 = vld [vmem:[#allocation71_spill] sm:$0xff]  ;;  %v9210_v14 = vld [vmem:[#allocation8 + $0x918] sm:$0xff] }
 0x497   :  { %2785 = vmatpush.msra.mxu2 %v12368_v2  ;;  %2825 = vmatpush.msra.mxu0 %v12369_v59  ;;  %v12371_v15 = vld [vmem:[#allocation75_spill] sm:$0xff]  ;;  %12373 = vst [vmem:[#allocation59_spill] sm:$0xff] %v9210_v14 }
 0x498   :  { %2718 = vmatmul.f32.vlgmr.msrb.gmra.mxu2 %v9167_v21  ;;  %2758 = vmatmul.f32.vlgmr.msrb.gmra.mxu0 %v9167_v21  ;;  %v9207_v44 = vld [vmem:[#allocation8 + $0x910] sm:$0xff]  ;;  %12377 = vst [vmem:[#allocation75_spill] sm:$0xff] %v9218_v32 }
 0x499   :  { %2786 = vmatpush.msra.mxu2 %v12370_v55  ;;  %2826 = vmatpush.msra.mxu0 %v12371_v15  ;;  %12372 = vst [vmem:[#allocation67_spill] sm:$0xff] %v9207_v44  ;;  %v12374_v13 = vld [vmem:[#allocation79_spill] sm:$0xff]  ;;  %v12379_v15 = vld [vmem:[#allocation89_spill] sm:$0xff] }
 0x49a   :  { %2729 = vmatpush.msra.mxu3 %v9207_v44  ;;  %2769 = vmatpush.msra.mxu1 %v9210_v14  ;;  %v12375_v2 = vld [vmem:[#allocation83_spill] sm:$0xff]  ;;  %v9226_v14 = vld [vmem:[#allocation8 + $0x858] sm:$0xff] }
 0x49b   :  { %2787 = vmatpush.msra.mxu2 %v12374_v13  ;;  %2827 = vmatpush.msra.mxu0 %v12375_v2  ;;  %v9215_v59 = vld [vmem:[#allocation8 + $0x8b0] sm:$0xff]  ;;  %12381 = vst [vmem:[#allocation83_spill] sm:$0xff] %v9226_v14  ;;  %v12382_v13 = vld [vmem:[#allocation90_spill] sm:$0xff] }
 0x49c   :  { %12376 = vst [vmem:[#allocation71_spill] sm:$0xff] %v9215_v59  ;;  %2730 = vmatpush.msra.mxu3 %v9215_v59  ;;  %2770 = vmatpush.msra.mxu1 %v9218_v32  ;;  %v12378_v55 = vld [vmem:[#allocation87_spill] sm:$0xff]  ;;  %v12383_v2 = vld [vmem:[#allocation92_spill] sm:$0xff] }
 0x49d   :  { %2788 = vmatpush.msra.mxu2 %v12378_v55  ;;  %2828 = vmatpush.msra.mxu0 %v12379_v15  ;;  %v9223_v44 = vld [vmem:[#allocation8 + $0x850] sm:$0xff]  ;;  %v9234_v32 = vld [vmem:[#allocation8 + $0x7f8] sm:$0xff] }
 0x49e   :  { %12380 = vst [vmem:[#allocation79_spill] sm:$0xff] %v9223_v44  ;;  %2731 = vmatpush.msra.mxu3 %v9223_v44  ;;  %2771 = vmatpush.msra.mxu1 %v9226_v14  ;;  %v9231_v59 = vld [vmem:[#allocation8 + $0x7f0] sm:$0xff]  ;;  %v12387_v15 = vld [vmem:[#allocation97_spill] sm:$0xff] }
 0x49f   :  { %2789 = vmatpush.msra.mxu2 %v12382_v13  ;;  %2829 = vmatpush.msra.mxu0 %v12383_v2  ;;  %12384 = vst [vmem:[#allocation87_spill] sm:$0xff] %v9231_v59  ;;  %v12386_v55 = vld [vmem:[#allocation91_spill] sm:$0xff]  ;;  %v9242_v14 = vld [vmem:[#allocation8 + $0x798] sm:$0xff]  ;;  %v12391_v2 = vld [vmem:[#allocation94_spill] sm:$0xff] }
 0x4a0   :  { %2732 = vmatpush.msra.mxu3 %v9231_v59  ;;  %12385 = vst [vmem:[#allocation89_spill] sm:$0xff] %v9234_v32  ;;  %2772 = vmatpush.msra.mxu1 %v9234_v32  ;;  %v9239_v44 = vld [vmem:[#allocation8 + $0x790] sm:$0xff]  ;;  %v12390_v13 = vld [vmem:[#allocation93_spill] sm:$0xff] }
 0x4a1   :  { %2790 = vmatpush.msra.mxu2 %v12386_v55  ;;  %2830 = vmatpush.msra.mxu0 %v12387_v15  ;;  %12388 = vst [vmem:[#allocation90_spill] sm:$0xff] %v9239_v44  ;;  %v9247_v59 = vld [vmem:[#allocation8 + $0x730] sm:$0xff]  ;;  %v9250_v32 = vld [vmem:[#allocation8 + $0x738] sm:$0xff] }
 0x4a2   :  { %2733 = vmatpush.msra.mxu3 %v9239_v44  ;;  %12389 = vst [vmem:[#allocation92_spill] sm:$0xff] %v9242_v14  ;;  %2773 = vmatpush.msra.mxu1 %v9242_v14  ;;  %v12394_v55 = vld [vmem:[#allocation95_spill] sm:$0xff]  ;;  %v12395_v15 = vld [vmem:[#allocation96_spill] sm:$0xff] }
 0x4a3   :  { %2791 = vmatpush.msra.mxu2 %v12390_v13  ;;  %2831 = vmatpush.msra.mxu0 %v12391_v2  ;;  %12392 = vst [vmem:[#allocation91_spill] sm:$0xff] %v9247_v59  ;;  %v9255_v44 = vld [vmem:[#allocation8 + $0x6d0] sm:$0xff]  ;;  %v9258_v14 = vld [vmem:[#allocation8 + $0x6d8] sm:$0xff]  ;;  %v12398_v13 = vld [vmem:[#allocation98_spill] sm:$0xff] }
 0x4a4   :  { %2734 = vmatpush.msra.mxu3 %v9247_v59  ;;  %12393 = vst [vmem:[#allocation97_spill] sm:$0xff] %v9250_v32  ;;  %2774 = vmatpush.msra.mxu1 %v9250_v32  ;;  %v12399_v2 = vld [vmem:[#allocation100_spill] sm:$0xff] }
 0x4a5   :  { %2792 = vmatpush.msra.mxu2 %v12394_v55  ;;  %2832 = vmatpush.msra.mxu0 %v12395_v15  ;;  %12396 = vst [vmem:[#allocation93_spill] sm:$0xff] %v9255_v44  ;;  %v9263_v59 = vld [vmem:[#allocation8 + $0x670] sm:$0xff]  ;;  %v9266_v32 = vld [vmem:[#allocation8 + $0x678] sm:$0xff]  ;;  %v12402_v55 = vld [vmem:[#allocation102_spill] sm:$0xff] }
 0x4a6   :  { %2735 = vmatpush.msra.mxu3 %v9255_v44  ;;  %12397 = vst [vmem:[#allocation94_spill] sm:$0xff] %v9258_v14  ;;  %2775 = vmatpush.msra.mxu1 %v9258_v14  ;;  %v12403_v15 = vld [vmem:[#allocation104_spill] sm:$0xff] }
 0x4a7   :  { %2793 = vmatpush.msra.mxu2 %v12398_v13  ;;  %2833 = vmatpush.msra.mxu0 %v12399_v2  ;;  %12400 = vst [vmem:[#allocation95_spill] sm:$0xff] %v9263_v59  ;;  %v9271_v44 = vld [vmem:[#allocation8 + $0x610] sm:$0xff]  ;;  %v9274_v14 = vld [vmem:[#allocation8 + $0x618] sm:$0xff]  ;;  %v12406_v13 = vld [vmem:[#allocation106_spill] sm:$0xff] }
 0x4a8   :  { %2736 = vmatpush.msra.mxu3 %v9263_v59  ;;  %12401 = vst [vmem:[#allocation96_spill] sm:$0xff] %v9266_v32  ;;  %2776 = vmatpush.msra.mxu1 %v9266_v32  ;;  %v12407_v2 = vld [vmem:[#allocation108_spill] sm:$0xff]  ;;  %v12408_v59 = vld [vmem:[#allocation110_spill] sm:$0xff]  ;;  %v12410_v32 = vld [vmem:[#allocation115_spill] sm:$0xff] }
 0x4a9   :  { %2794 = vmatpush.msra.mxu2 %v12402_v55  ;;  %2834 = vmatpush.msra.mxu0 %v12403_v15  ;;  %12404 = vst [vmem:[#allocation98_spill] sm:$0xff] %v9271_v44  ;;  %v12411_v55 = vld [vmem:[#allocation117_spill] sm:$0xff]  ;;  %v12412_v15 = vld [vmem:[#allocation119_spill] sm:$0xff] }
 0x4aa   :  { %2737 = vmatpush.msra.mxu3 %v9271_v44  ;;  %12405 = vst [vmem:[#allocation100_spill] sm:$0xff] %v9274_v14  ;;  %2777 = vmatpush.msra.mxu1 %v9274_v14  ;;  %v12413_v44 = vld [vmem:[#allocation99_spill] sm:$0xff]  ;;  %v12414_v14 = vld [vmem:[#allocation101_spill] sm:$0xff] }
 0x4ab   :  { %2795 = vmatpush.msra.mxu2 %v12406_v13  ;;  %2835 = vmatpush.msra.mxu0 %v12407_v2  ;;  %v12415_v13 = vld [vmem:[#allocation103_spill] sm:$0xff]  ;;  %v12416_v2 = vld [vmem:[#allocation105_spill] sm:$0xff] }
 0x4ad   :  { %2796 = vmatpush.msra.mxu2 %v12408_v59  ;;  %2836 = vmatpush.msra.mxu0 %v12409_v60  ;;  %v12417_v59 = vld [vmem:[#allocation107_spill] sm:$0xff]  ;;  %v12418_v60 = vld [vmem:[#allocation109_spill] sm:$0xff] }
 0x4af   :  { %2797 = vmatpush.msra.mxu2 %v12410_v32  ;;  %2837 = vmatpush.msra.mxu0 %v12411_v55  ;;  %v12419_v32 = vld [vmem:[#allocation111_spill] sm:$0xff]  ;;  %v12420_v55 = vld [vmem:[#allocation113_spill] sm:$0xff] }
 0x4b0   :  { %2798 = vmatmul.f32.vlgmr.msra.gmra.mxu2 %v9167_v21  ;;  %2838 = vmatmul.f32.vlgmr.msra.gmra.mxu0 %v9167_v21 }
 0x4b1   :  { %2862 = vmatpush.msrb.mxu2 %v12412_v15  ;;  %2902 = vmatpush.msrb.mxu0 %v12413_v44  ;;  %v12423_v15 = vld [vmem:[#allocation118_spill] sm:$0xff]  ;;  %v12424_v44 = vld [vmem:[#allocation120_spill] sm:$0xff] }
 0x4b3   :  { %2863 = vmatpush.msrb.mxu2 %v12414_v14  ;;  %2903 = vmatpush.msrb.mxu0 %v12415_v13  ;;  %v12425_v14 = vld [vmem:[#allocation121_spill] sm:$0xff]  ;;  %v12426_v13 = vld [vmem:[#allocation127_spill] sm:$0xff] }
 0x4b5   :  { %2864 = vmatpush.msrb.mxu2 %v12416_v2  ;;  %2904 = vmatpush.msrb.mxu0 %v12417_v59  ;;  %v12427_v2 = vld [vmem:[#allocation128_spill] sm:$0xff]  ;;  %v12428_v59 = vld [vmem:[#allocation129_spill] sm:$0xff] }
 0x4b7   :  { %2865 = vmatpush.msrb.mxu2 %v12418_v60  ;;  %2905 = vmatpush.msrb.mxu0 %v12419_v32  ;;  %v12429_v60 = vld [vmem:[#allocation130_spill] sm:$0xff]  ;;  %v12430_v32 = vld [vmem:[#allocation131_spill] sm:$0xff] }
 0x4b9   :  { %2866 = vmatpush.msrb.mxu2 %v12420_v55  ;;  %2906 = vmatpush.msrb.mxu0 %v12421_v0  ;;  %v12431_v55 = vld [vmem:[#allocation132_spill] sm:$0xff]  ;;  %v12432_v0 = vld [vmem:[#allocation133_spill] sm:$0xff] }
 0x4bb   :  { %2867 = vmatpush.msrb.mxu2 %v12422_v23  ;;  %2907 = vmatpush.msrb.mxu0 %v12423_v15  ;;  %v12433_v23 = vld [vmem:[#allocation134_spill] sm:$0xff]  ;;  %v12434_v15 = vld [vmem:[#allocation135_spill] sm:$0xff] }
 0x4bd   :  { %2868 = vmatpush.msrb.mxu2 %v12424_v44  ;;  %2908 = vmatpush.msrb.mxu0 %v12425_v14  ;;  %v12435_v44 = vld [vmem:[#allocation136_spill] sm:$0xff]  ;;  %v12436_v14 = vld [vmem:[#allocation137_spill] sm:$0xff] }
 0x4bf   :  { %2869 = vmatpush.msrb.mxu2 %v12426_v13  ;;  %2909 = vmatpush.msrb.mxu0 %v12427_v2  ;;  %v12437_v13 = vld [vmem:[#allocation138_spill] sm:$0xff]  ;;  %v12438_v2 = vld [vmem:[#allocation139_spill] sm:$0xff] }
 0x4c1   :  { %2870 = vmatpush.msrb.mxu2 %v12428_v59  ;;  %2910 = vmatpush.msrb.mxu0 %v12429_v60  ;;  %v12439_v59 = vld [vmem:[#allocation140_spill] sm:$0xff]  ;;  %v2326_v60 = vpop.f32.mrf.mxu1 }
 0x4c3   :  { %2871 = vmatpush.msrb.mxu2 %v12430_v32  ;;  %2911 = vmatpush.msrb.mxu0 %v12431_v55  ;;  %v12440_v32 = vld [vmem:[#allocation141_spill] sm:$0xff]  ;;  %v12441_v55 = vld [vmem:[#allocation142_spill] sm:$0xff] }
 0x4c5   :  { %2872 = vmatpush.msrb.mxu2 %v12432_v0  ;;  %2912 = vmatpush.msrb.mxu0 %v12433_v23  ;;  %v2306_v0 = vpop.f32.mrf.mxu0  ;;  %v12442_v23 = vld [vmem:[#allocation143_spill] sm:$0xff] }
 0x4c7   :  { %2873 = vmatpush.msrb.mxu2 %v12434_v15  ;;  %2913 = vmatpush.msrb.mxu0 %v12435_v44  ;;  %v12443_v15 = vld [vmem:[#allocation144_spill] sm:$0xff]  ;;  %v2266_v44 = vpop.f32.mrf.mxu2 }
 0x4c9   :  { %2874 = vmatpush.msrb.mxu2 %v12436_v14  ;;  %2914 = vmatpush.msrb.mxu0 %v12437_v13  ;;  %v12444_v14 = vld [vmem:[#allocation145_spill] sm:$0xff]  ;;  %v12445_v13 = vld [vmem:[#allocation146_spill] sm:$0xff] }
 0x4cb   :  { %2875 = vmatpush.msrb.mxu2 %v12438_v2  ;;  %2915 = vmatpush.msrb.mxu0 %v12439_v59  ;;  %v12446_v2 = vld [vmem:[#allocation147_spill] sm:$0xff]  ;;  %v12447_v59 = vld [vmem:[#allocation148_spill] sm:$0xff] }
 0x4cd   :  { %2876 = vmatpush.msrb.mxu2 %v12440_v32  ;;  %2916 = vmatpush.msrb.mxu0 %v12441_v55  ;;  %v2406_v32 = vpop.f32.mrf.mxu1  ;;  %v12448_v55 = vld [vmem:[#allocation149_spill] sm:$0xff] }
 0x4cf   :  { %2877 = vmatpush.msrb.mxu2 %v12442_v23  ;;  %2917 = vmatpush.msrb.mxu0 %v12443_v15  ;;  %v2386_v23 = vpop.f32.mrf.mxu0  ;;  %v2366_v15 = vpop.f32.mrf.mxu3 }
 0x4d0   :  { %2878 = vmatmul.f32.vlgmr.msrb.gmra.mxu2 %v9167_v21  ;;  %2918 = vmatmul.f32.vlgmr.msrb.gmra.mxu0 %v9167_v21  ;;  %v2346_v43 = vpop.f32.mrf.mxu2 }
 0x4d1   :  { %2942 = vmatpush.msra.mxu2 %v12444_v14  ;;  %2982 = vmatpush.msra.mxu0 %v12445_v13  ;;  %v12453_v14 = vld [vmem:[#allocation154_spill] sm:$0xff]  ;;  %v12454_v13 = vld [vmem:[#allocation155_spill] sm:$0xff] }
 0x4d3   :  { %2943 = vmatpush.msra.mxu2 %v12446_v2  ;;  %2983 = vmatpush.msra.mxu0 %v12447_v59  ;;  %v12455_v2 = vld [vmem:[#allocation156_spill] sm:$0xff] }
 0x4d5   :  { %2944 = vmatpush.msra.mxu2 %v12448_v55  ;;  %2984 = vmatpush.msra.mxu0 %v12449_v48  ;;  %v2486_v59 = vpop.f32.mrf.mxu1 }
 0x4d7   :  { %2945 = vmatpush.msra.mxu2 %v12450_v42  ;;  %2985 = vmatpush.msra.mxu0 %v12451_v51  ;;  %v2466_v48 = vpop.f32.mrf.mxu0  ;;  %v2446_v55 = vpop.f32.mrf.mxu3 }
 0x4d8   :  { %v2487_v51 = vadd.f32 %v2486_v59, %v2466_v48  ;;  %v2426_v42 = vpop.f32.mrf.mxu2  ;;  %v12464_v59 = vld [vmem:[#allocation122_spill] sm:$0xff] }
 0x4d9   :  { %2946 = vmatpush.msra.mxu2 %v12452_v20  ;;  %2986 = vmatpush.msra.mxu0 %v12453_v14  ;;  %v12457_v20 = vld [vmem:[#allocation158_spill] sm:$0xff]  ;;  %v12458_v14 = vld [vmem:[#allocation159_spill] sm:$0xff]  ;;  %v2447_v17 = vadd.f32 %v2446_v55, %v2426_v42  ;;  %v12472_v42 = vld [vmem:[#allocation169_spill] sm:$0xff] }
 0x4da   :  { %v12466_v55 = vld [vmem:[#allocation50_spill] sm:$0xff] }
 0x4db   :  { %2947 = vmatpush.msra.mxu2 %v12454_v13  ;;  %2987 = vmatpush.msra.mxu0 %v12455_v2  ;;  %v2327_v13 = vadd.f32 %v2326_v60, %v2306_v0  ;;  %v12459_v2 = vld [vmem:[#allocation160_spill] sm:$0xff] }
 0x4dc   :  { %v12465_v60 = vld [vmem:[#allocation16_spill] sm:$0xff] }
 0x4dd   :  { %2948 = vmatpush.msra.mxu2 %v12456_v8  ;;  %2988 = vmatpush.msra.mxu0 %v8456_v25  ;;  %v2287_v8 = vadd.f32 %v2286_v33, %v2266_v44  ;;  %v2570_v25 = vadd.f32 %v2487_v51, %v2327_v13  ;;  %v12474_v13 = vld [vmem:[#allocation171_spill] sm:$0xff] }
 0x4df   :  { %2949 = vmatpush.msra.mxu2 %v8459_v3  ;;  %2989 = vmatpush.msra.mxu0 %v8462_v53  ;;  %v2569_v3 = vadd.f32 %v2447_v17, %v2287_v8  ;;  %v12463_v53 = vld [vmem:[#allocation164_spill] sm:$0xff]  ;;  %v2574_v48 = vadd.f32 %v2570_v25, %v12464_v59 }
 0x4e0   :  { %v2506_v33 = vpop.f32.mrf.mxu2 }
 0x4e1   :  { %2950 = vmatpush.msra.mxu2 %v12457_v20  ;;  %2990 = vmatpush.msra.mxu0 %v12458_v14  ;;  %v2573_v0 = vadd.f32 %v2569_v3, %v12465_v60  ;;  %4783 = vtanh.f32 %v2574_v48  ;;  %v12473_v20 = vld [vmem:[#allocation170_spill] sm:$0xff]  ;;  %v12475_v48 = vld [vmem:[#allocation173_spill] sm:$0xff] }
 0x4e3   :  { %2951 = vmatpush.msra.mxu2 %v12459_v2  ;;  %2991 = vmatpush.msra.mxu0 %v12460_v40  ;;  %4785 = vtanh.f32 %v2573_v0  ;;  %v12476_v0 = vld [vmem:[#allocation174_spill] sm:$0xff] }
 0x4e5   :  { %2952 = vmatpush.msra.mxu2 %v12461_v58  ;;  %2992 = vmatpush.msra.mxu0 %v12462_v54  ;;  %v2566_v40 = vpop.f32.mrf.mxu1  ;;  %v2546_v54 = vpop.f32.mrf.mxu0  ;;  %v2367_v58 = vadd.f32 %v2366_v15, %v2346_v43  ;;  %v12467_v43 = vld [vmem:[#allocation165_spill] sm:$0xff]  ;;  %v12468_v15 = vld [vmem:[#allocation166_spill] sm:$0xff] }
 0x4e7   :  { %2953 = vmatpush.msra.mxu2 %v12463_v53  ;;  %2993 = vmatpush.msra.mxu0 %v8488_v1  ;;  %v2567_v1 = vadd.f32 %v2566_v40, %v2546_v54  ;;  %v12477_v40 = vld [vmem:[#allocation172_spill] sm:$0xff] }
 0x4e8   :  { %v12479_v54 = vld [vmem:[#allocation176_spill] sm:$0xff] }
 0x4e9   :  { %2954 = vmatpush.msra.mxu2 %v8491_v38  ;;  %2994 = vmatpush.msra.mxu0 %v8494_v29  ;;  %v2407_v29 = vadd.f32 %v2406_v32, %v2386_v23  ;;  %v12470_v32 = vld [vmem:[#allocation168_spill] sm:$0xff]  ;;  %v12471_v23 = vld [vmem:[#allocation22_spill] sm:$0xff] }
 0x4eb   :  { %v2526_v44 = vpop.f32.mrf.mxu3  ;;  %2955 = vmatpush.msra.mxu2 %v8499_v34  ;;  %2995 = vmatpush.msra.mxu0 %v8502_v24  ;;  %v2572_v24 = vadd.f32 %v2567_v1, %v2407_v29  ;;  %v12482_v1 = vld [vmem:[#allocation179_spill] sm:$0xff] }
 0x4ec   :  { %v2527_v17 = vadd.f32 %v2526_v44, %v2506_v33  ;;  %v12478_v44 = vld [vmem:[#allocation175_spill] sm:$0xff] }
 0x4ed   :  { %2956 = vmatpush.msra.mxu2 %v8506_v56  ;;  %2996 = vmatpush.msra.mxu0 %v8509_v27  ;;  %v4784_v56 = vpop.eup %4783  ;;  %v12469_v27 = vld [vmem:[#allocation167_spill] sm:$0xff]  ;;  %v2576_v51 = vadd.f32 %v2572_v24, %v12471_v23 }
 0x4ee   :  { %v2571_v38 = vadd.f32 %v2527_v17, %v2367_v58 }
 0x4ef   :  { %2957 = vmatpush.msra.mxu2 %v8512_v52  ;;  %2997 = vmatpush.msra.mxu0 %v8515_v10  ;;  %v4786_v52 = vpop.eup %4785  ;;  %v2582_v10 = vmul.f32 %v4784_v56, %v7226_v4  ;;  %v12485_v56 = vld [vmem:[#allocation182_spill] sm:$0xff] }
 0x4f0   :  { %v2575_v34 = vadd.f32 %v2571_v38, %v12466_v55  ;;  %2958 = vmatmul.f32.vlgmr.msra.gmra.mxu2 %v9167_v21  ;;  %2998 = vmatmul.f32.vlgmr.msra.gmra.mxu0 %v9167_v21  ;;  %v2581_v14 = vmul.f32 %v4786_v52, %v11754_v46  ;;  %v12483_v38 = vld [vmem:[#allocation180_spill] sm:$0xff]  ;;  %v5592_v52 = vld [vmem:[#allocation8 + $0xaa0] sm:$0xff] }
 0x4f1   :  { %3022 = vmatpush.msrb.mxu2 %v12467_v43  ;;  %3062 = vmatpush.msrb.mxu0 %v12468_v15  ;;  %v2586_v8 = vadd.f32 %v2582_v10, %v7229_v30  ;;  %v5600_v10 = vld [vmem:[#allocation8 + $0x920] sm:$0xff] }
 0x4f2   :  { %4787 = vtanh.f32 %v2575_v34  ;;  %v2585_v3 = vadd.f32 %v2581_v14, %v6883_v19  ;;  %v12484_v34 = vld [vmem:[#allocation181_spill] sm:$0xff]  ;;  %v12491_v14 = vld [vmem:[#allocation188_spill] sm:$0xff] }
 0x4f3   :  { %3023 = vmatpush.msrb.mxu2 %v12469_v27  ;;  %3063 = vmatpush.msrb.mxu0 %v12470_v32  ;;  %4789 = vtanh.f32 %v2576_v51  ;;  %v12486_v27 = vld [vmem:[#allocation183_spill] sm:$0xff]  ;;  %v5602_v51 = vld [vmem:[#allocation8 + $0x8c0] sm:$0xff] }
 0x4f4   :  { %v5591_v32 = vld [vmem:[#allocation8 + $0xb08] sm:$0xff] }
 0x4f5   :  { %3024 = vmatpush.msrb.mxu2 %v12472_v42  ;;  %3064 = vmatpush.msrb.mxu0 %v12473_v20  ;;  %v12489_v42 = vld [vmem:[#allocation186_spill] sm:$0xff] }
 0x4f6   :  { %v5604_v20 = vld [vmem:[#allocation8 + $0x860] sm:$0xff] }
 0x4f7   :  { %3025 = vmatpush.msrb.mxu2 %v12474_v13  ;;  %3065 = vmatpush.msrb.mxu0 %v8548_v62  ;;  %v2589_v62 = vmul.f32 %v2586_v8, %v12477_v40  ;;  %v5606_v13 = vld [vmem:[#allocation8 + $0x800] sm:$0xff]  ;;  %v5611_v40 = vld [vmem:[#allocation8 + $0x748] sm:$0xff] }
 0x4f8   :  { %v4788_v2 = vpop.eup %4787  ;;  %v12493_v8 = vld [vmem:[#allocation190_spill] sm:$0xff] }
 0x4f9   :  { %v2583_v25 = vmul.f32 %v4788_v2, %v11755_v63  ;;  %3026 = vmatpush.msrb.mxu2 %v8552_v61  ;;  %3066 = vmatpush.msrb.mxu0 %v8555_v31  ;;  %v4790_v58 = vpop.eup %4789  ;;  %v12480_v61 = vld [vmem:[#allocation177_spill] sm:$0xff]  ;;  %v12481_v31 = vld [vmem:[#allocation178_spill] sm:$0xff] }
 0x4fa   :  { %v2584_v29 = vmul.f32 %v4790_v58, %v6897_v49  ;;  %v12492_v2 = vld [vmem:[#allocation189_spill] sm:$0xff]  ;;  %v12498_v58 = vld [vmem:[#allocation195_spill] sm:$0xff] }
 0x4fb   :  { %v2587_v53 = vadd.f32 %v2583_v25, %v11757_v18  ;;  %3027 = vmatpush.msrb.mxu2 %v12475_v48  ;;  %3067 = vmatpush.msrb.mxu0 %v12476_v0  ;;  %v5608_v25 = vld [vmem:[#allocation8 + $0x7a0] sm:$0xff]  ;;  %v12495_v48 = vld [vmem:[#allocation192_spill] sm:$0xff] }
 0x4fc   :  { %v2588_v24 = vadd.f32 %v2584_v29, %v6901_v45  ;;  %v5610_v0 = vld [vmem:[#allocation8 + $0x740] sm:$0xff] }
 0x4fd   :  { %v2590_v33 = vmul.f32 %v2587_v53, %v2585_v3  ;;  %3028 = vmatpush.msrb.mxu2 %v12478_v44  ;;  %3068 = vmatpush.msrb.mxu0 %v12479_v54  ;;  %v5609_v3 = vld [vmem:[#allocation8 + $0x7a8] sm:$0xff]  ;;  %v5612_v44 = vld [vmem:[#allocation8 + $0x6e0] sm:$0xff] }
 0x4fe   :  { %v12494_v53 = vld [vmem:[#allocation191_spill] sm:$0xff]  ;;  %v12501_v29 = vld [vmem:[#allocation198_spill] sm:$0xff] }
 0x4ff   :  { %v9378_v17 = vadd.f32 %v2590_v33, %v2589_v62  ;;  %3029 = vmatpush.msrb.mxu2 %v12480_v61  ;;  %3069 = vmatpush.msrb.mxu0 %v12481_v31  ;;  %v12496_v62 = vld [vmem:[#allocation193_spill] sm:$0xff]  ;;  %v12497_v33 = vld [vmem:[#allocation194_spill] sm:$0xff]  ;;  %v12499_v61 = vld [vmem:[#allocation196_spill] sm:$0xff] }
 0x500   :  { %v5613_v54 = vld [vmem:[#allocation8 + $0x6e8] sm:$0xff]  ;;  %v5614_v31 = vld [vmem:[#allocation8 + $0x680] sm:$0xff] }
 0x501   :  { %4791 = vtanh.f32 %v9378_v17  ;;  %3030 = vmatpush.msrb.mxu2 %v12482_v1  ;;  %3070 = vmatpush.msrb.mxu0 %v12483_v38  ;;  %v5615_v1 = vld [vmem:[#allocation8 + $0x688] sm:$0xff]  ;;  %v12500_v38 = vld [vmem:[#allocation197_spill] sm:$0xff] }
 0x503   :  { %3031 = vmatpush.msrb.mxu2 %v12484_v34  ;;  %3071 = vmatpush.msrb.mxu0 %v8590_v36  ;;  %v5587_v36 = vld [vmem:[#allocation8 + $0xbc8] sm:$0xff]  ;;  %v5616_v34 = vld [vmem:[#allocation8 + $0x620] sm:$0xff] }
 0x505   :  { %3032 = vmatpush.msrb.mxu2 %v8593_v9  ;;  %3072 = vmatpush.msrb.mxu0 %v8596_v37  ;;  %v5586_v9 = vld [vmem:[#allocation8 + $0xbc0] sm:$0xff] }
 0x506   :  { %v5588_v37 = vld [vmem:[#allocation8 + $0xb60] sm:$0xff] }
 0x507   :  { %v4792_v43 = vpop.eup %4791  ;;  %3033 = vmatpush.msrb.mxu2 %v8599_v16  ;;  %3073 = vmatpush.msrb.mxu0 %v8602_v11  ;;  %v5589_v11 = vld [vmem:[#allocation8 + $0xb68] sm:$0xff]  ;;  %v5590_v16 = vld [vmem:[#allocation8 + $0xb00] sm:$0xff] }
 0x508   :  { %v9393_v15 = vmul.f32 %v4792_v43, %v2588_v24  ;;  %v5617_v24 = vld [vmem:[#allocation8 + $0x628] sm:$0xff]  ;;  %v5618_v43 = vld [vmem:[#allocation8 + $0xbd0] sm:$0xff] }
 0x509   :  { %3034 = vmatpush.msrb.mxu2 %v12485_v56  ;;  %3074 = vmatpush.msrb.mxu0 %v12486_v27  ;;  %v5619_v56 = vld [vmem:[#allocation8 + $0xbd8] sm:$0xff]  ;;  %v12502_v27 = vld [vmem:[#allocation54_spill] sm:$0xff] }
 0x50a   :  { %2658 = vmatmul.f32.vlgmr.msrb.gmra.mxu3 %v9393_v15  ;;  %2698 = vmatmul.f32.vlgmr.msrb.gmra.mxu1 %v9393_v15 }
 0x50b   :  { %2802 = vmatpush.msrb.mxu3 %v5586_v9  ;;  %2842 = vmatpush.msrb.mxu1 %v5587_v36  ;;  %v12503_v9 = vld [vmem:[#allocation17_spill] sm:$0xff]  ;;  %v5620_v36 = vld [vmem:[#allocation8 + $0xb70] sm:$0xff] }
 0x50c   :  { %3035 = vmatpush.msrb.mxu2 %v8617_v7  ;;  %3075 = vmatpush.msrb.mxu0 %v8620_v47  ;;  %v5593_v7 = vld [vmem:[#allocation8 + $0xaa8] sm:$0xff]  ;;  %v5596_v47 = vld [vmem:[#allocation8 + $0x9e0] sm:$0xff] }
 0x50d   :  { %2803 = vmatpush.msrb.mxu3 %v5588_v37  ;;  %2843 = vmatpush.msrb.mxu1 %v5589_v11  ;;  %v5621_v37 = vld [vmem:[#allocation8 + $0xb78] sm:$0xff] }
 0x50e   :  { %3036 = vmatpush.msrb.mxu2 %v8625_v12  ;;  %3076 = vmatpush.msrb.mxu0 %v8628_v39  ;;  %v5594_v39 = vld [vmem:[#allocation8 + $0xa40] sm:$0xff]  ;;  %v5595_v12 = vld [vmem:[#allocation8 + $0xa48] sm:$0xff] }
 0x50f   :  { %2804 = vmatpush.msrb.mxu3 %v5590_v16  ;;  %2844 = vmatpush.msrb.mxu1 %v5591_v32  ;;  %v12504_v11 = vld [vmem:[#allocation25_spill] sm:$0xff]  ;;  %v12505_v16 = vld [vmem:[#allocation58_spill] sm:$0xff]  ;;  %v5622_v32 = vld [vmem:[#allocation8 + $0xb10] sm:$0xff] }
 0x510   :  { %3037 = vmatpush.msrb.mxu2 %v8633_v22  ;;  %3077 = vmatpush.msrb.mxu0 %v8636_v35  ;;  %v5597_v22 = vld [vmem:[#allocation8 + $0x9e8] sm:$0xff]  ;;  %v5598_v35 = vld [vmem:[#allocation8 + $0x980] sm:$0xff] }
 0x511   :  { %2805 = vmatpush.msrb.mxu3 %v5592_v52  ;;  %2845 = vmatpush.msrb.mxu1 %v5593_v7  ;;  %v5623_v52 = vld [vmem:[#allocation8 + $0xb18] sm:$0xff]  ;;  %v12506_v7 = vld [vmem:[#allocation18_spill] sm:$0xff] }
 0x512   :  { %3038 = vmatmul.f32.vlgmr.msrb.gmra.mxu2 %v9167_v21  ;;  %3078 = vmatmul.f32.vlgmr.msrb.gmra.mxu0 %v9167_v21  ;;  %v5599_v21 = vld [vmem:[#allocation8 + $0x988] sm:$0xff] }
 0x513   :  { %2738 = vmatmul.f32.vlgmr.msra.gmra.mxu3 %v9393_v15  ;;  %2778 = vmatmul.f32.vlgmr.msra.gmra.mxu1 %v9393_v15 }
 0x514   :  { %2806 = vmatpush.msrb.mxu3 %v5594_v39  ;;  %2846 = vmatpush.msrb.mxu1 %v5595_v12  ;;  %v12507_v39 = vld [vmem:[#allocation28_spill] sm:$0xff] }
 0x515   :  { %3174 = vmatpush.msra.mxu2 %v8647_v6  ;;  %3214 = vmatpush.msra.mxu0 %v8650_v26  ;;  %v5601_v6 = vld [vmem:[#allocation8 + $0x928] sm:$0xff]  ;;  %v12487_v26 = vld [vmem:[#allocation184_spill] sm:$0xff] }
 0x516   :  { %2807 = vmatpush.msrb.mxu3 %v5596_v47  ;;  %2847 = vmatpush.msrb.mxu1 %v5597_v22  ;;  %v5624_v12 = vld [vmem:[#allocation8 + $0xab0] sm:$0xff]  ;;  %v5625_v47 = vld [vmem:[#allocation8 + $0xab8] sm:$0xff] }
 0x517   :  { %3175 = vmatpush.msra.mxu2 %v8655_v57  ;;  %3215 = vmatpush.msra.mxu0 %v8658_v5  ;;  %v5603_v57 = vld [vmem:[#allocation8 + $0x8c8] sm:$0xff]  ;;  %v12488_v5 = vld [vmem:[#allocation185_spill] sm:$0xff] }
 0x518   :  { %2808 = vmatpush.msrb.mxu3 %v5598_v35  ;;  %2848 = vmatpush.msrb.mxu1 %v5599_v21  ;;  %v12508_v22 = vld [vmem:[#allocation31_spill] sm:$0xff] }
 0x519   :  { %3176 = vmatpush.msra.mxu2 %v8663_v28  ;;  %3216 = vmatpush.msra.mxu0 %v8666_v50  ;;  %v5605_v28 = vld [vmem:[#allocation8 + $0x868] sm:$0xff]  ;;  %v5626_v21 = vld [vmem:[#allocation8 + $0xa50] sm:$0xff] }
 0x51a   :  { %2809 = vmatpush.msrb.mxu3 %v5600_v10  ;;  %2849 = vmatpush.msrb.mxu1 %v5601_v6  ;;  %v12490_v50 = vld [vmem:[#allocation187_spill] sm:$0xff]  ;;  %v5627_v10 = vld [vmem:[#allocation8 + $0xa58] sm:$0xff]  ;;  %v12510_v6 = vld [vmem:[#allocation62_spill] sm:$0xff] }
 0x51b   :  { %3177 = vmatpush.msra.mxu2 %v8671_v41  ;;  %3217 = vmatpush.msra.mxu0 %v12487_v26  ;;  %v5607_v41 = vld [vmem:[#allocation8 + $0x808] sm:$0xff] }
 0x51c   :  { %2810 = vmatpush.msrb.mxu3 %v5602_v51  ;;  %2850 = vmatpush.msrb.mxu1 %v5603_v57  ;;  %v12509_v35 = vld [vmem:[#allocation19_spill] sm:$0xff]  ;;  %v12511_v26 = vld [vmem:[#allocation34_spill] sm:$0xff]  ;;  %v5629_v57 = vld [vmem:[#allocation8 + $0x9f8] sm:$0xff] }
 0x51d   :  { %3178 = vmatpush.msra.mxu2 %v12488_v5  ;;  %3218 = vmatpush.msra.mxu0 %v12489_v42  ;;  %v5628_v51 = vld [vmem:[#allocation8 + $0x9f0] sm:$0xff]  ;;  %v12512_v5 = vld [vmem:[#allocation21_spill] sm:$0xff]  ;;  %v12513_v42 = vld [vmem:[#allocation66_spill] sm:$0xff] }
 0x51e   :  { %2811 = vmatpush.msrb.mxu3 %v5604_v20  ;;  %2851 = vmatpush.msrb.mxu1 %v5605_v28  ;;  %v5630_v20 = vld [vmem:[#allocation8 + $0x990] sm:$0xff]  ;;  %v5631_v28 = vld [vmem:[#allocation8 + $0x998] sm:$0xff] }
 0x51f   :  { %3179 = vmatpush.msra.mxu2 %v12490_v50  ;;  %3219 = vmatpush.msra.mxu0 %v12491_v14  ;;  %v12514_v50 = vld [vmem:[#allocation37_spill] sm:$0xff]  ;;  %v12515_v14 = vld [vmem:[#allocation24_spill] sm:$0xff] }
 0x520   :  { %2812 = vmatpush.msrb.mxu3 %v5606_v13  ;;  %2852 = vmatpush.msrb.mxu1 %v5607_v41  ;;  %v5632_v13 = vld [vmem:[#allocation8 + $0x930] sm:$0xff]  ;;  %v5633_v41 = vld [vmem:[#allocation8 + $0x938] sm:$0xff] }
 0x521   :  { %3180 = vmatpush.msra.mxu2 %v12492_v2  ;;  %3220 = vmatpush.msra.mxu0 %v12493_v8  ;;  %v12516_v2 = vld [vmem:[#allocation70_spill] sm:$0xff]  ;;  %v12517_v8 = vld [vmem:[#allocation40_spill] sm:$0xff] }
 0x522   :  { %2813 = vmatpush.msrb.mxu3 %v5608_v25  ;;  %2853 = vmatpush.msrb.mxu1 %v5609_v3  ;;  %v5634_v25 = vld [vmem:[#allocation8 + $0x8d0] sm:$0xff]  ;;  %v5635_v3 = vld [vmem:[#allocation8 + $0x8d8] sm:$0xff] }
 0x523   :  { %3181 = vmatpush.msra.mxu2 %v12494_v53  ;;  %3221 = vmatpush.msra.mxu0 %v12495_v48  ;;  %v12518_v53 = vld [vmem:[#allocation27_spill] sm:$0xff]  ;;  %v12519_v48 = vld [vmem:[#allocation74_spill] sm:$0xff] }
 0x524   :  { %2814 = vmatpush.msrb.mxu3 %v5610_v0  ;;  %2854 = vmatpush.msrb.mxu1 %v5611_v40  ;;  %v5636_v0 = vld [vmem:[#allocation8 + $0x870] sm:$0xff]  ;;  %v5637_v40 = vld [vmem:[#allocation8 + $0x878] sm:$0xff] }
 0x525   :  { %3182 = vmatpush.msra.mxu2 %v12496_v62  ;;  %3222 = vmatpush.msra.mxu0 %v12497_v33  ;;  %v12520_v62 = vld [vmem:[#allocation43_spill] sm:$0xff]  ;;  %v12521_v33 = vld [vmem:[#allocation30_spill] sm:$0xff] }
 0x526   :  { %2815 = vmatpush.msrb.mxu3 %v5612_v44  ;;  %2855 = vmatpush.msrb.mxu1 %v5613_v54  ;;  %v5638_v44 = vld [vmem:[#allocation8 + $0x810] sm:$0xff]  ;;  %v5639_v54 = vld [vmem:[#allocation8 + $0x818] sm:$0xff] }
 0x527   :  { %3183 = vmatpush.msra.mxu2 %v12498_v58  ;;  %3223 = vmatpush.msra.mxu0 %v12499_v61  ;;  %v12522_v58 = vld [vmem:[#allocation78_spill] sm:$0xff] }
 0x528   :  { %2816 = vmatpush.msrb.mxu3 %v5614_v31  ;;  %2856 = vmatpush.msrb.mxu1 %v5615_v1  ;;  %v12523_v61 = vld [vmem:[#allocation46_spill] sm:$0xff]  ;;  %v5640_v31 = vld [vmem:[#allocation8 + $0x7b0] sm:$0xff]  ;;  %v5641_v1 = vld [vmem:[#allocation8 + $0x7b8] sm:$0xff] }
 0x529   :  { %3184 = vmatpush.msra.mxu2 %v12500_v38  ;;  %3224 = vmatpush.msra.mxu0 %v12501_v29  ;;  %v12524_v38 = vld [vmem:[#allocation33_spill] sm:$0xff]  ;;  %v12525_v29 = vld [vmem:[#allocation82_spill] sm:$0xff] }
 0x52a   :  { %2817 = vmatpush.msrb.mxu3 %v5616_v34  ;;  %2857 = vmatpush.msrb.mxu1 %v5617_v24  ;;  %v5642_v34 = vld [vmem:[#allocation8 + $0x750] sm:$0xff]  ;;  %v5643_v24 = vld [vmem:[#allocation8 + $0x758] sm:$0xff] }
 0x52b   :  { %2818 = vmatmul.f32.vlgmr.msrb.gmra.mxu3 %v9393_v15  ;;  %2858 = vmatmul.f32.vlgmr.msrb.gmra.mxu1 %v9393_v15 }
 0x52c   :  { %2882 = vmatpush.msra.mxu3 %v5618_v43  ;;  %2922 = vmatpush.msra.mxu1 %v5619_v56  ;;  %v12526_v43 = vld [vmem:[#allocation49_spill] sm:$0xff]  ;;  %v12527_v56 = vld [vmem:[#allocation36_spill] sm:$0xff] }
 0x52d   :  { %3185 = vmatpush.msra.mxu2 %v12502_v27  ;;  %3225 = vmatpush.msra.mxu0 %v12503_v9  ;;  %v5644_v27 = vld [vmem:[#allocation8 + $0x6f0] sm:$0xff]  ;;  %v5645_v9 = vld [vmem:[#allocation8 + $0x6f8] sm:$0xff] }
 0x52e   :  { %2883 = vmatpush.msra.mxu3 %v5620_v36  ;;  %2923 = vmatpush.msra.mxu1 %v5621_v37  ;;  %v12528_v36 = vld [vmem:[#allocation86_spill] sm:$0xff]  ;;  %v12529_v37 = vld [vmem:[#allocation53_spill] sm:$0xff] }
 0x52f   :  { %3186 = vmatpush.msra.mxu2 %v12504_v11  ;;  %3226 = vmatpush.msra.mxu0 %v12505_v16  ;;  %v5646_v11 = vld [vmem:[#allocation8 + $0x690] sm:$0xff]  ;;  %v5647_v16 = vld [vmem:[#allocation8 + $0x698] sm:$0xff] }
 0x530   :  { %2884 = vmatpush.msra.mxu3 %v5622_v32  ;;  %2924 = vmatpush.msra.mxu1 %v5623_v52  ;;  %v12530_v32 = vld [vmem:[#allocation39_spill] sm:$0xff]  ;;  %v12531_v52 = vld [vmem:[#allocation57_spill] sm:$0xff] }
 0x531   :  { %3187 = vmatpush.msra.mxu2 %v12506_v7  ;;  %3227 = vmatpush.msra.mxu0 %v12507_v39  ;;  %v5648_v7 = vld [vmem:[#allocation8 + $0x630] sm:$0xff]  ;;  %v5649_v39 = vld [vmem:[#allocation8 + $0x638] sm:$0xff] }
 0x532   :  { %2885 = vmatpush.msra.mxu3 %v5624_v12  ;;  %2925 = vmatpush.msra.mxu1 %v5625_v47  ;;  %v5650_v12 = vld [vmem:[#allocation8 + $0xbe0] sm:$0xff]  ;;  %v5651_v47 = vld [vmem:[#allocation8 + $0xbe8] sm:$0xff] }
 0x533   :  { %3188 = vmatpush.msra.mxu2 %v12508_v22  ;;  %3228 = vmatpush.msra.mxu0 %v12509_v35  ;;  %v12532_v22 = vld [vmem:[#allocation42_spill] sm:$0xff]  ;;  %v12533_v35 = vld [vmem:[#allocation61_spill] sm:$0xff] }
 0x534   :  { %2886 = vmatpush.msra.mxu3 %v5626_v21  ;;  %2926 = vmatpush.msra.mxu1 %v5627_v10  ;;  %v5652_v21 = vld [vmem:[#allocation8 + $0xb80] sm:$0xff]  ;;  %v5653_v10 = vld [vmem:[#allocation8 + $0xb88] sm:$0xff] }
 0x535   :  { %3189 = vmatpush.msra.mxu2 %v12510_v6  ;;  %3229 = vmatpush.msra.mxu0 %v12511_v26  ;;  %v12534_v6 = vld [vmem:[#allocation45_spill] sm:$0xff] }
 0x536   :  { %2887 = vmatpush.msra.mxu3 %v5628_v51  ;;  %2927 = vmatpush.msra.mxu1 %v5629_v57  ;;  %v12535_v26 = vld [vmem:[#allocation65_spill] sm:$0xff]  ;;  %v5655_v57 = vld [vmem:[#allocation8 + $0xb28] sm:$0xff] }
 0x537   :  { %3254 = vmatpush.msrb.mxu2 %v12512_v5  ;;  %3294 = vmatpush.msrb.mxu0 %v12513_v42  ;;  %v5654_v51 = vld [vmem:[#allocation8 + $0xb20] sm:$0xff]  ;;  %v12536_v5 = vld [vmem:[#allocation48_spill] sm:$0xff] }
 0x538   :  { %2888 = vmatpush.msra.mxu3 %v5630_v20  ;;  %2928 = vmatpush.msra.mxu1 %v5631_v28  ;;  %v12537_v42 = vld [vmem:[#allocation69_spill] sm:$0xff]  ;;  %v5657_v28 = vld [vmem:[#allocation8 + $0xac8] sm:$0xff] }
 0x539   :  { %3255 = vmatpush.msrb.mxu2 %v12514_v50  ;;  %3295 = vmatpush.msrb.mxu0 %v12515_v14  ;;  %v5656_v20 = vld [vmem:[#allocation8 + $0xac0] sm:$0xff]  ;;  %v12538_v50 = vld [vmem:[#allocation52_spill] sm:$0xff] }
 0x53a   :  { %2889 = vmatpush.msra.mxu3 %v5632_v13  ;;  %2929 = vmatpush.msra.mxu1 %v5633_v41  ;;  %v12539_v14 = vld [vmem:[#allocation20_spill] sm:$0xff]  ;;  %v5658_v13 = vld [vmem:[#allocation8 + $0xa60] sm:$0xff]  ;;  %v5659_v41 = vld [vmem:[#allocation8 + $0xa68] sm:$0xff] }
 0x53b   :  { %3256 = vmatpush.msrb.mxu2 %v12516_v2  ;;  %3296 = vmatpush.msrb.mxu0 %v12517_v8  ;;  %v12540_v2 = vld [vmem:[#allocation73_spill] sm:$0xff]  ;;  %v12541_v8 = vld [vmem:[#allocation56_spill] sm:$0xff] }
 0x53c   :  { %2890 = vmatpush.msra.mxu3 %v5634_v25  ;;  %2930 = vmatpush.msra.mxu1 %v5635_v3  ;;  %v5660_v25 = vld [vmem:[#allocation8 + $0xa00] sm:$0xff]  ;;  %v5661_v3 = vld [vmem:[#allocation8 + $0xa08] sm:$0xff] }
 0x53d   :  { %3257 = vmatpush.msrb.mxu2 %v12518_v53  ;;  %3297 = vmatpush.msrb.mxu0 %v12519_v48  ;;  %v12542_v53 = vld [vmem:[#allocation23_spill] sm:$0xff]  ;;  %v12543_v48 = vld [vmem:[#allocation77_spill] sm:$0xff] }
 0x53e   :  { %2891 = vmatpush.msra.mxu3 %v5636_v0  ;;  %2931 = vmatpush.msra.mxu1 %v5637_v40  ;;  %v12544_v0 = vld [vmem:[#allocation60_spill] sm:$0xff]  ;;  %v12545_v40 = vld [vmem:[#allocation26_spill] sm:$0xff] }
 0x53f   :  { %3258 = vmatpush.msrb.mxu2 %v12520_v62  ;;  %3298 = vmatpush.msrb.mxu0 %v12521_v33  ;;  %v12546_v62 = vld [vmem:[#allocation81_spill] sm:$0xff]  ;;  %v12547_v33 = vld [vmem:[#allocation64_spill] sm:$0xff] }
 0x540   :  { %2892 = vmatpush.msra.mxu3 %v5638_v44  ;;  %2932 = vmatpush.msra.mxu1 %v5639_v54  ;;  %v12548_v44 = vld [vmem:[#allocation199_spill] sm:$0xff]  ;;  %v12549_v54 = vld [vmem:[#allocation200_spill] sm:$0xff] }
 0x541   :  { %3259 = vmatpush.msrb.mxu2 %v12522_v58  ;;  %3299 = vmatpush.msrb.mxu0 %v12523_v61  ;;  %v12550_v58 = vld [vmem:[#allocation201_spill] sm:$0xff]  ;;  %v12551_v61 = vld [vmem:[#allocation202_spill] sm:$0xff] }
 0x542   :  { %2893 = vmatpush.msra.mxu3 %v5640_v31  ;;  %2933 = vmatpush.msra.mxu1 %v5641_v1  ;;  %v12552_v31 = vld [vmem:[#allocation203_spill] sm:$0xff]  ;;  %v12553_v1 = vld [vmem:[#allocation204_spill] sm:$0xff] }
 0x543   :  { %3260 = vmatpush.msrb.mxu2 %v12524_v38  ;;  %3300 = vmatpush.msrb.mxu0 %v12525_v29  ;;  %v12554_v38 = vld [vmem:[#allocation205_spill] sm:$0xff]  ;;  %v12555_v29 = vld [vmem:[#allocation206_spill] sm:$0xff] }
 0x544   :  { %2894 = vmatpush.msra.mxu3 %v5642_v34  ;;  %2934 = vmatpush.msra.mxu1 %v5643_v24  ;;  %v12556_v34 = vld [vmem:[#allocation207_spill] sm:$0xff]  ;;  %v12557_v24 = vld [vmem:[#allocation208_spill] sm:$0xff] }
 0x545   :  { %3261 = vmatpush.msrb.mxu2 %v12526_v43  ;;  %3301 = vmatpush.msrb.mxu0 %v12527_v56  ;;  %v12558_v43 = vld [vmem:[#allocation209_spill] sm:$0xff]  ;;  %v12559_v56 = vld [vmem:[#allocation210_spill] sm:$0xff] }
 0x546   :  { %2895 = vmatpush.msra.mxu3 %v5644_v27  ;;  %2935 = vmatpush.msra.mxu1 %v5645_v9  ;;  %v12560_v27 = vld [vmem:[#allocation211_spill] sm:$0xff]  ;;  %v12561_v9 = vld [vmem:[#allocation212_spill] sm:$0xff] }
 0x547   :  { %3262 = vmatpush.msrb.mxu2 %v12528_v36  ;;  %3302 = vmatpush.msrb.mxu0 %v12529_v37  ;;  %v12562_v36 = vld [vmem:[#allocation213_spill] sm:$0xff]  ;;  %v12563_v37 = vld [vmem:[#allocation214_spill] sm:$0xff] }
 0x548   :  { %2896 = vmatpush.msra.mxu3 %v5646_v11  ;;  %2936 = vmatpush.msra.mxu1 %v5647_v16  ;;  %v12564_v11 = vld [vmem:[#allocation215_spill] sm:$0xff]  ;;  %v12565_v16 = vld [vmem:[#allocation216_spill] sm:$0xff] }
 0x549   :  { %3263 = vmatpush.msrb.mxu2 %v12530_v32  ;;  %3303 = vmatpush.msrb.mxu0 %v12531_v52  ;;  %v12566_v32 = vld [vmem:[#allocation217_spill] sm:$0xff]  ;;  %v12567_v52 = vld [vmem:[#allocation218_spill] sm:$0xff] }
 0x54a   :  { %2897 = vmatpush.msra.mxu3 %v5648_v7  ;;  %2937 = vmatpush.msra.mxu1 %v5649_v39  ;;  %v12568_v7 = vld [vmem:[#allocation219_spill] sm:$0xff]  ;;  %v12569_v39 = vld [vmem:[#allocation220_spill] sm:$0xff] }
 0x54b   :  { %2898 = vmatmul.f32.vlgmr.msra.gmra.mxu3 %v9393_v15  ;;  %2938 = vmatmul.f32.vlgmr.msra.gmra.mxu1 %v9393_v15 }
 0x54c   :  { %2962 = vmatpush.msrb.mxu3 %v5650_v12  ;;  %3002 = vmatpush.msrb.mxu1 %v5651_v47  ;;  %v12570_v12 = vld [vmem:[#allocation221_spill] sm:$0xff]  ;;  %v12571_v47 = vld [vmem:[#allocation222_spill] sm:$0xff] }
 0x54d   :  { %3264 = vmatpush.msrb.mxu2 %v12532_v22  ;;  %3304 = vmatpush.msrb.mxu0 %v12533_v35  ;;  %v12572_v22 = vld [vmem:[#allocation223_spill] sm:$0xff]  ;;  %v12573_v35 = vld [vmem:[#allocation224_spill] sm:$0xff] }
 0x54e   :  { %2963 = vmatpush.msrb.mxu3 %v5652_v21  ;;  %3003 = vmatpush.msrb.mxu1 %v5653_v10  ;;  %v12574_v21 = vld [vmem:[#allocation225_spill] sm:$0xff]  ;;  %v12575_v10 = vld [vmem:[#allocation226_spill] sm:$0xff] }
 0x54f   :  { %3265 = vmatpush.msrb.mxu2 %v12534_v6  ;;  %3305 = vmatpush.msrb.mxu0 %v12535_v26  ;;  %v12576_v6 = vld [vmem:[#allocation227_spill] sm:$0xff]  ;;  %v12577_v26 = vld [vmem:[#allocation228_spill] sm:$0xff] }
 0x550   :  { %2964 = vmatpush.msrb.mxu3 %v5654_v51  ;;  %3004 = vmatpush.msrb.mxu1 %v5655_v57  ;;  %v12578_v51 = vld [vmem:[#allocation229_spill] sm:$0xff]  ;;  %v12579_v57 = vld [vmem:[#allocation230_spill] sm:$0xff] }
 0x551   :  { %3266 = vmatpush.msrb.mxu2 %v12536_v5  ;;  %3306 = vmatpush.msrb.mxu0 %v12537_v42  ;;  %v12580_v5 = vld [vmem:[#allocation231_spill] sm:$0xff]  ;;  %v12581_v42 = vld [vmem:[#allocation232_spill] sm:$0xff] }
 0x552   :  { %2965 = vmatpush.msrb.mxu3 %v5656_v20  ;;  %3005 = vmatpush.msrb.mxu1 %v5657_v28  ;;  %v12582_v20 = vld [vmem:[#allocation233_spill] sm:$0xff]  ;;  %v12583_v28 = vld [vmem:[#allocation234_spill] sm:$0xff] }
 0x553   :  { %3267 = vmatpush.msrb.mxu2 %v12538_v50  ;;  %3307 = vmatpush.msrb.mxu0 %v12539_v14  ;;  %v12584_v50 = vld [vmem:[#allocation235_spill] sm:$0xff]  ;;  %v12585_v14 = vld [vmem:[#allocation236_spill] sm:$0xff] }
 0x554   :  { %2966 = vmatpush.msrb.mxu3 %v5658_v13  ;;  %3006 = vmatpush.msrb.mxu1 %v5659_v41  ;;  %v12586_v13 = vld [vmem:[#allocation237_spill] sm:$0xff]  ;;  %v12587_v41 = vld [vmem:[#allocation238_spill] sm:$0xff] }
 0x555   :  { %3268 = vmatpush.msrb.mxu2 %v12540_v2  ;;  %3308 = vmatpush.msrb.mxu0 %v12541_v8  ;;  %v12588_v2 = vld [vmem:[#allocation239_spill] sm:$0xff]  ;;  %v12589_v8 = vld [vmem:[#allocation240_spill] sm:$0xff] }
 0x556   :  { %2967 = vmatpush.msrb.mxu3 %v5660_v25  ;;  %3007 = vmatpush.msrb.mxu1 %v5661_v3  ;;  %v12590_v25 = vld [vmem:[#allocation241_spill] sm:$0xff]  ;;  %v12591_v3 = vld [vmem:[#allocation242_spill] sm:$0xff] }
 0x557   :  { %3269 = vmatpush.msrb.mxu2 %v12542_v53  ;;  %3309 = vmatpush.msrb.mxu0 %v12543_v48  ;;  %v12592_v53 = vld [vmem:[#allocation243_spill] sm:$0xff]  ;;  %v12593_v48 = vld [vmem:[#allocation244_spill] sm:$0xff] }
 0x558   :  { %2968 = vmatpush.msrb.mxu3 %v12544_v0  ;;  %3008 = vmatpush.msrb.mxu1 %v12545_v40  ;;  %v2679_v40 = vpop.f32.mrf.mxu0 }
 0x55a   :  { %2969 = vmatpush.msrb.mxu3 %v12546_v62  ;;  %3009 = vmatpush.msrb.mxu1 %v12547_v33  ;;  %v5662_v62 = vld [vmem:[#allocation8 + $0x650] sm:$0xff]  ;;  %v5663_v33 = vld [vmem:[#allocation8 + $0x658] sm:$0xff] }
 0x55c   :  { %2970 = vmatpush.msrb.mxu3 %v12548_v44  ;;  %3010 = vmatpush.msrb.mxu1 %v12549_v54  ;;  %v2639_v54 = vpop.f32.mrf.mxu2 }
 0x55e   :  { %2971 = vmatpush.msrb.mxu3 %v12550_v58  ;;  %3011 = vmatpush.msrb.mxu1 %v12551_v61  ;;  %v5664_v58 = vld [vmem:[#allocation8 + $0xba0] sm:$0xff]  ;;  %v5665_v61 = vld [vmem:[#allocation8 + $0xba8] sm:$0xff] }
 0x560   :  { %2972 = vmatpush.msrb.mxu3 %v12552_v31  ;;  %3012 = vmatpush.msrb.mxu1 %v12553_v1 }
 0x562   :  { %2973 = vmatpush.msrb.mxu3 %v12554_v38  ;;  %3013 = vmatpush.msrb.mxu1 %v12555_v29  ;;  %v12594_v38 = vld [vmem:[#allocation29_spill] sm:$0xff] }
 0x563   :  { %v12595_v29 = vld [vmem:[#allocation85_spill] sm:$0xff] }
 0x564   :  { %2974 = vmatpush.msrb.mxu3 %v12556_v34  ;;  %3014 = vmatpush.msrb.mxu1 %v12557_v24  ;;  %v12596_v24 = vld [vmem:[#allocation32_spill] sm:$0xff] }
 0x566   :  { %2975 = vmatpush.msrb.mxu3 %v12558_v43  ;;  %3015 = vmatpush.msrb.mxu1 %v12559_v56  ;;  %v12597_v43 = vld [vmem:[#allocation68_spill] sm:$0xff] }
 0x568   :  { %2976 = vmatpush.msrb.mxu3 %v12560_v27  ;;  %3016 = vmatpush.msrb.mxu1 %v12561_v9  ;;  %v3128_v27 = vld [vmem:[#allocation2 + $0x20] sm:$0xc]  ;;  %v12599_v9 = vld [vmem:[#allocation246_spill] sm:$0xff] }
 0x56a   :  { %2977 = vmatpush.msrb.mxu3 %v12562_v36  ;;  %3017 = vmatpush.msrb.mxu1 %v12563_v37  ;;  %v3127_v37 = vld [vmem:[#allocation2 + $0x8] sm:$0xc] }
 0x56b   :  { %2978 = vmatmul.f32.vlgmr.msrb.gmra.mxu3 %v9393_v15  ;;  %3018 = vmatmul.f32.vlgmr.msrb.gmra.mxu1 %v9393_v15 }
 0x56c   :  { %3042 = vmatpush.msra.mxu3 %v12564_v11  ;;  %3082 = vmatpush.msra.mxu1 %v12565_v16  ;;  %v5666_v11 = vld [vmem:[#allocation8 + $0xa20] sm:$0xff]  ;;  %v5667_v16 = vld [vmem:[#allocation8 + $0xa28] sm:$0xff] }
 0x56e   :  { %3043 = vmatpush.msra.mxu3 %v12566_v32  ;;  %3083 = vmatpush.msra.mxu1 %v12567_v52 }
 0x570   :  { %3044 = vmatpush.msra.mxu3 %v12568_v7  ;;  %3084 = vmatpush.msra.mxu1 %v12569_v39  ;;  %v2719_v7 = vpop.f32.mrf.mxu2 }
 0x572   :  { %3045 = vmatpush.msra.mxu3 %v12570_v12  ;;  %3085 = vmatpush.msra.mxu1 %v12571_v47  ;;  %v5668_v12 = vld [vmem:[#allocation8 + $0x9c0] sm:$0xff]  ;;  %v5669_v47 = vld [vmem:[#allocation8 + $0x9c8] sm:$0xff] }
 0x574   :  { %3046 = vmatpush.msra.mxu3 %v12572_v22  ;;  %3086 = vmatpush.msra.mxu1 %v12573_v35  ;;  %v2759_v22 = vpop.f32.mrf.mxu0 }
 0x576   :  { %3047 = vmatpush.msra.mxu3 %v12574_v21  ;;  %3087 = vmatpush.msra.mxu1 %v12575_v10  ;;  %v5670_v10 = vld [vmem:[#allocation8 + $0x960] sm:$0xff] }
 0x578   :  { %3048 = vmatpush.msra.mxu3 %v12576_v6  ;;  %3088 = vmatpush.msra.mxu1 %v12577_v26  ;;  %v5671_v6 = vld [vmem:[#allocation8 + $0x968] sm:$0xff] }
 0x57a   :  { %3049 = vmatpush.msra.mxu3 %v12578_v51  ;;  %3089 = vmatpush.msra.mxu1 %v12579_v57  ;;  %v3129_v51 = vld [vmem:[#allocation2 + $0x28] sm:$0xc]  ;;  %v5672_v57 = vld [vmem:[#allocation8 + $0x900] sm:$0xff] }
 0x57c   :  { %3050 = vmatpush.msra.mxu3 %v12580_v5  ;;  %3090 = vmatpush.msra.mxu1 %v12581_v42  ;;  %v5673_v5 = vld [vmem:[#allocation8 + $0x908] sm:$0xff] }
 0x57e   :  { %3051 = vmatpush.msra.mxu3 %v12582_v20  ;;  %3091 = vmatpush.msra.mxu1 %v12583_v28  ;;  %v5674_v28 = vld [vmem:[#allocation8 + $0x8a0] sm:$0xff] }
 0x580   :  { %3052 = vmatpush.msra.mxu3 %v12584_v50  ;;  %3092 = vmatpush.msra.mxu1 %v12585_v14  ;;  %v5675_v50 = vld [vmem:[#allocation8 + $0x8a8] sm:$0xff] }
 0x582   :  { %3053 = vmatpush.msra.mxu3 %v12586_v13  ;;  %3093 = vmatpush.msra.mxu1 %v12587_v41  ;;  %v12600_v13 = vld [vmem:[#allocation35_spill] sm:$0xff]  ;;  %v12601_v41 = vld [vmem:[#allocation72_spill] sm:$0xff] }
 0x584   :  { %3054 = vmatpush.msra.mxu3 %v12588_v2  ;;  %3094 = vmatpush.msra.mxu1 %v12589_v8  ;;  %v3130_v8 = vld [vmem:[#allocation2 + $0x38] sm:$0xc] }
 0x586   :  { %3055 = vmatpush.msra.mxu3 %v12590_v25  ;;  %3095 = vmatpush.msra.mxu1 %v12591_v3 }
 0x587   :  { %v2699_v0 = vpop.f32.mrf.mxu1 }
 0x588   :  { %3056 = vmatpush.msra.mxu3 %v12592_v53  ;;  %3096 = vmatpush.msra.mxu1 %v12593_v48  ;;  %v2700_v44 = vadd.f32 %v2699_v0, %v2679_v40  ;;  %v12602_v53 = vld [vmem:[#allocation41_spill] sm:$0xff]  ;;  %v12603_v48 = vld [vmem:[#allocation80_spill] sm:$0xff]  ;;  %v12604_v40 = vld [vmem:[#allocation47_spill] sm:$0xff] }
 0x58a   :  { %3057 = vmatpush.msra.mxu3 %v5662_v62  ;;  %3097 = vmatpush.msra.mxu1 %v5663_v33  ;;  %v3136_v34 = vrot.slane %v2700_v44, 6  ;;  %v12605_v62 = vld [vmem:[#allocation88_spill] sm:$0xff] }
 0x58b   :  { %3058 = vmatmul.f32.vlgmr.msra.gmra.mxu3 %v9393_v15  ;;  %3098 = vmatmul.f32.vlgmr.msra.gmra.mxu1 %v9393_v15  ;;  %v12598_v15 = vld [vmem:[#allocation245_spill] sm:$0xff] }
 0x58c   :  { %3194 = vmatpush.msrb.mxu3 %v5664_v58  ;;  %3234 = vmatpush.msrb.mxu1 %v5665_v61  ;;  %v3144_v36 = vadd.f32 %v3136_v34, %v3128_v27  ;;  %v12606_v58 = vld [vmem:[#allocation123_spill] sm:$0xff]  ;;  %v12607_v61 = vld [vmem:[#allocation124_spill] sm:$0xff]  ;;  %v12609_v34 = vld [vmem:[#allocation125_spill] sm:$0xff] }
 0x58d   :  { %v2659_v31 = vpop.f32.mrf.mxu3  ;;  %v12611_v27 = vld [vmem:[#allocation247_spill] sm:$0xff] }
 0x58e   :  { %v2660_v1 = vadd.f32 %v2659_v31, %v2639_v54  ;;  %3195 = vmatpush.msrb.mxu3 %v12594_v38  ;;  %3235 = vmatpush.msrb.mxu1 %v12595_v29  ;;  %4793 = vtanh.f32 %v3144_v36  ;;  %v12608_v31 = vld [vmem:[#allocation38_spill] sm:$0xff] }
 0x590   :  { %3196 = vmatpush.msrb.mxu3 %v12596_v24  ;;  %3236 = vmatpush.msrb.mxu1 %v12597_v43  ;;  %v3135_v56 = vrot.slane %v2660_v1, 6  ;;  %v2779_v52 = vpop.f32.mrf.mxu1  ;;  %v3160_v1 = vrot.slane %v12608_v31, 6  ;;  %v12610_v24 = vld [vmem:[#allocation126_spill] sm:$0xff]  ;;  %v12635_v31 = vld [vmem:[#allocation87_spill] sm:$0xff] }
 0x591   :  { %v2780_v21 = vadd.f32 %v2779_v52, %v2759_v22 }
 0x592   :  { %3197 = vmatpush.msrb.mxu3 %v12598_v15  ;;  %3237 = vmatpush.msrb.mxu1 %v12599_v9  ;;  %v3143_v32 = vadd.f32 %v3135_v56, %v3127_v37  ;;  %v12612_v15 = vld [vmem:[#allocation248_spill] sm:$0xff]  ;;  %v12613_v37 = vld [vmem:[#allocation249_spill] sm:$0xff] }
 0x593   :  { %v3138_v20 = vrot.slane %v2780_v21, 6  ;;  %v12622_v21 = vld [vmem:[#allocation258_spill] sm:$0xff] }
 0x594   :  { %3198 = vmatpush.msrb.mxu3 %v5666_v11  ;;  %3238 = vmatpush.msrb.mxu1 %v5667_v16  ;;  %4795 = vtanh.f32 %v3143_v32  ;;  %v4794_v14 = vpop.eup %4793  ;;  %v12614_v11 = vld [vmem:[#allocation250_spill] sm:$0xff]  ;;  %v12615_v16 = vld [vmem:[#allocation251_spill] sm:$0xff]  ;;  %v12616_v32 = vld [vmem:[#allocation252_spill] sm:$0xff] }
 0x595   :  { %v3152_v25 = vmul.f32 %v4794_v14, %v7226_v4  ;;  %v3146_v3 = vadd.f32 %v3138_v20, %v3130_v8  ;;  %v5676_v20 = vld [vmem:[#allocation8 + $0x5c0] sm:$0xff]  ;;  %v12628_v14 = vld [vmem:[#allocation63_spill] sm:$0xff] }
 0x596   :  { %v2739_v39 = vpop.f32.mrf.mxu3  ;;  %3199 = vmatpush.msrb.mxu3 %v5668_v12  ;;  %3239 = vmatpush.msrb.mxu1 %v5669_v47  ;;  %v12619_v12 = vld [vmem:[#allocation255_spill] sm:$0xff]  ;;  %v12620_v47 = vld [vmem:[#allocation256_spill] sm:$0xff] }
 0x597   :  { %v2740_v35 = vadd.f32 %v2739_v39, %v2719_v7  ;;  %v3156_v44 = vadd.f32 %v3152_v25, %v7229_v30  ;;  %v12617_v7 = vld [vmem:[#allocation253_spill] sm:$0xff]  ;;  %v12618_v39 = vld [vmem:[#allocation254_spill] sm:$0xff]  ;;  %v12630_v8 = vld [vmem:[#allocation59_spill] sm:$0xff] }
 0x598   :  { %3200 = vmatpush.msrb.mxu3 %v5670_v10  ;;  %3240 = vmatpush.msrb.mxu1 %v5671_v6  ;;  %v5680_v25 = vld [vmem:[#allocation8 + $0x500] sm:$0xff] }
 0x599   :  { %v3137_v26 = vrot.slane %v2740_v35, 6  ;;  %v3162_v43 = vmul.f32 %v3160_v1, %v3156_v44  ;;  %v12621_v35 = vld [vmem:[#allocation257_spill] sm:$0xff]  ;;  %v12633_v44 = vld [vmem:[#allocation79_spill] sm:$0xff] }
 0x59a   :  { %3201 = vmatpush.msrb.mxu3 %v5672_v57  ;;  %3241 = vmatpush.msrb.mxu1 %v5673_v5  ;;  %v4796_v2 = vpop.eup %4795  ;;  %v12625_v5 = vld [vmem:[#allocation84_spill] sm:$0xff]  ;;  %v12636_v1 = vld [vmem:[#allocation89_spill] sm:$0xff] }
 0x59b   :  { %v3145_v42 = vadd.f32 %v3137_v26, %v3129_v51  ;;  %v3151_v0 = vmul.f32 %v4796_v2, %v11754_v46  ;;  %v12623_v26 = vld [vmem:[#allocation76_spill] sm:$0xff]  ;;  %v12629_v2 = vld [vmem:[#allocation67_spill] sm:$0xff] }
 0x59c   :  { %3202 = vmatpush.msrb.mxu3 %v5674_v28  ;;  %3242 = vmatpush.msrb.mxu1 %v5675_v50  ;;  %v12624_v51 = vld [vmem:[#allocation44_spill] sm:$0xff]  ;;  %v5677_v28 = vld [vmem:[#allocation8 + $0x5c8] sm:$0xff] }
 0x59d   :  { %4797 = vtanh.f32 %v3145_v42  ;;  %v3155_v38 = vadd.f32 %v3151_v0, %v6883_v19  ;;  %v12626_v42 = vld [vmem:[#allocation51_spill] sm:$0xff]  ;;  %v5682_v0 = vld [vmem:[#allocation8 + $0x4a0] sm:$0xff] }
 0x59e   :  { %3203 = vmatpush.msrb.mxu3 %v12600_v13  ;;  %3243 = vmatpush.msrb.mxu1 %v12601_v41  ;;  %4799 = vtanh.f32 %v3146_v3  ;;  %v12627_v50 = vld [vmem:[#allocation55_spill] sm:$0xff]  ;;  %v5678_v13 = vld [vmem:[#allocation8 + $0x560] sm:$0xff] }
 0x59f   :  { %v5679_v41 = vld [vmem:[#allocation8 + $0x568] sm:$0xff] }
 0x5a0   :  { %3204 = vmatpush.msrb.mxu3 %v12602_v53  ;;  %3244 = vmatpush.msrb.mxu1 %v12603_v48  ;;  %v5681_v3 = vld [vmem:[#allocation8 + $0x508] sm:$0xff] }
 0x5a1   :  { %v12631_v53 = vld [vmem:[#allocation71_spill] sm:$0xff] }
 0x5a2   :  { %3205 = vmatpush.msrb.mxu3 %v12604_v40  ;;  %3245 = vmatpush.msrb.mxu1 %v12605_v62  ;;  %v12632_v48 = vld [vmem:[#allocation75_spill] sm:$0xff]  ;;  %v5684_v62 = vld [vmem:[#allocation8 + $0x440] sm:$0xff] }
 0x5a3   :  { %v4798_v33 = vpop.eup %4797  ;;  %v5683_v40 = vld [vmem:[#allocation8 + $0x4a8] sm:$0xff] }
 0x5a4   :  { %v3153_v54 = vmul.f32 %v4798_v33, %v11755_v63  ;;  %3206 = vmatpush.msrb.mxu3 %v12606_v58  ;;  %3246 = vmatpush.msrb.mxu1 %v12607_v61  ;;  %v4800_v9 = vpop.eup %4799  ;;  %v5685_v33 = vld [vmem:[#allocation8 + $0x448] sm:$0xff]  ;;  %v5686_v58 = vld [vmem:[#allocation8 + $0x3e0] sm:$0xff] }
 0x5a5   :  { %v3154_v52 = vmul.f32 %v4800_v9, %v6897_v49  ;;  %v5687_v61 = vld [vmem:[#allocation8 + $0x3e8] sm:$0xff]  ;;  %v5692_v9 = vld [vmem:[#allocation8 + $0x2c0] sm:$0xff] }
 0x5a6   :  { %v3157_v29 = vadd.f32 %v3153_v54, %v11757_v18  ;;  %3207 = vmatpush.msrb.mxu3 %v12609_v34  ;;  %3247 = vmatpush.msrb.mxu1 %v12610_v24  ;;  %v12634_v54 = vld [vmem:[#allocation83_spill] sm:$0xff]  ;;  %v12637_v34 = vld [vmem:[#allocation90_spill] sm:$0xff]  ;;  %v12638_v24 = vld [vmem:[#allocation92_spill] sm:$0xff] }
 0x5a7   :  { %v3158_v22 = vadd.f32 %v3154_v52, %v6901_v45  ;;  %v5695_v52 = vld [vmem:[#allocation8 + $0x268] sm:$0xff] }
 0x5a8   :  { %v3163_v56 = vmul.f32 %v3157_v29, %v3155_v38  ;;  %3208 = vmatpush.msrb.mxu3 %v12611_v27  ;;  %3248 = vmatpush.msrb.mxu1 %v12612_v15  ;;  %v5688_v38 = vld [vmem:[#allocation8 + $0x380] sm:$0xff]  ;;  %v5689_v29 = vld [vmem:[#allocation8 + $0x388] sm:$0xff] }
 0x5a9   :  { %v12639_v27 = vld [vmem:[#allocation91_spill] sm:$0xff]  ;;  %v12640_v15 = vld [vmem:[#allocation97_spill] sm:$0xff] }
 0x5aa   :  { %v9556_v36 = vadd.f32 %v3163_v56, %v3162_v43  ;;  %3209 = vmatpush.msrb.mxu3 %v12613_v37  ;;  %3249 = vmatpush.msrb.mxu1 %v12614_v11  ;;  %v5690_v43 = vld [vmem:[#allocation8 + $0x320] sm:$0xff]  ;;  %v5691_v56 = vld [vmem:[#allocation8 + $0x328] sm:$0xff] }
 0x5ab   :  { %v5693_v37 = vld [vmem:[#allocation8 + $0x2c8] sm:$0xff]  ;;  %v12641_v11 = vld [vmem:[#allocation93_spill] sm:$0xff] }
 0x5ac   :  { %3274 = vmatpush.msra.mxu3 %v12615_v16  ;;  %3314 = vmatpush.msra.mxu1 %v12616_v32  ;;  %4801 = vtanh.f32 %v9556_v36  ;;  %v12642_v16 = vld [vmem:[#allocation94_spill] sm:$0xff] }
 0x5ad   :  { %v5694_v32 = vld [vmem:[#allocation8 + $0x260] sm:$0xff] }
 0x5ae   :  { %3275 = vmatpush.msra.mxu3 %v12617_v7  ;;  %3315 = vmatpush.msra.mxu1 %v12618_v39  ;;  %v12643_v7 = vld [vmem:[#allocation95_spill] sm:$0xff]  ;;  %v12644_v39 = vld [vmem:[#allocation96_spill] sm:$0xff] }
 0x5b0   :  { %3276 = vmatpush.msra.mxu3 %v12619_v12  ;;  %3316 = vmatpush.msra.mxu1 %v12620_v47  ;;  %v5696_v12 = vld [vmem:[#allocation8 + $0x200] sm:$0xff]  ;;  %v5697_v47 = vld [vmem:[#allocation8 + $0x208] sm:$0xff] }
 0x5b2   :  { %3277 = vmatpush.msra.mxu3 %v12621_v35  ;;  %3317 = vmatpush.msra.mxu1 %v12622_v21  ;;  %v4802_v10 = vpop.eup %4801  ;;  %v12646_v35 = vld [vmem:[#allocation100_spill] sm:$0xff]  ;;  %v5698_v21 = vld [vmem:[#allocation8 + $0x1a0] sm:$0xff] }
 0x5b3   :  { %v3166_v6 = vmul.f32 %v4802_v10, %v3158_v22  ;;  %v12645_v22 = vld [vmem:[#allocation98_spill] sm:$0xff] }
 0x5b4   :  { %3278 = vmatpush.msra.mxu3 %v12623_v26  ;;  %3318 = vmatpush.msra.mxu1 %v12624_v51  ;;  %v5699_v10 = vld [vmem:[#allocation8 + $0x1a8] sm:$0xff]  ;;  %v5702_v51 = vld [vmem:[#allocation8 + $0xe0] sm:$0xff] }
 0x5b5   :  { %v9573_v57 = vrot.slane %v3166_v6, 2  ;;  %v5700_v6 = vld [vmem:[#allocation8 + $0x140] sm:$0xff]  ;;  %v5701_v26 = vld [vmem:[#allocation8 + $0x148] sm:$0xff] }
 0x5b6   :  { %3279 = vmatpush.msra.mxu3 %v12625_v5  ;;  %3319 = vmatpush.msra.mxu1 %v12626_v42  ;;  %v5703_v5 = vld [vmem:[#allocation8 + $0xe8] sm:$0xff]  ;;  %v5704_v42 = vld [vmem:[#allocation8 + $0x80] sm:$0xff] }
 0x5b7   :  { %3190 = vmatmul.f32.vlgmr.msra.gmra.mxu2 %v9573_v57  ;;  %3230 = vmatmul.f32.vlgmr.msra.gmra.mxu0 %v9573_v57 }
 0x5b8   :  { %3334 = vmatpush.msra.mxu2 %v5676_v20  ;;  %3374 = vmatpush.msra.mxu0 %v5677_v28  ;;  %v5705_v20 = vld [vmem:[#allocation8 + $0x88] sm:$0xff]  ;;  %v5706_v28 = vld [vmem:[#allocation8 + $0x20] sm:$0xff] }
 0x5b9   :  { %3280 = vmatpush.msra.mxu3 %v12627_v50  ;;  %3320 = vmatpush.msra.mxu1 %v12628_v14  ;;  %v5707_v50 = vld [vmem:[#allocation8 + $0x28] sm:$0xff]  ;;  %v5708_v14 = vld [vmem:[#allocation8 + $0x5d0] sm:$0xff] }
 0x5ba   :  { %3335 = vmatpush.msra.mxu2 %v5678_v13  ;;  %3375 = vmatpush.msra.mxu0 %v5679_v41  ;;  %v5709_v13 = vld [vmem:[#allocation8 + $0x5d8] sm:$0xff]  ;;  %v5710_v41 = vld [vmem:[#allocation8 + $0x570] sm:$0xff] }
 0x5bb   :  { %3281 = vmatpush.msra.mxu3 %v12629_v2  ;;  %3321 = vmatpush.msra.mxu1 %v12630_v8  ;;  %v5711_v2 = vld [vmem:[#allocation8 + $0x578] sm:$0xff]  ;;  %v5712_v8 = vld [vmem:[#allocation8 + $0x510] sm:$0xff] }
 0x5bc   :  { %3336 = vmatpush.msra.mxu2 %v5680_v25  ;;  %3376 = vmatpush.msra.mxu0 %v5681_v3  ;;  %v5713_v25 = vld [vmem:[#allocation8 + $0x518] sm:$0xff]  ;;  %v5714_v3 = vld [vmem:[#allocation8 + $0x4b0] sm:$0xff] }
 0x5bd   :  { %3282 = vmatpush.msra.mxu3 %v12631_v53  ;;  %3322 = vmatpush.msra.mxu1 %v12632_v48  ;;  %v5715_v53 = vld [vmem:[#allocation8 + $0x4b8] sm:$0xff]  ;;  %v5716_v48 = vld [vmem:[#allocation8 + $0x450] sm:$0xff] }
 0x5be   :  { %3337 = vmatpush.msra.mxu2 %v5682_v0  ;;  %3377 = vmatpush.msra.mxu0 %v5683_v40  ;;  %v5717_v0 = vld [vmem:[#allocation8 + $0x458] sm:$0xff]  ;;  %v5718_v40 = vld [vmem:[#allocation8 + $0x3f0] sm:$0xff] }
 0x5bf   :  { %3270 = vmatmul.f32.vlgmr.msrb.gmra.mxu2 %v9573_v57  ;;  %3310 = vmatmul.f32.vlgmr.msrb.gmra.mxu0 %v9573_v57 }
 0x5c0   :  { %3338 = vmatpush.msra.mxu2 %v5684_v62  ;;  %3378 = vmatpush.msra.mxu0 %v5685_v33  ;;  %v5719_v62 = vld [vmem:[#allocation8 + $0x3f8] sm:$0xff]  ;;  %v5720_v33 = vld [vmem:[#allocation8 + $0x390] sm:$0xff] }
 0x5c1   :  { %3283 = vmatpush.msra.mxu3 %v12633_v44  ;;  %3323 = vmatpush.msra.mxu1 %v12634_v54  ;;  %v5721_v44 = vld [vmem:[#allocation8 + $0x398] sm:$0xff]  ;;  %v5722_v54 = vld [vmem:[#allocation8 + $0x330] sm:$0xff] }
 0x5c2   :  { %3339 = vmatpush.msra.mxu2 %v5686_v58  ;;  %3379 = vmatpush.msra.mxu0 %v5687_v61  ;;  %v5723_v58 = vld [vmem:[#allocation8 + $0x338] sm:$0xff]  ;;  %v5724_v61 = vld [vmem:[#allocation8 + $0x2d0] sm:$0xff] }
 0x5c3   :  { %3284 = vmatpush.msra.mxu3 %v12635_v31  ;;  %3324 = vmatpush.msra.mxu1 %v12636_v1  ;;  %v5725_v31 = vld [vmem:[#allocation8 + $0x2d8] sm:$0xff]  ;;  %v5726_v1 = vld [vmem:[#allocation8 + $0x270] sm:$0xff] }
 0x5c4   :  { %3340 = vmatpush.msra.mxu2 %v5688_v38  ;;  %3380 = vmatpush.msra.mxu0 %v5689_v29  ;;  %v5727_v38 = vld [vmem:[#allocation8 + $0x278] sm:$0xff]  ;;  %v5728_v29 = vld [vmem:[#allocation8 + $0x210] sm:$0xff] }
 0x5c5   :  { %3285 = vmatpush.msra.mxu3 %v12637_v34  ;;  %3325 = vmatpush.msra.mxu1 %v12638_v24  ;;  %v5729_v34 = vld [vmem:[#allocation8 + $0x218] sm:$0xff]  ;;  %v5730_v24 = vld [vmem:[#allocation8 + $0x1b0] sm:$0xff] }
 0x5c6   :  { %3341 = vmatpush.msra.mxu2 %v5690_v43  ;;  %3381 = vmatpush.msra.mxu0 %v5691_v56  ;;  %v5731_v43 = vld [vmem:[#allocation8 + $0x1b8] sm:$0xff]  ;;  %v2859_v56 = vpop.f32.mrf.mxu1 }
 0x5c7   :  { %3286 = vmatpush.msra.mxu3 %v12639_v27  ;;  %3326 = vmatpush.msra.mxu1 %v12640_v15  ;;  %v5732_v27 = vld [vmem:[#allocation8 + $0x150] sm:$0xff]  ;;  %v5733_v15 = vld [vmem:[#allocation8 + $0x158] sm:$0xff] }
 0x5c8   :  { %3342 = vmatpush.msra.mxu2 %v5692_v9  ;;  %3382 = vmatpush.msra.mxu0 %v5693_v37  ;;  %v2839_v9 = vpop.f32.mrf.mxu0  ;;  %v2819_v37 = vpop.f32.mrf.mxu3 }
 0x5c9   :  { %3287 = vmatpush.msra.mxu3 %v12641_v11  ;;  %3327 = vmatpush.msra.mxu1 %v12642_v16  ;;  %v5734_v11 = vld [vmem:[#allocation8 + $0xf0] sm:$0xff]  ;;  %v5735_v16 = vld [vmem:[#allocation8 + $0xf8] sm:$0xff] }
 0x5ca   :  { %3343 = vmatpush.msra.mxu2 %v5694_v32  ;;  %3383 = vmatpush.msra.mxu0 %v5695_v52  ;;  %v2799_v32 = vpop.f32.mrf.mxu2  ;;  %v5736_v52 = vld [vmem:[#allocation8 + $0x90] sm:$0xff] }
 0x5cb   :  { %3288 = vmatpush.msra.mxu3 %v12643_v7  ;;  %3328 = vmatpush.msra.mxu1 %v12644_v39  ;;  %v5737_v7 = vld [vmem:[#allocation8 + $0x98] sm:$0xff]  ;;  %v5738_v39 = vld [vmem:[#allocation8 + $0x30] sm:$0xff] }
 0x5cc   :  { %3344 = vmatpush.msra.mxu2 %v5696_v12  ;;  %3384 = vmatpush.msra.mxu0 %v5697_v47  ;;  %v5739_v12 = vld [vmem:[#allocation8 + $0x38] sm:$0xff] }
 0x5cd   :  { %3289 = vmatpush.msra.mxu3 %v12645_v22  ;;  %3329 = vmatpush.msra.mxu1 %v12646_v35  ;;  %v5740_v22 = vld [vmem:[#allocation8 + $0x5e0] sm:$0xff]  ;;  %v5741_v35 = vld [vmem:[#allocation8 + $0x5e8] sm:$0xff] }
 0x5ce   :  { %3345 = vmatpush.msra.mxu2 %v5698_v21  ;;  %3385 = vmatpush.msra.mxu0 %v5699_v10  ;;  %v9605_v47 = vpop.f32.mrf.mxu1 }
 0x5d0   :  { %3346 = vmatpush.msra.mxu2 %v5700_v6  ;;  %3386 = vmatpush.msra.mxu0 %v5701_v26  ;;  %v9607_v21 = vpop.f32.mrf.mxu0  ;;  %v2899_v10 = vpop.f32.mrf.mxu3  ;;  %v5742_v6 = vld [vmem:[#allocation8 + $0x580] sm:$0xff]  ;;  %v5743_v26 = vld [vmem:[#allocation8 + $0x588] sm:$0xff] }
 0x5d2   :  { %3347 = vmatpush.msra.mxu2 %v5702_v51  ;;  %3387 = vmatpush.msra.mxu0 %v5703_v5  ;;  %v2879_v51 = vpop.f32.mrf.mxu2  ;;  %v5744_v5 = vld [vmem:[#allocation8 + $0x520] sm:$0xff] }
 0x5d4   :  { %3348 = vmatpush.msra.mxu2 %v5704_v42  ;;  %3388 = vmatpush.msra.mxu0 %v5705_v20  ;;  %v5745_v42 = vld [vmem:[#allocation8 + $0x528] sm:$0xff]  ;;  %v5746_v20 = vld [vmem:[#allocation8 + $0x4c0] sm:$0xff] }
 0x5d6   :  { %3349 = vmatpush.msra.mxu2 %v5706_v28  ;;  %3389 = vmatpush.msra.mxu0 %v5707_v50  ;;  %v5747_v28 = vld [vmem:[#allocation8 + $0x4c8] sm:$0xff] }
 0x5d7   :  { %3350 = vmatmul.f32.vlgmr.msra.gmra.mxu2 %v9573_v57  ;;  %3390 = vmatmul.f32.vlgmr.msra.gmra.mxu0 %v9573_v57 }
 0x5d8   :  { %3414 = vmatpush.msrb.mxu2 %v5708_v14  ;;  %3454 = vmatpush.msrb.mxu0 %v5709_v13  ;;  %v5748_v14 = vld [vmem:[#allocation8 + $0x460] sm:$0xff]  ;;  %v5749_v13 = vld [vmem:[#allocation8 + $0x468] sm:$0xff] }
 0x5da   :  { %3415 = vmatpush.msrb.mxu2 %v5710_v41  ;;  %3455 = vmatpush.msrb.mxu0 %v5711_v2  ;;  %v2999_v41 = vpop.f32.mrf.mxu0 }
 0x5dc   :  { %3416 = vmatpush.msrb.mxu2 %v5712_v8  ;;  %3456 = vmatpush.msrb.mxu0 %v5713_v25  ;;  %v5750_v8 = vld [vmem:[#allocation8 + $0x400] sm:$0xff]  ;;  %v5751_v25 = vld [vmem:[#allocation8 + $0x408] sm:$0xff] }
 0x5de   :  { %3417 = vmatpush.msrb.mxu2 %v5714_v3  ;;  %3457 = vmatpush.msrb.mxu0 %v5715_v53  ;;  %v2959_v53 = vpop.f32.mrf.mxu2 }
 0x5e0   :  { %3418 = vmatpush.msrb.mxu2 %v5716_v48  ;;  %3458 = vmatpush.msrb.mxu0 %v5717_v0  ;;  %v5752_v48 = vld [vmem:[#allocation8 + $0x3a0] sm:$0xff]  ;;  %v5753_v0 = vld [vmem:[#allocation8 + $0x3a8] sm:$0xff] }
 0x5e2   :  { %3419 = vmatpush.msrb.mxu2 %v5718_v40  ;;  %3459 = vmatpush.msrb.mxu0 %v5719_v62  ;;  %v2860_v40 = vadd.f32 %v2859_v56, %v2839_v9 }
 0x5e4   :  { %3420 = vmatpush.msrb.mxu2 %v5720_v33  ;;  %3460 = vmatpush.msrb.mxu0 %v5721_v44  ;;  %v5754_v33 = vld [vmem:[#allocation8 + $0x340] sm:$0xff]  ;;  %v5755_v44 = vld [vmem:[#allocation8 + $0x348] sm:$0xff] }
 0x5e6   :  { %3421 = vmatpush.msrb.mxu2 %v5722_v54  ;;  %3461 = vmatpush.msrb.mxu0 %v5723_v58  ;;  %v2820_v54 = vadd.f32 %v2819_v37, %v2799_v32  ;;  %v5762_v37 = vld [vmem:[#allocation8 + $0x1c0] sm:$0xff]  ;;  %v2900_v32 = vadd.f32 %v2899_v10, %v2879_v51  ;;  %v5769_v51 = vld [vmem:[#allocation8 + $0xa8] sm:$0xff] }
 0x5e7   :  { %v5768_v10 = vld [vmem:[#allocation8 + $0xa0] sm:$0xff] }
 0x5e8   :  { %3422 = vmatpush.msrb.mxu2 %v5724_v61  ;;  %3462 = vmatpush.msrb.mxu0 %v5725_v31  ;;  %v3019_v50 = vpop.f32.mrf.mxu1  ;;  %v5756_v61 = vld [vmem:[#allocation8 + $0x2e0] sm:$0xff]  ;;  %v5757_v31 = vld [vmem:[#allocation8 + $0x2e8] sm:$0xff] }
 0x5e9   :  { %v3020_v3 = vadd.f32 %v3019_v50, %v2999_v41  ;;  %v5771_v50 = vld [vmem:[#allocation8 + $0x48] sm:$0xff]  ;;  %v5773_v41 = vld [vmem:[#allocation8 + $0x5f8] sm:$0xff] }
 0x5ea   :  { %3423 = vmatpush.msrb.mxu2 %v5726_v1  ;;  %3463 = vmatpush.msrb.mxu0 %v5727_v38  ;;  %v5758_v38 = vld [vmem:[#allocation8 + $0x280] sm:$0xff] }
 0x5eb   :  { %v3103_v58 = vadd.f32 %v3020_v3, %v2860_v40  ;;  %v5777_v40 = vld [vmem:[#allocation8 + $0x538] sm:$0xff] }
 0x5ec   :  { %3424 = vmatpush.msrb.mxu2 %v5728_v29  ;;  %3464 = vmatpush.msrb.mxu0 %v5729_v34  ;;  %v5759_v29 = vld [vmem:[#allocation8 + $0x288] sm:$0xff] }
 0x5ed   :  { %v3107_v34 = vadd.f32 %v3103_v58, %v12464_v59 }
 0x5ee   :  { %3425 = vmatpush.msrb.mxu2 %v5730_v24  ;;  %3465 = vmatpush.msrb.mxu0 %v5731_v43  ;;  %v2979_v2 = vpop.f32.mrf.mxu3  ;;  %v5760_v24 = vld [vmem:[#allocation8 + $0x220] sm:$0xff]  ;;  %v5761_v43 = vld [vmem:[#allocation8 + $0x228] sm:$0xff] }
 0x5ef   :  { %v2980_v62 = vadd.f32 %v2979_v2, %v2959_v53  ;;  %4803 = vtanh.f32 %v3107_v34  ;;  %v5782_v34 = vld [vmem:[#allocation8 + $0x410] sm:$0xff] }
 0x5f0   :  { %3426 = vmatpush.msrb.mxu2 %v5732_v27  ;;  %3466 = vmatpush.msrb.mxu0 %v5733_v15  ;;  %v3039_v15 = vpop.f32.mrf.mxu2 }
 0x5f1   :  { %v3102_v1 = vadd.f32 %v2980_v62, %v2820_v54  ;;  %v5779_v54 = vld [vmem:[#allocation8 + $0x4d8] sm:$0xff] }
 0x5f2   :  { %3427 = vmatpush.msrb.mxu2 %v5734_v11  ;;  %3467 = vmatpush.msrb.mxu0 %v5735_v16  ;;  %v5763_v11 = vld [vmem:[#allocation8 + $0x1c8] sm:$0xff]  ;;  %v3079_v16 = vpop.f32.mrf.mxu0 }
 0x5f3   :  { %v3106_v56 = vadd.f32 %v3102_v1, %v12465_v60  ;;  %v5781_v1 = vld [vmem:[#allocation8 + $0x478] sm:$0xff] }
 0x5f4   :  { %3428 = vmatpush.msrb.mxu2 %v5736_v52  ;;  %3468 = vmatpush.msrb.mxu0 %v5737_v7 }
 0x5f5   :  { %4805 = vtanh.f32 %v3106_v56  ;;  %v5785_v56 = vld [vmem:[#allocation8 + $0x3b8] sm:$0xff] }
 0x5f6   :  { %3429 = vmatpush.msrb.mxu2 %v5738_v39  ;;  %3469 = vmatpush.msrb.mxu0 %v5739_v12  ;;  %v5764_v39 = vld [vmem:[#allocation8 + $0x160] sm:$0xff]  ;;  %v5765_v12 = vld [vmem:[#allocation8 + $0x168] sm:$0xff] }
 0x5f7   :  { %3430 = vmatmul.f32.vlgmr.msrb.gmra.mxu2 %v9573_v57  ;;  %3470 = vmatmul.f32.vlgmr.msrb.gmra.mxu0 %v9573_v57 }
 0x5f8   :  { %3494 = vmatpush.msra.mxu2 %v5740_v22  ;;  %3534 = vmatpush.msra.mxu0 %v5741_v35  ;;  %v2940_v35 = vadd.f32 %v9605_v47, %v9607_v21 }
 0x5fa   :  { %3495 = vmatpush.msra.mxu2 %v5742_v6  ;;  %3535 = vmatpush.msra.mxu0 %v5743_v26  ;;  %v5766_v6 = vld [vmem:[#allocation8 + $0x100] sm:$0xff]  ;;  %v5767_v26 = vld [vmem:[#allocation8 + $0x108] sm:$0xff] }
 0x5fc   :  { %3496 = vmatpush.msra.mxu2 %v5744_v5  ;;  %3536 = vmatpush.msra.mxu0 %v5745_v42 }
 0x5fe   :  { %3497 = vmatpush.msra.mxu2 %v5746_v20  ;;  %3537 = vmatpush.msra.mxu0 %v5747_v28  ;;  %v4804_v20 = vpop.eup %4803  ;;  %v5770_v28 = vld [vmem:[#allocation8 + $0x40] sm:$0xff] }
 0x5ff   :  { %v3115_v47 = vmul.f32 %v4804_v20, %v7226_v4  ;;  %v5800_v20 = vld [vmem:[#allocation8 + $0x110] sm:$0xff] }
 0x600   :  { %3498 = vmatpush.msra.mxu2 %v5748_v14  ;;  %3538 = vmatpush.msra.mxu0 %v5749_v13  ;;  %v4806_v14 = vpop.eup %4805  ;;  %v5772_v13 = vld [vmem:[#allocation8 + $0x5f0] sm:$0xff] }
 0x601   :  { %v3114_v2 = vmul.f32 %v4806_v14, %v11754_v46  ;;  %v3119_v53 = vadd.f32 %v3115_v47, %v7229_v30  ;;  %v5803_v14 = vld [vmem:[#allocation8 + $0xb68] sm:$0xff]  ;;  %v5804_v47 = vld [vmem:[#allocation8 + $0xb0] sm:$0xff] }
 0x602   :  { %3499 = vmatpush.msra.mxu2 %v5750_v8  ;;  %3539 = vmatpush.msra.mxu0 %v5751_v25  ;;  %v5774_v8 = vld [vmem:[#allocation8 + $0x590] sm:$0xff]  ;;  %v5775_v25 = vld [vmem:[#allocation8 + $0x598] sm:$0xff] }
 0x603   :  { %v3118_v62 = vadd.f32 %v3114_v2, %v6883_v19  ;;  %v3122_v58 = vmul.f32 %v3119_v53, %v9378_v17  ;;  %v5808_v2 = vld [vmem:[#allocation8 + $0x50] sm:$0xff]  ;;  %v5812_v53 = vld [vmem:[#allocation8 + $0xa40] sm:$0xff] }
 0x604   :  { %3500 = vmatpush.msra.mxu2 %v5752_v48  ;;  %3540 = vmatpush.msra.mxu0 %v5753_v0  ;;  %v5776_v0 = vld [vmem:[#allocation8 + $0x530] sm:$0xff] }
 0x606   :  { %3501 = vmatpush.msra.mxu2 %v5754_v33  ;;  %3541 = vmatpush.msra.mxu0 %v5755_v44  ;;  %v5778_v44 = vld [vmem:[#allocation8 + $0x4d0] sm:$0xff] }
 0x608   :  { %3502 = vmatpush.msra.mxu2 %v5756_v61  ;;  %3542 = vmatpush.msra.mxu0 %v5757_v31  ;;  %v3099_v27 = vpop.f32.mrf.mxu1  ;;  %v5780_v31 = vld [vmem:[#allocation8 + $0x470] sm:$0xff] }
 0x609   :  { %v3100_v7 = vadd.f32 %v3099_v27, %v3079_v16  ;;  %v5786_v27 = vld [vmem:[#allocation8 + $0x350] sm:$0xff] }
 0x60a   :  { %3503 = vmatpush.msra.mxu2 %v5758_v38  ;;  %3543 = vmatpush.msra.mxu0 %v5759_v29 }
 0x60b   :  { %v3105_v42 = vadd.f32 %v3100_v7, %v2940_v35  ;;  %v5794_v35 = vld [vmem:[#allocation8 + $0x1d0] sm:$0xff] }
 0x60c   :  { %3504 = vmatpush.msra.mxu2 %v5760_v24  ;;  %3544 = vmatpush.msra.mxu0 %v5761_v43  ;;  %v5783_v24 = vld [vmem:[#allocation8 + $0x418] sm:$0xff]  ;;  %v5784_v43 = vld [vmem:[#allocation8 + $0x3b0] sm:$0xff] }
 0x60d   :  { %v3109_v21 = vadd.f32 %v3105_v42, %v12471_v23  ;;  %v5797_v42 = vld [vmem:[#allocation8 + $0x178] sm:$0xff] }
 0x60e   :  { %v3059_v9 = vpop.f32.mrf.mxu3  ;;  %3505 = vmatpush.msra.mxu2 %v5762_v37  ;;  %3545 = vmatpush.msra.mxu0 %v5763_v11  ;;  %v5789_v37 = vld [vmem:[#allocation8 + $0x2f8] sm:$0xff] }
 0x60f   :  { %v3060_v52 = vadd.f32 %v3059_v9, %v3039_v15  ;;  %v5787_v15 = vld [vmem:[#allocation8 + $0x358] sm:$0xff]  ;;  %v5788_v9 = vld [vmem:[#allocation8 + $0x2f0] sm:$0xff] }
 0x610   :  { %3506 = vmatpush.msra.mxu2 %v5764_v39  ;;  %3546 = vmatpush.msra.mxu0 %v5765_v12  ;;  %v5792_v39 = vld [vmem:[#allocation8 + $0x230] sm:$0xff]  ;;  %v5793_v12 = vld [vmem:[#allocation8 + $0x238] sm:$0xff] }
 0x611   :  { %v3104_v22 = vadd.f32 %v3060_v52, %v2900_v32  ;;  %v5790_v32 = vld [vmem:[#allocation8 + $0x290] sm:$0xff]  ;;  %v5791_v52 = vld [vmem:[#allocation8 + $0x298] sm:$0xff] }
 0x612   :  { %3507 = vmatpush.msra.mxu2 %v5766_v6  ;;  %3547 = vmatpush.msra.mxu0 %v5767_v26  ;;  %v5795_v6 = vld [vmem:[#allocation8 + $0x1d8] sm:$0xff] }
 0x613   :  { %v3108_v5 = vadd.f32 %v3104_v22, %v12466_v55 }
 0x614   :  { %3508 = vmatpush.msra.mxu2 %v5768_v10  ;;  %3548 = vmatpush.msra.mxu0 %v5769_v51  ;;  %v5798_v10 = vld [vmem:[#allocation8 + $0xbc0] sm:$0xff]  ;;  %v5799_v51 = vld [vmem:[#allocation8 + $0xbc8] sm:$0xff] }
 0x615   :  { %4807 = vtanh.f32 %v3108_v5  ;;  %v5796_v5 = vld [vmem:[#allocation8 + $0x170] sm:$0xff] }
 0x616   :  { %3509 = vmatpush.msra.mxu2 %v5770_v28  ;;  %3549 = vmatpush.msra.mxu0 %v5771_v50  ;;  %4809 = vtanh.f32 %v3109_v21  ;;  %v5801_v28 = vld [vmem:[#allocation8 + $0x118] sm:$0xff]  ;;  %v5802_v50 = vld [vmem:[#allocation8 + $0xb60] sm:$0xff] }
 0x617   :  { %3510 = vmatmul.f32.vlgmr.msra.gmra.mxu2 %v9573_v57  ;;  %3550 = vmatmul.f32.vlgmr.msra.gmra.mxu0 %v9573_v57  ;;  %v5805_v21 = vld [vmem:[#allocation8 + $0xb8] sm:$0xff] }
 0x618   :  { %3574 = vmatpush.msrb.mxu2 %v5772_v13  ;;  %3614 = vmatpush.msrb.mxu0 %v5773_v41  ;;  %v5806_v13 = vld [vmem:[#allocation8 + $0xb00] sm:$0xff]  ;;  %v5807_v41 = vld [vmem:[#allocation8 + $0xb08] sm:$0xff] }
 0x61a   :  { %3575 = vmatpush.msrb.mxu2 %v5774_v8  ;;  %3615 = vmatpush.msrb.mxu0 %v5775_v25  ;;  %v5809_v8 = vld [vmem:[#allocation8 + $0x58] sm:$0xff]  ;;  %v5810_v25 = vld [vmem:[#allocation8 + $0xaa0] sm:$0xff] }
 0x61b   :  { %v4808_v3 = vpop.eup %4807 }
 0x61c   :  { %v3116_v48 = vmul.f32 %v4808_v3, %v11755_v63  ;;  %3576 = vmatpush.msrb.mxu2 %v5776_v0  ;;  %3616 = vmatpush.msrb.mxu0 %v5777_v40  ;;  %v4810_v38 = vpop.eup %4809  ;;  %v5811_v3 = vld [vmem:[#allocation8 + $0xaa8] sm:$0xff]  ;;  %v5814_v0 = vld [vmem:[#allocation8 + $0x5a0] sm:$0xff] }
 0x61d   :  { %v3117_v17 = vmul.f32 %v4810_v38, %v6897_v49  ;;  %v5815_v40 = vld [vmem:[#allocation8 + $0x5a8] sm:$0xff] }
 0x61e   :  { %v3120_v33 = vadd.f32 %v3116_v48, %v11757_v18  ;;  %3577 = vmatpush.msrb.mxu2 %v5778_v44  ;;  %3617 = vmatpush.msrb.mxu0 %v5779_v54  ;;  %v5813_v48 = vld [vmem:[#allocation8 + $0xa48] sm:$0xff]  ;;  %v5818_v44 = vld [vmem:[#allocation8 + $0x540] sm:$0xff] }
 0x61f   :  { %v3121_v11 = vadd.f32 %v3117_v17, %v6901_v45  ;;  %v5819_v54 = vld [vmem:[#allocation8 + $0x548] sm:$0xff]  ;;  %v5830_v17 = vld [vmem:[#allocation8 + $0x420] sm:$0xff] }
 0x620   :  { %v3123_v61 = vmul.f32 %v3120_v33, %v3118_v62  ;;  %3578 = vmatpush.msrb.mxu2 %v5780_v31  ;;  %3618 = vmatpush.msrb.mxu0 %v5781_v1  ;;  %v5816_v62 = vld [vmem:[#allocation8 + $0x9e0] sm:$0xff]  ;;  %v5817_v33 = vld [vmem:[#allocation8 + $0x9e8] sm:$0xff] }
 0x621   :  { %v5823_v31 = vld [vmem:[#allocation8 + $0x4e8] sm:$0xff]  ;;  %v5824_v1 = vld [vmem:[#allocation8 + $0x920] sm:$0xff] }
 0x622   :  { %v9624_v29 = vadd.f32 %v3123_v61, %v3122_v58  ;;  %3579 = vmatpush.msrb.mxu2 %v5782_v34  ;;  %3619 = vmatpush.msrb.mxu0 %v5783_v24  ;;  %v5821_v58 = vld [vmem:[#allocation8 + $0x988] sm:$0xff]  ;;  %v5822_v61 = vld [vmem:[#allocation8 + $0x4e0] sm:$0xff] }
 0x623   :  { %v5825_v38 = vld [vmem:[#allocation8 + $0x928] sm:$0xff]  ;;  %v5826_v34 = vld [vmem:[#allocation8 + $0x480] sm:$0xff] }
 0x624   :  { %4811 = vtanh.f32 %v9624_v29  ;;  %3580 = vmatpush.msrb.mxu2 %v5784_v43  ;;  %3620 = vmatpush.msrb.mxu0 %v5785_v56  ;;  %v5827_v24 = vld [vmem:[#allocation8 + $0x488] sm:$0xff]  ;;  %v5828_v43 = vld [vmem:[#allocation8 + $0x8c0] sm:$0xff] }
 0x625   :  { %v5829_v56 = vld [vmem:[#allocation8 + $0x8c8] sm:$0xff] }
 0x626   :  { %3581 = vmatpush.msrb.mxu2 %v5786_v27  ;;  %3621 = vmatpush.msrb.mxu0 %v5787_v15  ;;  %v5831_v27 = vld [vmem:[#allocation8 + $0x428] sm:$0xff]  ;;  %v5832_v15 = vld [vmem:[#allocation8 + $0x860] sm:$0xff] }
 0x628   :  { %3582 = vmatpush.msrb.mxu2 %v5788_v9  ;;  %3622 = vmatpush.msrb.mxu0 %v5789_v37  ;;  %v5833_v9 = vld [vmem:[#allocation8 + $0x868] sm:$0xff]  ;;  %v5834_v37 = vld [vmem:[#allocation8 + $0x3c0] sm:$0xff] }
 0x62a   :  { %v4812_v16 = vpop.eup %4811  ;;  %3583 = vmatpush.msrb.mxu2 %v5790_v32  ;;  %3623 = vmatpush.msrb.mxu0 %v5791_v52  ;;  %v5837_v32 = vld [vmem:[#allocation8 + $0x808] sm:$0xff]  ;;  %v5838_v52 = vld [vmem:[#allocation8 + $0x360] sm:$0xff] }
 0x62b   :  { %v3126_v7 = vmul.f32 %v4812_v16, %v3121_v11  ;;  %v5835_v11 = vld [vmem:[#allocation8 + $0x3c8] sm:$0xff]  ;;  %v5836_v16 = vld [vmem:[#allocation8 + $0x800] sm:$0xff] }
 0x62c   :  { %3584 = vmatpush.msrb.mxu2 %v5792_v39  ;;  %3624 = vmatpush.msrb.mxu0 %v5793_v12  ;;  %v5840_v39 = vld [vmem:[#allocation8 + $0x7a0] sm:$0xff]  ;;  %v5841_v12 = vld [vmem:[#allocation8 + $0x7a8] sm:$0xff] }
 0x62d   :  { %v3168_v22 = vrot.slane %v3126_v7, 6  ;;  %v5839_v7 = vld [vmem:[#allocation8 + $0x368] sm:$0xff] }
 0x62e   :  { %3585 = vmatpush.msrb.mxu2 %v5794_v35  ;;  %3625 = vmatpush.msrb.mxu0 %v5795_v6  ;;  %v5843_v35 = vld [vmem:[#allocation8 + $0x308] sm:$0xff]  ;;  %v5844_v6 = vld [vmem:[#allocation8 + $0x740] sm:$0xff] }
 0x62f   :  { %v9629_v26 = vrot.slane %v3168_v22, 2  ;;  %v5842_v22 = vld [vmem:[#allocation8 + $0x300] sm:$0xff] }
 0x630   :  { %3586 = vmatpush.msrb.mxu2 %v5796_v5  ;;  %3626 = vmatpush.msrb.mxu0 %v5797_v42  ;;  %v5845_v5 = vld [vmem:[#allocation8 + $0x748] sm:$0xff]  ;;  %v5846_v42 = vld [vmem:[#allocation8 + $0x2a0] sm:$0xff] }
 0x631   :  { %3210 = vmatmul.f32.vlgmr.msrb.gmra.mxu3 %v9629_v26  ;;  %3250 = vmatmul.f32.vlgmr.msrb.gmra.mxu1 %v9629_v26 }
 0x632   :  { %3354 = vmatpush.msrb.mxu3 %v5798_v10  ;;  %3394 = vmatpush.msrb.mxu1 %v5799_v51  ;;  %v5847_v10 = vld [vmem:[#allocation8 + $0x2a8] sm:$0xff]  ;;  %v5848_v51 = vld [vmem:[#allocation8 + $0x6e0] sm:$0xff] }
 0x633   :  { %3587 = vmatpush.msrb.mxu2 %v5800_v20  ;;  %3627 = vmatpush.msrb.mxu0 %v5801_v28  ;;  %v5849_v20 = vld [vmem:[#allocation8 + $0x6e8] sm:$0xff]  ;;  %v5850_v28 = vld [vmem:[#allocation8 + $0x240] sm:$0xff] }
 0x634   :  { %3355 = vmatpush.msrb.mxu3 %v5802_v50  ;;  %3395 = vmatpush.msrb.mxu1 %v5803_v14  ;;  %v5851_v50 = vld [vmem:[#allocation8 + $0x248] sm:$0xff]  ;;  %v5852_v14 = vld [vmem:[#allocation8 + $0x680] sm:$0xff] }
 0x635   :  { %3588 = vmatpush.msrb.mxu2 %v5804_v47  ;;  %3628 = vmatpush.msrb.mxu0 %v5805_v21  ;;  %v5853_v47 = vld [vmem:[#allocation8 + $0x688] sm:$0xff]  ;;  %v5854_v21 = vld [vmem:[#allocation8 + $0x1e0] sm:$0xff] }
 0x636   :  { %3356 = vmatpush.msrb.mxu3 %v5806_v13  ;;  %3396 = vmatpush.msrb.mxu1 %v5807_v41  ;;  %v5855_v13 = vld [vmem:[#allocation8 + $0x1e8] sm:$0xff]  ;;  %v5856_v41 = vld [vmem:[#allocation8 + $0x620] sm:$0xff] }
 0x637   :  { %3589 = vmatpush.msrb.mxu2 %v5808_v2  ;;  %3629 = vmatpush.msrb.mxu0 %v5809_v8  ;;  %v5857_v2 = vld [vmem:[#allocation8 + $0x628] sm:$0xff]  ;;  %v5858_v8 = vld [vmem:[#allocation8 + $0xbd0] sm:$0xff] }
 0x638   :  { %3357 = vmatpush.msrb.mxu3 %v5810_v25  ;;  %3397 = vmatpush.msrb.mxu1 %v5811_v3  ;;  %v5859_v25 = vld [vmem:[#allocation8 + $0xbd8] sm:$0xff]  ;;  %v5860_v3 = vld [vmem:[#allocation8 + $0x180] sm:$0xff] }
 0x639   :  { %3590 = vmatmul.f32.vlgmr.msrb.gmra.mxu2 %v9573_v57  ;;  %3630 = vmatmul.f32.vlgmr.msrb.gmra.mxu0 %v9573_v57  ;;  %v5820_v57 = vld [vmem:[#allocation8 + $0x980] sm:$0xff] }
 0x63a   :  { %3290 = vmatmul.f32.vlgmr.msra.gmra.mxu3 %v9629_v26  ;;  %3330 = vmatmul.f32.vlgmr.msra.gmra.mxu1 %v9629_v26 }
 0x63b   :  { %3358 = vmatpush.msrb.mxu3 %v5812_v53  ;;  %3398 = vmatpush.msrb.mxu1 %v5813_v48  ;;  %v5861_v53 = vld [vmem:[#allocation8 + $0x188] sm:$0xff]  ;;  %v5862_v48 = vld [vmem:[#allocation8 + $0xb70] sm:$0xff] }
 0x63c   :  { %3726 = vmatpush.msra.mxu2 %v5814_v0  ;;  %3766 = vmatpush.msra.mxu0 %v5815_v40  ;;  %v5863_v0 = vld [vmem:[#allocation8 + $0xb78] sm:$0xff]  ;;  %v5864_v40 = vld [vmem:[#allocation8 + $0x120] sm:$0xff] }
 0x63d   :  { %3359 = vmatpush.msrb.mxu3 %v5816_v62  ;;  %3399 = vmatpush.msrb.mxu1 %v5817_v33  ;;  %v5865_v62 = vld [vmem:[#allocation8 + $0x128] sm:$0xff]  ;;  %v5866_v33 = vld [vmem:[#allocation8 + $0xb10] sm:$0xff] }
 0x63e   :  { %3727 = vmatpush.msra.mxu2 %v5818_v44  ;;  %3767 = vmatpush.msra.mxu0 %v5819_v54  ;;  %v5867_v44 = vld [vmem:[#allocation8 + $0xb18] sm:$0xff]  ;;  %v5868_v54 = vld [vmem:[#allocation8 + $0xc0] sm:$0xff] }
 0x63f   :  { %3360 = vmatpush.msrb.mxu3 %v5820_v57  ;;  %3400 = vmatpush.msrb.mxu1 %v5821_v58  ;;  %v5869_v57 = vld [vmem:[#allocation8 + $0xc8] sm:$0xff]  ;;  %v5870_v58 = vld [vmem:[#allocation8 + $0xab0] sm:$0xff] }
 0x640   :  { %3728 = vmatpush.msra.mxu2 %v5822_v61  ;;  %3768 = vmatpush.msra.mxu0 %v5823_v31  ;;  %v5871_v61 = vld [vmem:[#allocation8 + $0xab8] sm:$0xff]  ;;  %v5872_v31 = vld [vmem:[#allocation8 + $0x60] sm:$0xff] }
 0x641   :  { %3361 = vmatpush.msrb.mxu3 %v5824_v1  ;;  %3401 = vmatpush.msrb.mxu1 %v5825_v38  ;;  %v5873_v1 = vld [vmem:[#allocation8 + $0x68] sm:$0xff]  ;;  %v5874_v38 = vld [vmem:[#allocation8 + $0xa50] sm:$0xff] }
 0x642   :  { %3729 = vmatpush.msra.mxu2 %v5826_v34  ;;  %3769 = vmatpush.msra.mxu0 %v5827_v24  ;;  %v5875_v34 = vld [vmem:[#allocation8 + $0xa58] sm:$0xff]  ;;  %v5876_v24 = vld [vmem:[#allocation8] sm:$0xff] }
 0x643   :  { %3362 = vmatpush.msrb.mxu3 %v5828_v43  ;;  %3402 = vmatpush.msrb.mxu1 %v5829_v56  ;;  %v5877_v43 = vld [vmem:[#allocation8 + $0x8] sm:$0xff]  ;;  %v5878_v56 = vld [vmem:[#allocation8 + $0x9f0] sm:$0xff] }
 0x644   :  { %3730 = vmatpush.msra.mxu2 %v5830_v17  ;;  %3770 = vmatpush.msra.mxu0 %v5831_v27  ;;  %v5879_v17 = vld [vmem:[#allocation8 + $0x9f8] sm:$0xff]  ;;  %v5880_v27 = vld [vmem:[#allocation8 + $0x5b0] sm:$0xff] }
 0x645   :  { %3363 = vmatpush.msrb.mxu3 %v5832_v15  ;;  %3403 = vmatpush.msrb.mxu1 %v5833_v9  ;;  %v5881_v15 = vld [vmem:[#allocation8 + $0x5b8] sm:$0xff]  ;;  %v5882_v9 = vld [vmem:[#allocation8 + $0x990] sm:$0xff] }
 0x646   :  { %3731 = vmatpush.msra.mxu2 %v5834_v37  ;;  %3771 = vmatpush.msra.mxu0 %v5835_v11  ;;  %v5883_v37 = vld [vmem:[#allocation8 + $0x998] sm:$0xff]  ;;  %v5884_v11 = vld [vmem:[#allocation8 + $0x550] sm:$0xff] }
 0x647   :  { %3364 = vmatpush.msrb.mxu3 %v5836_v16  ;;  %3404 = vmatpush.msrb.mxu1 %v5837_v32  ;;  %v5885_v16 = vld [vmem:[#allocation8 + $0x558] sm:$0xff]  ;;  %v5886_v32 = vld [vmem:[#allocation8 + $0x930] sm:$0xff] }
 0x648   :  { %3732 = vmatpush.msra.mxu2 %v5838_v52  ;;  %3772 = vmatpush.msra.mxu0 %v5839_v7  ;;  %v5887_v52 = vld [vmem:[#allocation8 + $0x938] sm:$0xff]  ;;  %v5888_v7 = vld [vmem:[#allocation8 + $0x4f0] sm:$0xff] }
 0x649   :  { %3365 = vmatpush.msrb.mxu3 %v5840_v39  ;;  %3405 = vmatpush.msrb.mxu1 %v5841_v12  ;;  %v5889_v39 = vld [vmem:[#allocation8 + $0x4f8] sm:$0xff]  ;;  %v5890_v12 = vld [vmem:[#allocation8 + $0x8d0] sm:$0xff] }
 0x64a   :  { %3733 = vmatpush.msra.mxu2 %v5842_v22  ;;  %3773 = vmatpush.msra.mxu0 %v5843_v35  ;;  %v5891_v22 = vld [vmem:[#allocation8 + $0x8d8] sm:$0xff]  ;;  %v5892_v35 = vld [vmem:[#allocation8 + $0x490] sm:$0xff] }
 0x64b   :  { %3366 = vmatpush.msrb.mxu3 %v5844_v6  ;;  %3406 = vmatpush.msrb.mxu1 %v5845_v5  ;;  %v5893_v6 = vld [vmem:[#allocation8 + $0x498] sm:$0xff]  ;;  %v5894_v5 = vld [vmem:[#allocation8 + $0x870] sm:$0xff] }
 0x64c   :  { %3734 = vmatpush.msra.mxu2 %v5846_v42  ;;  %3774 = vmatpush.msra.mxu0 %v5847_v10  ;;  %v5895_v42 = vld [vmem:[#allocation8 + $0x878] sm:$0xff]  ;;  %v5896_v10 = vld [vmem:[#allocation8 + $0x430] sm:$0xff] }
 0x64d   :  { %3367 = vmatpush.msrb.mxu3 %v5848_v51  ;;  %3407 = vmatpush.msrb.mxu1 %v5849_v20  ;;  %v5897_v51 = vld [vmem:[#allocation8 + $0x438] sm:$0xff]  ;;  %v5898_v20 = vld [vmem:[#allocation8 + $0x810] sm:$0xff] }
 0x64e   :  { %3735 = vmatpush.msra.mxu2 %v5850_v28  ;;  %3775 = vmatpush.msra.mxu0 %v5851_v50  ;;  %v5899_v28 = vld [vmem:[#allocation8 + $0x818] sm:$0xff]  ;;  %v5900_v50 = vld [vmem:[#allocation8 + $0x3d0] sm:$0xff] }
 0x64f   :  { %3368 = vmatpush.msrb.mxu3 %v5852_v14  ;;  %3408 = vmatpush.msrb.mxu1 %v5853_v47  ;;  %v5901_v14 = vld [vmem:[#allocation8 + $0x3d8] sm:$0xff]  ;;  %v5902_v47 = vld [vmem:[#allocation8 + $0x7b0] sm:$0xff] }
 0x650   :  { %3736 = vmatpush.msra.mxu2 %v5854_v21  ;;  %3776 = vmatpush.msra.mxu0 %v5855_v13  ;;  %v5903_v21 = vld [vmem:[#allocation8 + $0x7b8] sm:$0xff]  ;;  %v5904_v13 = vld [vmem:[#allocation8 + $0x370] sm:$0xff] }
 0x651   :  { %3369 = vmatpush.msrb.mxu3 %v5856_v41  ;;  %3409 = vmatpush.msrb.mxu1 %v5857_v2  ;;  %v5905_v41 = vld [vmem:[#allocation8 + $0x378] sm:$0xff]  ;;  %v5906_v2 = vld [vmem:[#allocation8 + $0x750] sm:$0xff] }
 0x652   :  { %3370 = vmatmul.f32.vlgmr.msrb.gmra.mxu3 %v9629_v26  ;;  %3410 = vmatmul.f32.vlgmr.msrb.gmra.mxu1 %v9629_v26 }
 0x653   :  { %3434 = vmatpush.msra.mxu3 %v5858_v8  ;;  %3474 = vmatpush.msra.mxu1 %v5859_v25  ;;  %v5907_v8 = vld [vmem:[#allocation8 + $0x758] sm:$0xff]  ;;  %v5908_v25 = vld [vmem:[#allocation8 + $0x310] sm:$0xff] }
 0x654   :  { %3737 = vmatpush.msra.mxu2 %v5860_v3  ;;  %3777 = vmatpush.msra.mxu0 %v5861_v53  ;;  %v5909_v3 = vld [vmem:[#allocation8 + $0x318] sm:$0xff]  ;;  %v5910_v53 = vld [vmem:[#allocation8 + $0x6f0] sm:$0xff] }
 0x655   :  { %3435 = vmatpush.msra.mxu3 %v5862_v48  ;;  %3475 = vmatpush.msra.mxu1 %v5863_v0  ;;  %v5911_v48 = vld [vmem:[#allocation8 + $0x6f8] sm:$0xff]  ;;  %v5912_v0 = vld [vmem:[#allocation8 + $0x2b0] sm:$0xff] }
 0x656   :  { %3738 = vmatpush.msra.mxu2 %v5864_v40  ;;  %3778 = vmatpush.msra.mxu0 %v5865_v62  ;;  %v5913_v40 = vld [vmem:[#allocation8 + $0x2b8] sm:$0xff]  ;;  %v5914_v62 = vld [vmem:[#allocation8 + $0x690] sm:$0xff] }
 0x657   :  { %3436 = vmatpush.msra.mxu3 %v5866_v33  ;;  %3476 = vmatpush.msra.mxu1 %v5867_v44  ;;  %v5915_v33 = vld [vmem:[#allocation8 + $0x698] sm:$0xff]  ;;  %v5916_v44 = vld [vmem:[#allocation8 + $0x250] sm:$0xff] }
 0x658   :  { %3739 = vmatpush.msra.mxu2 %v5868_v54  ;;  %3779 = vmatpush.msra.mxu0 %v5869_v57  ;;  %v5917_v54 = vld [vmem:[#allocation8 + $0x258] sm:$0xff]  ;;  %v5918_v57 = vld [vmem:[#allocation8 + $0x630] sm:$0xff] }
 0x659   :  { %3437 = vmatpush.msra.mxu3 %v5870_v58  ;;  %3477 = vmatpush.msra.mxu1 %v5871_v61  ;;  %v5919_v58 = vld [vmem:[#allocation8 + $0x638] sm:$0xff]  ;;  %v5920_v61 = vld [vmem:[#allocation8 + $0xbe0] sm:$0xff] }
 0x65a   :  { %3740 = vmatpush.msra.mxu2 %v5872_v31  ;;  %3780 = vmatpush.msra.mxu0 %v5873_v1  ;;  %v5921_v31 = vld [vmem:[#allocation8 + $0xbe8] sm:$0xff]  ;;  %v5922_v1 = vld [vmem:[#allocation8 + $0x1f0] sm:$0xff] }
 0x65b   :  { %3438 = vmatpush.msra.mxu3 %v5874_v38  ;;  %3478 = vmatpush.msra.mxu1 %v5875_v34  ;;  %v5923_v38 = vld [vmem:[#allocation8 + $0x1f8] sm:$0xff]  ;;  %v5924_v34 = vld [vmem:[#allocation8 + $0xb80] sm:$0xff] }
 0x65c   :  { %3741 = vmatpush.msra.mxu2 %v5876_v24  ;;  %3781 = vmatpush.msra.mxu0 %v5877_v43  ;;  %v5925_v24 = vld [vmem:[#allocation8 + $0xb88] sm:$0xff]  ;;  %v5926_v43 = vld [vmem:[#allocation8 + $0x190] sm:$0xff] }
 0x65d   :  { %3439 = vmatpush.msra.mxu3 %v5878_v56  ;;  %3479 = vmatpush.msra.mxu1 %v5879_v17  ;;  %v5927_v56 = vld [vmem:[#allocation8 + $0x198] sm:$0xff]  ;;  %v5928_v17 = vld [vmem:[#allocation8 + $0xb20] sm:$0xff] }
 0x65e   :  { %3806 = vmatpush.msrb.mxu2 %v5880_v27  ;;  %3846 = vmatpush.msrb.mxu0 %v5881_v15  ;;  %v5929_v27 = vld [vmem:[#allocation8 + $0xb28] sm:$0xff]  ;;  %v5930_v15 = vld [vmem:[#allocation8 + $0x130] sm:$0xff] }
 0x65f   :  { %3440 = vmatpush.msra.mxu3 %v5882_v9  ;;  %3480 = vmatpush.msra.mxu1 %v5883_v37  ;;  %v5931_v9 = vld [vmem:[#allocation8 + $0x138] sm:$0xff]  ;;  %v5932_v37 = vld [vmem:[#allocation8 + $0xac0] sm:$0xff] }
 0x660   :  { %3807 = vmatpush.msrb.mxu2 %v5884_v11  ;;  %3847 = vmatpush.msrb.mxu0 %v5885_v16  ;;  %v5933_v11 = vld [vmem:[#allocation8 + $0xac8] sm:$0xff]  ;;  %v5934_v16 = vld [vmem:[#allocation8 + $0xd0] sm:$0xff] }
 0x661   :  { %3441 = vmatpush.msra.mxu3 %v5886_v32  ;;  %3481 = vmatpush.msra.mxu1 %v5887_v52  ;;  %v5935_v32 = vld [vmem:[#allocation8 + $0xd8] sm:$0xff]  ;;  %v5936_v52 = vld [vmem:[#allocation8 + $0xa60] sm:$0xff] }
 0x662   :  { %3808 = vmatpush.msrb.mxu2 %v5888_v7  ;;  %3848 = vmatpush.msrb.mxu0 %v5889_v39  ;;  %v5937_v7 = vld [vmem:[#allocation8 + $0xa68] sm:$0xff]  ;;  %v5938_v39 = vld [vmem:[#allocation8 + $0x70] sm:$0xff] }
 0x663   :  { %3442 = vmatpush.msra.mxu3 %v5890_v12  ;;  %3482 = vmatpush.msra.mxu1 %v5891_v22  ;;  %v5939_v12 = vld [vmem:[#allocation8 + $0x78] sm:$0xff]  ;;  %v5940_v22 = vld [vmem:[#allocation8 + $0xa00] sm:$0xff] }
 0x664   :  { %3809 = vmatpush.msrb.mxu2 %v5892_v35  ;;  %3849 = vmatpush.msrb.mxu0 %v5893_v6  ;;  %v5941_v35 = vld [vmem:[#allocation8 + $0xa08] sm:$0xff]  ;;  %v5942_v6 = vld [vmem:[#allocation8 + $0x10] sm:$0xff] }
 0x665   :  { %3443 = vmatpush.msra.mxu3 %v5894_v5  ;;  %3483 = vmatpush.msra.mxu1 %v5895_v42  ;;  %v5943_v5 = vld [vmem:[#allocation8 + $0x18] sm:$0xff]  ;;  %v5944_v42 = vld [vmem:[#allocation8 + $0x9a0] sm:$0xff] }
 0x666   :  { %3810 = vmatpush.msrb.mxu2 %v5896_v10  ;;  %3850 = vmatpush.msrb.mxu0 %v5897_v51  ;;  %v5945_v10 = vld [vmem:[#allocation8 + $0x9a8] sm:$0xff]  ;;  %v5946_v51 = vld [vmem:[#allocation8 + $0x940] sm:$0xff] }
 0x667   :  { %3444 = vmatpush.msra.mxu3 %v5898_v20  ;;  %3484 = vmatpush.msra.mxu1 %v5899_v28  ;;  %v5947_v20 = vld [vmem:[#allocation8 + $0x948] sm:$0xff]  ;;  %v5948_v28 = vld [vmem:[#allocation8 + $0x8e0] sm:$0xff] }
 0x668   :  { %3811 = vmatpush.msrb.mxu2 %v5900_v50  ;;  %3851 = vmatpush.msrb.mxu0 %v5901_v14  ;;  %v5949_v50 = vld [vmem:[#allocation8 + $0x8e8] sm:$0xff]  ;;  %v5950_v14 = vld [vmem:[#allocation8 + $0x880] sm:$0xff] }
 0x669   :  { %3445 = vmatpush.msra.mxu3 %v5902_v47  ;;  %3485 = vmatpush.msra.mxu1 %v5903_v21  ;;  %v5951_v47 = vld [vmem:[#allocation8 + $0x888] sm:$0xff]  ;;  %v5952_v21 = vld [vmem:[#allocation8 + $0x820] sm:$0xff] }
 0x66a   :  { %3812 = vmatpush.msrb.mxu2 %v5904_v13  ;;  %3852 = vmatpush.msrb.mxu0 %v5905_v41  ;;  %v5953_v13 = vld [vmem:[#allocation8 + $0x828] sm:$0xff]  ;;  %v5954_v41 = vld [vmem:[#allocation8 + $0x7c0] sm:$0xff] }
 0x66b   :  { %3446 = vmatpush.msra.mxu3 %v5906_v2  ;;  %3486 = vmatpush.msra.mxu1 %v5907_v8  ;;  %v5955_v2 = vld [vmem:[#allocation8 + $0x7c8] sm:$0xff]  ;;  %v5956_v8 = vld [vmem:[#allocation8 + $0x760] sm:$0xff] }
 0x66c   :  { %3813 = vmatpush.msrb.mxu2 %v5908_v25  ;;  %3853 = vmatpush.msrb.mxu0 %v5909_v3  ;;  %v5957_v25 = vld [vmem:[#allocation8 + $0x768] sm:$0xff]  ;;  %v5958_v3 = vld [vmem:[#allocation8 + $0x700] sm:$0xff] }
 0x66d   :  { %3447 = vmatpush.msra.mxu3 %v5910_v53  ;;  %3487 = vmatpush.msra.mxu1 %v5911_v48  ;;  %v5959_v53 = vld [vmem:[#allocation8 + $0x708] sm:$0xff]  ;;  %v5960_v48 = vld [vmem:[#allocation8 + $0x6a0] sm:$0xff] }
 0x66e   :  { %3814 = vmatpush.msrb.mxu2 %v5912_v0  ;;  %3854 = vmatpush.msrb.mxu0 %v5913_v40  ;;  %v5961_v0 = vld [vmem:[#allocation8 + $0x6a8] sm:$0xff]  ;;  %v5962_v40 = vld [vmem:[#allocation8 + $0x640] sm:$0xff] }
 0x66f   :  { %3448 = vmatpush.msra.mxu3 %v5914_v62  ;;  %3488 = vmatpush.msra.mxu1 %v5915_v33  ;;  %v5963_v62 = vld [vmem:[#allocation8 + $0x648] sm:$0xff]  ;;  %v5964_v33 = vld [vmem:[#allocation8 + $0xbf0] sm:$0xff] }
 0x670   :  { %3815 = vmatpush.msrb.mxu2 %v5916_v44  ;;  %3855 = vmatpush.msrb.mxu0 %v5917_v54  ;;  %v5965_v44 = vld [vmem:[#allocation8 + $0xbf8] sm:$0xff]  ;;  %v5966_v54 = vld [vmem:[#allocation8 + $0xb90] sm:$0xff] }
 0x671   :  { %3449 = vmatpush.msra.mxu3 %v5918_v57  ;;  %3489 = vmatpush.msra.mxu1 %v5919_v58  ;;  %v5967_v57 = vld [vmem:[#allocation8 + $0xb98] sm:$0xff]  ;;  %v5968_v58 = vld [vmem:[#allocation8 + $0xb30] sm:$0xff] }
 0x672   :  { %3450 = vmatmul.f32.vlgmr.msra.gmra.mxu3 %v9629_v26  ;;  %3490 = vmatmul.f32.vlgmr.msra.gmra.mxu1 %v9629_v26 }
 0x673   :  { %3514 = vmatpush.msrb.mxu3 %v5920_v61  ;;  %3554 = vmatpush.msrb.mxu1 %v5921_v31  ;;  %v5969_v61 = vld [vmem:[#allocation8 + $0xb38] sm:$0xff]  ;;  %v5970_v31 = vld [vmem:[#allocation8 + $0xad0] sm:$0xff] }
 0x674   :  { %3816 = vmatpush.msrb.mxu2 %v5922_v1  ;;  %3856 = vmatpush.msrb.mxu0 %v5923_v38  ;;  %v5971_v1 = vld [vmem:[#allocation8 + $0xad8] sm:$0xff]  ;;  %v5972_v38 = vld [vmem:[#allocation8 + $0xa70] sm:$0xff] }
 0x675   :  { %3515 = vmatpush.msrb.mxu3 %v5924_v34  ;;  %3555 = vmatpush.msrb.mxu1 %v5925_v24  ;;  %v5973_v34 = vld [vmem:[#allocation8 + $0xa78] sm:$0xff]  ;;  %v5974_v24 = vld [vmem:[#allocation8 + $0xa10] sm:$0xff] }
 0x676   :  { %3817 = vmatpush.msrb.mxu2 %v5926_v43  ;;  %3857 = vmatpush.msrb.mxu0 %v5927_v56  ;;  %v5975_v43 = vld [vmem:[#allocation8 + $0xa18] sm:$0xff]  ;;  %v5976_v56 = vld [vmem:[#allocation8 + $0x9b0] sm:$0xff] }
 0x677   :  { %3516 = vmatpush.msrb.mxu3 %v5928_v17  ;;  %3556 = vmatpush.msrb.mxu1 %v5929_v27  ;;  %v5977_v17 = vld [vmem:[#allocation8 + $0x9b8] sm:$0xff]  ;;  %v5978_v27 = vld [vmem:[#allocation8 + $0x950] sm:$0xff] }
 0x678   :  { %3818 = vmatpush.msrb.mxu2 %v5930_v15  ;;  %3858 = vmatpush.msrb.mxu0 %v5931_v9  ;;  %v5979_v15 = vld [vmem:[#allocation8 + $0x958] sm:$0xff]  ;;  %v5980_v9 = vld [vmem:[#allocation8 + $0x8f0] sm:$0xff] }
 0x679   :  { %3517 = vmatpush.msrb.mxu3 %v5932_v37  ;;  %3557 = vmatpush.msrb.mxu1 %v5933_v11  ;;  %v5981_v37 = vld [vmem:[#allocation8 + $0x8f8] sm:$0xff]  ;;  %v5982_v11 = vld [vmem:[#allocation8 + $0x890] sm:$0xff] }
 0x67a   :  { %3819 = vmatpush.msrb.mxu2 %v5934_v16  ;;  %3859 = vmatpush.msrb.mxu0 %v5935_v32  ;;  %v5983_v16 = vld [vmem:[#allocation8 + $0x898] sm:$0xff]  ;;  %v5984_v32 = vld [vmem:[#allocation8 + $0x830] sm:$0xff] }
 0x67b   :  { %3518 = vmatpush.msrb.mxu3 %v5936_v52  ;;  %3558 = vmatpush.msrb.mxu1 %v5937_v7  ;;  %v5985_v52 = vld [vmem:[#allocation8 + $0x838] sm:$0xff]  ;;  %v5986_v7 = vld [vmem:[#allocation8 + $0x7d0] sm:$0xff] }
 0x67c   :  { %3820 = vmatpush.msrb.mxu2 %v5938_v39  ;;  %3860 = vmatpush.msrb.mxu0 %v5939_v12  ;;  %v5987_v39 = vld [vmem:[#allocation8 + $0x7d8] sm:$0xff]  ;;  %v5988_v12 = vld [vmem:[#allocation8 + $0x770] sm:$0xff] }
 0x67d   :  { %3519 = vmatpush.msrb.mxu3 %v5940_v22  ;;  %3559 = vmatpush.msrb.mxu1 %v5941_v35  ;;  %v5989_v22 = vld [vmem:[#allocation8 + $0x778] sm:$0xff]  ;;  %v5990_v35 = vld [vmem:[#allocation8 + $0x710] sm:$0xff] }
 0x67e   :  { %3821 = vmatpush.msrb.mxu2 %v5942_v6  ;;  %3861 = vmatpush.msrb.mxu0 %v5943_v5  ;;  %v5991_v6 = vld [vmem:[#allocation8 + $0x718] sm:$0xff]  ;;  %v5992_v5 = vld [vmem:[#allocation8 + $0x6b0] sm:$0xff] }
 0x67f   :  { %3520 = vmatpush.msrb.mxu3 %v5944_v42  ;;  %3560 = vmatpush.msrb.mxu1 %v5945_v10  ;;  %v5993_v42 = vld [vmem:[#allocation8 + $0x6b8] sm:$0xff] }
 0x681   :  { %3521 = vmatpush.msrb.mxu3 %v5946_v51  ;;  %3561 = vmatpush.msrb.mxu1 %v5947_v20  ;;  %v3231_v51 = vpop.f32.mrf.mxu0  ;;  %v5994_v20 = vld [vmem:[#allocation8 + $0x650] sm:$0xff] }
 0x683   :  { %3522 = vmatpush.msrb.mxu3 %v5948_v28  ;;  %3562 = vmatpush.msrb.mxu1 %v5949_v50  ;;  %v5995_v28 = vld [vmem:[#allocation8 + $0x658] sm:$0xff] }
 0x685   :  { %3523 = vmatpush.msrb.mxu3 %v5950_v14  ;;  %3563 = vmatpush.msrb.mxu1 %v5951_v47  ;;  %v3191_v14 = vpop.f32.mrf.mxu2  ;;  %v5996_v47 = vld [vmem:[#allocation8 + $0xba0] sm:$0xff] }
 0x687   :  { %3524 = vmatpush.msrb.mxu3 %v5952_v21  ;;  %3564 = vmatpush.msrb.mxu1 %v5953_v13  ;;  %v5997_v21 = vld [vmem:[#allocation8 + $0xba8] sm:$0xff] }
 0x689   :  { %3525 = vmatpush.msrb.mxu3 %v5954_v41  ;;  %3565 = vmatpush.msrb.mxu1 %v5955_v2  ;;  %v5998_v2 = vld [vmem:[#allocation8 + $0xb40] sm:$0xff] }
 0x68b   :  { %3526 = vmatpush.msrb.mxu3 %v5956_v8  ;;  %3566 = vmatpush.msrb.mxu1 %v5957_v25  ;;  %v5999_v8 = vld [vmem:[#allocation8 + $0xb48] sm:$0xff] }
 0x68d   :  { %3527 = vmatpush.msrb.mxu3 %v5958_v3  ;;  %3567 = vmatpush.msrb.mxu1 %v5959_v53  ;;  %v6000_v3 = vld [vmem:[#allocation8 + $0xae0] sm:$0xff]  ;;  %v6001_v53 = vld [vmem:[#allocation8 + $0xae8] sm:$0xff] }
 0x68f   :  { %3528 = vmatpush.msrb.mxu3 %v5960_v48  ;;  %3568 = vmatpush.msrb.mxu1 %v5961_v0  ;;  %v3680_v0 = vld [vmem:[#allocation2 + $0x20] sm:$0x30] }
 0x691   :  { %3529 = vmatpush.msrb.mxu3 %v5962_v40  ;;  %3569 = vmatpush.msrb.mxu1 %v5963_v62  ;;  %v6003_v40 = vld [vmem:[#allocation8 + $0xa88] sm:$0xff] }
 0x692   :  { %3530 = vmatmul.f32.vlgmr.msrb.gmra.mxu3 %v9629_v26  ;;  %3570 = vmatmul.f32.vlgmr.msrb.gmra.mxu1 %v9629_v26 }
 0x693   :  { %3594 = vmatpush.msra.mxu3 %v5964_v33  ;;  %3634 = vmatpush.msra.mxu1 %v5965_v44  ;;  %v3679_v33 = vld [vmem:[#allocation2 + $0x8] sm:$0x30]  ;;  %v6004_v44 = vld [vmem:[#allocation8 + $0xa20] sm:$0xff] }
 0x695   :  { %3595 = vmatpush.msra.mxu3 %v5966_v54  ;;  %3635 = vmatpush.msra.mxu1 %v5967_v57  ;;  %v6005_v54 = vld [vmem:[#allocation8 + $0xa28] sm:$0xff] }
 0x697   :  { %3596 = vmatpush.msra.mxu3 %v5968_v58  ;;  %3636 = vmatpush.msra.mxu1 %v5969_v61  ;;  %v3271_v61 = vpop.f32.mrf.mxu2 }
 0x699   :  { %3597 = vmatpush.msra.mxu3 %v5970_v31  ;;  %3637 = vmatpush.msra.mxu1 %v5971_v1  ;;  %v6006_v1 = vld [vmem:[#allocation8 + $0x9c0] sm:$0xff] }
 0x69b   :  { %3598 = vmatpush.msra.mxu3 %v5972_v38  ;;  %3638 = vmatpush.msra.mxu1 %v5973_v34  ;;  %v6007_v38 = vld [vmem:[#allocation8 + $0x9c8] sm:$0xff]  ;;  %v3311_v34 = vpop.f32.mrf.mxu0 }
 0x69d   :  { %3599 = vmatpush.msra.mxu3 %v5974_v24  ;;  %3639 = vmatpush.msra.mxu1 %v5975_v43 }
 0x69f   :  { %3600 = vmatpush.msra.mxu3 %v5976_v56  ;;  %3640 = vmatpush.msra.mxu1 %v5977_v17  ;;  %v6008_v56 = vld [vmem:[#allocation8 + $0x960] sm:$0xff]  ;;  %v6009_v17 = vld [vmem:[#allocation8 + $0x968] sm:$0xff] }
 0x6a1   :  { %3601 = vmatpush.msra.mxu3 %v5978_v27  ;;  %3641 = vmatpush.msra.mxu1 %v5979_v15  ;;  %v3681_v15 = vld [vmem:[#allocation2 + $0x28] sm:$0x30] }
 0x6a3   :  { %3602 = vmatpush.msra.mxu3 %v5980_v9  ;;  %3642 = vmatpush.msra.mxu1 %v5981_v37  ;;  %v6010_v9 = vld [vmem:[#allocation8 + $0x900] sm:$0xff]  ;;  %v6011_v37 = vld [vmem:[#allocation8 + $0x908] sm:$0xff] }
 0x6a5   :  { %3603 = vmatpush.msra.mxu3 %v5982_v11  ;;  %3643 = vmatpush.msra.mxu1 %v5983_v16 }
 0x6a7   :  { %3604 = vmatpush.msra.mxu3 %v5984_v32  ;;  %3644 = vmatpush.msra.mxu1 %v5985_v52  ;;  %v6012_v32 = vld [vmem:[#allocation8 + $0x8a0] sm:$0xff]  ;;  %v6013_v52 = vld [vmem:[#allocation8 + $0x8a8] sm:$0xff] }
 0x6a9   :  { %3605 = vmatpush.msra.mxu3 %v5986_v7  ;;  %3645 = vmatpush.msra.mxu1 %v5987_v39  ;;  %v6014_v39 = vld [vmem:[#allocation8 + $0x840] sm:$0xff] }
 0x6ab   :  { %3606 = vmatpush.msra.mxu3 %v5988_v12  ;;  %3646 = vmatpush.msra.mxu1 %v5989_v22  ;;  %v6015_v12 = vld [vmem:[#allocation8 + $0x848] sm:$0xff] }
 0x6ad   :  { %3607 = vmatpush.msra.mxu3 %v5990_v35  ;;  %3647 = vmatpush.msra.mxu1 %v5991_v6  ;;  %v3682_v35 = vld [vmem:[#allocation2 + $0x38] sm:$0x30] }
 0x6ae   :  { %v3251_v10 = vpop.f32.mrf.mxu1 }
 0x6af   :  { %3608 = vmatpush.msra.mxu3 %v5992_v5  ;;  %3648 = vmatpush.msra.mxu1 %v5993_v42  ;;  %v3252_v50 = vadd.f32 %v3251_v10, %v3231_v51  ;;  %v6016_v42 = vld [vmem:[#allocation8 + $0x7e0] sm:$0xff]  ;;  %v6017_v10 = vld [vmem:[#allocation8 + $0x7e8] sm:$0xff] }
 0x6b1   :  { %3609 = vmatpush.msra.mxu3 %v5994_v20  ;;  %3649 = vmatpush.msra.mxu1 %v5995_v28  ;;  %v3688_v25 = vrot.slane %v3252_v50, 4  ;;  %v6018_v20 = vld [vmem:[#allocation8 + $0x780] sm:$0xff]  ;;  %v6019_v28 = vld [vmem:[#allocation8 + $0x788] sm:$0xff] }
 0x6b2   :  { %3610 = vmatmul.f32.vlgmr.msra.gmra.mxu3 %v9629_v26  ;;  %3650 = vmatmul.f32.vlgmr.msra.gmra.mxu1 %v9629_v26  ;;  %v6002_v26 = vld [vmem:[#allocation8 + $0xa80] sm:$0xff] }
 0x6b3   :  { %3746 = vmatpush.msrb.mxu3 %v5996_v47  ;;  %3786 = vmatpush.msrb.mxu1 %v5997_v21  ;;  %v3696_v62 = vadd.f32 %v3688_v25, %v3680_v0  ;;  %v6020_v21 = vld [vmem:[#allocation8 + $0x720] sm:$0xff] }
 0x6b4   :  { %v3211_v13 = vpop.f32.mrf.mxu3  ;;  %v6022_v25 = vld [vmem:[#allocation8 + $0x6c0] sm:$0xff] }
 0x6b5   :  { %v3212_v41 = vadd.f32 %v3211_v13, %v3191_v14  ;;  %3747 = vmatpush.msrb.mxu3 %v5998_v2  ;;  %3787 = vmatpush.msrb.mxu1 %v5999_v8  ;;  %4813 = vtanh.f32 %v3696_v62  ;;  %v6021_v13 = vld [vmem:[#allocation8 + $0x728] sm:$0xff]  ;;  %v6024_v0 = vld [vmem:[#allocation8 + $0x660] sm:$0xff] }
 0x6b7   :  { %3748 = vmatpush.msrb.mxu3 %v6000_v3  ;;  %3788 = vmatpush.msrb.mxu1 %v6001_v53  ;;  %v3687_v48 = vrot.slane %v3212_v41, 4  ;;  %v3331_v58 = vpop.f32.mrf.mxu1  ;;  %v3712_v41 = vrot.slane %v9556_v36, 6  ;;  %v6023_v3 = vld [vmem:[#allocation8 + $0x6c8] sm:$0xff] }
 0x6b8   :  { %v3332_v43 = vadd.f32 %v3331_v58, %v3311_v34  ;;  %v6027_v36 = vld [vmem:[#allocation8 + $0x608] sm:$0xff]  ;;  %v6030_v58 = vld [vmem:[#allocation8 + $0xb50] sm:$0xff] }
 0x6b9   :  { %3749 = vmatpush.msrb.mxu3 %v6002_v26  ;;  %3789 = vmatpush.msrb.mxu1 %v6003_v40  ;;  %v3695_v57 = vadd.f32 %v3687_v48, %v3679_v33  ;;  %v6025_v26 = vld [vmem:[#allocation8 + $0x668] sm:$0xff]  ;;  %v6026_v33 = vld [vmem:[#allocation8 + $0x600] sm:$0xff]  ;;  %v6034_v34 = vld [vmem:[#allocation8 + $0xa90] sm:$0xff] }
 0x6ba   :  { %v3690_v16 = vrot.slane %v3332_v43, 4 }
 0x6bb   :  { %3750 = vmatpush.msrb.mxu3 %v6004_v44  ;;  %3790 = vmatpush.msrb.mxu1 %v6005_v54  ;;  %4815 = vtanh.f32 %v3695_v57  ;;  %v4814_v7 = vpop.eup %4813  ;;  %v6028_v44 = vld [vmem:[#allocation8 + $0xbb0] sm:$0xff]  ;;  %v6029_v54 = vld [vmem:[#allocation8 + $0xbb8] sm:$0xff] }
 0x6bc   :  { %v3704_v6 = vmul.f32 %v4814_v7, %v7226_v4  ;;  %v3698_v5 = vadd.f32 %v3690_v16, %v3682_v35  ;;  %v9664_v16 = vld [vmem:[#allocation8 + $0x5c8] sm:$0xff]  ;;  %v9667_v7 = vld [vmem:[#allocation8 + $0x560] sm:$0xff] }
 0x6bd   :  { %v3291_v31 = vpop.f32.mrf.mxu3  ;;  %3751 = vmatpush.msrb.mxu3 %v6006_v1  ;;  %3791 = vmatpush.msrb.mxu1 %v6007_v38  ;;  %v6033_v1 = vld [vmem:[#allocation8 + $0xaf8] sm:$0xff]  ;;  %v9673_v35 = vld [vmem:[#allocation8 + $0x500] sm:$0xff] }
 0x6be   :  { %v3292_v24 = vadd.f32 %v3291_v31, %v3271_v61  ;;  %v3708_v14 = vadd.f32 %v3704_v6, %v7229_v30  ;;  %v6031_v61 = vld [vmem:[#allocation8 + $0xb58] sm:$0xff]  ;;  %v6032_v31 = vld [vmem:[#allocation8 + $0xaf0] sm:$0xff]  ;;  %v9676_v6 = vld [vmem:[#allocation8 + $0x508] sm:$0xff] }
 0x6bf   :  { %3752 = vmatpush.msrb.mxu3 %v6008_v56  ;;  %3792 = vmatpush.msrb.mxu1 %v6009_v17  ;;  %v6036_v17 = vld [vmem:[#allocation8 + $0xa30] sm:$0xff] }
 0x6c0   :  { %v3689_v27 = vrot.slane %v3292_v24, 4  ;;  %v3714_v53 = vmul.f32 %v3712_v41, %v3708_v14  ;;  %v6035_v24 = vld [vmem:[#allocation8 + $0xa98] sm:$0xff] }
 0x6c1   :  { %3753 = vmatpush.msrb.mxu3 %v6010_v9  ;;  %3793 = vmatpush.msrb.mxu1 %v6011_v37  ;;  %v4816_v22 = vpop.eup %4815  ;;  %v6038_v9 = vld [vmem:[#allocation8 + $0x9d0] sm:$0xff]  ;;  %v6039_v37 = vld [vmem:[#allocation8 + $0x9d8] sm:$0xff] }
 0x6c2   :  { %v3697_v11 = vadd.f32 %v3689_v27, %v3681_v15  ;;  %v3703_v51 = vmul.f32 %v4816_v22, %v11754_v46  ;;  %v6037_v27 = vld [vmem:[#allocation8 + $0xa38] sm:$0xff] }
 0x6c3   :  { %3754 = vmatpush.msrb.mxu3 %v6012_v32  ;;  %3794 = vmatpush.msrb.mxu1 %v6013_v52  ;;  %v6042_v32 = vld [vmem:[#allocation8 + $0x970] sm:$0xff]  ;;  %v6043_v52 = vld [vmem:[#allocation8 + $0x978] sm:$0xff] }
 0x6c4   :  { %4817 = vtanh.f32 %v3697_v11  ;;  %v3707_v2 = vadd.f32 %v3703_v51, %v6883_v19  ;;  %v9661_v11 = vld [vmem:[#allocation8 + $0x5c0] sm:$0xff]  ;;  %v6047_v22 = vld [vmem:[#allocation8 + $0x918] sm:$0xff]  ;;  %v9682_v51 = vld [vmem:[#allocation8 + $0x4a8] sm:$0xff] }
 0x6c5   :  { %3755 = vmatpush.msrb.mxu3 %v6014_v39  ;;  %3795 = vmatpush.msrb.mxu1 %v6015_v12  ;;  %4819 = vtanh.f32 %v3698_v5  ;;  %v9670_v39 = vld [vmem:[#allocation8 + $0x568] sm:$0xff]  ;;  %v6046_v12 = vld [vmem:[#allocation8 + $0x910] sm:$0xff]  ;;  %v6057_v14 = vld [vmem:[#allocation8 + $0x858] sm:$0xff] }
 0x6c6   :  { %v6050_v5 = vld [vmem:[#allocation8 + $0x8b0] sm:$0xff]  ;;  %v6061_v41 = vld [vmem:[#allocation8 + $0x7f8] sm:$0xff] }
 0x6c7   :  { %3756 = vmatpush.msrb.mxu3 %v6016_v42  ;;  %3796 = vmatpush.msrb.mxu1 %v6017_v10  ;;  %v6051_v42 = vld [vmem:[#allocation8 + $0x8b8] sm:$0xff]  ;;  %v9679_v10 = vld [vmem:[#allocation8 + $0x4a0] sm:$0xff] }
 0x6c9   :  { %3757 = vmatpush.msrb.mxu3 %v6018_v20  ;;  %3797 = vmatpush.msrb.mxu1 %v6019_v28  ;;  %v9687_v20 = vld [vmem:[#allocation8 + $0x440] sm:$0xff]  ;;  %v9690_v28 = vld [vmem:[#allocation8 + $0x448] sm:$0xff] }
 0x6ca   :  { %v4818_v50 = vpop.eup %4817 }
 0x6cb   :  { %v3705_v47 = vmul.f32 %v4818_v50, %v11755_v63  ;;  %3758 = vmatpush.msrb.mxu3 %v6020_v21  ;;  %3798 = vmatpush.msrb.mxu1 %v6021_v13  ;;  %v4820_v40 = vpop.eup %4819  ;;  %v6056_v50 = vld [vmem:[#allocation8 + $0x850] sm:$0xff]  ;;  %v9696_v21 = vld [vmem:[#allocation8 + $0x3e8] sm:$0xff] }
 0x6cc   :  { %v3706_v57 = vmul.f32 %v4820_v40, %v6897_v49  ;;  %v6060_v13 = vld [vmem:[#allocation8 + $0x7f0] sm:$0xff]  ;;  %v9711_v40 = vld [vmem:[#allocation8 + $0x2c0] sm:$0xff] }
 0x6cd   :  { %v3709_v8 = vadd.f32 %v3705_v47, %v11757_v18  ;;  %3759 = vmatpush.msrb.mxu3 %v6022_v25  ;;  %3799 = vmatpush.msrb.mxu1 %v6023_v3  ;;  %v9693_v47 = vld [vmem:[#allocation8 + $0x3e0] sm:$0xff]  ;;  %v6064_v25 = vld [vmem:[#allocation8 + $0x790] sm:$0xff]  ;;  %v6065_v3 = vld [vmem:[#allocation8 + $0x798] sm:$0xff] }
 0x6ce   :  { %v3710_v38 = vadd.f32 %v3706_v57, %v6901_v45  ;;  %v9720_v57 = vld [vmem:[#allocation8 + $0x268] sm:$0xff] }
 0x6cf   :  { %v3715_v48 = vmul.f32 %v3709_v8, %v3707_v2  ;;  %3760 = vmatpush.msrb.mxu3 %v6024_v0  ;;  %3800 = vmatpush.msrb.mxu1 %v6025_v26  ;;  %v9699_v2 = vld [vmem:[#allocation8 + $0x380] sm:$0xff]  ;;  %v9702_v8 = vld [vmem:[#allocation8 + $0x388] sm:$0xff]  ;;  %v6068_v0 = vld [vmem:[#allocation8 + $0x730] sm:$0xff] }
 0x6d0   :  { %v6069_v26 = vld [vmem:[#allocation8 + $0x738] sm:$0xff] }
 0x6d1   :  { %v9652_v62 = vadd.f32 %v3715_v48, %v3714_v53  ;;  %3761 = vmatpush.msrb.mxu3 %v6026_v33  ;;  %3801 = vmatpush.msrb.mxu1 %v6027_v36  ;;  %v9705_v53 = vld [vmem:[#allocation8 + $0x320] sm:$0xff]  ;;  %v9708_v48 = vld [vmem:[#allocation8 + $0x328] sm:$0xff]  ;;  %v6072_v36 = vld [vmem:[#allocation8 + $0x6d0] sm:$0xff] }
 0x6d2   :  { %v9714_v33 = vld [vmem:[#allocation8 + $0x2c8] sm:$0xff] }
 0x6d3   :  { %12647 = vst [vmem:[#allocation102_spill] sm:$0xff] %v9652_v62  ;;  %3826 = vmatpush.msra.mxu3 %v6028_v44  ;;  %3866 = vmatpush.msra.mxu1 %v6029_v54  ;;  %4821 = vtanh.f32 %v9652_v62  ;;  %v6073_v44 = vld [vmem:[#allocation8 + $0x6d8] sm:$0xff]  ;;  %v9717_v54 = vld [vmem:[#allocation8 + $0x260] sm:$0xff] }
 0x6d4   :  { %v9812_v62 = vld [vmem:[#allocation8 + $0x2d8] sm:$0xff] }
 0x6d5   :  { %3827 = vmatpush.msra.mxu3 %v6030_v58  ;;  %3867 = vmatpush.msra.mxu1 %v6031_v61  ;;  %v6076_v58 = vld [vmem:[#allocation8 + $0x670] sm:$0xff]  ;;  %v6077_v61 = vld [vmem:[#allocation8 + $0x678] sm:$0xff]  ;;  %12667 = vst [vmem:[#allocation120_spill] sm:$0xff] %v9812_v62 }
 0x6d7   :  { %3828 = vmatpush.msra.mxu3 %v6032_v31  ;;  %3868 = vmatpush.msra.mxu1 %v6033_v1  ;;  %v9723_v31 = vld [vmem:[#allocation8 + $0x200] sm:$0xff]  ;;  %v9726_v1 = vld [vmem:[#allocation8 + $0x208] sm:$0xff] }
 0x6d9   :  { %3829 = vmatpush.msra.mxu3 %v6034_v34  ;;  %3869 = vmatpush.msra.mxu1 %v6035_v24  ;;  %v4822_v43 = vpop.eup %4821  ;;  %v6081_v34 = vld [vmem:[#allocation8 + $0x618] sm:$0xff]  ;;  %v9729_v24 = vld [vmem:[#allocation8 + $0x1a0] sm:$0xff] }
 0x6da   :  { %v3718_v56 = vmul.f32 %v4822_v43, %v3710_v38  ;;  %v6080_v38 = vld [vmem:[#allocation8 + $0x610] sm:$0xff]  ;;  %v9732_v43 = vld [vmem:[#allocation8 + $0x1a8] sm:$0xff] }
 0x6db   :  { %3830 = vmatpush.msra.mxu3 %v6036_v17  ;;  %3870 = vmatpush.msra.mxu1 %v6037_v27  ;;  %v9738_v17 = vld [vmem:[#allocation8 + $0x148] sm:$0xff]  ;;  %v9741_v27 = vld [vmem:[#allocation8 + $0xe0] sm:$0xff] }
 0x6dc   :  { %v9657_v15 = vrot.slane %v3718_v56, 4  ;;  %v9735_v56 = vld [vmem:[#allocation8 + $0x140] sm:$0xff] }
 0x6dd   :  { %3831 = vmatpush.msra.mxu3 %v6038_v9  ;;  %3871 = vmatpush.msra.mxu1 %v6039_v37  ;;  %v9744_v9 = vld [vmem:[#allocation8 + $0xe8] sm:$0xff]  ;;  %v9747_v37 = vld [vmem:[#allocation8 + $0x80] sm:$0xff] }
 0x6de   :  { %3742 = vmatmul.f32.vlgmr.msra.gmra.mxu2 %v9657_v15  ;;  %3782 = vmatmul.f32.vlgmr.msra.gmra.mxu0 %v9657_v15 }
 0x6df   :  { %3886 = vmatpush.msra.mxu2 %v9661_v11  ;;  %3926 = vmatpush.msra.mxu0 %v9664_v16 }
 0x6e0   :  { %3832 = vmatpush.msra.mxu3 %v6042_v32  ;;  %3872 = vmatpush.msra.mxu1 %v6043_v52  ;;  %v9750_v32 = vld [vmem:[#allocation8 + $0x88] sm:$0xff]  ;;  %v9753_v52 = vld [vmem:[#allocation8 + $0x20] sm:$0xff] }
 0x6e1   :  { %3887 = vmatpush.msra.mxu2 %v9667_v7  ;;  %3927 = vmatpush.msra.mxu0 %v9670_v39  ;;  %12648 = vst [vmem:[#allocation104_spill] sm:$0xff] %v9753_v52 }
 0x6e2   :  { %3833 = vmatpush.msra.mxu3 %v6046_v12  ;;  %3873 = vmatpush.msra.mxu1 %v6047_v22  ;;  %v9756_v12 = vld [vmem:[#allocation8 + $0x28] sm:$0xff]  ;;  %v9761_v22 = vld [vmem:[#allocation8 + $0x5d0] sm:$0xff] }
 0x6e3   :  { %3888 = vmatpush.msra.mxu2 %v9673_v35  ;;  %3928 = vmatpush.msra.mxu0 %v9676_v6  ;;  %12649 = vst [vmem:[#allocation106_spill] sm:$0xff] %v9756_v12 }
 0x6e4   :  { %3834 = vmatpush.msra.mxu3 %v6050_v5  ;;  %3874 = vmatpush.msra.mxu1 %v6051_v42  ;;  %12650 = vst [vmem:[#allocation108_spill] sm:$0xff] %v9761_v22  ;;  %v9764_v5 = vld [vmem:[#allocation8 + $0x5d8] sm:$0xff]  ;;  %v9767_v42 = vld [vmem:[#allocation8 + $0x570] sm:$0xff] }
 0x6e5   :  { %3889 = vmatpush.msra.mxu2 %v9679_v10  ;;  %3929 = vmatpush.msra.mxu0 %v9682_v51  ;;  %12651 = vst [vmem:[#allocation110_spill] sm:$0xff] %v9764_v5 }
 0x6e6   :  { %3822 = vmatmul.f32.vlgmr.msrb.gmra.mxu2 %v9657_v15  ;;  %3862 = vmatmul.f32.vlgmr.msrb.gmra.mxu0 %v9657_v15  ;;  %12652 = vst [vmem:[#allocation112_spill] sm:$0xff] %v9767_v42 }
 0x6e7   :  { %3890 = vmatpush.msra.mxu2 %v9687_v20  ;;  %3930 = vmatpush.msra.mxu0 %v9690_v28 }
 0x6e8   :  { %3835 = vmatpush.msra.mxu3 %v6056_v50  ;;  %3875 = vmatpush.msra.mxu1 %v6057_v14  ;;  %v9770_v50 = vld [vmem:[#allocation8 + $0x578] sm:$0xff]  ;;  %v9773_v14 = vld [vmem:[#allocation8 + $0x510] sm:$0xff] }
 0x6e9   :  { %3891 = vmatpush.msra.mxu2 %v9693_v47  ;;  %3931 = vmatpush.msra.mxu0 %v9696_v21  ;;  %12653 = vst [vmem:[#allocation115_spill] sm:$0xff] %v9770_v50 }
 0x6ea   :  { %3836 = vmatpush.msra.mxu3 %v6060_v13  ;;  %3876 = vmatpush.msra.mxu1 %v6061_v41  ;;  %12654 = vst [vmem:[#allocation117_spill] sm:$0xff] %v9773_v14  ;;  %v9776_v13 = vld [vmem:[#allocation8 + $0x518] sm:$0xff]  ;;  %v9779_v41 = vld [vmem:[#allocation8 + $0x4b0] sm:$0xff] }
 0x6eb   :  { %3892 = vmatpush.msra.mxu2 %v9699_v2  ;;  %3932 = vmatpush.msra.mxu0 %v9702_v8  ;;  %12655 = vst [vmem:[#allocation119_spill] sm:$0xff] %v9776_v13 }
 0x6ec   :  { %3837 = vmatpush.msra.mxu3 %v6064_v25  ;;  %3877 = vmatpush.msra.mxu1 %v6065_v3  ;;  %12656 = vst [vmem:[#allocation99_spill] sm:$0xff] %v9779_v41  ;;  %v9782_v25 = vld [vmem:[#allocation8 + $0x4b8] sm:$0xff]  ;;  %v9785_v3 = vld [vmem:[#allocation8 + $0x450] sm:$0xff] }
 0x6ed   :  { %3893 = vmatpush.msra.mxu2 %v9705_v53  ;;  %3933 = vmatpush.msra.mxu0 %v9708_v48  ;;  %12657 = vst [vmem:[#allocation101_spill] sm:$0xff] %v9782_v25 }
 0x6ee   :  { %3838 = vmatpush.msra.mxu3 %v6068_v0  ;;  %3878 = vmatpush.msra.mxu1 %v6069_v26  ;;  %12658 = vst [vmem:[#allocation103_spill] sm:$0xff] %v9785_v3  ;;  %v9788_v0 = vld [vmem:[#allocation8 + $0x458] sm:$0xff]  ;;  %v9791_v26 = vld [vmem:[#allocation8 + $0x3f0] sm:$0xff] }
 0x6ef   :  { %3894 = vmatpush.msra.mxu2 %v9711_v40  ;;  %3934 = vmatpush.msra.mxu0 %v9714_v33  ;;  %12659 = vst [vmem:[#allocation105_spill] sm:$0xff] %v9788_v0 }
 0x6f0   :  { %3839 = vmatpush.msra.mxu3 %v6072_v36  ;;  %3879 = vmatpush.msra.mxu1 %v6073_v44  ;;  %12660 = vst [vmem:[#allocation107_spill] sm:$0xff] %v9791_v26  ;;  %v9794_v36 = vld [vmem:[#allocation8 + $0x3f8] sm:$0xff]  ;;  %v9797_v44 = vld [vmem:[#allocation8 + $0x390] sm:$0xff] }
 0x6f1   :  { %3895 = vmatpush.msra.mxu2 %v9717_v54  ;;  %3935 = vmatpush.msra.mxu0 %v9720_v57  ;;  %12661 = vst [vmem:[#allocation109_spill] sm:$0xff] %v9794_v36 }
 0x6f2   :  { %3840 = vmatpush.msra.mxu3 %v6076_v58  ;;  %3880 = vmatpush.msra.mxu1 %v6077_v61  ;;  %12662 = vst [vmem:[#allocation111_spill] sm:$0xff] %v9797_v44  ;;  %v9800_v58 = vld [vmem:[#allocation8 + $0x398] sm:$0xff]  ;;  %v9803_v61 = vld [vmem:[#allocation8 + $0x330] sm:$0xff] }
 0x6f3   :  { %3896 = vmatpush.msra.mxu2 %v9723_v31  ;;  %3936 = vmatpush.msra.mxu0 %v9726_v1  ;;  %12663 = vst [vmem:[#allocation113_spill] sm:$0xff] %v9800_v58 }
 0x6f4   :  { %3841 = vmatpush.msra.mxu3 %v6080_v38  ;;  %3881 = vmatpush.msra.mxu1 %v6081_v34  ;;  %12664 = vst [vmem:[#allocation114_spill] sm:$0xff] %v9803_v61  ;;  %v9806_v38 = vld [vmem:[#allocation8 + $0x338] sm:$0xff]  ;;  %v9809_v34 = vld [vmem:[#allocation8 + $0x2d0] sm:$0xff] }
 0x6f5   :  { %3897 = vmatpush.msra.mxu2 %v9729_v24  ;;  %3937 = vmatpush.msra.mxu0 %v9732_v43  ;;  %12665 = vst [vmem:[#allocation116_spill] sm:$0xff] %v9806_v38 }
 0x6f6   :  { %12666 = vst [vmem:[#allocation118_spill] sm:$0xff] %v9809_v34 }
 0x6f7   :  { %3898 = vmatpush.msra.mxu2 %v9735_v56  ;;  %3938 = vmatpush.msra.mxu0 %v9738_v17 }
 0x6f9   :  { %3899 = vmatpush.msra.mxu2 %v9741_v27  ;;  %3939 = vmatpush.msra.mxu0 %v9744_v9 }
 0x6fb   :  { %3900 = vmatpush.msra.mxu2 %v9747_v37  ;;  %3940 = vmatpush.msra.mxu0 %v9750_v32 }
 0x6fd   :  { %3901 = vmatpush.msra.mxu2 %v9753_v52  ;;  %3941 = vmatpush.msra.mxu0 %v9756_v12  ;;  %v9905_v52 = vld [vmem:[#allocation8 + $0x340] sm:$0xff] }
 0x6fe   :  { %3902 = vmatmul.f32.vlgmr.msra.gmra.mxu2 %v9657_v15  ;;  %3942 = vmatmul.f32.vlgmr.msra.gmra.mxu0 %v9657_v15  ;;  %12696 = vst [vmem:[#allocation154_spill] sm:$0xff] %v9905_v52 }
 0x6ff   :  { %3966 = vmatpush.msrb.mxu2 %v9761_v22  ;;  %4006 = vmatpush.msrb.mxu0 %v9764_v5  ;;  %v9899_v22 = vld [vmem:[#allocation8 + $0x3a0] sm:$0xff] }
 0x700   :  { %12694 = vst [vmem:[#allocation152_spill] sm:$0xff] %v9899_v22 }
 0x701   :  { %3967 = vmatpush.msrb.mxu2 %v9767_v42  ;;  %4007 = vmatpush.msrb.mxu0 %v9770_v50  ;;  %v9887_v50 = vld [vmem:[#allocation8 + $0x460] sm:$0xff] }
 0x702   :  { %12690 = vst [vmem:[#allocation148_spill] sm:$0xff] %v9887_v50 }
 0x703   :  { %3968 = vmatpush.msrb.mxu2 %v9773_v14  ;;  %4008 = vmatpush.msrb.mxu0 %v9776_v13  ;;  %v9875_v13 = vld [vmem:[#allocation8 + $0x520] sm:$0xff]  ;;  %v9884_v14 = vld [vmem:[#allocation8 + $0x4c8] sm:$0xff] }
 0x704   :  { %12686 = vst [vmem:[#allocation144_spill] sm:$0xff] %v9875_v13 }
 0x705   :  { %3969 = vmatpush.msrb.mxu2 %v9779_v41  ;;  %4009 = vmatpush.msrb.mxu0 %v9782_v25  ;;  %v9869_v25 = vld [vmem:[#allocation8 + $0x580] sm:$0xff]  ;;  %12689 = vst [vmem:[#allocation147_spill] sm:$0xff] %v9884_v14 }
 0x706   :  { %12684 = vst [vmem:[#allocation142_spill] sm:$0xff] %v9869_v25 }
 0x707   :  { %3970 = vmatpush.msrb.mxu2 %v9785_v3  ;;  %4010 = vmatpush.msrb.mxu0 %v9788_v0  ;;  %v9845_v0 = vld [vmem:[#allocation8 + $0x90] sm:$0xff]  ;;  %v9854_v3 = vld [vmem:[#allocation8 + $0x38] sm:$0xff] }
 0x708   :  { %12678 = vst [vmem:[#allocation136_spill] sm:$0xff] %v9845_v0 }
 0x709   :  { %3971 = vmatpush.msrb.mxu2 %v9791_v26  ;;  %4011 = vmatpush.msrb.mxu0 %v9794_v36  ;;  %v9833_v36 = vld [vmem:[#allocation8 + $0x150] sm:$0xff]  ;;  %v3371_v26 = vpop.f32.mrf.mxu3  ;;  %12681 = vst [vmem:[#allocation139_spill] sm:$0xff] %v9854_v3 }
 0x70a   :  { %12674 = vst [vmem:[#allocation132_spill] sm:$0xff] %v9833_v36 }
 0x70b   :  { %3972 = vmatpush.msrb.mxu2 %v9797_v44  ;;  %4012 = vmatpush.msrb.mxu0 %v9800_v58  ;;  %v9815_v44 = vld [vmem:[#allocation8 + $0x270] sm:$0xff]  ;;  %v9818_v58 = vld [vmem:[#allocation8 + $0x278] sm:$0xff] }
 0x70c   :  { %12668 = vst [vmem:[#allocation121_spill] sm:$0xff] %v9815_v44 }
 0x70d   :  { %3973 = vmatpush.msrb.mxu2 %v9803_v61  ;;  %4013 = vmatpush.msrb.mxu0 %v9806_v38  ;;  %12669 = vst [vmem:[#allocation127_spill] sm:$0xff] %v9818_v58  ;;  %v9821_v61 = vld [vmem:[#allocation8 + $0x210] sm:$0xff]  ;;  %v9824_v38 = vld [vmem:[#allocation8 + $0x218] sm:$0xff] }
 0x70e   :  { %12670 = vst [vmem:[#allocation128_spill] sm:$0xff] %v9821_v61 }
 0x70f   :  { %3974 = vmatpush.msrb.mxu2 %v9809_v34  ;;  %4014 = vmatpush.msrb.mxu0 %v9812_v62  ;;  %12671 = vst [vmem:[#allocation129_spill] sm:$0xff] %v9824_v38  ;;  %v9827_v34 = vld [vmem:[#allocation8 + $0x1b0] sm:$0xff]  ;;  %v9830_v62 = vld [vmem:[#allocation8 + $0x1b8] sm:$0xff] }
 0x710   :  { %12672 = vst [vmem:[#allocation130_spill] sm:$0xff] %v9827_v34 }
 0x711   :  { %3975 = vmatpush.msrb.mxu2 %v9815_v44  ;;  %4015 = vmatpush.msrb.mxu0 %v9818_v58  ;;  %12673 = vst [vmem:[#allocation131_spill] sm:$0xff] %v9830_v62  ;;  %v3411_v44 = vpop.f32.mrf.mxu1  ;;  %v9836_v58 = vld [vmem:[#allocation8 + $0x158] sm:$0xff] }
 0x712   :  { %12675 = vst [vmem:[#allocation133_spill] sm:$0xff] %v9836_v58 }
 0x713   :  { %3976 = vmatpush.msrb.mxu2 %v9821_v61  ;;  %4016 = vmatpush.msrb.mxu0 %v9824_v38  ;;  %v3391_v61 = vpop.f32.mrf.mxu0  ;;  %v9839_v38 = vld [vmem:[#allocation8 + $0xf0] sm:$0xff] }
 0x714   :  { %12676 = vst [vmem:[#allocation134_spill] sm:$0xff] %v9839_v38 }
 0x715   :  { %3977 = vmatpush.msrb.mxu2 %v9827_v34  ;;  %4017 = vmatpush.msrb.mxu0 %v9830_v62  ;;  %v9842_v34 = vld [vmem:[#allocation8 + $0xf8] sm:$0xff]  ;;  %v3351_v62 = vpop.f32.mrf.mxu2 }
 0x716   :  { %12677 = vst [vmem:[#allocation135_spill] sm:$0xff] %v9842_v34 }
 0x717   :  { %3978 = vmatpush.msrb.mxu2 %v9833_v36  ;;  %4018 = vmatpush.msrb.mxu0 %v9836_v58  ;;  %v9848_v36 = vld [vmem:[#allocation8 + $0x98] sm:$0xff]  ;;  %v9851_v58 = vld [vmem:[#allocation8 + $0x30] sm:$0xff] }
 0x718   :  { %12679 = vst [vmem:[#allocation137_spill] sm:$0xff] %v9848_v36 }
 0x719   :  { %3979 = vmatpush.msrb.mxu2 %v9839_v38  ;;  %4019 = vmatpush.msrb.mxu0 %v9842_v34  ;;  %12680 = vst [vmem:[#allocation138_spill] sm:$0xff] %v9851_v58  ;;  %v9859_v34 = vpop.f32.mrf.mxu1  ;;  %v9861_v38 = vld [vmem:[#allocation8 + $0x5e0] sm:$0xff] }
 0x71a   :  { %12682 = vst [vmem:[#allocation140_spill] sm:$0xff] %v9861_v38 }
 0x71b   :  { %3980 = vmatpush.msrb.mxu2 %v9845_v0  ;;  %4020 = vmatpush.msrb.mxu0 %v9848_v36  ;;  %v9864_v0 = vld [vmem:[#allocation8 + $0x5e8] sm:$0xff]  ;;  %v9867_v36 = vpop.f32.mrf.mxu0 }
 0x71c   :  { %12683 = vst [vmem:[#allocation141_spill] sm:$0xff] %v9864_v0 }
 0x71d   :  { %3981 = vmatpush.msrb.mxu2 %v9851_v58  ;;  %4021 = vmatpush.msrb.mxu0 %v9854_v3  ;;  %v3451_v58 = vpop.f32.mrf.mxu3  ;;  %v9872_v3 = vld [vmem:[#allocation8 + $0x588] sm:$0xff]  ;;  %v3431_v41 = vpop.f32.mrf.mxu2 }
 0x71e   :  { %3982 = vmatmul.f32.vlgmr.msrb.gmra.mxu2 %v9657_v15  ;;  %4022 = vmatmul.f32.vlgmr.msrb.gmra.mxu0 %v9657_v15  ;;  %12685 = vst [vmem:[#allocation143_spill] sm:$0xff] %v9872_v3 }
 0x71f   :  { %4046 = vmatpush.msra.mxu2 %v9861_v38  ;;  %4086 = vmatpush.msra.mxu0 %v9864_v0  ;;  %v9878_v38 = vld [vmem:[#allocation8 + $0x528] sm:$0xff]  ;;  %v9881_v0 = vld [vmem:[#allocation8 + $0x4c0] sm:$0xff] }
 0x720   :  { %12687 = vst [vmem:[#allocation145_spill] sm:$0xff] %v9878_v38 }
 0x721   :  { %4047 = vmatpush.msra.mxu2 %v9869_v25  ;;  %4087 = vmatpush.msra.mxu0 %v9872_v3  ;;  %12688 = vst [vmem:[#allocation146_spill] sm:$0xff] %v9881_v0  ;;  %v3571_v25 = vpop.f32.mrf.mxu1  ;;  %v9890_v3 = vld [vmem:[#allocation8 + $0x468] sm:$0xff] }
 0x722   :  { %12691 = vst [vmem:[#allocation149_spill] sm:$0xff] %v9890_v3 }
 0x723   :  { %4048 = vmatpush.msra.mxu2 %v9875_v13  ;;  %4088 = vmatpush.msra.mxu0 %v9878_v38  ;;  %v3551_v13 = vpop.f32.mrf.mxu0  ;;  %v9893_v38 = vld [vmem:[#allocation8 + $0x400] sm:$0xff] }
 0x724   :  { %12692 = vst [vmem:[#allocation150_spill] sm:$0xff] %v9893_v38 }
 0x725   :  { %4049 = vmatpush.msra.mxu2 %v9881_v0  ;;  %4089 = vmatpush.msra.mxu0 %v9884_v14  ;;  %v3531_v42 = vpop.f32.mrf.mxu3  ;;  %v9896_v0 = vld [vmem:[#allocation8 + $0x408] sm:$0xff]  ;;  %v3572_v14 = vadd.f32 %v3571_v25, %v3551_v13  ;;  %v3511_v5 = vpop.f32.mrf.mxu2  ;;  %v3372_v13 = vadd.f32 %v3371_v26, %v3351_v62 }
 0x726   :  { %12693 = vst [vmem:[#allocation151_spill] sm:$0xff] %v9896_v0  ;;  %v3532_v12 = vadd.f32 %v3531_v42, %v3511_v5  ;;  %v9917_v5 = vld [vmem:[#allocation8 + $0x280] sm:$0xff]  ;;  %v9920_v42 = vld [vmem:[#allocation8 + $0x288] sm:$0xff] }
 0x727   :  { %4050 = vmatpush.msra.mxu2 %v9887_v50  ;;  %4090 = vmatpush.msra.mxu0 %v9890_v3  ;;  %v9902_v50 = vld [vmem:[#allocation8 + $0x3a8] sm:$0xff]  ;;  %v3412_v3 = vadd.f32 %v3411_v44, %v3391_v61  ;;  %12700 = vst [vmem:[#allocation158_spill] sm:$0xff] %v9917_v5 }
 0x728   :  { %12695 = vst [vmem:[#allocation153_spill] sm:$0xff] %v9902_v50  ;;  %v3654_v44 = vadd.f32 %v3532_v12, %v3372_v13 }
 0x729   :  { %4051 = vmatpush.msra.mxu2 %v9893_v38  ;;  %4091 = vmatpush.msra.mxu0 %v9896_v0  ;;  %v9908_v38 = vld [vmem:[#allocation8 + $0x348] sm:$0xff]  ;;  %v3655_v25 = vadd.f32 %v3572_v14, %v3412_v3  ;;  %v9911_v0 = vld [vmem:[#allocation8 + $0x2e0] sm:$0xff]  ;;  %12701 = vst [vmem:[#allocation159_spill] sm:$0xff] %v9920_v42 }
 0x72a   :  { %12697 = vst [vmem:[#allocation155_spill] sm:$0xff] %v9908_v38  ;;  %v9924_v14 = vld [vmem:[#allocation8 + $0x220] sm:$0xff]  ;;  %v9927_v3 = vld [vmem:[#allocation8 + $0x228] sm:$0xff]  ;;  %v3658_v12 = vadd.f32 %v3654_v44, %v12465_v60 }
 0x72b   :  { %4052 = vmatpush.msra.mxu2 %v9899_v22  ;;  %4092 = vmatpush.msra.mxu0 %v9902_v50  ;;  %12698 = vst [vmem:[#allocation156_spill] sm:$0xff] %v9911_v0  ;;  %v9914_v22 = vld [vmem:[#allocation8 + $0x2e8] sm:$0xff]  ;;  %v3659_v62 = vadd.f32 %v3655_v25, %v12464_v59  ;;  %v3631_v25 = vpop.f32.mrf.mxu0  ;;  %v3452_v59 = vadd.f32 %v3451_v58, %v3431_v41  ;;  %v10275_v50 = vld [vmem:[#allocation8 + $0x870] sm:$0xff] }
 0x72c   :  { %12699 = vst [vmem:[#allocation157_spill] sm:$0xff] %v9914_v22  ;;  %v9940_v44 = vld [vmem:[#allocation8 + $0x168] sm:$0xff] }
 0x72d   :  { %4053 = vmatpush.msra.mxu2 %v9905_v52  ;;  %4093 = vmatpush.msra.mxu0 %v9908_v38  ;;  %12702 = vst [vmem:[#allocation160_spill] sm:$0xff] %v9924_v14  ;;  %v3591_v61 = vpop.f32.mrf.mxu2  ;;  %4823 = vtanh.f32 %v3659_v62  ;;  %v9948_v41 = vld [vmem:[#allocation8 + $0x108] sm:$0xff]  ;;  %v10267_v38 = vld [vmem:[#allocation8 + $0x8d0] sm:$0xff]  ;;  %v10270_v52 = vld [vmem:[#allocation8 + $0x8d8] sm:$0xff] }
 0x72e   :  { %12703 = vst [vmem:[#allocation161_spill] sm:$0xff] %v9927_v3  ;;  %4825 = vtanh.f32 %v3658_v12  ;;  %v9955_v12 = vld [vmem:[#allocation8 + $0xa8] sm:$0xff] }
 0x72f   :  { %4054 = vmatpush.msra.mxu2 %v9911_v0  ;;  %4094 = vmatpush.msra.mxu0 %v9914_v22  ;;  %v3651_v26 = vpop.f32.mrf.mxu1  ;;  %v9937_v0 = vld [vmem:[#allocation8 + $0x160] sm:$0xff]  ;;  %12707 = vst [vmem:[#allocation165_spill] sm:$0xff] %v9940_v44 }
 0x730   :  { %v3652_v22 = vadd.f32 %v3651_v26, %v3631_v25  ;;  %12706 = vst [vmem:[#allocation164_spill] sm:$0xff] %v9937_v0  ;;  %v9952_v26 = vld [vmem:[#allocation8 + $0xa0] sm:$0xff]  ;;  %v9975_v25 = vld [vmem:[#allocation8 + $0x590] sm:$0xff] }
 0x731   :  { %4055 = vmatpush.msra.mxu2 %v9917_v5  ;;  %4095 = vmatpush.msra.mxu0 %v9920_v42  ;;  %v9931_v5 = vld [vmem:[#allocation8 + $0x1c0] sm:$0xff]  ;;  %v9934_v42 = vld [vmem:[#allocation8 + $0x1c8] sm:$0xff]  ;;  %12709 = vst [vmem:[#allocation167_spill] sm:$0xff] %v9948_v41 }
 0x732   :  { %12704 = vst [vmem:[#allocation162_spill] sm:$0xff] %v9931_v5 }
 0x733   :  { %4056 = vmatpush.msra.mxu2 %v9924_v14  ;;  %4096 = vmatpush.msra.mxu0 %v9927_v3  ;;  %12705 = vst [vmem:[#allocation163_spill] sm:$0xff] %v9934_v42  ;;  %v9945_v3 = vld [vmem:[#allocation8 + $0x100] sm:$0xff] }
 0x734   :  { %12708 = vst [vmem:[#allocation166_spill] sm:$0xff] %v9945_v3 }
 0x735   :  { %v3611_v13 = vpop.f32.mrf.mxu3  ;;  %4057 = vmatpush.msra.mxu2 %v9931_v5  ;;  %4097 = vmatpush.msra.mxu0 %v9934_v42  ;;  %v3492_v5 = vadd.f32 %v9859_v34, %v9867_v36  ;;  %12710 = vst [vmem:[#allocation168_spill] sm:$0xff] %v9952_v26  ;;  %v9958_v36 = vld [vmem:[#allocation8 + $0x40] sm:$0xff]  ;;  %v9961_v34 = vld [vmem:[#allocation8 + $0x48] sm:$0xff]  ;;  %v10262_v42 = vld [vmem:[#allocation8 + $0x938] sm:$0xff] }
 0x736   :  { %v3612_v14 = vadd.f32 %v3611_v13, %v3591_v61  ;;  %12711 = vst [vmem:[#allocation169_spill] sm:$0xff] %v9955_v12  ;;  %v9971_v61 = vld [vmem:[#allocation8 + $0x5f8] sm:$0xff] }
 0x737   :  { %4058 = vmatpush.msra.mxu2 %v9937_v0  ;;  %4098 = vmatpush.msra.mxu0 %v9940_v44  ;;  %v3657_v62 = vadd.f32 %v3652_v22, %v3492_v5  ;;  %12712 = vst [vmem:[#allocation170_spill] sm:$0xff] %v9958_v36  ;;  %v10254_v44 = vld [vmem:[#allocation8 + $0x998] sm:$0xff]  ;;  %v10259_v0 = vld [vmem:[#allocation8 + $0x930] sm:$0xff] }
 0x738   :  { %v3656_v60 = vadd.f32 %v3612_v14, %v3452_v59  ;;  %v4824_v59 = vpop.eup %4823  ;;  %12713 = vst [vmem:[#allocation171_spill] sm:$0xff] %v9961_v34  ;;  %v9968_v14 = vld [vmem:[#allocation8 + $0x5f0] sm:$0xff] }
 0x739   :  { %4059 = vmatpush.msra.mxu2 %v9945_v3  ;;  %4099 = vmatpush.msra.mxu0 %v9948_v41  ;;  %v3667_v22 = vmul.f32 %v4824_v59, %v7226_v4  ;;  %v3661_v5 = vadd.f32 %v3657_v62, %v12471_v23  ;;  %12714 = vst [vmem:[#allocation173_spill] sm:$0xff] %v9968_v14  ;;  %v10246_v41 = vld [vmem:[#allocation8 + $0x9f8] sm:$0xff]  ;;  %v10251_v3 = vld [vmem:[#allocation8 + $0x990] sm:$0xff] }
 0x73a   :  { %v3660_v58 = vadd.f32 %v3656_v60, %v12466_v55  ;;  %v4826_v60 = vpop.eup %4825  ;;  %12715 = vst [vmem:[#allocation174_spill] sm:$0xff] %v9971_v61  ;;  %v9983_v55 = vld [vmem:[#allocation8 + $0x530] sm:$0xff] }
 0x73b   :  { %4060 = vmatpush.msra.mxu2 %v9952_v26  ;;  %4100 = vmatpush.msra.mxu0 %v9955_v12  ;;  %v3666_v13 = vmul.f32 %v4826_v60, %v11754_v46  ;;  %12716 = vst [vmem:[#allocation172_spill] sm:$0xff] %v9975_v25  ;;  %v3671_v62 = vadd.f32 %v3667_v22, %v7229_v30  ;;  %v9994_v22 = vld [vmem:[#allocation8 + $0x4d8] sm:$0xff]  ;;  %v10243_v26 = vld [vmem:[#allocation8 + $0x9f0] sm:$0xff] }
 0x73c   :  { %4827 = vtanh.f32 %v3660_v58  ;;  %v9978_v58 = vld [vmem:[#allocation8 + $0x598] sm:$0xff]  ;;  %12718 = vst [vmem:[#allocation176_spill] sm:$0xff] %v9983_v55 }
 0x73d   :  { %4061 = vmatpush.msra.mxu2 %v9958_v36  ;;  %4101 = vmatpush.msra.mxu0 %v9961_v34  ;;  %12717 = vst [vmem:[#allocation175_spill] sm:$0xff] %v9978_v58  ;;  %4829 = vtanh.f32 %v3661_v5  ;;  %v3670_v60 = vadd.f32 %v3666_v13, %v6883_v19  ;;  %v3674_v5 = vmul.f32 %v3671_v62, %v9624_v29  ;;  %v10013_v29 = vld [vmem:[#allocation8 + $0x3b0] sm:$0xff]  ;;  %v10126_v34 = vld [vmem:[#allocation8 + $0x988] sm:$0xff]  ;;  %v10222_v12 = vld [vmem:[#allocation8 + $0xb18] sm:$0xff] }
 0x73e   :  { %4062 = vmatmul.f32.vlgmr.msra.gmra.mxu2 %v9657_v15  ;;  %4102 = vmatmul.f32.vlgmr.msra.gmra.mxu0 %v9657_v15  ;;  %12721 = vst [vmem:[#allocation179_spill] sm:$0xff] %v9994_v22  ;;  %v10219_v36 = vld [vmem:[#allocation8 + $0xb10] sm:$0xff] }
 0x73f   :  { %4126 = vmatpush.msrb.mxu2 %v9968_v14  ;;  %4166 = vmatpush.msrb.mxu0 %v9971_v61  ;;  %v9986_v61 = vld [vmem:[#allocation8 + $0x538] sm:$0xff]  ;;  %v9991_v14 = vld [vmem:[#allocation8 + $0x4d0] sm:$0xff]  ;;  %12727 = vst [vmem:[#allocation185_spill] sm:$0xff] %v10013_v29 }
 0x740   :  { %12719 = vst [vmem:[#allocation177_spill] sm:$0xff] %v9986_v61 }
 0x741   :  { %4127 = vmatpush.msrb.mxu2 %v9975_v25  ;;  %4167 = vmatpush.msrb.mxu0 %v9978_v58  ;;  %12720 = vst [vmem:[#allocation178_spill] sm:$0xff] %v9991_v14  ;;  %v10006_v58 = vld [vmem:[#allocation8 + $0x410] sm:$0xff] }
 0x742   :  { %v4828_v59 = vpop.eup %4827  ;;  %12725 = vst [vmem:[#allocation183_spill] sm:$0xff] %v10006_v58 }
 0x743   :  { %v3668_v23 = vmul.f32 %v4828_v59, %v11755_v63  ;;  %4128 = vmatpush.msrb.mxu2 %v9983_v55  ;;  %4168 = vmatpush.msrb.mxu0 %v9986_v61  ;;  %v9998_v55 = vld [vmem:[#allocation8 + $0x470] sm:$0xff]  ;;  %v10001_v61 = vld [vmem:[#allocation8 + $0x478] sm:$0xff]  ;;  %12753 = vst [vmem:[#allocation31_spill] sm:$0xff] %v10259_v0 }
 0x744   :  { %12722 = vst [vmem:[#allocation180_spill] sm:$0xff] %v9998_v55 }
 0x745   :  { %v3672_v25 = vadd.f32 %v3668_v23, %v11757_v18  ;;  %4129 = vmatpush.msrb.mxu2 %v9991_v14  ;;  %4169 = vmatpush.msrb.mxu0 %v9994_v22  ;;  %12723 = vst [vmem:[#allocation181_spill] sm:$0xff] %v10001_v61  ;;  %v4830_v23 = vpop.eup %4829  ;;  %v10009_v14 = vld [vmem:[#allocation8 + $0x418] sm:$0xff]  ;;  %v10123_v22 = vld [vmem:[#allocation8 + $0x980] sm:$0xff] }
 0x746   :  { %12726 = vst [vmem:[#allocation184_spill] sm:$0xff] %v10009_v14  ;;  %v3669_v62 = vmul.f32 %v4830_v23, %v6897_v49  ;;  %v10033_v23 = vld [vmem:[#allocation8 + $0x290] sm:$0xff] }
 0x747   :  { %v3675_v59 = vmul.f32 %v3672_v25, %v3670_v60  ;;  %4130 = vmatpush.msrb.mxu2 %v9998_v55  ;;  %4170 = vmatpush.msrb.mxu0 %v10001_v61  ;;  %v10016_v25 = vld [vmem:[#allocation8 + $0x3b8] sm:$0xff]  ;;  %v10020_v60 = vld [vmem:[#allocation8 + $0x350] sm:$0xff]  ;;  %12733 = vst [vmem:[#allocation191_spill] sm:$0xff] %v10033_v23  ;;  %v10115_v55 = vld [vmem:[#allocation8 + $0x9e0] sm:$0xff] }
 0x748   :  { %12728 = vst [vmem:[#allocation186_spill] sm:$0xff] %v10016_v25  ;;  %v10094_v61 = vld [vmem:[#allocation8 + $0x58] sm:$0xff] }
 0x749   :  { %v10004_v13 = vadd.f32 %v3675_v59, %v3674_v5  ;;  %4131 = vmatpush.msrb.mxu2 %v10006_v58  ;;  %4171 = vmatpush.msrb.mxu0 %v10009_v14  ;;  %12729 = vst [vmem:[#allocation187_spill] sm:$0xff] %v10020_v60  ;;  %v10023_v5 = vld [vmem:[#allocation8 + $0x358] sm:$0xff]  ;;  %v10026_v59 = vld [vmem:[#allocation8 + $0x2f0] sm:$0xff] }
 0x74a   :  { %12730 = vst [vmem:[#allocation188_spill] sm:$0xff] %v10023_v5  ;;  %v10039_v14 = vld [vmem:[#allocation8 + $0x230] sm:$0xff]  ;;  %v10048_v58 = vld [vmem:[#allocation8 + $0x1d8] sm:$0xff] }
 0x74b   :  { %12724 = vst [vmem:[#allocation182_spill] sm:$0xff] %v10004_v13  ;;  %4831 = vtanh.f32 %v10004_v13  ;;  %4132 = vmatpush.msrb.mxu2 %v10013_v29  ;;  %4172 = vmatpush.msrb.mxu0 %v10016_v25  ;;  %v10029_v13 = vld [vmem:[#allocation8 + $0x2f8] sm:$0xff]  ;;  %v3673_v25 = vadd.f32 %v3669_v62, %v6901_v45  ;;  %v10045_v62 = vld [vmem:[#allocation8 + $0x1d0] sm:$0xff] }
 0x74c   :  { %12731 = vst [vmem:[#allocation189_spill] sm:$0xff] %v10026_v59 }
 0x74d   :  { %4133 = vmatpush.msrb.mxu2 %v10020_v60  ;;  %4173 = vmatpush.msrb.mxu0 %v10023_v5  ;;  %12732 = vst [vmem:[#allocation190_spill] sm:$0xff] %v10029_v13  ;;  %v10036_v60 = vld [vmem:[#allocation8 + $0x298] sm:$0xff] }
 0x74e   :  { %12734 = vst [vmem:[#allocation192_spill] sm:$0xff] %v10036_v60 }
 0x74f   :  { %4134 = vmatpush.msrb.mxu2 %v10026_v59  ;;  %4174 = vmatpush.msrb.mxu0 %v10029_v13  ;;  %12735 = vst [vmem:[#allocation193_spill] sm:$0xff] %v10039_v14  ;;  %v10042_v59 = vld [vmem:[#allocation8 + $0x238] sm:$0xff] }
 0x750   :  { %12736 = vst [vmem:[#allocation194_spill] sm:$0xff] %v10042_v59 }
 0x751   :  { %v4832_v29 = vpop.eup %4831  ;;  %4135 = vmatpush.msrb.mxu2 %v10033_v23  ;;  %4175 = vmatpush.msrb.mxu0 %v10036_v60  ;;  %12737 = vst [vmem:[#allocation195_spill] sm:$0xff] %v10045_v62  ;;  %v10091_v60 = vld [vmem:[#allocation8 + $0x50] sm:$0xff] }
 0x752   :  { %v3678_v5 = vmul.f32 %v4832_v29, %v3673_v25  ;;  %12738 = vst [vmem:[#allocation196_spill] sm:$0xff] %v10048_v58  ;;  %v10053_v29 = vld [vmem:[#allocation8 + $0x170] sm:$0xff]  ;;  %v10056_v25 = vld [vmem:[#allocation8 + $0x178] sm:$0xff] }
 0x753   :  { %4136 = vmatpush.msrb.mxu2 %v10039_v14  ;;  %4176 = vmatpush.msrb.mxu0 %v10042_v59  ;;  %12739 = vst [vmem:[#allocation197_spill] sm:$0xff] %v10053_v29  ;;  %v10079_v59 = vld [vmem:[#allocation8 + $0xb0] sm:$0xff]  ;;  %v10082_v14 = vld [vmem:[#allocation8 + $0xb8] sm:$0xff] }
 0x754   :  { %v3720_v13 = vrot.slane %v3678_v5, 4  ;;  %12740 = vst [vmem:[#allocation198_spill] sm:$0xff] %v10056_v25  ;;  %v10061_v5 = vld [vmem:[#allocation8 + $0xbc0] sm:$0xff] }
 0x755   :  { %4137 = vmatpush.msrb.mxu2 %v10045_v62  ;;  %4177 = vmatpush.msrb.mxu0 %v10048_v58  ;;  %v10064_v62 = vld [vmem:[#allocation8 + $0xbc8] sm:$0xff]  ;;  %12743 = vst [vmem:[#allocation25_spill] sm:$0xff] %v10079_v59 }
 0x756   :  { %v10051_v23 = vrot.slane %v3720_v13, 4  ;;  %v10067_v13 = vld [vmem:[#allocation8 + $0x110] sm:$0xff]  ;;  %v10076_v58 = vld [vmem:[#allocation8 + $0xb68] sm:$0xff]  ;;  %12744 = vst [vmem:[#allocation58_spill] sm:$0xff] %v10082_v14 }
 0x757   :  { %4138 = vmatpush.msrb.mxu2 %v10053_v29  ;;  %4178 = vmatpush.msrb.mxu0 %v10056_v25  ;;  %12741 = vst [vmem:[#allocation54_spill] sm:$0xff] %v10067_v13  ;;  %v10070_v29 = vld [vmem:[#allocation8 + $0x118] sm:$0xff]  ;;  %v10073_v25 = vld [vmem:[#allocation8 + $0xb60] sm:$0xff] }
 0x758   :  { %3762 = vmatmul.f32.vlgmr.msrb.gmra.mxu3 %v10051_v23  ;;  %3802 = vmatmul.f32.vlgmr.msrb.gmra.mxu1 %v10051_v23  ;;  %12742 = vst [vmem:[#allocation17_spill] sm:$0xff] %v10070_v29 }
 0x759   :  { %3906 = vmatpush.msrb.mxu3 %v10061_v5  ;;  %3946 = vmatpush.msrb.mxu1 %v10064_v62  ;;  %12745 = vst [vmem:[#allocation18_spill] sm:$0xff] %v10091_v60 }
 0x75a   :  { %4139 = vmatpush.msrb.mxu2 %v10067_v13  ;;  %4179 = vmatpush.msrb.mxu0 %v10070_v29  ;;  %v10085_v13 = vld [vmem:[#allocation8 + $0xb00] sm:$0xff]  ;;  %v10088_v29 = vld [vmem:[#allocation8 + $0xb08] sm:$0xff]  ;;  %12746 = vst [vmem:[#allocation28_spill] sm:$0xff] %v10094_v61 }
 0x75b   :  { %3907 = vmatpush.msrb.mxu3 %v10073_v25  ;;  %3947 = vmatpush.msrb.mxu1 %v10076_v58  ;;  %12754 = vst [vmem:[#allocation19_spill] sm:$0xff] %v10262_v42 }
 0x75c   :  { %4140 = vmatpush.msrb.mxu2 %v10079_v59  ;;  %4180 = vmatpush.msrb.mxu0 %v10082_v14  ;;  %v10097_v59 = vld [vmem:[#allocation8 + $0xaa0] sm:$0xff]  ;;  %v10100_v14 = vld [vmem:[#allocation8 + $0xaa8] sm:$0xff]  ;;  %12757 = vst [vmem:[#allocation62_spill] sm:$0xff] %v10267_v38 }
 0x75d   :  { %3908 = vmatpush.msrb.mxu3 %v10085_v13  ;;  %3948 = vmatpush.msrb.mxu1 %v10088_v29  ;;  %12758 = vst [vmem:[#allocation34_spill] sm:$0xff] %v10270_v52 }
 0x75e   :  { %4141 = vmatpush.msrb.mxu2 %v10091_v60  ;;  %4181 = vmatpush.msrb.mxu0 %v10094_v61  ;;  %v10107_v60 = vld [vmem:[#allocation8 + $0xa40] sm:$0xff]  ;;  %v10110_v61 = vld [vmem:[#allocation8 + $0xa48] sm:$0xff]  ;;  %12761 = vst [vmem:[#allocation21_spill] sm:$0xff] %v10275_v50 }
 0x75f   :  { %3909 = vmatpush.msrb.mxu3 %v10097_v59  ;;  %3949 = vmatpush.msrb.mxu1 %v10100_v14 }
 0x760   :  { %4142 = vmatmul.f32.vlgmr.msrb.gmra.mxu2 %v9657_v15  ;;  %4182 = vmatmul.f32.vlgmr.msrb.gmra.mxu0 %v9657_v15  ;;  %v10118_v15 = vld [vmem:[#allocation8 + $0x9e8] sm:$0xff] }
 0x761   :  { %3842 = vmatmul.f32.vlgmr.msra.gmra.mxu3 %v10051_v23  ;;  %3882 = vmatmul.f32.vlgmr.msra.gmra.mxu1 %v10051_v23 }
 0x762   :  { %3910 = vmatpush.msrb.mxu3 %v10107_v60  ;;  %3950 = vmatpush.msrb.mxu1 %v10110_v61 }
 0x763   :  { %4278 = vmatpush.msra.mxu2 %v9661_v11  ;;  %4318 = vmatpush.msra.mxu0 %v9664_v16  ;;  %v10131_v11 = vld [vmem:[#allocation8 + $0x920] sm:$0xff]  ;;  %v10134_v16 = vld [vmem:[#allocation8 + $0x928] sm:$0xff] }
 0x764   :  { %3911 = vmatpush.msrb.mxu3 %v10115_v55  ;;  %3951 = vmatpush.msrb.mxu1 %v10118_v15 }
 0x765   :  { %4279 = vmatpush.msra.mxu2 %v9667_v7  ;;  %4319 = vmatpush.msra.mxu0 %v9670_v39  ;;  %v10139_v7 = vld [vmem:[#allocation8 + $0x8c0] sm:$0xff]  ;;  %v10142_v39 = vld [vmem:[#allocation8 + $0x8c8] sm:$0xff] }
 0x766   :  { %3912 = vmatpush.msrb.mxu3 %v10123_v22  ;;  %3952 = vmatpush.msrb.mxu1 %v10126_v34 }
 0x767   :  { %4280 = vmatpush.msra.mxu2 %v9673_v35  ;;  %4320 = vmatpush.msra.mxu0 %v9676_v6  ;;  %v10147_v35 = vld [vmem:[#allocation8 + $0x860] sm:$0xff]  ;;  %v10150_v6 = vld [vmem:[#allocation8 + $0x868] sm:$0xff] }
 0x768   :  { %3913 = vmatpush.msrb.mxu3 %v10131_v11  ;;  %3953 = vmatpush.msrb.mxu1 %v10134_v16 }
 0x769   :  { %4281 = vmatpush.msra.mxu2 %v9679_v10  ;;  %4321 = vmatpush.msra.mxu0 %v9682_v51  ;;  %v10155_v10 = vld [vmem:[#allocation8 + $0x800] sm:$0xff]  ;;  %v10158_v51 = vld [vmem:[#allocation8 + $0x808] sm:$0xff] }
 0x76a   :  { %3914 = vmatpush.msrb.mxu3 %v10139_v7  ;;  %3954 = vmatpush.msrb.mxu1 %v10142_v39 }
 0x76b   :  { %4282 = vmatpush.msra.mxu2 %v9687_v20  ;;  %4322 = vmatpush.msra.mxu0 %v9690_v28  ;;  %v10163_v20 = vld [vmem:[#allocation8 + $0x7a0] sm:$0xff]  ;;  %v10166_v28 = vld [vmem:[#allocation8 + $0x7a8] sm:$0xff] }
 0x76c   :  { %3915 = vmatpush.msrb.mxu3 %v10147_v35  ;;  %3955 = vmatpush.msrb.mxu1 %v10150_v6 }
 0x76d   :  { %4283 = vmatpush.msra.mxu2 %v9693_v47  ;;  %4323 = vmatpush.msra.mxu0 %v9696_v21  ;;  %v10171_v47 = vld [vmem:[#allocation8 + $0x740] sm:$0xff]  ;;  %v10174_v21 = vld [vmem:[#allocation8 + $0x748] sm:$0xff] }
 0x76e   :  { %3916 = vmatpush.msrb.mxu3 %v10155_v10  ;;  %3956 = vmatpush.msrb.mxu1 %v10158_v51 }
 0x76f   :  { %4284 = vmatpush.msra.mxu2 %v9699_v2  ;;  %4324 = vmatpush.msra.mxu0 %v9702_v8  ;;  %v10179_v2 = vld [vmem:[#allocation8 + $0x6e0] sm:$0xff]  ;;  %v10182_v8 = vld [vmem:[#allocation8 + $0x6e8] sm:$0xff] }
 0x770   :  { %3917 = vmatpush.msrb.mxu3 %v10163_v20  ;;  %3957 = vmatpush.msrb.mxu1 %v10166_v28 }
 0x771   :  { %4285 = vmatpush.msra.mxu2 %v9705_v53  ;;  %4325 = vmatpush.msra.mxu0 %v9708_v48  ;;  %v10187_v53 = vld [vmem:[#allocation8 + $0x680] sm:$0xff]  ;;  %v10190_v48 = vld [vmem:[#allocation8 + $0x688] sm:$0xff] }
 0x772   :  { %3918 = vmatpush.msrb.mxu3 %v10171_v47  ;;  %3958 = vmatpush.msrb.mxu1 %v10174_v21 }
 0x773   :  { %4286 = vmatpush.msra.mxu2 %v9711_v40  ;;  %4326 = vmatpush.msra.mxu0 %v9714_v33  ;;  %v10195_v40 = vld [vmem:[#allocation8 + $0x620] sm:$0xff]  ;;  %v10198_v33 = vld [vmem:[#allocation8 + $0x628] sm:$0xff] }
 0x774   :  { %3919 = vmatpush.msrb.mxu3 %v10179_v2  ;;  %3959 = vmatpush.msrb.mxu1 %v10182_v8 }
 0x775   :  { %4287 = vmatpush.msra.mxu2 %v9717_v54  ;;  %4327 = vmatpush.msra.mxu0 %v9720_v57  ;;  %v10203_v54 = vld [vmem:[#allocation8 + $0xbd0] sm:$0xff]  ;;  %v10206_v57 = vld [vmem:[#allocation8 + $0xbd8] sm:$0xff] }
 0x776   :  { %3920 = vmatpush.msrb.mxu3 %v10187_v53  ;;  %3960 = vmatpush.msrb.mxu1 %v10190_v48 }
 0x777   :  { %4288 = vmatpush.msra.mxu2 %v9723_v31  ;;  %4328 = vmatpush.msra.mxu0 %v9726_v1  ;;  %v10211_v31 = vld [vmem:[#allocation8 + $0xb70] sm:$0xff]  ;;  %v10214_v1 = vld [vmem:[#allocation8 + $0xb78] sm:$0xff] }
 0x778   :  { %3921 = vmatpush.msrb.mxu3 %v10195_v40  ;;  %3961 = vmatpush.msrb.mxu1 %v10198_v33 }
 0x779   :  { %3922 = vmatmul.f32.vlgmr.msrb.gmra.mxu3 %v10051_v23  ;;  %3962 = vmatmul.f32.vlgmr.msrb.gmra.mxu1 %v10051_v23 }
 0x77a   :  { %3986 = vmatpush.msra.mxu3 %v10203_v54  ;;  %4026 = vmatpush.msra.mxu1 %v10206_v57 }
 0x77b   :  { %4289 = vmatpush.msra.mxu2 %v9729_v24  ;;  %4329 = vmatpush.msra.mxu0 %v9732_v43  ;;  %v10227_v24 = vld [vmem:[#allocation8 + $0xab0] sm:$0xff]  ;;  %v10230_v43 = vld [vmem:[#allocation8 + $0xab8] sm:$0xff] }
 0x77c   :  { %3987 = vmatpush.msra.mxu3 %v10211_v31  ;;  %4027 = vmatpush.msra.mxu1 %v10214_v1 }
 0x77d   :  { %4290 = vmatpush.msra.mxu2 %v9735_v56  ;;  %4330 = vmatpush.msra.mxu0 %v9738_v17  ;;  %v10235_v56 = vld [vmem:[#allocation8 + $0xa50] sm:$0xff]  ;;  %v10238_v17 = vld [vmem:[#allocation8 + $0xa58] sm:$0xff] }
 0x77e   :  { %3988 = vmatpush.msra.mxu3 %v10219_v36  ;;  %4028 = vmatpush.msra.mxu1 %v10222_v12 }
 0x77f   :  { %4291 = vmatpush.msra.mxu2 %v9741_v27  ;;  %4331 = vmatpush.msra.mxu0 %v9744_v9  ;;  %v12747_v27 = vld [vmem:[#allocation104_spill] sm:$0xff]  ;;  %v12748_v9 = vld [vmem:[#allocation106_spill] sm:$0xff] }
 0x780   :  { %3989 = vmatpush.msra.mxu3 %v10227_v24  ;;  %4029 = vmatpush.msra.mxu1 %v10230_v43 }
 0x781   :  { %4292 = vmatpush.msra.mxu2 %v9747_v37  ;;  %4332 = vmatpush.msra.mxu0 %v9750_v32  ;;  %v12749_v37 = vld [vmem:[#allocation108_spill] sm:$0xff]  ;;  %v12750_v32 = vld [vmem:[#allocation110_spill] sm:$0xff] }
 0x782   :  { %3990 = vmatpush.msra.mxu3 %v10235_v56  ;;  %4030 = vmatpush.msra.mxu1 %v10238_v17 }
 0x783   :  { %4293 = vmatpush.msra.mxu2 %v12747_v27  ;;  %4333 = vmatpush.msra.mxu0 %v12748_v9  ;;  %v12751_v27 = vld [vmem:[#allocation112_spill] sm:$0xff]  ;;  %v12752_v9 = vld [vmem:[#allocation115_spill] sm:$0xff] }
 0x784   :  { %3991 = vmatpush.msra.mxu3 %v10243_v26  ;;  %4031 = vmatpush.msra.mxu1 %v10246_v41 }
 0x785   :  { %4358 = vmatpush.msrb.mxu2 %v12749_v37  ;;  %4398 = vmatpush.msrb.mxu0 %v12750_v32  ;;  %v12755_v37 = vld [vmem:[#allocation117_spill] sm:$0xff]  ;;  %v12756_v32 = vld [vmem:[#allocation119_spill] sm:$0xff] }
 0x786   :  { %3992 = vmatpush.msra.mxu3 %v10251_v3  ;;  %4032 = vmatpush.msra.mxu1 %v10254_v44 }
 0x787   :  { %4359 = vmatpush.msrb.mxu2 %v12751_v27  ;;  %4399 = vmatpush.msrb.mxu0 %v12752_v9  ;;  %v12759_v27 = vld [vmem:[#allocation99_spill] sm:$0xff]  ;;  %v12760_v9 = vld [vmem:[#allocation101_spill] sm:$0xff] }
 0x788   :  { %3993 = vmatpush.msra.mxu3 %v10259_v0  ;;  %4033 = vmatpush.msra.mxu1 %v10262_v42  ;;  %v10278_v42 = vld [vmem:[#allocation8 + $0x878] sm:$0xff]  ;;  %v4232_v0 = vld [vmem:[#allocation2 + $0x20] sm:$0xc0] }
 0x789   :  { %4360 = vmatpush.msrb.mxu2 %v12755_v37  ;;  %4400 = vmatpush.msrb.mxu0 %v12756_v32  ;;  %12762 = vst [vmem:[#allocation66_spill] sm:$0xff] %v10278_v42  ;;  %v12763_v37 = vld [vmem:[#allocation103_spill] sm:$0xff]  ;;  %v12764_v32 = vld [vmem:[#allocation105_spill] sm:$0xff] }
 0x78a   :  { %3994 = vmatpush.msra.mxu3 %v10267_v38  ;;  %4034 = vmatpush.msra.mxu1 %v10270_v52  ;;  %v10283_v38 = vld [vmem:[#allocation8 + $0x810] sm:$0xff]  ;;  %v10286_v52 = vld [vmem:[#allocation8 + $0x818] sm:$0xff] }
 0x78b   :  { %4361 = vmatpush.msrb.mxu2 %v12759_v27  ;;  %4401 = vmatpush.msrb.mxu0 %v12760_v9  ;;  %12765 = vst [vmem:[#allocation37_spill] sm:$0xff] %v10283_v38  ;;  %v12767_v27 = vld [vmem:[#allocation107_spill] sm:$0xff]  ;;  %v12768_v9 = vld [vmem:[#allocation109_spill] sm:$0xff] }
 0x78c   :  { %3995 = vmatpush.msra.mxu3 %v10275_v50  ;;  %4035 = vmatpush.msra.mxu1 %v10278_v42  ;;  %12766 = vst [vmem:[#allocation24_spill] sm:$0xff] %v10286_v52  ;;  %v10291_v50 = vld [vmem:[#allocation8 + $0x7b0] sm:$0xff]  ;;  %v10294_v42 = vld [vmem:[#allocation8 + $0x7b8] sm:$0xff] }
 0x78d   :  { %4362 = vmatpush.msrb.mxu2 %v12763_v37  ;;  %4402 = vmatpush.msrb.mxu0 %v12764_v32  ;;  %12769 = vst [vmem:[#allocation70_spill] sm:$0xff] %v10291_v50  ;;  %v12771_v37 = vld [vmem:[#allocation111_spill] sm:$0xff]  ;;  %v12772_v32 = vld [vmem:[#allocation113_spill] sm:$0xff] }
 0x78e   :  { %3996 = vmatpush.msra.mxu3 %v10283_v38  ;;  %4036 = vmatpush.msra.mxu1 %v10286_v52  ;;  %12770 = vst [vmem:[#allocation40_spill] sm:$0xff] %v10294_v42  ;;  %v10299_v38 = vld [vmem:[#allocation8 + $0x750] sm:$0xff]  ;;  %v10302_v52 = vld [vmem:[#allocation8 + $0x758] sm:$0xff] }
 0x78f   :  { %4363 = vmatpush.msrb.mxu2 %v12767_v27  ;;  %4403 = vmatpush.msrb.mxu0 %v12768_v9  ;;  %12773 = vst [vmem:[#allocation27_spill] sm:$0xff] %v10299_v38  ;;  %v12775_v27 = vld [vmem:[#allocation114_spill] sm:$0xff]  ;;  %v12776_v9 = vld [vmem:[#allocation116_spill] sm:$0xff] }
 0x790   :  { %3997 = vmatpush.msra.mxu3 %v10291_v50  ;;  %4037 = vmatpush.msra.mxu1 %v10294_v42  ;;  %12774 = vst [vmem:[#allocation74_spill] sm:$0xff] %v10302_v52  ;;  %v10307_v50 = vld [vmem:[#allocation8 + $0x6f0] sm:$0xff]  ;;  %v10310_v42 = vld [vmem:[#allocation8 + $0x6f8] sm:$0xff] }
 0x791   :  { %4364 = vmatpush.msrb.mxu2 %v12771_v37  ;;  %4404 = vmatpush.msrb.mxu0 %v12772_v32  ;;  %12777 = vst [vmem:[#allocation43_spill] sm:$0xff] %v10307_v50  ;;  %v12779_v37 = vld [vmem:[#allocation118_spill] sm:$0xff]  ;;  %v12780_v32 = vld [vmem:[#allocation120_spill] sm:$0xff] }
 0x792   :  { %3998 = vmatpush.msra.mxu3 %v10299_v38  ;;  %4038 = vmatpush.msra.mxu1 %v10302_v52  ;;  %12778 = vst [vmem:[#allocation30_spill] sm:$0xff] %v10310_v42  ;;  %v10315_v38 = vld [vmem:[#allocation8 + $0x690] sm:$0xff]  ;;  %v10318_v52 = vld [vmem:[#allocation8 + $0x698] sm:$0xff] }
 0x793   :  { %4365 = vmatpush.msrb.mxu2 %v12775_v27  ;;  %4405 = vmatpush.msrb.mxu0 %v12776_v9  ;;  %12781 = vst [vmem:[#allocation78_spill] sm:$0xff] %v10315_v38  ;;  %v12783_v27 = vld [vmem:[#allocation121_spill] sm:$0xff]  ;;  %v12784_v9 = vld [vmem:[#allocation127_spill] sm:$0xff] }
 0x794   :  { %3999 = vmatpush.msra.mxu3 %v10307_v50  ;;  %4039 = vmatpush.msra.mxu1 %v10310_v42  ;;  %12782 = vst [vmem:[#allocation46_spill] sm:$0xff] %v10318_v52  ;;  %v10323_v50 = vld [vmem:[#allocation8 + $0x630] sm:$0xff]  ;;  %v10326_v42 = vld [vmem:[#allocation8 + $0x638] sm:$0xff] }
 0x795   :  { %4366 = vmatpush.msrb.mxu2 %v12779_v37  ;;  %4406 = vmatpush.msrb.mxu0 %v12780_v32  ;;  %12785 = vst [vmem:[#allocation33_spill] sm:$0xff] %v10323_v50  ;;  %v10331_v37 = vld [vmem:[#allocation8 + $0xbe0] sm:$0xff]  ;;  %v10334_v32 = vld [vmem:[#allocation8 + $0xbe8] sm:$0xff] }
 0x796   :  { %4000 = vmatpush.msra.mxu3 %v10315_v38  ;;  %4040 = vmatpush.msra.mxu1 %v10318_v52  ;;  %12786 = vst [vmem:[#allocation82_spill] sm:$0xff] %v10326_v42  ;;  %v12793_v52 = vld [vmem:[#allocation130_spill] sm:$0xff]  ;;  %v12794_v38 = vld [vmem:[#allocation131_spill] sm:$0xff] }
 0x797   :  { %4367 = vmatpush.msrb.mxu2 %v12783_v27  ;;  %4407 = vmatpush.msrb.mxu0 %v12784_v9  ;;  %12787 = vst [vmem:[#allocation49_spill] sm:$0xff] %v10331_v37  ;;  %v12789_v27 = vld [vmem:[#allocation128_spill] sm:$0xff]  ;;  %v12790_v9 = vld [vmem:[#allocation129_spill] sm:$0xff] }
 0x798   :  { %4001 = vmatpush.msra.mxu3 %v10323_v50  ;;  %4041 = vmatpush.msra.mxu1 %v10326_v42  ;;  %12788 = vst [vmem:[#allocation36_spill] sm:$0xff] %v10334_v32  ;;  %v10339_v50 = vld [vmem:[#allocation8 + $0xb80] sm:$0xff]  ;;  %v10342_v42 = vld [vmem:[#allocation8 + $0xb88] sm:$0xff] }
 0x799   :  { %4002 = vmatmul.f32.vlgmr.msra.gmra.mxu3 %v10051_v23  ;;  %4042 = vmatmul.f32.vlgmr.msra.gmra.mxu1 %v10051_v23  ;;  %12791 = vst [vmem:[#allocation86_spill] sm:$0xff] %v10339_v50 }
 0x79a   :  { %4066 = vmatpush.msrb.mxu3 %v10331_v37  ;;  %4106 = vmatpush.msrb.mxu1 %v10334_v32  ;;  %12792 = vst [vmem:[#allocation53_spill] sm:$0xff] %v10342_v42  ;;  %v10347_v37 = vld [vmem:[#allocation8 + $0xb20] sm:$0xff]  ;;  %v10350_v32 = vld [vmem:[#allocation8 + $0xb28] sm:$0xff] }
 0x79b   :  { %4368 = vmatpush.msrb.mxu2 %v12789_v27  ;;  %4408 = vmatpush.msrb.mxu0 %v12790_v9  ;;  %12795 = vst [vmem:[#allocation39_spill] sm:$0xff] %v10347_v37  ;;  %v12797_v27 = vld [vmem:[#allocation132_spill] sm:$0xff]  ;;  %v12798_v9 = vld [vmem:[#allocation133_spill] sm:$0xff] }
 0x79c   :  { %4067 = vmatpush.msrb.mxu3 %v10339_v50  ;;  %4107 = vmatpush.msrb.mxu1 %v10342_v42  ;;  %12796 = vst [vmem:[#allocation57_spill] sm:$0xff] %v10350_v32  ;;  %v10355_v50 = vld [vmem:[#allocation8 + $0xac0] sm:$0xff]  ;;  %v10358_v42 = vld [vmem:[#allocation8 + $0xac8] sm:$0xff] }
 0x79d   :  { %4369 = vmatpush.msrb.mxu2 %v12793_v52  ;;  %4409 = vmatpush.msrb.mxu0 %v12794_v38  ;;  %12799 = vst [vmem:[#allocation42_spill] sm:$0xff] %v10355_v50  ;;  %v12801_v52 = vld [vmem:[#allocation134_spill] sm:$0xff]  ;;  %v12802_v38 = vld [vmem:[#allocation135_spill] sm:$0xff] }
 0x79e   :  { %4068 = vmatpush.msrb.mxu3 %v10347_v37  ;;  %4108 = vmatpush.msrb.mxu1 %v10350_v32  ;;  %12800 = vst [vmem:[#allocation61_spill] sm:$0xff] %v10358_v42  ;;  %v10363_v37 = vld [vmem:[#allocation8 + $0xa60] sm:$0xff]  ;;  %v10366_v32 = vld [vmem:[#allocation8 + $0xa68] sm:$0xff] }
 0x79f   :  { %4370 = vmatpush.msrb.mxu2 %v12797_v27  ;;  %4410 = vmatpush.msrb.mxu0 %v12798_v9  ;;  %12803 = vst [vmem:[#allocation45_spill] sm:$0xff] %v10363_v37  ;;  %v12805_v27 = vld [vmem:[#allocation136_spill] sm:$0xff]  ;;  %v12806_v9 = vld [vmem:[#allocation137_spill] sm:$0xff] }
 0x7a0   :  { %4069 = vmatpush.msrb.mxu3 %v10355_v50  ;;  %4109 = vmatpush.msrb.mxu1 %v10358_v42  ;;  %12804 = vst [vmem:[#allocation65_spill] sm:$0xff] %v10366_v32  ;;  %v10371_v50 = vld [vmem:[#allocation8 + $0xa00] sm:$0xff]  ;;  %v10374_v42 = vld [vmem:[#allocation8 + $0xa08] sm:$0xff] }
 0x7a1   :  { %4371 = vmatpush.msrb.mxu2 %v12801_v52  ;;  %4411 = vmatpush.msrb.mxu0 %v12802_v38  ;;  %12807 = vst [vmem:[#allocation48_spill] sm:$0xff] %v10371_v50  ;;  %v12809_v52 = vld [vmem:[#allocation138_spill] sm:$0xff]  ;;  %v12810_v38 = vld [vmem:[#allocation139_spill] sm:$0xff] }
 0x7a2   :  { %4070 = vmatpush.msrb.mxu3 %v10363_v37  ;;  %4110 = vmatpush.msrb.mxu1 %v10366_v32  ;;  %12808 = vst [vmem:[#allocation69_spill] sm:$0xff] %v10374_v42  ;;  %v10379_v37 = vld [vmem:[#allocation8 + $0x9a0] sm:$0xff]  ;;  %v10382_v32 = vld [vmem:[#allocation8 + $0x9a8] sm:$0xff] }
 0x7a3   :  { %4372 = vmatpush.msrb.mxu2 %v12805_v27  ;;  %4412 = vmatpush.msrb.mxu0 %v12806_v9  ;;  %12811 = vst [vmem:[#allocation52_spill] sm:$0xff] %v10379_v37  ;;  %v10385_v27 = vld [vmem:[#allocation8 + $0x940] sm:$0xff]  ;;  %v10388_v9 = vld [vmem:[#allocation8 + $0x948] sm:$0xff] }
 0x7a4   :  { %4071 = vmatpush.msrb.mxu3 %v10371_v50  ;;  %4111 = vmatpush.msrb.mxu1 %v10374_v42  ;;  %12812 = vst [vmem:[#allocation20_spill] sm:$0xff] %v10382_v32  ;;  %v10391_v42 = vld [vmem:[#allocation8 + $0x8e0] sm:$0xff]  ;;  %v10531_v50 = vld [vmem:[#allocation8 + $0x650] sm:$0xff] }
 0x7a5   :  { %4373 = vmatpush.msrb.mxu2 %v12809_v52  ;;  %4413 = vmatpush.msrb.mxu0 %v12810_v38  ;;  %12813 = vst [vmem:[#allocation73_spill] sm:$0xff] %v10385_v27  ;;  %v10394_v52 = vld [vmem:[#allocation8 + $0x8e8] sm:$0xff]  ;;  %v10397_v38 = vld [vmem:[#allocation8 + $0x880] sm:$0xff] }
 0x7a6   :  { %4072 = vmatpush.msrb.mxu3 %v10379_v37  ;;  %4112 = vmatpush.msrb.mxu1 %v10382_v32  ;;  %12814 = vst [vmem:[#allocation56_spill] sm:$0xff] %v10388_v9  ;;  %v10400_v32 = vld [vmem:[#allocation8 + $0x888] sm:$0xff]  ;;  %v3783_v37 = vpop.f32.mrf.mxu0 }
 0x7a7   :  { %12815 = vst [vmem:[#allocation23_spill] sm:$0xff] %v10391_v42 }
 0x7a8   :  { %4073 = vmatpush.msrb.mxu3 %v10385_v27  ;;  %4113 = vmatpush.msrb.mxu1 %v10388_v9  ;;  %12816 = vst [vmem:[#allocation77_spill] sm:$0xff] %v10394_v52  ;;  %v10403_v27 = vld [vmem:[#allocation8 + $0x820] sm:$0xff]  ;;  %v10406_v9 = vld [vmem:[#allocation8 + $0x828] sm:$0xff] }
 0x7a9   :  { %12817 = vst [vmem:[#allocation60_spill] sm:$0xff] %v10397_v38 }
 0x7aa   :  { %4074 = vmatpush.msrb.mxu3 %v10391_v42  ;;  %4114 = vmatpush.msrb.mxu1 %v10394_v52  ;;  %12818 = vst [vmem:[#allocation26_spill] sm:$0xff] %v10400_v32  ;;  %v10409_v42 = vld [vmem:[#allocation8 + $0x7c0] sm:$0xff]  ;;  %v10412_v52 = vld [vmem:[#allocation8 + $0x7c8] sm:$0xff] }
 0x7ab   :  { %12819 = vst [vmem:[#allocation81_spill] sm:$0xff] %v10403_v27 }
 0x7ac   :  { %4075 = vmatpush.msrb.mxu3 %v10397_v38  ;;  %4115 = vmatpush.msrb.mxu1 %v10400_v32  ;;  %12820 = vst [vmem:[#allocation64_spill] sm:$0xff] %v10406_v9  ;;  %v10415_v38 = vld [vmem:[#allocation8 + $0x760] sm:$0xff]  ;;  %v10418_v32 = vld [vmem:[#allocation8 + $0x768] sm:$0xff] }
 0x7ad   :  { %12821 = vst [vmem:[#allocation199_spill] sm:$0xff] %v10409_v42 }
 0x7ae   :  { %4076 = vmatpush.msrb.mxu3 %v10403_v27  ;;  %4116 = vmatpush.msrb.mxu1 %v10406_v9  ;;  %12822 = vst [vmem:[#allocation200_spill] sm:$0xff] %v10412_v52  ;;  %v10421_v27 = vld [vmem:[#allocation8 + $0x700] sm:$0xff]  ;;  %v10424_v9 = vld [vmem:[#allocation8 + $0x708] sm:$0xff] }
 0x7af   :  { %12823 = vst [vmem:[#allocation201_spill] sm:$0xff] %v10415_v38 }
 0x7b0   :  { %4077 = vmatpush.msrb.mxu3 %v10409_v42  ;;  %4117 = vmatpush.msrb.mxu1 %v10412_v52  ;;  %12824 = vst [vmem:[#allocation202_spill] sm:$0xff] %v10418_v32  ;;  %v10427_v42 = vld [vmem:[#allocation8 + $0x6a0] sm:$0xff]  ;;  %v10430_v52 = vld [vmem:[#allocation8 + $0x6a8] sm:$0xff] }
 0x7b1   :  { %12825 = vst [vmem:[#allocation203_spill] sm:$0xff] %v10421_v27 }
 0x7b2   :  { %4078 = vmatpush.msrb.mxu3 %v10415_v38  ;;  %4118 = vmatpush.msrb.mxu1 %v10418_v32  ;;  %12826 = vst [vmem:[#allocation204_spill] sm:$0xff] %v10424_v9  ;;  %v10433_v38 = vld [vmem:[#allocation8 + $0x640] sm:$0xff]  ;;  %v10436_v32 = vld [vmem:[#allocation8 + $0x648] sm:$0xff] }
 0x7b3   :  { %12827 = vst [vmem:[#allocation205_spill] sm:$0xff] %v10427_v42 }
 0x7b4   :  { %4079 = vmatpush.msrb.mxu3 %v10421_v27  ;;  %4119 = vmatpush.msrb.mxu1 %v10424_v9  ;;  %12828 = vst [vmem:[#allocation206_spill] sm:$0xff] %v10430_v52  ;;  %v10441_v9 = vld [vmem:[#allocation8 + $0xbf0] sm:$0xff]  ;;  %v10456_v27 = vld [vmem:[#allocation8 + $0xb38] sm:$0xff] }
 0x7b5   :  { %12829 = vst [vmem:[#allocation207_spill] sm:$0xff] %v10433_v38 }
 0x7b6   :  { %4080 = vmatpush.msrb.mxu3 %v10427_v42  ;;  %4120 = vmatpush.msrb.mxu1 %v10430_v52  ;;  %12830 = vst [vmem:[#allocation208_spill] sm:$0xff] %v10436_v32  ;;  %v10444_v42 = vld [vmem:[#allocation8 + $0xbf8] sm:$0xff]  ;;  %v10447_v52 = vld [vmem:[#allocation8 + $0xb90] sm:$0xff] }
 0x7b7   :  { %12831 = vst [vmem:[#allocation209_spill] sm:$0xff] %v10441_v9 }
 0x7b8   :  { %4081 = vmatpush.msrb.mxu3 %v10433_v38  ;;  %4121 = vmatpush.msrb.mxu1 %v10436_v32  ;;  %12832 = vst [vmem:[#allocation210_spill] sm:$0xff] %v10444_v42  ;;  %v10450_v38 = vld [vmem:[#allocation8 + $0xb98] sm:$0xff]  ;;  %v10453_v32 = vld [vmem:[#allocation8 + $0xb30] sm:$0xff] }
 0x7b9   :  { %4082 = vmatmul.f32.vlgmr.msrb.gmra.mxu3 %v10051_v23  ;;  %4122 = vmatmul.f32.vlgmr.msrb.gmra.mxu1 %v10051_v23  ;;  %12833 = vst [vmem:[#allocation211_spill] sm:$0xff] %v10447_v52 }
 0x7ba   :  { %4146 = vmatpush.msra.mxu3 %v10441_v9  ;;  %4186 = vmatpush.msra.mxu1 %v10444_v42  ;;  %12834 = vst [vmem:[#allocation212_spill] sm:$0xff] %v10450_v38  ;;  %v10459_v9 = vld [vmem:[#allocation8 + $0xad0] sm:$0xff]  ;;  %v10462_v42 = vld [vmem:[#allocation8 + $0xad8] sm:$0xff] }
 0x7bb   :  { %12835 = vst [vmem:[#allocation213_spill] sm:$0xff] %v10453_v32 }
 0x7bc   :  { %4147 = vmatpush.msra.mxu3 %v10447_v52  ;;  %4187 = vmatpush.msra.mxu1 %v10450_v38  ;;  %12836 = vst [vmem:[#allocation214_spill] sm:$0xff] %v10456_v27  ;;  %v10465_v52 = vld [vmem:[#allocation8 + $0xa70] sm:$0xff]  ;;  %v10468_v38 = vld [vmem:[#allocation8 + $0xa78] sm:$0xff] }
 0x7bd   :  { %12837 = vst [vmem:[#allocation215_spill] sm:$0xff] %v10459_v9 }
 0x7be   :  { %4148 = vmatpush.msra.mxu3 %v10453_v32  ;;  %4188 = vmatpush.msra.mxu1 %v10456_v27  ;;  %12838 = vst [vmem:[#allocation216_spill] sm:$0xff] %v10462_v42  ;;  %v10471_v32 = vld [vmem:[#allocation8 + $0xa10] sm:$0xff]  ;;  %v10474_v27 = vld [vmem:[#allocation8 + $0xa18] sm:$0xff] }
 0x7bf   :  { %12839 = vst [vmem:[#allocation217_spill] sm:$0xff] %v10465_v52 }
 0x7c0   :  { %4149 = vmatpush.msra.mxu3 %v10459_v9  ;;  %4189 = vmatpush.msra.mxu1 %v10462_v42  ;;  %12840 = vst [vmem:[#allocation218_spill] sm:$0xff] %v10468_v38  ;;  %v10477_v9 = vld [vmem:[#allocation8 + $0x9b0] sm:$0xff]  ;;  %v10480_v42 = vld [vmem:[#allocation8 + $0x9b8] sm:$0xff] }
 0x7c1   :  { %12841 = vst [vmem:[#allocation219_spill] sm:$0xff] %v10471_v32 }
 0x7c2   :  { %4150 = vmatpush.msra.mxu3 %v10465_v52  ;;  %4190 = vmatpush.msra.mxu1 %v10468_v38  ;;  %12842 = vst [vmem:[#allocation220_spill] sm:$0xff] %v10474_v27  ;;  %v10483_v52 = vld [vmem:[#allocation8 + $0x950] sm:$0xff]  ;;  %v10486_v38 = vld [vmem:[#allocation8 + $0x958] sm:$0xff] }
 0x7c3   :  { %12843 = vst [vmem:[#allocation221_spill] sm:$0xff] %v10477_v9 }
 0x7c4   :  { %4151 = vmatpush.msra.mxu3 %v10471_v32  ;;  %4191 = vmatpush.msra.mxu1 %v10474_v27  ;;  %12844 = vst [vmem:[#allocation222_spill] sm:$0xff] %v10480_v42  ;;  %v10489_v32 = vld [vmem:[#allocation8 + $0x8f0] sm:$0xff]  ;;  %v10492_v27 = vld [vmem:[#allocation8 + $0x8f8] sm:$0xff] }
 0x7c5   :  { %12845 = vst [vmem:[#allocation223_spill] sm:$0xff] %v10483_v52 }
 0x7c6   :  { %4152 = vmatpush.msra.mxu3 %v10477_v9  ;;  %4192 = vmatpush.msra.mxu1 %v10480_v42  ;;  %12846 = vst [vmem:[#allocation224_spill] sm:$0xff] %v10486_v38  ;;  %v10495_v9 = vld [vmem:[#allocation8 + $0x890] sm:$0xff]  ;;  %v10498_v42 = vld [vmem:[#allocation8 + $0x898] sm:$0xff] }
 0x7c7   :  { %12847 = vst [vmem:[#allocation225_spill] sm:$0xff] %v10489_v32 }
 0x7c8   :  { %4153 = vmatpush.msra.mxu3 %v10483_v52  ;;  %4193 = vmatpush.msra.mxu1 %v10486_v38  ;;  %12848 = vst [vmem:[#allocation226_spill] sm:$0xff] %v10492_v27  ;;  %v10501_v52 = vld [vmem:[#allocation8 + $0x830] sm:$0xff]  ;;  %v10504_v38 = vld [vmem:[#allocation8 + $0x838] sm:$0xff] }
 0x7c9   :  { %12849 = vst [vmem:[#allocation227_spill] sm:$0xff] %v10495_v9 }
 0x7ca   :  { %4154 = vmatpush.msra.mxu3 %v10489_v32  ;;  %4194 = vmatpush.msra.mxu1 %v10492_v27  ;;  %12850 = vst [vmem:[#allocation228_spill] sm:$0xff] %v10498_v42  ;;  %v10507_v32 = vld [vmem:[#allocation8 + $0x7d0] sm:$0xff]  ;;  %v10510_v27 = vld [vmem:[#allocation8 + $0x7d8] sm:$0xff] }
 0x7cb   :  { %12851 = vst [vmem:[#allocation229_spill] sm:$0xff] %v10501_v52 }
 0x7cc   :  { %4155 = vmatpush.msra.mxu3 %v10495_v9  ;;  %4195 = vmatpush.msra.mxu1 %v10498_v42  ;;  %12852 = vst [vmem:[#allocation230_spill] sm:$0xff] %v10504_v38  ;;  %v10513_v9 = vld [vmem:[#allocation8 + $0x770] sm:$0xff]  ;;  %v10516_v42 = vld [vmem:[#allocation8 + $0x778] sm:$0xff] }
 0x7cd   :  { %12853 = vst [vmem:[#allocation231_spill] sm:$0xff] %v10507_v32 }
 0x7ce   :  { %4156 = vmatpush.msra.mxu3 %v10501_v52  ;;  %4196 = vmatpush.msra.mxu1 %v10504_v38  ;;  %12854 = vst [vmem:[#allocation232_spill] sm:$0xff] %v10510_v27  ;;  %v10519_v52 = vld [vmem:[#allocation8 + $0x710] sm:$0xff]  ;;  %v10522_v38 = vld [vmem:[#allocation8 + $0x718] sm:$0xff] }
 0x7cf   :  { %12855 = vst [vmem:[#allocation233_spill] sm:$0xff] %v10513_v9 }
 0x7d0   :  { %4157 = vmatpush.msra.mxu3 %v10507_v32  ;;  %4197 = vmatpush.msra.mxu1 %v10510_v27  ;;  %12856 = vst [vmem:[#allocation234_spill] sm:$0xff] %v10516_v42  ;;  %v10525_v32 = vld [vmem:[#allocation8 + $0x6b0] sm:$0xff]  ;;  %v10528_v27 = vld [vmem:[#allocation8 + $0x6b8] sm:$0xff] }
 0x7d1   :  { %12857 = vst [vmem:[#allocation235_spill] sm:$0xff] %v10519_v52 }
 0x7d2   :  { %4158 = vmatpush.msra.mxu3 %v10513_v9  ;;  %4198 = vmatpush.msra.mxu1 %v10516_v42  ;;  %12858 = vst [vmem:[#allocation236_spill] sm:$0xff] %v10522_v38  ;;  %v10534_v42 = vld [vmem:[#allocation8 + $0x658] sm:$0xff] }
 0x7d3   :  { %12859 = vst [vmem:[#allocation237_spill] sm:$0xff] %v10525_v32 }
 0x7d4   :  { %4159 = vmatpush.msra.mxu3 %v10519_v52  ;;  %4199 = vmatpush.msra.mxu1 %v10522_v38  ;;  %12860 = vst [vmem:[#allocation238_spill] sm:$0xff] %v10528_v27 }
 0x7d5   :  { %v3803_v9 = vpop.f32.mrf.mxu1  ;;  %12861 = vst [vmem:[#allocation239_spill] sm:$0xff] %v10531_v50 }
 0x7d6   :  { %4160 = vmatpush.msra.mxu3 %v10525_v32  ;;  %4200 = vmatpush.msra.mxu1 %v10528_v27  ;;  %12862 = vst [vmem:[#allocation240_spill] sm:$0xff] %v10534_v42  ;;  %v3804_v38 = vadd.f32 %v3803_v9, %v3783_v37  ;;  %v3743_v32 = vpop.f32.mrf.mxu2  ;;  %v12882_v9 = vld [vmem:[#allocation37_spill] sm:$0xff] }
 0x7d8   :  { %4161 = vmatpush.msra.mxu3 %v10531_v50  ;;  %4201 = vmatpush.msra.mxu1 %v10534_v42  ;;  %v4240_v50 = vrot.slane %v3804_v38, 2  ;;  %v12884_v38 = vld [vmem:[#allocation152_spill] sm:$0xff] }
 0x7d9   :  { %4162 = vmatmul.f32.vlgmr.msra.gmra.mxu3 %v10051_v23  ;;  %4202 = vmatmul.f32.vlgmr.msra.gmra.mxu1 %v10051_v23 }
 0x7da   :  { %4298 = vmatpush.msrb.mxu3 %v10061_v5  ;;  %4338 = vmatpush.msrb.mxu1 %v10064_v62  ;;  %v4248_v23 = vadd.f32 %v4240_v50, %v4232_v0  ;;  %v4231_v5 = vld [vmem:[#allocation2 + $0x8] sm:$0xc0] }
 0x7db   :  { %v3763_v27 = vpop.f32.mrf.mxu3  ;;  %v4233_v0 = vld [vmem:[#allocation2 + $0x28] sm:$0xc0] }
 0x7dc   :  { %v3764_v52 = vadd.f32 %v3763_v27, %v3743_v32  ;;  %4299 = vmatpush.msrb.mxu3 %v10073_v25  ;;  %4339 = vmatpush.msrb.mxu1 %v10076_v58  ;;  %4833 = vtanh.f32 %v4248_v23  ;;  %v12880_v32 = vld [vmem:[#allocation150_spill] sm:$0xff]  ;;  %v12881_v27 = vld [vmem:[#allocation151_spill] sm:$0xff]  ;;  %v12885_v23 = vld [vmem:[#allocation153_spill] sm:$0xff] }
 0x7de   :  { %4300 = vmatpush.msrb.mxu3 %v10085_v13  ;;  %4340 = vmatpush.msrb.mxu1 %v10088_v29  ;;  %v4239_v42 = vrot.slane %v3764_v52, 2  ;;  %v3883_v25 = vpop.f32.mrf.mxu1  ;;  %v3823_v58 = vpop.f32.mrf.mxu2  ;;  %v12883_v52 = vld [vmem:[#allocation24_spill] sm:$0xff] }
 0x7df   :  { %v3863_v29 = vpop.f32.mrf.mxu0 }
 0x7e0   :  { %4301 = vmatpush.msrb.mxu3 %v10097_v59  ;;  %4341 = vmatpush.msrb.mxu1 %v10100_v14  ;;  %v4247_v62 = vadd.f32 %v4239_v42, %v4231_v5  ;;  %v3884_v59 = vadd.f32 %v3883_v25, %v3863_v29  ;;  %v12886_v5 = vld [vmem:[#allocation70_spill] sm:$0xff] }
 0x7e1   :  { %v12888_v25 = vld [vmem:[#allocation154_spill] sm:$0xff] }
 0x7e2   :  { %4302 = vmatpush.msrb.mxu3 %v10107_v60  ;;  %4342 = vmatpush.msrb.mxu1 %v10110_v61  ;;  %4835 = vtanh.f32 %v4247_v62  ;;  %v4242_v14 = vrot.slane %v3884_v59, 2  ;;  %v4234_v61 = vld [vmem:[#allocation2 + $0x38] sm:$0xc0]  ;;  %v12887_v62 = vld [vmem:[#allocation40_spill] sm:$0xff]  ;;  %v12891_v29 = vld [vmem:[#allocation74_spill] sm:$0xff] }
 0x7e3   :  { %v12893_v59 = vld [vmem:[#allocation157_spill] sm:$0xff] }
 0x7e4   :  { %v3843_v37 = vpop.f32.mrf.mxu3  ;;  %4303 = vmatpush.msrb.mxu3 %v10115_v55  ;;  %4343 = vmatpush.msrb.mxu1 %v10118_v15  ;;  %v4834_v55 = vpop.eup %4833  ;;  %v4250_v60 = vadd.f32 %v4242_v14, %v4234_v61  ;;  %v12897_v14 = vld [vmem:[#allocation159_spill] sm:$0xff]  ;;  %v12900_v61 = vld [vmem:[#allocation160_spill] sm:$0xff] }
 0x7e5   :  { %v3844_v13 = vadd.f32 %v3843_v37, %v3823_v58  ;;  %v12889_v58 = vld [vmem:[#allocation155_spill] sm:$0xff] }
 0x7e6   :  { %4304 = vmatpush.msrb.mxu3 %v10123_v22  ;;  %4344 = vmatpush.msrb.mxu1 %v10126_v34  ;;  %v4256_v22 = vmul.f32 %v4834_v55, %v7226_v4  ;;  %v12890_v37 = vld [vmem:[#allocation27_spill] sm:$0xff]  ;;  %v12898_v55 = vld [vmem:[#allocation78_spill] sm:$0xff] }
 0x7e7   :  { %v4241_v50 = vrot.slane %v3844_v13, 2  ;;  %v12892_v13 = vld [vmem:[#allocation156_spill] sm:$0xff] }
 0x7e8   :  { %4305 = vmatpush.msrb.mxu3 %v10131_v11  ;;  %4345 = vmatpush.msrb.mxu1 %v10134_v16  ;;  %v4836_v34 = vpop.eup %4835  ;;  %v4260_v16 = vadd.f32 %v4256_v22, %v7229_v30  ;;  %v12901_v22 = vld [vmem:[#allocation161_spill] sm:$0xff] }
 0x7e9   :  { %v4249_v42 = vadd.f32 %v4241_v50, %v4233_v0  ;;  %v4255_v15 = vmul.f32 %v4836_v34, %v11754_v46  ;;  %v12894_v50 = vld [vmem:[#allocation43_spill] sm:$0xff]  ;;  %v12895_v0 = vld [vmem:[#allocation30_spill] sm:$0xff] }
 0x7ea   :  { %4306 = vmatpush.msrb.mxu3 %v10139_v7  ;;  %4346 = vmatpush.msrb.mxu1 %v10142_v39  ;;  %v12863_v39 = vld [vmem:[#allocation102_spill] sm:$0xff] }
 0x7eb   :  { %4837 = vtanh.f32 %v4249_v42  ;;  %v12896_v42 = vld [vmem:[#allocation158_spill] sm:$0xff] }
 0x7ec   :  { %4307 = vmatpush.msrb.mxu3 %v10147_v35  ;;  %4347 = vmatpush.msrb.mxu1 %v10150_v6  ;;  %4839 = vtanh.f32 %v4250_v60  ;;  %v4264_v35 = vrot.slane %v12863_v39, 6  ;;  %v4259_v6 = vadd.f32 %v4255_v15, %v6883_v19  ;;  %v12899_v34 = vld [vmem:[#allocation46_spill] sm:$0xff]  ;;  %v12902_v60 = vld [vmem:[#allocation33_spill] sm:$0xff] }
 0x7ed   :  { %v12903_v15 = vld [vmem:[#allocation82_spill] sm:$0xff]  ;;  %v12907_v39 = vld [vmem:[#allocation165_spill] sm:$0xff] }
 0x7ee   :  { %4308 = vmatpush.msrb.mxu3 %v10155_v10  ;;  %4348 = vmatpush.msrb.mxu1 %v10158_v51  ;;  %v4266_v51 = vmul.f32 %v4264_v35, %v4260_v16  ;;  %v12905_v16 = vld [vmem:[#allocation163_spill] sm:$0xff]  ;;  %v12908_v35 = vld [vmem:[#allocation166_spill] sm:$0xff] }
 0x7f0   :  { %4309 = vmatpush.msrb.mxu3 %v10163_v20  ;;  %4349 = vmatpush.msrb.mxu1 %v10166_v28 }
 0x7f1   :  { %v4838_v11 = vpop.eup %4837 }
 0x7f2   :  { %v4257_v7 = vmul.f32 %v4838_v11, %v11755_v63  ;;  %4310 = vmatpush.msrb.mxu3 %v10171_v47  ;;  %4350 = vmatpush.msrb.mxu1 %v10174_v21  ;;  %v4840_v28 = vpop.eup %4839  ;;  %v12904_v11 = vld [vmem:[#allocation162_spill] sm:$0xff] }
 0x7f3   :  { %v4258_v21 = vmul.f32 %v4840_v28, %v6897_v49  ;;  %v12913_v28 = vld [vmem:[#allocation171_spill] sm:$0xff] }
 0x7f4   :  { %v4261_v10 = vadd.f32 %v4257_v7, %v11757_v18  ;;  %4311 = vmatpush.msrb.mxu3 %v10179_v2  ;;  %4351 = vmatpush.msrb.mxu1 %v10182_v8  ;;  %v12906_v7 = vld [vmem:[#allocation164_spill] sm:$0xff] }
 0x7f5   :  { %v4262_v2 = vadd.f32 %v4258_v21, %v6901_v45  ;;  %v12915_v21 = vld [vmem:[#allocation174_spill] sm:$0xff] }
 0x7f6   :  { %v4267_v20 = vmul.f32 %v4261_v10, %v4259_v6  ;;  %4312 = vmatpush.msrb.mxu3 %v10187_v53  ;;  %4352 = vmatpush.msrb.mxu1 %v10190_v48  ;;  %v12909_v6 = vld [vmem:[#allocation167_spill] sm:$0xff]  ;;  %v12910_v10 = vld [vmem:[#allocation168_spill] sm:$0xff] }
 0x7f8   :  { %v4268_v47 = vadd.f32 %v4267_v20, %v4266_v51  ;;  %4313 = vmatpush.msrb.mxu3 %v10195_v40  ;;  %4353 = vmatpush.msrb.mxu1 %v10198_v33  ;;  %v12866_v40 = vld [vmem:[#allocation142_spill] sm:$0xff]  ;;  %v12867_v33 = vld [vmem:[#allocation143_spill] sm:$0xff]  ;;  %v12911_v51 = vld [vmem:[#allocation169_spill] sm:$0xff] }
 0x7f9   :  { %v12912_v20 = vld [vmem:[#allocation170_spill] sm:$0xff] }
 0x7fa   :  { %4378 = vmatpush.msra.mxu3 %v10203_v54  ;;  %4418 = vmatpush.msra.mxu1 %v10206_v57  ;;  %4841 = vtanh.f32 %v4268_v47  ;;  %v12868_v54 = vld [vmem:[#allocation31_spill] sm:$0xff]  ;;  %v12871_v57 = vld [vmem:[#allocation145_spill] sm:$0xff] }
 0x7fb   :  { %v12914_v47 = vld [vmem:[#allocation173_spill] sm:$0xff] }
 0x7fc   :  { %4379 = vmatpush.msra.mxu3 %v10211_v31  ;;  %4419 = vmatpush.msra.mxu1 %v10214_v1  ;;  %v12872_v31 = vld [vmem:[#allocation62_spill] sm:$0xff] }
 0x7fd   :  { %v12873_v1 = vld [vmem:[#allocation34_spill] sm:$0xff] }
 0x7fe   :  { %4380 = vmatpush.msra.mxu3 %v10219_v36  ;;  %4420 = vmatpush.msra.mxu1 %v10222_v12  ;;  %v12864_v12 = vld [vmem:[#allocation140_spill] sm:$0xff]  ;;  %v12865_v36 = vld [vmem:[#allocation141_spill] sm:$0xff] }
 0x800   :  { %4381 = vmatpush.msra.mxu3 %v10227_v24  ;;  %4421 = vmatpush.msra.mxu1 %v10230_v43  ;;  %v4842_v8 = vpop.eup %4841  ;;  %v12874_v24 = vld [vmem:[#allocation146_spill] sm:$0xff]  ;;  %v12877_v43 = vld [vmem:[#allocation149_spill] sm:$0xff] }
 0x801   :  { %v4270_v53 = vmul.f32 %v4842_v8, %v4262_v2  ;;  %v12916_v2 = vld [vmem:[#allocation172_spill] sm:$0xff]  ;;  %v12917_v8 = vld [vmem:[#allocation175_spill] sm:$0xff] }
 0x802   :  { %4382 = vmatpush.msra.mxu3 %v10235_v56  ;;  %4422 = vmatpush.msra.mxu1 %v10238_v17  ;;  %v12878_v56 = vld [vmem:[#allocation21_spill] sm:$0xff]  ;;  %v12879_v17 = vld [vmem:[#allocation66_spill] sm:$0xff] }
 0x803   :  { %v10590_v48 = vrot.slane %v4270_v53, 6  ;;  %v12918_v53 = vld [vmem:[#allocation176_spill] sm:$0xff] }
 0x804   :  { %4383 = vmatpush.msra.mxu3 %v10243_v26  ;;  %4423 = vmatpush.msra.mxu1 %v10246_v41  ;;  %v12869_v26 = vld [vmem:[#allocation19_spill] sm:$0xff]  ;;  %v12870_v41 = vld [vmem:[#allocation144_spill] sm:$0xff] }
 0x805   :  { %4294 = vmatmul.f32.vlgmr.msra.gmra.mxu2 %v10590_v48  ;;  %4334 = vmatmul.f32.vlgmr.msra.gmra.mxu0 %v10590_v48 }
 0x806   :  { %4438 = vmatpush.msra.mxu2 %v12864_v12  ;;  %4478 = vmatpush.msra.mxu0 %v12865_v36  ;;  %v12919_v12 = vld [vmem:[#allocation177_spill] sm:$0xff]  ;;  %v12920_v36 = vld [vmem:[#allocation178_spill] sm:$0xff] }
 0x807   :  { %4384 = vmatpush.msra.mxu3 %v10251_v3  ;;  %4424 = vmatpush.msra.mxu1 %v10254_v44  ;;  %v12875_v3 = vld [vmem:[#allocation147_spill] sm:$0xff]  ;;  %v12876_v44 = vld [vmem:[#allocation148_spill] sm:$0xff] }
 0x808   :  { %4439 = vmatpush.msra.mxu2 %v12866_v40  ;;  %4479 = vmatpush.msra.mxu0 %v12867_v33  ;;  %v12921_v40 = vld [vmem:[#allocation179_spill] sm:$0xff]  ;;  %v12922_v33 = vld [vmem:[#allocation180_spill] sm:$0xff] }
 0x809   :  { %4385 = vmatpush.msra.mxu3 %v12868_v54  ;;  %4425 = vmatpush.msra.mxu1 %v12869_v26  ;;  %v12923_v54 = vld [vmem:[#allocation181_spill] sm:$0xff]  ;;  %v12924_v26 = vld [vmem:[#allocation183_spill] sm:$0xff] }
 0x80a   :  { %4440 = vmatpush.msra.mxu2 %v12870_v41  ;;  %4480 = vmatpush.msra.mxu0 %v12871_v57  ;;  %v12925_v41 = vld [vmem:[#allocation184_spill] sm:$0xff]  ;;  %v12926_v57 = vld [vmem:[#allocation185_spill] sm:$0xff] }
 0x80b   :  { %4386 = vmatpush.msra.mxu3 %v12872_v31  ;;  %4426 = vmatpush.msra.mxu1 %v12873_v1  ;;  %v12927_v31 = vld [vmem:[#allocation186_spill] sm:$0xff]  ;;  %v12928_v1 = vld [vmem:[#allocation187_spill] sm:$0xff] }
 0x80c   :  { %4441 = vmatpush.msra.mxu2 %v12874_v24  ;;  %4481 = vmatpush.msra.mxu0 %v12875_v3  ;;  %v12929_v24 = vld [vmem:[#allocation188_spill] sm:$0xff]  ;;  %v12930_v3 = vld [vmem:[#allocation189_spill] sm:$0xff] }
 0x80d   :  { %4374 = vmatmul.f32.vlgmr.msrb.gmra.mxu2 %v10590_v48  ;;  %4414 = vmatmul.f32.vlgmr.msrb.gmra.mxu0 %v10590_v48 }
 0x80e   :  { %4442 = vmatpush.msra.mxu2 %v12876_v44  ;;  %4482 = vmatpush.msra.mxu0 %v12877_v43  ;;  %v12931_v44 = vld [vmem:[#allocation190_spill] sm:$0xff]  ;;  %v12932_v43 = vld [vmem:[#allocation191_spill] sm:$0xff] }
 0x80f   :  { %4387 = vmatpush.msra.mxu3 %v12878_v56  ;;  %4427 = vmatpush.msra.mxu1 %v12879_v17  ;;  %v12933_v56 = vld [vmem:[#allocation192_spill] sm:$0xff]  ;;  %v12934_v17 = vld [vmem:[#allocation193_spill] sm:$0xff] }
 0x810   :  { %4443 = vmatpush.msra.mxu2 %v12880_v32  ;;  %4483 = vmatpush.msra.mxu0 %v12881_v27  ;;  %v12935_v32 = vld [vmem:[#allocation194_spill] sm:$0xff]  ;;  %v12936_v27 = vld [vmem:[#allocation195_spill] sm:$0xff] }
 0x811   :  { %4388 = vmatpush.msra.mxu3 %v12882_v9  ;;  %4428 = vmatpush.msra.mxu1 %v12883_v52  ;;  %v12937_v9 = vld [vmem:[#allocation196_spill] sm:$0xff]  ;;  %v3963_v52 = vpop.f32.mrf.mxu1 }
 0x812   :  { %4444 = vmatpush.msra.mxu2 %v12884_v38  ;;  %4484 = vmatpush.msra.mxu0 %v12885_v23  ;;  %v12938_v38 = vld [vmem:[#allocation197_spill] sm:$0xff]  ;;  %v12939_v23 = vld [vmem:[#allocation198_spill] sm:$0xff] }
 0x813   :  { %4389 = vmatpush.msra.mxu3 %v12886_v5  ;;  %4429 = vmatpush.msra.mxu1 %v12887_v62  ;;  %v3943_v5 = vpop.f32.mrf.mxu0  ;;  %v3923_v62 = vpop.f32.mrf.mxu3 }
 0x814   :  { %4445 = vmatpush.msra.mxu2 %v12888_v25  ;;  %4485 = vmatpush.msra.mxu0 %v12889_v58  ;;  %v12940_v25 = vld [vmem:[#allocation54_spill] sm:$0xff]  ;;  %v12941_v58 = vld [vmem:[#allocation17_spill] sm:$0xff] }
 0x815   :  { %4390 = vmatpush.msra.mxu3 %v12890_v37  ;;  %4430 = vmatpush.msra.mxu1 %v12891_v29  ;;  %v3903_v37 = vpop.f32.mrf.mxu2  ;;  %v12942_v29 = vld [vmem:[#allocation25_spill] sm:$0xff] }
 0x816   :  { %4446 = vmatpush.msra.mxu2 %v12892_v13  ;;  %4486 = vmatpush.msra.mxu0 %v12893_v59  ;;  %v12943_v13 = vld [vmem:[#allocation58_spill] sm:$0xff] }
 0x817   :  { %4391 = vmatpush.msra.mxu3 %v12894_v50  ;;  %4431 = vmatpush.msra.mxu1 %v12895_v0  ;;  %v12944_v59 = vld [vmem:[#allocation18_spill] sm:$0xff]  ;;  %v12945_v50 = vld [vmem:[#allocation28_spill] sm:$0xff] }
 0x818   :  { %4447 = vmatpush.msra.mxu2 %v12896_v42  ;;  %4487 = vmatpush.msra.mxu0 %v12897_v14 }
 0x819   :  { %4392 = vmatpush.msra.mxu3 %v12898_v55  ;;  %4432 = vmatpush.msra.mxu1 %v12899_v34  ;;  %v4043_v0 = vpop.f32.mrf.mxu1 }
 0x81a   :  { %4448 = vmatpush.msra.mxu2 %v12900_v61  ;;  %4488 = vmatpush.msra.mxu0 %v12901_v22 }
 0x81b   :  { %4393 = vmatpush.msra.mxu3 %v12902_v60  ;;  %4433 = vmatpush.msra.mxu1 %v12903_v15  ;;  %v4023_v42 = vpop.f32.mrf.mxu0 }
 0x81c   :  { %4449 = vmatpush.msra.mxu2 %v12904_v11  ;;  %4489 = vmatpush.msra.mxu0 %v12905_v16  ;;  %v4003_v14 = vpop.f32.mrf.mxu3  ;;  %v3964_v11 = vadd.f32 %v3963_v52, %v3943_v5 }
 0x81d   :  { %v3983_v55 = vpop.f32.mrf.mxu2 }
 0x81e   :  { %4450 = vmatpush.msra.mxu2 %v12906_v7  ;;  %4490 = vmatpush.msra.mxu0 %v12907_v39  ;;  %v3924_v7 = vadd.f32 %v3923_v62, %v3903_v37 }
 0x820   :  { %4451 = vmatpush.msra.mxu2 %v12908_v35  ;;  %4491 = vmatpush.msra.mxu0 %v12909_v6  ;;  %v12946_v6 = vld [vmem:[#allocation122_spill] sm:$0xff] }
 0x822   :  { %4452 = vmatpush.msra.mxu2 %v12910_v10  ;;  %4492 = vmatpush.msra.mxu0 %v12911_v51  ;;  %v12947_v51 = vld [vmem:[#allocation16_spill] sm:$0xff] }
 0x823   :  { %v4103_v61 = vpop.f32.mrf.mxu0 }
 0x824   :  { %4453 = vmatpush.msra.mxu2 %v12912_v20  ;;  %4493 = vmatpush.msra.mxu0 %v12913_v28 }
 0x825   :  { %4454 = vmatmul.f32.vlgmr.msra.gmra.mxu2 %v10590_v48  ;;  %4494 = vmatmul.f32.vlgmr.msra.gmra.mxu0 %v10590_v48  ;;  %v4063_v15 = vpop.f32.mrf.mxu2 }
 0x826   :  { %4518 = vmatpush.msrb.mxu2 %v12914_v47  ;;  %4558 = vmatpush.msrb.mxu0 %v12915_v21 }
 0x828   :  { %4519 = vmatpush.msrb.mxu2 %v12916_v2  ;;  %4559 = vmatpush.msrb.mxu0 %v12917_v8  ;;  %v4004_v2 = vadd.f32 %v4003_v14, %v3983_v55  ;;  %v12957_v14 = vld [vmem:[#allocation42_spill] sm:$0xff]  ;;  %v12958_v55 = vld [vmem:[#allocation61_spill] sm:$0xff] }
 0x82a   :  { %4520 = vmatpush.msrb.mxu2 %v12918_v53  ;;  %4560 = vmatpush.msrb.mxu0 %v12919_v12 }
 0x82b   :  { %v4183_v21 = vpop.f32.mrf.mxu0 }
 0x82c   :  { %4521 = vmatpush.msrb.mxu2 %v12920_v36  ;;  %4561 = vmatpush.msrb.mxu0 %v12921_v40  ;;  %v4044_v36 = vadd.f32 %v4043_v0, %v4023_v42  ;;  %v12948_v40 = vld [vmem:[#allocation50_spill] sm:$0xff]  ;;  %v12955_v0 = vld [vmem:[#allocation39_spill] sm:$0xff]  ;;  %v12956_v42 = vld [vmem:[#allocation57_spill] sm:$0xff] }
 0x82e   :  { %4522 = vmatpush.msrb.mxu2 %v12922_v33  ;;  %4562 = vmatpush.msrb.mxu0 %v12923_v54 }
 0x830   :  { %4523 = vmatpush.msrb.mxu2 %v12924_v26  ;;  %4563 = vmatpush.msrb.mxu0 %v12925_v41 }
 0x832   :  { %4524 = vmatpush.msrb.mxu2 %v12926_v57  ;;  %4564 = vmatpush.msrb.mxu0 %v12927_v31  ;;  %v12949_v31 = vld [vmem:[#allocation22_spill] sm:$0xff] }
 0x834   :  { %4525 = vmatpush.msrb.mxu2 %v12928_v1  ;;  %4565 = vmatpush.msrb.mxu0 %v12929_v24 }
 0x836   :  { %4526 = vmatpush.msrb.mxu2 %v12930_v3  ;;  %4566 = vmatpush.msrb.mxu0 %v12931_v44  ;;  %v4123_v34 = vpop.f32.mrf.mxu1 }
 0x837   :  { %v4124_v60 = vadd.f32 %v4123_v34, %v4103_v61  ;;  %v12959_v34 = vld [vmem:[#allocation45_spill] sm:$0xff] }
 0x838   :  { %4527 = vmatpush.msrb.mxu2 %v12932_v43  ;;  %4567 = vmatpush.msrb.mxu0 %v12933_v56  ;;  %v12960_v61 = vld [vmem:[#allocation65_spill] sm:$0xff] }
 0x839   :  { %v4207_v39 = vadd.f32 %v4124_v60, %v3964_v11  ;;  %v12962_v60 = vld [vmem:[#allocation69_spill] sm:$0xff]  ;;  %v12964_v11 = vld [vmem:[#allocation20_spill] sm:$0xff] }
 0x83a   :  { %4528 = vmatpush.msrb.mxu2 %v12934_v17  ;;  %4568 = vmatpush.msrb.mxu0 %v12935_v32  ;;  %v12950_v32 = vld [vmem:[#allocation182_spill] sm:$0xff] }
 0x83b   :  { %v4211_v10 = vadd.f32 %v4207_v39, %v12946_v6  ;;  %v12967_v39 = vld [vmem:[#allocation23_spill] sm:$0xff] }
 0x83c   :  { %4529 = vmatpush.msrb.mxu2 %v12936_v27  ;;  %4569 = vmatpush.msrb.mxu0 %v12937_v9  ;;  %v4083_v22 = vpop.f32.mrf.mxu3 }
 0x83d   :  { %v4084_v16 = vadd.f32 %v4083_v22, %v4063_v15  ;;  %4843 = vtanh.f32 %v4211_v10  ;;  %v12961_v22 = vld [vmem:[#allocation48_spill] sm:$0xff] }
 0x83e   :  { %4530 = vmatpush.msrb.mxu2 %v12938_v38  ;;  %4570 = vmatpush.msrb.mxu0 %v12939_v23  ;;  %v12963_v15 = vld [vmem:[#allocation52_spill] sm:$0xff] }
 0x83f   :  { %v4206_v35 = vadd.f32 %v4084_v16, %v3924_v7  ;;  %v12965_v16 = vld [vmem:[#allocation73_spill] sm:$0xff]  ;;  %v12966_v7 = vld [vmem:[#allocation56_spill] sm:$0xff] }
 0x840   :  { %4531 = vmatpush.msrb.mxu2 %v12940_v25  ;;  %4571 = vmatpush.msrb.mxu0 %v12941_v58  ;;  %v12969_v10 = vld [vmem:[#allocation60_spill] sm:$0xff] }
 0x841   :  { %v4210_v20 = vadd.f32 %v4206_v35, %v12947_v51  ;;  %v12968_v35 = vld [vmem:[#allocation77_spill] sm:$0xff] }
 0x842   :  { %4532 = vmatpush.msrb.mxu2 %v12942_v29  ;;  %4572 = vmatpush.msrb.mxu0 %v12943_v13  ;;  %v12951_v29 = vld [vmem:[#allocation49_spill] sm:$0xff]  ;;  %v12952_v13 = vld [vmem:[#allocation36_spill] sm:$0xff] }
 0x843   :  { %4845 = vtanh.f32 %v4210_v20  ;;  %v4844_v26 = vpop.eup %4843  ;;  %v12970_v20 = vld [vmem:[#allocation26_spill] sm:$0xff] }
 0x844   :  { %4533 = vmatpush.msrb.mxu2 %v12944_v59  ;;  %4573 = vmatpush.msrb.mxu0 %v12945_v50  ;;  %v4219_v57 = vmul.f32 %v4844_v26, %v7226_v4  ;;  %v12953_v59 = vld [vmem:[#allocation86_spill] sm:$0xff]  ;;  %v12954_v50 = vld [vmem:[#allocation53_spill] sm:$0xff]  ;;  %v12982_v26 = vld [vmem:[#allocation208_spill] sm:$0xff] }
 0x845   :  { %4534 = vmatmul.f32.vlgmr.msrb.gmra.mxu2 %v10590_v48  ;;  %4574 = vmatmul.f32.vlgmr.msrb.gmra.mxu0 %v10590_v48  ;;  %v4143_v48 = vpop.f32.mrf.mxu2 }
 0x846   :  { %v4223_v44 = vadd.f32 %v4219_v57, %v7229_v30  ;;  %v12984_v57 = vld [vmem:[#allocation210_spill] sm:$0xff] }
 0x848   :  { %v4226_v27 = vmul.f32 %v4223_v44, %v12950_v32  ;;  %v12988_v44 = vld [vmem:[#allocation214_spill] sm:$0xff] }
 0x849   :  { %v4846_v41 = vpop.eup %4845  ;;  %v12992_v32 = vld [vmem:[#allocation218_spill] sm:$0xff] }
 0x84a   :  { %v4218_v24 = vmul.f32 %v4846_v41, %v11754_v46  ;;  %v12983_v41 = vld [vmem:[#allocation209_spill] sm:$0xff] }
 0x84c   :  { %v4222_v56 = vadd.f32 %v4218_v24, %v6883_v19  ;;  %v12986_v24 = vld [vmem:[#allocation212_spill] sm:$0xff] }
 0x856   :  { %v4203_v28 = vpop.f32.mrf.mxu1 }
 0x857   :  { %v4204_v53 = vadd.f32 %v4203_v28, %v4183_v21  ;;  %v12971_v28 = vld [vmem:[#allocation81_spill] sm:$0xff]  ;;  %v12974_v21 = vld [vmem:[#allocation200_spill] sm:$0xff] }
 0x859   :  { %v4209_v54 = vadd.f32 %v4204_v53, %v4044_v36  ;;  %v12977_v53 = vld [vmem:[#allocation203_spill] sm:$0xff]  ;;  %v12979_v36 = vld [vmem:[#allocation205_spill] sm:$0xff] }
 0x85b   :  { %v4213_v1 = vadd.f32 %v4209_v54, %v12949_v31  ;;  %v12981_v54 = vld [vmem:[#allocation207_spill] sm:$0xff] }
 0x85c   :  { %v4163_v47 = vpop.f32.mrf.mxu3 }
 0x85d   :  { %v4164_v8 = vadd.f32 %v4163_v47, %v4143_v48  ;;  %v12972_v48 = vld [vmem:[#allocation64_spill] sm:$0xff]  ;;  %v12973_v47 = vld [vmem:[#allocation199_spill] sm:$0xff] }
 0x85f   :  { %v4208_v12 = vadd.f32 %v4164_v8, %v4004_v2  ;;  %v12975_v2 = vld [vmem:[#allocation201_spill] sm:$0xff]  ;;  %v12976_v8 = vld [vmem:[#allocation202_spill] sm:$0xff] }
 0x861   :  { %v4212_v33 = vadd.f32 %v4208_v12, %v12948_v40  ;;  %v12978_v12 = vld [vmem:[#allocation204_spill] sm:$0xff] }
 0x863   :  { %4847 = vtanh.f32 %v4212_v33  ;;  %v12980_v33 = vld [vmem:[#allocation206_spill] sm:$0xff] }
 0x864   :  { %4849 = vtanh.f32 %v4213_v1  ;;  %v12985_v1 = vld [vmem:[#allocation211_spill] sm:$0xff] }
 0x869   :  { %v4848_v3 = vpop.eup %4847 }
 0x86a   :  { %v4220_v43 = vmul.f32 %v4848_v3, %v11755_v63  ;;  %v4850_v52 = vpop.eup %4849  ;;  %v12987_v3 = vld [vmem:[#allocation213_spill] sm:$0xff] }
 0x86b   :  { %v4221_v23 = vmul.f32 %v4850_v52, %v6897_v49  ;;  %v12995_v52 = vld [vmem:[#allocation221_spill] sm:$0xff] }
 0x86c   :  { %v4224_v17 = vadd.f32 %v4220_v43, %v11757_v18  ;;  %v12989_v43 = vld [vmem:[#allocation215_spill] sm:$0xff] }
 0x86d   :  { %v4225_v5 = vadd.f32 %v4221_v23, %v6901_v45  ;;  %v12996_v23 = vld [vmem:[#allocation222_spill] sm:$0xff] }
 0x86e   :  { %v4227_v9 = vmul.f32 %v4224_v17, %v4222_v56  ;;  %v12990_v56 = vld [vmem:[#allocation216_spill] sm:$0xff]  ;;  %v12991_v17 = vld [vmem:[#allocation217_spill] sm:$0xff] }
 0x870   :  { %v10697_v38 = vadd.f32 %v4227_v9, %v4226_v27  ;;  %v12993_v27 = vld [vmem:[#allocation219_spill] sm:$0xff]  ;;  %v12994_v9 = vld [vmem:[#allocation220_spill] sm:$0xff] }
 0x872   :  { %4851 = vtanh.f32 %v10697_v38 }
 0x878   :  { %v4852_v62 = vpop.eup %4851 }
 0x879   :  { %v4230_v25 = vmul.f32 %v4852_v62, %v4225_v5  ;;  %v12997_v5 = vld [vmem:[#allocation223_spill] sm:$0xff]  ;;  %v12998_v62 = vld [vmem:[#allocation224_spill] sm:$0xff] }
 0x87b   :  { %v4272_v58 = vrot.slane %v4230_v25, 2  ;;  %v12999_v25 = vld [vmem:[#allocation225_spill] sm:$0xff] }
 0x87d   :  { %v10702_v37 = vrot.slane %v4272_v58, 6  ;;  %v13000_v58 = vld [vmem:[#allocation226_spill] sm:$0xff] }
 0x87f   :  { %4314 = vmatmul.f32.vlgmr.msrb.gmra.mxu3 %v10702_v37  ;;  %4354 = vmatmul.f32.vlgmr.msrb.gmra.mxu1 %v10702_v37 }
 0x880   :  { %4458 = vmatpush.msrb.mxu3 %v12951_v29  ;;  %4498 = vmatpush.msrb.mxu1 %v12952_v13  ;;  %v13001_v29 = vld [vmem:[#allocation227_spill] sm:$0xff]  ;;  %v13002_v13 = vld [vmem:[#allocation228_spill] sm:$0xff] }
 0x882   :  { %4459 = vmatpush.msrb.mxu3 %v12953_v59  ;;  %4499 = vmatpush.msrb.mxu1 %v12954_v50  ;;  %v13003_v59 = vld [vmem:[#allocation229_spill] sm:$0xff]  ;;  %v13004_v50 = vld [vmem:[#allocation230_spill] sm:$0xff] }
 0x884   :  { %4460 = vmatpush.msrb.mxu3 %v12955_v0  ;;  %4500 = vmatpush.msrb.mxu1 %v12956_v42  ;;  %v13005_v0 = vld [vmem:[#allocation231_spill] sm:$0xff]  ;;  %v13006_v42 = vld [vmem:[#allocation232_spill] sm:$0xff] }
 0x886   :  { %4461 = vmatpush.msrb.mxu3 %v12957_v14  ;;  %4501 = vmatpush.msrb.mxu1 %v12958_v55  ;;  %v13007_v14 = vld [vmem:[#allocation233_spill] sm:$0xff]  ;;  %v13008_v55 = vld [vmem:[#allocation234_spill] sm:$0xff] }
 0x887   :  { %4394 = vmatmul.f32.vlgmr.msra.gmra.mxu3 %v10702_v37  ;;  %4434 = vmatmul.f32.vlgmr.msra.gmra.mxu1 %v10702_v37 }
 0x888   :  { %4462 = vmatpush.msrb.mxu3 %v12959_v34  ;;  %4502 = vmatpush.msrb.mxu1 %v12960_v61  ;;  %v13009_v34 = vld [vmem:[#allocation235_spill] sm:$0xff]  ;;  %v13010_v61 = vld [vmem:[#allocation236_spill] sm:$0xff] }
 0x88a   :  { %4463 = vmatpush.msrb.mxu3 %v12961_v22  ;;  %4503 = vmatpush.msrb.mxu1 %v12962_v60  ;;  %v13011_v22 = vld [vmem:[#allocation237_spill] sm:$0xff]  ;;  %v13012_v60 = vld [vmem:[#allocation238_spill] sm:$0xff] }
 0x88c   :  { %4464 = vmatpush.msrb.mxu3 %v12963_v15  ;;  %4504 = vmatpush.msrb.mxu1 %v12964_v11  ;;  %v13013_v15 = vld [vmem:[#allocation239_spill] sm:$0xff]  ;;  %v13014_v11 = vld [vmem:[#allocation240_spill] sm:$0xff] }
 0x88e   :  { %4465 = vmatpush.msrb.mxu3 %v12965_v16  ;;  %4505 = vmatpush.msrb.mxu1 %v12966_v7  ;;  %v4638_v16 = vld [vmem:[%s10844_s4 + $0x78] sm:$0xff] }
 0x88f   :  { %4641 = vmatpush.msra.mxu2 %v4638_v16 }
 0x890   :  { %4466 = vmatpush.msrb.mxu3 %v12967_v39  ;;  %4506 = vmatpush.msrb.mxu1 %v12968_v35  ;;  %v4637_v39 = vld [vmem:[%s10844_s4 + $0x70] sm:$0xff]  ;;  %v4335_v35 = vpop.f32.mrf.mxu0 }
 0x891   :  { %4642 = vmatpush.msra.mxu2 %v4637_v39 }
 0x892   :  { %4467 = vmatpush.msrb.mxu3 %v12969_v10  ;;  %4507 = vmatpush.msrb.mxu1 %v12970_v20  ;;  %v4636_v20 = vld [vmem:[%s10844_s4 + $0x68] sm:$0xff] }
 0x893   :  { %4643 = vmatpush.msra.mxu2 %v4636_v20 }
 0x894   :  { %4468 = vmatpush.msrb.mxu3 %v12971_v28  ;;  %4508 = vmatpush.msrb.mxu1 %v12972_v48  ;;  %v4295_v28 = vpop.f32.mrf.mxu2  ;;  %v4634_v48 = vld [vmem:[%s10844_s4 + $0x58] sm:$0xff] }
 0x896   :  { %4469 = vmatpush.msrb.mxu3 %v12973_v47  ;;  %4509 = vmatpush.msrb.mxu1 %v12974_v21  ;;  %v4633_v47 = vld [vmem:[%s10844_s4 + $0x50] sm:$0xff] }
 0x898   :  { %4470 = vmatpush.msrb.mxu3 %v12975_v2  ;;  %4510 = vmatpush.msrb.mxu1 %v12976_v8  ;;  %v4632_v2 = vld [vmem:[%s10844_s4 + $0x48] sm:$0xff]  ;;  %v4415_v8 = vpop.f32.mrf.mxu0 }
 0x89a   :  { %4471 = vmatpush.msrb.mxu3 %v12977_v53  ;;  %4511 = vmatpush.msrb.mxu1 %v12978_v12  ;;  %v4631_v12 = vld [vmem:[%s10844_s4 + $0x40] sm:$0xff] }
 0x89c   :  { %4472 = vmatpush.msrb.mxu3 %v12979_v36  ;;  %4512 = vmatpush.msrb.mxu1 %v12980_v33  ;;  %v4375_v36 = vpop.f32.mrf.mxu2  ;;  %v4630_v33 = vld [vmem:[%s10844_s4 + $0x38] sm:$0xff] }
 0x89e   :  { %4473 = vmatpush.msrb.mxu3 %v12981_v54  ;;  %4513 = vmatpush.msrb.mxu1 %v12982_v26  ;;  %v4629_v54 = vld [vmem:[%s10844_s4 + $0x30] sm:$0xff] }
 0x89f   :  { %4474 = vmatmul.f32.vlgmr.msrb.gmra.mxu3 %v10702_v37  ;;  %4514 = vmatmul.f32.vlgmr.msrb.gmra.mxu1 %v10702_v37 }
 0x8a0   :  { %4538 = vmatpush.msra.mxu3 %v12983_v41  ;;  %4578 = vmatpush.msra.mxu1 %v12984_v57  ;;  %v4628_v41 = vld [vmem:[%s10844_s4 + $0x28] sm:$0xff] }
 0x8a2   :  { %4539 = vmatpush.msra.mxu3 %v12985_v1  ;;  %4579 = vmatpush.msra.mxu1 %v12986_v24  ;;  %v4495_v57 = vpop.f32.mrf.mxu0 }
 0x8a4   :  { %4540 = vmatpush.msra.mxu3 %v12987_v3  ;;  %4580 = vmatpush.msra.mxu1 %v12988_v44  ;;  %v4627_v3 = vld [vmem:[%s10844_s4 + $0x20] sm:$0xff] }
 0x8a6   :  { %4541 = vmatpush.msra.mxu3 %v12989_v43  ;;  %4581 = vmatpush.msra.mxu1 %v12990_v56  ;;  %v4626_v43 = vld [vmem:[%s10844_s4 + $0x18] sm:$0xff] }
 0x8a8   :  { %4542 = vmatpush.msra.mxu3 %v12991_v17  ;;  %4582 = vmatpush.msra.mxu1 %v12992_v32  ;;  %v4455_v44 = vpop.f32.mrf.mxu2  ;;  %v4625_v32 = vld [vmem:[%s10844_s4 + $0x10] sm:$0xff] }
 0x8aa   :  { %4543 = vmatpush.msra.mxu3 %v12993_v27  ;;  %4583 = vmatpush.msra.mxu1 %v12994_v9 }
 0x8ac   :  { %4544 = vmatpush.msra.mxu3 %v12995_v52  ;;  %4584 = vmatpush.msra.mxu1 %v12996_v23  ;;  %v4624_v52 = vld [vmem:[%s10844_s4 + $0x8] sm:$0xff] }
 0x8ae   :  { %4545 = vmatpush.msra.mxu3 %v12997_v5  ;;  %4585 = vmatpush.msra.mxu1 %v12998_v62  ;;  %v4623_v5 = vld [vmem:[%s10844_s4] sm:$0xff] }
 0x8b0   :  { %4546 = vmatpush.msra.mxu3 %v12999_v25  ;;  %4586 = vmatpush.msra.mxu1 %v13000_v58 }
 0x8b2   :  { %4547 = vmatpush.msra.mxu3 %v13001_v29  ;;  %4587 = vmatpush.msra.mxu1 %v13002_v13 }
 0x8b4   :  { %4548 = vmatpush.msra.mxu3 %v13003_v59  ;;  %4588 = vmatpush.msra.mxu1 %v13004_v50 }
 0x8b6   :  { %4549 = vmatpush.msra.mxu3 %v13005_v0  ;;  %4589 = vmatpush.msra.mxu1 %v13006_v42 }
 0x8b8   :  { %4550 = vmatpush.msra.mxu3 %v13007_v14  ;;  %4590 = vmatpush.msra.mxu1 %v13008_v55 }
 0x8ba   :  { %4551 = vmatpush.msra.mxu3 %v13009_v34  ;;  %4591 = vmatpush.msra.mxu1 %v13010_v61 }
 0x8bc   :  { %4552 = vmatpush.msra.mxu3 %v13011_v22  ;;  %4592 = vmatpush.msra.mxu1 %v13012_v60 }
 0x8be   :  { %4553 = vmatpush.msra.mxu3 %v13013_v15  ;;  %4593 = vmatpush.msra.mxu1 %v13014_v11 }
 0x8bf   :  { %4554 = vmatmul.f32.vlgmr.msra.gmra.mxu3 %v10702_v37  ;;  %4594 = vmatmul.f32.vlgmr.msra.gmra.mxu1 %v10702_v37  ;;  %v4635_v37 = vld [vmem:[%s10844_s4 + $0x60] sm:$0xff]  ;;  %s6455_s4 = smov [#allocation11]  }
 0x8c0   :  { %4644 = vmatpush.msra.mxu2 %v4635_v37  ;;  %s4668_s18 = sshll.u32 %s6455_s4, 4  ;;  %s4669_s18 = int_to_ptr.vmem [resolvable:$true] %s4668_s18 }
 0x8c2   :  { %4645 = vmatpush.msra.mxu2 %v4634_v48  ;;  %v4575_v59 = vpop.f32.mrf.mxu0 }
 0x8c4   :  { %4646 = vmatpush.msra.mxu2 %v4633_v47 }
 0x8c6   :  { %4647 = vmatpush.msra.mxu2 %v4632_v2 }
 0x8c8   :  { %4648 = vmatpush.msra.mxu2 %v4631_v12  ;;  %v4535_v29 = vpop.f32.mrf.mxu2 }
 0x8ca   :  { %4649 = vmatpush.msra.mxu2 %v4630_v33 }
 0x8cc   :  { %4650 = vmatpush.msra.mxu2 %v4629_v54 }
 0x8ce   :  { %4651 = vmatpush.msra.mxu2 %v4628_v41 }
 0x8d0   :  { %4652 = vmatpush.msra.mxu2 %v4627_v3 }
 0x8d2   :  { %4653 = vmatpush.msra.mxu2 %v4626_v43 }
 0x8d4   :  { %4654 = vmatpush.msra.mxu2 %v4625_v32 }
 0x8d6   :  { %4655 = vmatpush.msra.mxu2 %v4624_v52 }
 0x8d8   :  { %4656 = vmatpush.msra.mxu2 %v4623_v5 }
 0x8fc   :  { %v4355_v7 = vpop.f32.mrf.mxu1 }
 0x8fd   :  { %v4356_v56 = vadd.f32 %v4355_v7, %v4335_v35 }
 0x902   :  { %v4315_v10 = vpop.f32.mrf.mxu3 }
 0x903   :  { %v4316_v27 = vadd.f32 %v4315_v10, %v4295_v28 }
 0x904   :  { %v4435_v21 = vpop.f32.mrf.mxu1 }
 0x905   :  { %v4436_v55 = vadd.f32 %v4435_v21, %v4415_v8 }
 0x90a   :  { %v4395_v53 = vpop.f32.mrf.mxu3 }
 0x90b   :  { %v4396_v50 = vadd.f32 %v4395_v53, %v4375_v36 }
 0x91c   :  { %v4515_v26 = vpop.f32.mrf.mxu1 }
 0x91d   :  { %v4516_v24 = vadd.f32 %v4515_v26, %v4495_v57 }
 0x91f   :  { %v4599_v9 = vadd.f32 %v4516_v24, %v4356_v56 }
 0x921   :  { %v4603_v62 = vadd.f32 %v4599_v9, %v12946_v6 }
 0x922   :  { %v4475_v1 = vpop.f32.mrf.mxu3 }
 0x923   :  { %v4476_v17 = vadd.f32 %v4475_v1, %v4455_v44  ;;  %4853 = vtanh.f32 %v4603_v62 }
 0x925   :  { %v4598_v23 = vadd.f32 %v4476_v17, %v4316_v27 }
 0x927   :  { %v4602_v25 = vadd.f32 %v4598_v23, %v12947_v51 }
 0x929   :  { %4855 = vtanh.f32 %v4602_v25  ;;  %v4854_v22 = vpop.eup %4853 }
 0x92a   :  { %v4611_v60 = vmul.f32 %v4854_v22, %v7226_v4 }
 0x92c   :  { %v4615_v16 = vadd.f32 %v4611_v60, %v7229_v30  ;;  %v4706_v30 = vld [vmem:[#allocation9 + $0x1] ss:$0 sm:$0xff] }
 0x92e   :  { %v4618_v35 = vmul.f32 %v4615_v16, %v10697_v38 }
 0x92f   :  { %v4856_v6 = vpop.eup %4855 }
 0x930   :  { %v4610_v15 = vmul.f32 %v4856_v6, %v11754_v46 }
 0x932   :  { %v4614_v39 = vadd.f32 %v4610_v15, %v6883_v19 }
 0x93c   :  { %v4595_v58 = vpop.f32.mrf.mxu1 }
 0x93d   :  { %v4596_v42 = vadd.f32 %v4595_v58, %v4575_v59 }
 0x93f   :  { %v4601_v61 = vadd.f32 %v4596_v42, %v4436_v55 }
 0x941   :  { %v4605_v51 = vadd.f32 %v4601_v61, %v12949_v31 }
 0x942   :  { %v4555_v13 = vpop.f32.mrf.mxu3 }
 0x943   :  { %v4556_v0 = vadd.f32 %v4555_v13, %v4535_v29 }
 0x945   :  { %v4600_v14 = vadd.f32 %v4556_v0, %v4396_v50 }
 0x947   :  { %v4604_v34 = vadd.f32 %v4600_v14, %v12948_v40 }
 0x949   :  { %4857 = vtanh.f32 %v4604_v34 }
 0x94a   :  { %4859 = vtanh.f32 %v4605_v51 }
 0x94f   :  { %v4858_v11 = vpop.eup %4857 }
 0x950   :  { %v4612_v7 = vmul.f32 %v4858_v11, %v11755_v63  ;;  %v4860_v20 = vpop.eup %4859 }
 0x951   :  { %v4613_v4 = vmul.f32 %v4860_v20, %v6897_v49 }
 0x952   :  { %v4616_v40 = vadd.f32 %v4612_v7, %v11757_v18 }
 0x953   :  { %v4617_v46 = vadd.f32 %v4613_v4, %v6901_v45 }
 0x954   :  { %v4619_v10 = vmul.f32 %v4616_v40, %v4614_v39 }
 0x956   :  { %v4620_v28 = vadd.f32 %v4619_v10, %v4618_v35 }
 0x958   :  { %4861 = vtanh.f32 %v4620_v28 }
 0x95e   :  { %v4862_v31 = vpop.eup %4861 }
 0x95f   :  { %v4622_v37 = vmul.f32 %v4862_v31, %v4617_v46 }
 0x961   :  { %4657 = vmatmul.f32.vlgmr.msra.gmra.mxu2 %v4622_v37 }
 0x9e4   :  { %v4658_v19 = vpop.f32.mrf.mxu2 }
 0x9e5   :  { %v4659_v63 = vadd.f32 %v4706_v30, %v4658_v19 }
 0x9e7   :  { %4662 = vst.msk [vmem:[#allocation11] sm:$0x3] %vm4661_vm2, %v4659_v63 }
 0x9e8   :  { %4673 = dma.vmem_to_hbm [thread:$0]  %s4669_s18, 32, %s4671_s21, [#allocation5]  }
 0x9e9   :  { %6442 = dma.done.wait [#allocation5], 32  }
 0x9ea   :  { %6443 = vsyncadd [#allocation5], 4294967264 }
 0x9eb   :  { %4678 = vsyncpa [#allocation4], 1 }
 0x9ec   :  { %4679 = vsyncpa [#allocation7], 1 }
 0x9ed   :  { %4680 = vsyncpa [#allocation10], 1 }
 0x9ee   :  { %4681 = vsyncpa [#allocation5], 1 }

</bundles_post_ra>
